<compile_context>
chip_gen: v7x
topology: tpu7x:2x2x1
jax: 0.10.0
libtpu: 0.0.40
codegen_flags: <defaults>
</compile_context>

<pallas_src>
import functools

import jax
import jax.numpy as jnp
from jax.experimental import pallas as pl
from jax.experimental.pallas import tpu as pltpu


def _round_up(x, m):
    return (x + m - 1) // m * m


# ---------------------------------------------------------------------------
# XLA-side helpers (each is ~1x activation-sized data movement, fused by XLA).
# ---------------------------------------------------------------------------
def _space_to_depth(x_nhwc, pad):
    """Zero-pad H/W by `pad`, fold the stride-2 phase into channels.

    Returns (N, Hp/2, Wp/2, 4*C) with channel order (ph, pw, c), i.e.
    out[n, i, j, ph*2C + pw*C + c] == x_padded[n, 2i+ph, 2j+pw, c].
    """
    n, h, w, c = x_nhwc.shape
    assert h % 2 == 0 and w % 2 == 0, (h, w)
    xp = jnp.pad(x_nhwc, ((0, 0), (pad, pad), (pad, pad), (0, 0)))
    hp, wp = h + 2 * pad, w + 2 * pad
    xs = xp.reshape(n, hp // 2, 2, wp // 2, 2, c)
    xs = xs.transpose(0, 1, 3, 2, 4, 5)            # (n, i, j, ph, pw, c)
    return xs.reshape(n, hp // 2, wp // 2, 4 * c)


def _prep_conv_weight(w, scale):
    """(Cout, Cin, 4, 4) torch conv weight -> (4, 4*Cin, Cout).

    Leading axis indexes the 2x2 space-to-depth taps t = 2*dh + dw, middle
    axis is ordered (ph, pw, cin) to match _space_to_depth; per-channel BN
    scale is folded into the Cout columns.
    """
    cout, cin = w.shape[0], w.shape[1]
    wt = w.transpose(2, 3, 1, 0)                   # (kh, kw, cin, cout)
    wt = wt.reshape(2, 2, 2, 2, cin, cout)         # (dh, ph, dw, pw, cin, cout)
    wt = wt.transpose(0, 2, 1, 3, 4, 5)            # (dh, dw, ph, pw, cin, cout)
    wt = wt.reshape(4, 4 * cin, cout)
    return wt * scale[None, None, :]


def _sublane(dtype):
    return 16 if jnp.dtype(dtype) == jnp.dtype(jnp.bfloat16) else 8


def _padded_block_bytes(shape, dtype):
    """VMEM footprint of one block, accounting for (sublane, lane) tiling."""
    lane = _round_up(shape[-1], 128)
    sub = _round_up(shape[-2], _sublane(dtype)) if len(shape) >= 2 else 1
    lead = 1
    for d in shape[:-2]:
        lead *= d
    return lead * sub * lane * jnp.dtype(dtype).itemsize


def _vmem_limit(blocks):
    """2x (double-buffered pipeline blocks) + headroom for in-kernel f32
    accumulator / sliced temporaries; clamped to a v7x-safe cap."""
    total = sum(_padded_block_bytes(s, d) for s, d in blocks)
    return int(min(max(2 * total + (8 << 20), 16 << 20), 48 << 20))


# ---------------------------------------------------------------------------
# Kernel: Conv2d(4x4, s=2, p=1, bias-free) + folded-BN bias + LeakyReLU(0.2),
# one batch element per grid step, 4 space-to-depth taps accumulated in f32.
# ---------------------------------------------------------------------------
def _conv4x4s2_lrelu_kernel(x_ref, w_ref, b_ref, o_ref, *, ho, wo):
    x = x_ref[0]                                   # (ho+1, wo+1, 4*Cin) bf16
    c4 = x.shape[-1]
    cout = w_ref.shape[-1]
    acc = jnp.zeros((ho, wo, cout), jnp.float32)
    for dh in range(2):
        for dw in range(2):
            xs = x[dh:dh + ho, dw:dw + wo, :]      # (ho, wo, c4)
            wt = w_ref[2 * dh + dw]                # (c4, cout) bf16
            wb = jnp.broadcast_to(wt[None, :, :], (ho, c4, cout))
            # batched-over-ho MXU matmul: (wo, c4) x (c4, cout) per row.
            acc = acc + jax.lax.dot_general(
                xs, wb,
                dimension_numbers=(((2,), (1,)), ((0,), (0,))),
                preferred_element_type=jnp.float32)
    y = acc + b_ref[...]                           # (1, 1, cout) broadcasts, f32
    y = jnp.where(y >= 0.0, y, 0.2 * y)            # LeakyReLU(0.2)
    o_ref[0] = y.astype(o_ref.dtype)               # bf16 store


# ---------------------------------------------------------------------------
# Kernel: last conv block fused with the final Conv2d(Cout=1, 4x4 valid) +
# Sigmoid.  The (4, 4, Cout) activation never leaves VMEM.
# ---------------------------------------------------------------------------
def _conv4x4s2_lrelu_final_kernel(x_ref, w_ref, b_ref, wf_ref, o_ref, *, ho, wo):
    x = x_ref[0]                                   # (ho+1, wo+1, c4) bf16
    c4 = x.shape[-1]
    cout = w_ref.shape[-1]
    acc = jnp.zeros((ho, wo, cout), jnp.float32)
    for dh in range(2):
        for dw in range(2):
            xs = x[dh:dh + ho, dw:dw + wo, :]
            wb = jnp.broadcast_to(w_ref[2 * dh + dw][None, :, :], (ho, c4, cout))
            acc = acc + jax.lax.dot_general(
                xs, wb,
                dimension_numbers=(((2,), (1,)), ((0,), (0,))),
                preferred_element_type=jnp.float32)
    y = acc + b_ref[...]
    y = jnp.where(y >= 0.0, y, 0.2 * y)
    # Final Conv2d(Cout=1) over the full 4x4 window == weighted full reduction.
    s = jnp.sum(y * wf_ref[...], axis=(0, 1, 2), keepdims=True)     # (1, 1, 1)
    sb = jnp.broadcast_to(s, o_ref.shape)                           # (1, 1, 128)
    # Numerically stable sigmoid.
    o_ref[...] = jnp.where(sb >= 0.0,
                           1.0 / (1.0 + jnp.exp(-sb)),
                           jnp.exp(sb) / (1.0 + jnp.exp(sb)))


# ---------------------------------------------------------------------------
# Pallas-call wrappers.
# ---------------------------------------------------------------------------
def conv4x4s2_bn_lrelu(x_nhwc, w_taps, bias):
    """One DCGAN 'Conv2d(4,2,1,bias=False) [+ BN(folded)] + LeakyReLU' layer."""
    n = x_nhwc.shape[0]
    xs = _space_to_depth(x_nhwc, 1)                # (N, ho+1, wo+1, 4*Cin) bf16
    _, ho1, wo1, c4 = xs.shape
    ho, wo = ho1 - 1, wo1 - 1
    cout = w_taps.shape[-1]

    limit = _vmem_limit([((1, ho1, wo1, c4), jnp.bfloat16),
                         ((4, c4, cout), jnp.bfloat16),
                         ((1, 1, cout), jnp.float32),
                         ((1, ho, wo, cout), jnp.bfloat16)])

    return pl.pallas_call(
        functools.partial(_conv4x4s2_lrelu_kernel, ho=ho, wo=wo),
        out_shape=jax.ShapeDtypeStruct((n, ho, wo, cout), jnp.bfloat16),
        grid_spec=pltpu.PrefetchScalarGridSpec(
            num_scalar_prefetch=0,
            grid=(n,),
            in_specs=[
                pl.BlockSpec((1, ho1, wo1, c4), lambda i: (i, 0, 0, 0)),
                pl.BlockSpec((4, c4, cout), lambda i: (0, 0, 0)),
                pl.BlockSpec((1, 1, cout), lambda i: (0, 0, 0)),
            ],
            out_specs=pl.BlockSpec((1, ho, wo, cout), lambda i: (i, 0, 0, 0)),
        ),
        compiler_params=pltpu.CompilerParams(
            dimension_semantics=("parallel",),
            vmem_limit_bytes=limit,
        ),
    )(xs, w_taps, bias)


def conv4x4s2_bn_lrelu_final(x_nhwc, w_taps, bias, w_final):
    """Last conv block + fused final Conv2d(Cout=1, 4x4 valid) + Sigmoid."""
    n = x_nhwc.shape[0]
    xs = _space_to_depth(x_nhwc, 1)
    _, ho1, wo1, c4 = xs.shape
    ho, wo = ho1 - 1, wo1 - 1
    cout = w_taps.shape[-1]
    assert (ho, wo) == (4, 4), (ho, wo)            # DCGAN final receptive field
    assert w_final.shape == (ho, wo, cout), w_final.shape

    limit = _vmem_limit([((1, ho1, wo1, c4), jnp.bfloat16),
                         ((4, c4, cout), jnp.bfloat16),
                         ((1, 1, cout), jnp.float32),
                         ((ho, wo, cout), jnp.float32),
                         ((1, 1, 128), jnp.float32)])

    out = pl.pallas_call(
        functools.partial(_conv4x4s2_lrelu_final_kernel, ho=ho, wo=wo),
        out_shape=jax.ShapeDtypeStruct((n, 1, 128), jnp.float32),
        grid_spec=pltpu.PrefetchScalarGridSpec(
            num_scalar_prefetch=0,
            grid=(n,),
            in_specs=[
                pl.BlockSpec((1, ho1, wo1, c4), lambda i: (i, 0, 0, 0)),
                pl.BlockSpec((4, c4, cout), lambda i: (0, 0, 0)),
                pl.BlockSpec((1, 1, cout), lambda i: (0, 0, 0)),
                pl.BlockSpec((ho, wo, cout), lambda i: (0, 0, 0)),
            ],
            out_specs=pl.BlockSpec((1, 1, 128), lambda i: (i, 0, 0)),
        ),
        compiler_params=pltpu.CompilerParams(
            dimension_semantics=("parallel",),
            vmem_limit_bytes=limit,
        ),
    )(xs, w_taps, bias, w_final)
    return out[:, 0, 0]                            # (N,)


# ---------------------------------------------------------------------------
# Parameters (deterministic) and forward pass.
# ---------------------------------------------------------------------------
def make_discriminator_params(key, nc, ndf):
    """Deterministic parameters for the 5 conv layers.

    BatchNorm is folded (inference mode, init running stats mean=0/var=1)
    into a per-channel weight scale + bias.  Weights are scaled ~1/sqrt(fan_in)
    so activations stay O(1) and the numerical check against the XLA
    reference is meaningful.
    """
    eps = 1e-5
    cfg = [
        (nc,      ndf,     False),
        (ndf,     ndf * 2, True),
        (ndf * 2, ndf * 4, True),
        (ndf * 4, ndf * 8, True),
    ]
    params = {"layers": [], "raw": []}
    for i, (cin, cout, has_bn) in enumerate(cfg):
        kw, kg, kb = jax.random.split(jax.random.fold_in(key, i), 3)
        std = 1.0 / (cin * 16) ** 0.5
        w = std * jax.random.normal(kw, (cout, cin, 4, 4), jnp.float32)
        running_mean = jnp.zeros((cout,), jnp.float32)
        running_var = jnp.ones((cout,), jnp.float32)
        if has_bn:
            gamma = 1.0 + 0.1 * jax.random.normal(kg, (cout,), jnp.float32)
            beta = 0.1 * jax.random.normal(kb, (cout,), jnp.float32)
            scale = gamma / jnp.sqrt(running_var + eps)
            bias = beta - running_mean * scale
        else:
            scale = jnp.ones((cout,), jnp.float32)
            bias = jnp.zeros((cout,), jnp.float32)
        w_taps = _prep_conv_weight(w, scale).astype(jnp.bfloat16)
        params["layers"].append(dict(w_taps=w_taps,
                                     bias=bias.reshape(1, 1, cout)))
        params["raw"].append(dict(w=w, scale=scale, bias=bias))
    # Final Conv2d(ndf*8 -> 1, 4x4, stride 1, no pad, no bias).
    kf = jax.random.fold_in(key, 99)
    cin_f = ndf * 8
    wf = (1.0 / (cin_f * 16) ** 0.5) * jax.random.normal(
        kf, (1, cin_f, 4, 4), jnp.float32)
    params["final_w"] = wf[0].transpose(1, 2, 0)   # (4, 4, ndf*8) f32
    params["raw_final_w"] = wf
    return params


def discriminator_forward(params, x_nchw):
    # Single NCHW->NHWC transpose + bf16 cast of the un-expanded input.
    h = jnp.transpose(x_nchw, (0, 2, 3, 1)).astype(jnp.bfloat16)
    layers = params["layers"]
    for p in layers[:-1]:
        h = conv4x4s2_bn_lrelu(h, p["w_taps"], p["bias"])
    last = layers[-1]
    out = conv4x4s2_bn_lrelu_final(h, last["w_taps"], last["bias"],
                                   params["final_w"])
    # PyTorch: output.view(-1, 1).squeeze(1) -> shape (N,)
    return out


def _reference_forward(params, x_nchw):
    """Pure-XLA reference (f32 convs) for numerical validation."""
    x = jnp.transpose(x_nchw, (0, 2, 3, 1)).astype(jnp.bfloat16)
    x = x.astype(jnp.float32)
    dn = ("NHWC", "OIHW", "NHWC")
    for raw in params["raw"]:
        y = jax.lax.conv_general_dilated(
            x, raw["w"], window_strides=(2, 2), padding=((1, 1), (1, 1)),
            dimension_numbers=dn)
        y = y * raw["scale"][None, None, None, :] + raw["bias"][None, None, None, :]
        x = jnp.where(y >= 0.0, y, 0.2 * y)
    y = jax.lax.conv_general_dilated(
        x, params["raw_final_w"], window_strides=(1, 1), padding="VALID",
        dimension_numbers=dn)
    return jax.nn.sigmoid(y).reshape(-1)


if __name__ == "__main__":
    # DCGAN discriminator requires 64x64 inputs (64->32->16->8->4, then 4x4 valid).
    batch, nc, ndf, img = 2, 3, 8, 64

    key = jax.random.PRNGKey(0)
    k_params, k_input = jax.random.split(key)
    params = make_discriminator_params(k_params, nc, ndf)
    x = jax.random.normal(k_input, (batch, nc, img, img), jnp.float32)

    fwd = jax.jit(lambda inp: discriminator_forward(params, inp))
    out = jax.block_until_ready(fwd(x))

    assert out.shape == (batch,), out.shape
    assert bool(jnp.all(jnp.isfinite(out)))
    assert bool(jnp.all((out >= 0.0) & (out <= 1.0)))  # sigmoid output range

    # Numerical check against a pure-XLA reference (loose tol for bf16 path).
    ref = jax.block_until_ready(
        jax.jit(lambda inp: _reference_forward(params, inp))(x))
    max_err = float(jnp.max(jnp.abs(out - ref)))
    assert max_err < 5e-2, (max_err, out, ref)

    print("KERNEL_OK")
</pallas_src>

<mosaic_0001>
module attributes {stable_mosaic.version = 11 : i64} {
  func.func @_conv4x4s2_lrelu_kernel(%arg0: i32, %arg1: memref<1x33x33x12xbf16, #tpu.memory_space<vmem>>, %arg2: memref<4x12x8xbf16, #tpu.memory_space<vmem>>, %arg3: memref<1x1x8xf32, #tpu.memory_space<vmem>>, %arg4: memref<1x32x32x8xbf16, #tpu.memory_space<vmem>>) attributes {dimension_semantics = [#tpu.dimension_semantics<parallel>], iteration_bounds = array<i64: 2>, scalar_prefetch = 0 : i64, scratch_operands = 0 : i64, tpu.core_type = #tpu.core_type<tc>, window_params = [{transform_indices = @transform_0, window_bounds = array<i64: 1, 33, 33, 12>}, {pipeline_mode = #tpu.pipeline_mode<synchronous>, transform_indices = @transform_1, window_bounds = array<i64: 4, 12, 8>}, {pipeline_mode = #tpu.pipeline_mode<synchronous>, transform_indices = @transform_2, window_bounds = array<i64: 1, 1, 8>}, {transform_indices = @transform_3, window_bounds = array<i64: 1, 32, 32, 8>}]} {
    %c0 = arith.constant 0 : index
    %c0_0 = arith.constant 0 : index
    %c0_1 = arith.constant 0 : index
    %c0_2 = arith.constant 0 : index
    %0 = vector.load %arg1[%c0, %c0_0, %c0_1, %c0_2] : memref<1x33x33x12xbf16, #tpu.memory_space<vmem>>, vector<1x33x33x12xbf16>
    %1 = vector.shape_cast %0 : vector<1x33x33x12xbf16> to vector<33x33x12xbf16>
    %cst = arith.constant 0.000000e+00 : f32
    %2 = vector.broadcast %cst : f32 to vector<32x32x8xf32>
    %3 = vector.extract_strided_slice %1 {offsets = [0, 0, 0], sizes = [32, 32, 12], strides = [1, 1, 1]} : vector<33x33x12xbf16> to vector<32x32x12xbf16>
    %c0_3 = arith.constant 0 : index
    %c0_4 = arith.constant 0 : index
    %c0_5 = arith.constant 0 : index
    %4 = vector.load %arg2[%c0_3, %c0_4, %c0_5] : memref<4x12x8xbf16, #tpu.memory_space<vmem>>, vector<1x12x8xbf16>
    %5 = vector.shape_cast %4 : vector<1x12x8xbf16> to vector<12x8xbf16>
    %6 = vector.shape_cast %5 : vector<12x8xbf16> to vector<1x12x8xbf16>
    %7 = vector.shape_cast %6 : vector<1x12x8xbf16> to vector<1x12x8xbf16>
    %8 = vector.broadcast %7 : vector<1x12x8xbf16> to vector<32x12x8xbf16>
    %cst_6 = arith.constant dense<0.000000e+00> : vector<32x32x8xf32>
    %9 = tpu.matmul %3, %8, %cst_6 {dimension_numbers = #tpu.dot_dimension_numbers<[2], [1], [1], [2], [0, 0, 0, 1, 1, 2], [0], [0]>} : vector<32x32x12xbf16>, vector<32x12x8xbf16>, vector<32x32x8xf32> -> vector<32x32x8xf32>
    %10 = arith.addf %2, %9 : vector<32x32x8xf32>
    %11 = vector.extract_strided_slice %1 {offsets = [0, 1, 0], sizes = [32, 32, 12], strides = [1, 1, 1]} : vector<33x33x12xbf16> to vector<32x32x12xbf16>
    %c1 = arith.constant 1 : index
    %c0_7 = arith.constant 0 : index
    %c0_8 = arith.constant 0 : index
    %12 = vector.load %arg2[%c1, %c0_7, %c0_8] : memref<4x12x8xbf16, #tpu.memory_space<vmem>>, vector<1x12x8xbf16>
    %13 = vector.shape_cast %12 : vector<1x12x8xbf16> to vector<12x8xbf16>
    %14 = vector.shape_cast %13 : vector<12x8xbf16> to vector<1x12x8xbf16>
    %15 = vector.shape_cast %14 : vector<1x12x8xbf16> to vector<1x12x8xbf16>
    %16 = vector.broadcast %15 : vector<1x12x8xbf16> to vector<32x12x8xbf16>
    %cst_9 = arith.constant dense<0.000000e+00> : vector<32x32x8xf32>
    %17 = tpu.matmul %11, %16, %cst_9 {dimension_numbers = #tpu.dot_dimension_numbers<[2], [1], [1], [2], [0, 0, 0, 1, 1, 2], [0], [0]>} : vector<32x32x12xbf16>, vector<32x12x8xbf16>, vector<32x32x8xf32> -> vector<32x32x8xf32>
    %18 = arith.addf %10, %17 : vector<32x32x8xf32>
    %19 = vector.extract_strided_slice %1 {offsets = [1, 0, 0], sizes = [32, 32, 12], strides = [1, 1, 1]} : vector<33x33x12xbf16> to vector<32x32x12xbf16>
    %c2 = arith.constant 2 : index
    %c0_10 = arith.constant 0 : index
    %c0_11 = arith.constant 0 : index
    %20 = vector.load %arg2[%c2, %c0_10, %c0_11] : memref<4x12x8xbf16, #tpu.memory_space<vmem>>, vector<1x12x8xbf16>
    %21 = vector.shape_cast %20 : vector<1x12x8xbf16> to vector<12x8xbf16>
    %22 = vector.shape_cast %21 : vector<12x8xbf16> to vector<1x12x8xbf16>
    %23 = vector.shape_cast %22 : vector<1x12x8xbf16> to vector<1x12x8xbf16>
    %24 = vector.broadcast %23 : vector<1x12x8xbf16> to vector<32x12x8xbf16>
    %cst_12 = arith.constant dense<0.000000e+00> : vector<32x32x8xf32>
    %25 = tpu.matmul %19, %24, %cst_12 {dimension_numbers = #tpu.dot_dimension_numbers<[2], [1], [1], [2], [0, 0, 0, 1, 1, 2], [0], [0]>} : vector<32x32x12xbf16>, vector<32x12x8xbf16>, vector<32x32x8xf32> -> vector<32x32x8xf32>
    %26 = arith.addf %18, %25 : vector<32x32x8xf32>
    %27 = vector.extract_strided_slice %1 {offsets = [1, 1, 0], sizes = [32, 32, 12], strides = [1, 1, 1]} : vector<33x33x12xbf16> to vector<32x32x12xbf16>
    %c3 = arith.constant 3 : index
    %c0_13 = arith.constant 0 : index
    %c0_14 = arith.constant 0 : index
    %28 = vector.load %arg2[%c3, %c0_13, %c0_14] : memref<4x12x8xbf16, #tpu.memory_space<vmem>>, vector<1x12x8xbf16>
    %29 = vector.shape_cast %28 : vector<1x12x8xbf16> to vector<12x8xbf16>
    %30 = vector.shape_cast %29 : vector<12x8xbf16> to vector<1x12x8xbf16>
    %31 = vector.shape_cast %30 : vector<1x12x8xbf16> to vector<1x12x8xbf16>
    %32 = vector.broadcast %31 : vector<1x12x8xbf16> to vector<32x12x8xbf16>
    %cst_15 = arith.constant dense<0.000000e+00> : vector<32x32x8xf32>
    %33 = tpu.matmul %27, %32, %cst_15 {dimension_numbers = #tpu.dot_dimension_numbers<[2], [1], [1], [2], [0, 0, 0, 1, 1, 2], [0], [0]>} : vector<32x32x12xbf16>, vector<32x12x8xbf16>, vector<32x32x8xf32> -> vector<32x32x8xf32>
    %34 = arith.addf %26, %33 : vector<32x32x8xf32>
    %c0_16 = arith.constant 0 : index
    %c0_17 = arith.constant 0 : index
    %c0_18 = arith.constant 0 : index
    %35 = vector.load %arg3[%c0_16, %c0_17, %c0_18] : memref<1x1x8xf32, #tpu.memory_space<vmem>>, vector<1x1x8xf32>
    %36 = vector.broadcast %35 : vector<1x1x8xf32> to vector<32x32x8xf32>
    %37 = arith.addf %34, %36 : vector<32x32x8xf32>
    %cst_19 = arith.constant 0.000000e+00 : f32
    %38 = vector.broadcast %cst_19 : f32 to vector<32x32x8xf32>
    %39 = arith.cmpf oge, %37, %38 : vector<32x32x8xf32>
    %cst_20 = arith.constant 2.000000e-01 : f32
    %40 = vector.broadcast %cst_20 : f32 to vector<32x32x8xf32>
    %41 = arith.mulf %40, %37 : vector<32x32x8xf32>
    %42 = arith.select %39, %37, %41 : vector<32x32x8xi1>, vector<32x32x8xf32>
    %43 = arith.truncf %42 : vector<32x32x8xf32> to vector<32x32x8xbf16>
    %c0_21 = arith.constant 0 : index
    %c0_22 = arith.constant 0 : index
    %c0_23 = arith.constant 0 : index
    %c0_24 = arith.constant 0 : index
    %44 = vector.load %arg4[%c0_21, %c0_22, %c0_23, %c0_24] : memref<1x32x32x8xbf16, #tpu.memory_space<vmem>>, vector<1x32x32x8xbf16>
    %45 = vector.shape_cast %44 : vector<1x32x32x8xbf16> to vector<32x32x8xbf16>
    %46 = vector.shape_cast %43 : vector<32x32x8xbf16> to vector<1x32x32x8xbf16>
    tpu.vector_store %arg4[%c0_21, %c0_22, %c0_23, %c0_24], %46 {strides = array<i32>} : memref<1x32x32x8xbf16, #tpu.memory_space<vmem>>, vector<1x32x32x8xbf16>,
    return
  }
  func.func @transform_0(%arg0: i32) -> (i32, i32, i32, i32) {
    %c0_i32 = arith.constant 0 : i32
    %c0_i32_0 = arith.constant 0 : i32
    %c0_i32_1 = arith.constant 0 : i32
    %c0_i32_2 = arith.constant 0 : i32
    return %arg0, %c0_i32, %c0_i32_0, %c0_i32_1 : i32, i32, i32, i32
  }
  func.func @transform_1(%arg0: i32) -> (i32, i32, i32) {
    %c0_i32 = arith.constant 0 : i32
    %c0_i32_0 = arith.constant 0 : i32
    %c0_i32_1 = arith.constant 0 : i32
    %c0_i32_2 = arith.constant 0 : i32
    return %c0_i32, %c0_i32_0, %c0_i32_1 : i32, i32, i32
  }
  func.func @transform_2(%arg0: i32) -> (i32, i32, i32) {
    %c0_i32 = arith.constant 0 : i32
    %c0_i32_0 = arith.constant 0 : i32
    %c0_i32_1 = arith.constant 0 : i32
    %c0_i32_2 = arith.constant 0 : i32
    return %c0_i32, %c0_i32_0, %c0_i32_1 : i32, i32, i32
  }
  func.func @transform_3(%arg0: i32) -> (i32, i32, i32, i32) {
    %c0_i32 = arith.constant 0 : i32
    %c0_i32_0 = arith.constant 0 : i32
    %c0_i32_1 = arith.constant 0 : i32
    %c0_i32_2 = arith.constant 0 : i32
    return %arg0, %c0_i32, %c0_i32_0, %c0_i32_1 : i32, i32, i32, i32
  }
}

module attributes {stable_mosaic.version = 11 : i64} {
  func.func @_conv4x4s2_lrelu_kernel(%arg0: i32, %arg1: memref<1x17x17x32xbf16, #tpu.memory_space<vmem>>, %arg2: memref<4x32x16xbf16, #tpu.memory_space<vmem>>, %arg3: memref<1x1x16xf32, #tpu.memory_space<vmem>>, %arg4: memref<1x16x16x16xbf16, #tpu.memory_space<vmem>>) attributes {dimension_semantics = [#tpu.dimension_semantics<parallel>], iteration_bounds = array<i64: 2>, scalar_prefetch = 0 : i64, scratch_operands = 0 : i64, tpu.core_type = #tpu.core_type<tc>, window_params = [{transform_indices = @transform_0, window_bounds = array<i64: 1, 17, 17, 32>}, {pipeline_mode = #tpu.pipeline_mode<synchronous>, transform_indices = @transform_1, window_bounds = array<i64: 4, 32, 16>}, {pipeline_mode = #tpu.pipeline_mode<synchronous>, transform_indices = @transform_2, window_bounds = array<i64: 1, 1, 16>}, {transform_indices = @transform_3, window_bounds = array<i64: 1, 16, 16, 16>}]} {
    %c0 = arith.constant 0 : index
    %c0_0 = arith.constant 0 : index
    %c0_1 = arith.constant 0 : index
    %c0_2 = arith.constant 0 : index
    %0 = vector.load %arg1[%c0, %c0_0, %c0_1, %c0_2] : memref<1x17x17x32xbf16, #tpu.memory_space<vmem>>, vector<1x17x17x32xbf16>
    %1 = vector.shape_cast %0 : vector<1x17x17x32xbf16> to vector<17x17x32xbf16>
    %cst = arith.constant 0.000000e+00 : f32
    %2 = vector.broadcast %cst : f32 to vector<16x16x16xf32>
    %3 = vector.extract_strided_slice %1 {offsets = [0, 0, 0], sizes = [16, 16, 32], strides = [1, 1, 1]} : vector<17x17x32xbf16> to vector<16x16x32xbf16>
    %c0_3 = arith.constant 0 : index
    %c0_4 = arith.constant 0 : index
    %c0_5 = arith.constant 0 : index
    %4 = vector.load %arg2[%c0_3, %c0_4, %c0_5] : memref<4x32x16xbf16, #tpu.memory_space<vmem>>, vector<1x32x16xbf16>
    %5 = vector.shape_cast %4 : vector<1x32x16xbf16> to vector<32x16xbf16>
    %6 = vector.shape_cast %5 : vector<32x16xbf16> to vector<1x32x16xbf16>
    %7 = vector.shape_cast %6 : vector<1x32x16xbf16> to vector<1x32x16xbf16>
    %8 = vector.broadcast %7 : vector<1x32x16xbf16> to vector<16x32x16xbf16>
    %cst_6 = arith.constant dense<0.000000e+00> : vector<16x16x16xf32>
    %9 = tpu.matmul %3, %8, %cst_6 {dimension_numbers = #tpu.dot_dimension_numbers<[2], [1], [1], [2], [0, 0, 0, 1, 1, 2], [0], [0]>} : vector<16x16x32xbf16>, vector<16x32x16xbf16>, vector<16x16x16xf32> -> vector<16x16x16xf32>
    %10 = arith.addf %2, %9 : vector<16x16x16xf32>
    %11 = vector.extract_strided_slice %1 {offsets = [0, 1, 0], sizes = [16, 16, 32], strides = [1, 1, 1]} : vector<17x17x32xbf16> to vector<16x16x32xbf16>
    %c1 = arith.constant 1 : index
    %c0_7 = arith.constant 0 : index
    %c0_8 = arith.constant 0 : index
    %12 = vector.load %arg2[%c1, %c0_7, %c0_8] : memref<4x32x16xbf16, #tpu.memory_space<vmem>>, vector<1x32x16xbf16>
    %13 = vector.shape_cast %12 : vector<1x32x16xbf16> to vector<32x16xbf16>
    %14 = vector.shape_cast %13 : vector<32x16xbf16> to vector<1x32x16xbf16>
    %15 = vector.shape_cast %14 : vector<1x32x16xbf16> to vector<1x32x16xbf16>
    %16 = vector.broadcast %15 : vector<1x32x16xbf16> to vector<16x32x16xbf16>
    %cst_9 = arith.constant dense<0.000000e+00> : vector<16x16x16xf32>
    %17 = tpu.matmul %11, %16, %cst_9 {dimension_numbers = #tpu.dot_dimension_numbers<[2], [1], [1], [2], [0, 0, 0, 1, 1, 2], [0], [0]>} : vector<16x16x32xbf16>, vector<16x32x16xbf16>, vector<16x16x16xf32> -> vector<16x16x16xf32>
    %18 = arith.addf %10, %17 : vector<16x16x16xf32>
    %19 = vector.extract_strided_slice %1 {offsets = [1, 0, 0], sizes = [16, 16, 32], strides = [1, 1, 1]} : vector<17x17x32xbf16> to vector<16x16x32xbf16>
    %c2 = arith.constant 2 : index
    %c0_10 = arith.constant 0 : index
    %c0_11 = arith.constant 0 : index
    %20 = vector.load %arg2[%c2, %c0_10, %c0_11] : memref<4x32x16xbf16, #tpu.memory_space<vmem>>, vector<1x32x16xbf16>
    %21 = vector.shape_cast %20 : vector<1x32x16xbf16> to vector<32x16xbf16>
    %22 = vector.shape_cast %21 : vector<32x16xbf16> to vector<1x32x16xbf16>
    %23 = vector.shape_cast %22 : vector<1x32x16xbf16> to vector<1x32x16xbf16>
    %24 = vector.broadcast %23 : vector<1x32x16xbf16> to vector<16x32x16xbf16>
    %cst_12 = arith.constant dense<0.000000e+00> : vector<16x16x16xf32>
    %25 = tpu.matmul %19, %24, %cst_12 {dimension_numbers = #tpu.dot_dimension_numbers<[2], [1], [1], [2], [0, 0, 0, 1, 1, 2], [0], [0]>} : vector<16x16x32xbf16>, vector<16x32x16xbf16>, vector<16x16x16xf32> -> vector<16x16x16xf32>
    %26 = arith.addf %18, %25 : vector<16x16x16xf32>
    %27 = vector.extract_strided_slice %1 {offsets = [1, 1, 0], sizes = [16, 16, 32], strides = [1, 1, 1]} : vector<17x17x32xbf16> to vector<16x16x32xbf16>
    %c3 = arith.constant 3 : index
    %c0_13 = arith.constant 0 : index
    %c0_14 = arith.constant 0 : index
    %28 = vector.load %arg2[%c3, %c0_13, %c0_14] : memref<4x32x16xbf16, #tpu.memory_space<vmem>>, vector<1x32x16xbf16>
    %29 = vector.shape_cast %28 : vector<1x32x16xbf16> to vector<32x16xbf16>
    %30 = vector.shape_cast %29 : vector<32x16xbf16> to vector<1x32x16xbf16>
    %31 = vector.shape_cast %30 : vector<1x32x16xbf16> to vector<1x32x16xbf16>
    %32 = vector.broadcast %31 : vector<1x32x16xbf16> to vector<16x32x16xbf16>
    %cst_15 = arith.constant dense<0.000000e+00> : vector<16x16x16xf32>
    %33 = tpu.matmul %27, %32, %cst_15 {dimension_numbers = #tpu.dot_dimension_numbers<[2], [1], [1], [2], [0, 0, 0, 1, 1, 2], [0], [0]>} : vector<16x16x32xbf16>, vector<16x32x16xbf16>, vector<16x16x16xf32> -> vector<16x16x16xf32>
    %34 = arith.addf %26, %33 : vector<16x16x16xf32>
    %c0_16 = arith.constant 0 : index
    %c0_17 = arith.constant 0 : index
    %c0_18 = arith.constant 0 : index
    %35 = vector.load %arg3[%c0_16, %c0_17, %c0_18] : memref<1x1x16xf32, #tpu.memory_space<vmem>>, vector<1x1x16xf32>
    %36 = vector.broadcast %35 : vector<1x1x16xf32> to vector<16x16x16xf32>
    %37 = arith.addf %34, %36 : vector<16x16x16xf32>
    %cst_19 = arith.constant 0.000000e+00 : f32
    %38 = vector.broadcast %cst_19 : f32 to vector<16x16x16xf32>
    %39 = arith.cmpf oge, %37, %38 : vector<16x16x16xf32>
    %cst_20 = arith.constant 2.000000e-01 : f32
    %40 = vector.broadcast %cst_20 : f32 to vector<16x16x16xf32>
    %41 = arith.mulf %40, %37 : vector<16x16x16xf32>
    %42 = arith.select %39, %37, %41 : vector<16x16x16xi1>, vector<16x16x16xf32>
    %43 = arith.truncf %42 : vector<16x16x16xf32> to vector<16x16x16xbf16>
    %c0_21 = arith.constant 0 : index
    %c0_22 = arith.constant 0 : index
    %c0_23 = arith.constant 0 : index
    %c0_24 = arith.constant 0 : index
    %44 = vector.load %arg4[%c0_21, %c0_22, %c0_23, %c0_24] : memref<1x16x16x16xbf16, #tpu.memory_space<vmem>>, vector<1x16x16x16xbf16>
    %45 = vector.shape_cast %44 : vector<1x16x16x16xbf16> to vector<16x16x16xbf16>
    %46 = vector.shape_cast %43 : vector<16x16x16xbf16> to vector<1x16x16x16xbf16>
    tpu.vector_store %arg4[%c0_21, %c0_22, %c0_23, %c0_24], %46 {strides = array<i32>} : memref<1x16x16x16xbf16, #tpu.memory_space<vmem>>, vector<1x16x16x16xbf16>,
    return
  }
  func.func @transform_0(%arg0: i32) -> (i32, i32, i32, i32) {
    %c0_i32 = arith.constant 0 : i32
    %c0_i32_0 = arith.constant 0 : i32
    %c0_i32_1 = arith.constant 0 : i32
    %c0_i32_2 = arith.constant 0 : i32
    return %arg0, %c0_i32, %c0_i32_0, %c0_i32_1 : i32, i32, i32, i32
  }
  func.func @transform_1(%arg0: i32) -> (i32, i32, i32) {
    %c0_i32 = arith.constant 0 : i32
    %c0_i32_0 = arith.constant 0 : i32
    %c0_i32_1 = arith.constant 0 : i32
    %c0_i32_2 = arith.constant 0 : i32
    return %c0_i32, %c0_i32_0, %c0_i32_1 : i32, i32, i32
  }
  func.func @transform_2(%arg0: i32) -> (i32, i32, i32) {
    %c0_i32 = arith.constant 0 : i32
    %c0_i32_0 = arith.constant 0 : i32
    %c0_i32_1 = arith.constant 0 : i32
    %c0_i32_2 = arith.constant 0 : i32
    return %c0_i32, %c0_i32_0, %c0_i32_1 : i32, i32, i32
  }
  func.func @transform_3(%arg0: i32) -> (i32, i32, i32, i32) {
    %c0_i32 = arith.constant 0 : i32
    %c0_i32_0 = arith.constant 0 : i32
    %c0_i32_1 = arith.constant 0 : i32
    %c0_i32_2 = arith.constant 0 : i32
    return %arg0, %c0_i32, %c0_i32_0, %c0_i32_1 : i32, i32, i32, i32
  }
}

module attributes {stable_mosaic.version = 11 : i64} {
  func.func @_conv4x4s2_lrelu_kernel(%arg0: i32, %arg1: memref<1x9x9x64xbf16, #tpu.memory_space<vmem>>, %arg2: memref<4x64x32xbf16, #tpu.memory_space<vmem>>, %arg3: memref<1x1x32xf32, #tpu.memory_space<vmem>>, %arg4: memref<1x8x8x32xbf16, #tpu.memory_space<vmem>>) attributes {dimension_semantics = [#tpu.dimension_semantics<parallel>], iteration_bounds = array<i64: 2>, scalar_prefetch = 0 : i64, scratch_operands = 0 : i64, tpu.core_type = #tpu.core_type<tc>, window_params = [{transform_indices = @transform_0, window_bounds = array<i64: 1, 9, 9, 64>}, {pipeline_mode = #tpu.pipeline_mode<synchronous>, transform_indices = @transform_1, window_bounds = array<i64: 4, 64, 32>}, {pipeline_mode = #tpu.pipeline_mode<synchronous>, transform_indices = @transform_2, window_bounds = array<i64: 1, 1, 32>}, {transform_indices = @transform_3, window_bounds = array<i64: 1, 8, 8, 32>}]} {
    %c0 = arith.constant 0 : index
    %c0_0 = arith.constant 0 : index
    %c0_1 = arith.constant 0 : index
    %c0_2 = arith.constant 0 : index
    %0 = vector.load %arg1[%c0, %c0_0, %c0_1, %c0_2] : memref<1x9x9x64xbf16, #tpu.memory_space<vmem>>, vector<1x9x9x64xbf16>
    %1 = vector.shape_cast %0 : vector<1x9x9x64xbf16> to vector<9x9x64xbf16>
    %cst = arith.constant 0.000000e+00 : f32
    %2 = vector.broadcast %cst : f32 to vector<8x8x32xf32>
    %3 = vector.extract_strided_slice %1 {offsets = [0, 0, 0], sizes = [8, 8, 64], strides = [1, 1, 1]} : vector<9x9x64xbf16> to vector<8x8x64xbf16>
    %c0_3 = arith.constant 0 : index
    %c0_4 = arith.constant 0 : index
    %c0_5 = arith.constant 0 : index
    %4 = vector.load %arg2[%c0_3, %c0_4, %c0_5] : memref<4x64x32xbf16, #tpu.memory_space<vmem>>, vector<1x64x32xbf16>
    %5 = vector.shape_cast %4 : vector<1x64x32xbf16> to vector<64x32xbf16>
    %6 = vector.shape_cast %5 : vector<64x32xbf16> to vector<1x64x32xbf16>
    %7 = vector.shape_cast %6 : vector<1x64x32xbf16> to vector<1x64x32xbf16>
    %8 = vector.broadcast %7 : vector<1x64x32xbf16> to vector<8x64x32xbf16>
    %cst_6 = arith.constant dense<0.000000e+00> : vector<8x8x32xf32>
    %9 = tpu.matmul %3, %8, %cst_6 {dimension_numbers = #tpu.dot_dimension_numbers<[2], [1], [1], [2], [0, 0, 0, 1, 1, 2], [0], [0]>} : vector<8x8x64xbf16>, vector<8x64x32xbf16>, vector<8x8x32xf32> -> vector<8x8x32xf32>
    %10 = arith.addf %2, %9 : vector<8x8x32xf32>
    %11 = vector.extract_strided_slice %1 {offsets = [0, 1, 0], sizes = [8, 8, 64], strides = [1, 1, 1]} : vector<9x9x64xbf16> to vector<8x8x64xbf16>
    %c1 = arith.constant 1 : index
    %c0_7 = arith.constant 0 : index
    %c0_8 = arith.constant 0 : index
    %12 = vector.load %arg2[%c1, %c0_7, %c0_8] : memref<4x64x32xbf16, #tpu.memory_space<vmem>>, vector<1x64x32xbf16>
    %13 = vector.shape_cast %12 : vector<1x64x32xbf16> to vector<64x32xbf16>
    %14 = vector.shape_cast %13 : vector<64x32xbf16> to vector<1x64x32xbf16>
    %15 = vector.shape_cast %14 : vector<1x64x32xbf16> to vector<1x64x32xbf16>
    %16 = vector.broadcast %15 : vector<1x64x32xbf16> to vector<8x64x32xbf16>
    %cst_9 = arith.constant dense<0.000000e+00> : vector<8x8x32xf32>
    %17 = tpu.matmul %11, %16, %cst_9 {dimension_numbers = #tpu.dot_dimension_numbers<[2], [1], [1], [2], [0, 0, 0, 1, 1, 2], [0], [0]>} : vector<8x8x64xbf16>, vector<8x64x32xbf16>, vector<8x8x32xf32> -> vector<8x8x32xf32>
    %18 = arith.addf %10, %17 : vector<8x8x32xf32>
    %19 = vector.extract_strided_slice %1 {offsets = [1, 0, 0], sizes = [8, 8, 64], strides = [1, 1, 1]} : vector<9x9x64xbf16> to vector<8x8x64xbf16>
    %c2 = arith.constant 2 : index
    %c0_10 = arith.constant 0 : index
    %c0_11 = arith.constant 0 : index
    %20 = vector.load %arg2[%c2, %c0_10, %c0_11] : memref<4x64x32xbf16, #tpu.memory_space<vmem>>, vector<1x64x32xbf16>
    %21 = vector.shape_cast %20 : vector<1x64x32xbf16> to vector<64x32xbf16>
    %22 = vector.shape_cast %21 : vector<64x32xbf16> to vector<1x64x32xbf16>
    %23 = vector.shape_cast %22 : vector<1x64x32xbf16> to vector<1x64x32xbf16>
    %24 = vector.broadcast %23 : vector<1x64x32xbf16> to vector<8x64x32xbf16>
    %cst_12 = arith.constant dense<0.000000e+00> : vector<8x8x32xf32>
    %25 = tpu.matmul %19, %24, %cst_12 {dimension_numbers = #tpu.dot_dimension_numbers<[2], [1], [1], [2], [0, 0, 0, 1, 1, 2], [0], [0]>} : vector<8x8x64xbf16>, vector<8x64x32xbf16>, vector<8x8x32xf32> -> vector<8x8x32xf32>
    %26 = arith.addf %18, %25 : vector<8x8x32xf32>
    %27 = vector.extract_strided_slice %1 {offsets = [1, 1, 0], sizes = [8, 8, 64], strides = [1, 1, 1]} : vector<9x9x64xbf16> to vector<8x8x64xbf16>
    %c3 = arith.constant 3 : index
    %c0_13 = arith.constant 0 : index
    %c0_14 = arith.constant 0 : index
    %28 = vector.load %arg2[%c3, %c0_13, %c0_14] : memref<4x64x32xbf16, #tpu.memory_space<vmem>>, vector<1x64x32xbf16>
    %29 = vector.shape_cast %28 : vector<1x64x32xbf16> to vector<64x32xbf16>
    %30 = vector.shape_cast %29 : vector<64x32xbf16> to vector<1x64x32xbf16>
    %31 = vector.shape_cast %30 : vector<1x64x32xbf16> to vector<1x64x32xbf16>
    %32 = vector.broadcast %31 : vector<1x64x32xbf16> to vector<8x64x32xbf16>
    %cst_15 = arith.constant dense<0.000000e+00> : vector<8x8x32xf32>
    %33 = tpu.matmul %27, %32, %cst_15 {dimension_numbers = #tpu.dot_dimension_numbers<[2], [1], [1], [2], [0, 0, 0, 1, 1, 2], [0], [0]>} : vector<8x8x64xbf16>, vector<8x64x32xbf16>, vector<8x8x32xf32> -> vector<8x8x32xf32>
    %34 = arith.addf %26, %33 : vector<8x8x32xf32>
    %c0_16 = arith.constant 0 : index
    %c0_17 = arith.constant 0 : index
    %c0_18 = arith.constant 0 : index
    %35 = vector.load %arg3[%c0_16, %c0_17, %c0_18] : memref<1x1x32xf32, #tpu.memory_space<vmem>>, vector<1x1x32xf32>
    %36 = vector.broadcast %35 : vector<1x1x32xf32> to vector<8x8x32xf32>
    %37 = arith.addf %34, %36 : vector<8x8x32xf32>
    %cst_19 = arith.constant 0.000000e+00 : f32
    %38 = vector.broadcast %cst_19 : f32 to vector<8x8x32xf32>
    %39 = arith.cmpf oge, %37, %38 : vector<8x8x32xf32>
    %cst_20 = arith.constant 2.000000e-01 : f32
    %40 = vector.broadcast %cst_20 : f32 to vector<8x8x32xf32>
    %41 = arith.mulf %40, %37 : vector<8x8x32xf32>
    %42 = arith.select %39, %37, %41 : vector<8x8x32xi1>, vector<8x8x32xf32>
    %43 = arith.truncf %42 : vector<8x8x32xf32> to vector<8x8x32xbf16>
    %c0_21 = arith.constant 0 : index
    %c0_22 = arith.constant 0 : index
    %c0_23 = arith.constant 0 : index
    %c0_24 = arith.constant 0 : index
    %44 = vector.load %arg4[%c0_21, %c0_22, %c0_23, %c0_24] : memref<1x8x8x32xbf16, #tpu.memory_space<vmem>>, vector<1x8x8x32xbf16>
    %45 = vector.shape_cast %44 : vector<1x8x8x32xbf16> to vector<8x8x32xbf16>
    %46 = vector.shape_cast %43 : vector<8x8x32xbf16> to vector<1x8x8x32xbf16>
    tpu.vector_store %arg4[%c0_21, %c0_22, %c0_23, %c0_24], %46 {strides = array<i32>} : memref<1x8x8x32xbf16, #tpu.memory_space<vmem>>, vector<1x8x8x32xbf16>,
    return
  }
  func.func @transform_0(%arg0: i32) -> (i32, i32, i32, i32) {
    %c0_i32 = arith.constant 0 : i32
    %c0_i32_0 = arith.constant 0 : i32
    %c0_i32_1 = arith.constant 0 : i32
    %c0_i32_2 = arith.constant 0 : i32
    return %arg0, %c0_i32, %c0_i32_0, %c0_i32_1 : i32, i32, i32, i32
  }
  func.func @transform_1(%arg0: i32) -> (i32, i32, i32) {
    %c0_i32 = arith.constant 0 : i32
    %c0_i32_0 = arith.constant 0 : i32
    %c0_i32_1 = arith.constant 0 : i32
    %c0_i32_2 = arith.constant 0 : i32
    return %c0_i32, %c0_i32_0, %c0_i32_1 : i32, i32, i32
  }
  func.func @transform_2(%arg0: i32) -> (i32, i32, i32) {
    %c0_i32 = arith.constant 0 : i32
    %c0_i32_0 = arith.constant 0 : i32
    %c0_i32_1 = arith.constant 0 : i32
    %c0_i32_2 = arith.constant 0 : i32
    return %c0_i32, %c0_i32_0, %c0_i32_1 : i32, i32, i32
  }
  func.func @transform_3(%arg0: i32) -> (i32, i32, i32, i32) {
    %c0_i32 = arith.constant 0 : i32
    %c0_i32_0 = arith.constant 0 : i32
    %c0_i32_1 = arith.constant 0 : i32
    %c0_i32_2 = arith.constant 0 : i32
    return %arg0, %c0_i32, %c0_i32_0, %c0_i32_1 : i32, i32, i32, i32
  }
}

module attributes {stable_mosaic.version = 11 : i64} {
  func.func @_conv4x4s2_lrelu_final_kernel(%arg0: i32, %arg1: memref<1x5x5x128xbf16, #tpu.memory_space<vmem>>, %arg2: memref<4x128x64xbf16, #tpu.memory_space<vmem>>, %arg3: memref<1x1x64xf32, #tpu.memory_space<vmem>>, %arg4: memref<4x4x64xf32, #tpu.memory_space<vmem>>, %arg5: memref<1x1x128xf32, #tpu.memory_space<vmem>>) attributes {dimension_semantics = [#tpu.dimension_semantics<parallel>], iteration_bounds = array<i64: 2>, scalar_prefetch = 0 : i64, scratch_operands = 0 : i64, tpu.core_type = #tpu.core_type<tc>, window_params = [{transform_indices = @transform_0, window_bounds = array<i64: 1, 5, 5, 128>}, {pipeline_mode = #tpu.pipeline_mode<synchronous>, transform_indices = @transform_1, window_bounds = array<i64: 4, 128, 64>}, {pipeline_mode = #tpu.pipeline_mode<synchronous>, transform_indices = @transform_2, window_bounds = array<i64: 1, 1, 64>}, {pipeline_mode = #tpu.pipeline_mode<synchronous>, transform_indices = @transform_3, window_bounds = array<i64: 4, 4, 64>}, {transform_indices = @transform_4, window_bounds = array<i64: 1, 1, 128>}]} {
    %c0 = arith.constant 0 : index
    %c0_0 = arith.constant 0 : index
    %c0_1 = arith.constant 0 : index
    %c0_2 = arith.constant 0 : index
    %0 = vector.load %arg1[%c0, %c0_0, %c0_1, %c0_2] : memref<1x5x5x128xbf16, #tpu.memory_space<vmem>>, vector<1x5x5x128xbf16>
    %1 = vector.shape_cast %0 : vector<1x5x5x128xbf16> to vector<5x5x128xbf16>
    %cst = arith.constant 0.000000e+00 : f32
    %2 = vector.broadcast %cst : f32 to vector<4x4x64xf32>
    %3 = vector.extract_strided_slice %1 {offsets = [0, 0, 0], sizes = [4, 4, 128], strides = [1, 1, 1]} : vector<5x5x128xbf16> to vector<4x4x128xbf16>
    %c0_3 = arith.constant 0 : index
    %c0_4 = arith.constant 0 : index
    %c0_5 = arith.constant 0 : index
    %4 = vector.load %arg2[%c0_3, %c0_4, %c0_5] : memref<4x128x64xbf16, #tpu.memory_space<vmem>>, vector<1x128x64xbf16>
    %5 = vector.shape_cast %4 : vector<1x128x64xbf16> to vector<128x64xbf16>
    %6 = vector.shape_cast %5 : vector<128x64xbf16> to vector<1x128x64xbf16>
    %7 = vector.shape_cast %6 : vector<1x128x64xbf16> to vector<1x128x64xbf16>
    %8 = vector.broadcast %7 : vector<1x128x64xbf16> to vector<4x128x64xbf16>
    %cst_6 = arith.constant dense<0.000000e+00> : vector<4x4x64xf32>
    %9 = tpu.matmul %3, %8, %cst_6 {dimension_numbers = #tpu.dot_dimension_numbers<[2], [1], [1], [2], [0, 0, 0, 1, 1, 2], [0], [0]>} : vector<4x4x128xbf16>, vector<4x128x64xbf16>, vector<4x4x64xf32> -> vector<4x4x64xf32>
    %10 = arith.addf %2, %9 : vector<4x4x64xf32>
    %11 = vector.extract_strided_slice %1 {offsets = [0, 1, 0], sizes = [4, 4, 128], strides = [1, 1, 1]} : vector<5x5x128xbf16> to vector<4x4x128xbf16>
    %c1 = arith.constant 1 : index
    %c0_7 = arith.constant 0 : index
    %c0_8 = arith.constant 0 : index
    %12 = vector.load %arg2[%c1, %c0_7, %c0_8] : memref<4x128x64xbf16, #tpu.memory_space<vmem>>, vector<1x128x64xbf16>
    %13 = vector.shape_cast %12 : vector<1x128x64xbf16> to vector<128x64xbf16>
    %14 = vector.shape_cast %13 : vector<128x64xbf16> to vector<1x128x64xbf16>
    %15 = vector.shape_cast %14 : vector<1x128x64xbf16> to vector<1x128x64xbf16>
    %16 = vector.broadcast %15 : vector<1x128x64xbf16> to vector<4x128x64xbf16>
    %cst_9 = arith.constant dense<0.000000e+00> : vector<4x4x64xf32>
    %17 = tpu.matmul %11, %16, %cst_9 {dimension_numbers = #tpu.dot_dimension_numbers<[2], [1], [1], [2], [0, 0, 0, 1, 1, 2], [0], [0]>} : vector<4x4x128xbf16>, vector<4x128x64xbf16>, vector<4x4x64xf32> -> vector<4x4x64xf32>
    %18 = arith.addf %10, %17 : vector<4x4x64xf32>
    %19 = vector.extract_strided_slice %1 {offsets = [1, 0, 0], sizes = [4, 4, 128], strides = [1, 1, 1]} : vector<5x5x128xbf16> to vector<4x4x128xbf16>
    %c2 = arith.constant 2 : index
    %c0_10 = arith.constant 0 : index
    %c0_11 = arith.constant 0 : index
    %20 = vector.load %arg2[%c2, %c0_10, %c0_11] : memref<4x128x64xbf16, #tpu.memory_space<vmem>>, vector<1x128x64xbf16>
    %21 = vector.shape_cast %20 : vector<1x128x64xbf16> to vector<128x64xbf16>
    %22 = vector.shape_cast %21 : vector<128x64xbf16> to vector<1x128x64xbf16>
    %23 = vector.shape_cast %22 : vector<1x128x64xbf16> to vector<1x128x64xbf16>
    %24 = vector.broadcast %23 : vector<1x128x64xbf16> to vector<4x128x64xbf16>
    %cst_12 = arith.constant dense<0.000000e+00> : vector<4x4x64xf32>
    %25 = tpu.matmul %19, %24, %cst_12 {dimension_numbers = #tpu.dot_dimension_numbers<[2], [1], [1], [2], [0, 0, 0, 1, 1, 2], [0], [0]>} : vector<4x4x128xbf16>, vector<4x128x64xbf16>, vector<4x4x64xf32> -> vector<4x4x64xf32>
    %26 = arith.addf %18, %25 : vector<4x4x64xf32>
    %27 = vector.extract_strided_slice %1 {offsets = [1, 1, 0], sizes = [4, 4, 128], strides = [1, 1, 1]} : vector<5x5x128xbf16> to vector<4x4x128xbf16>
    %c3 = arith.constant 3 : index
    %c0_13 = arith.constant 0 : index
    %c0_14 = arith.constant 0 : index
    %28 = vector.load %arg2[%c3, %c0_13, %c0_14] : memref<4x128x64xbf16, #tpu.memory_space<vmem>>, vector<1x128x64xbf16>
    %29 = vector.shape_cast %28 : vector<1x128x64xbf16> to vector<128x64xbf16>
    %30 = vector.shape_cast %29 : vector<128x64xbf16> to vector<1x128x64xbf16>
    %31 = vector.shape_cast %30 : vector<1x128x64xbf16> to vector<1x128x64xbf16>
    %32 = vector.broadcast %31 : vector<1x128x64xbf16> to vector<4x128x64xbf16>
    %cst_15 = arith.constant dense<0.000000e+00> : vector<4x4x64xf32>
    %33 = tpu.matmul %27, %32, %cst_15 {dimension_numbers = #tpu.dot_dimension_numbers<[2], [1], [1], [2], [0, 0, 0, 1, 1, 2], [0], [0]>} : vector<4x4x128xbf16>, vector<4x128x64xbf16>, vector<4x4x64xf32> -> vector<4x4x64xf32>
    %34 = arith.addf %26, %33 : vector<4x4x64xf32>
    %c0_16 = arith.constant 0 : index
    %c0_17 = arith.constant 0 : index
    %c0_18 = arith.constant 0 : index
    %35 = vector.load %arg3[%c0_16, %c0_17, %c0_18] : memref<1x1x64xf32, #tpu.memory_space<vmem>>, vector<1x1x64xf32>
    %36 = vector.broadcast %35 : vector<1x1x64xf32> to vector<4x4x64xf32>
    %37 = arith.addf %34, %36 : vector<4x4x64xf32>
    %cst_19 = arith.constant 0.000000e+00 : f32
    %38 = vector.broadcast %cst_19 : f32 to vector<4x4x64xf32>
    %39 = arith.cmpf oge, %37, %38 : vector<4x4x64xf32>
    %cst_20 = arith.constant 2.000000e-01 : f32
    %40 = vector.broadcast %cst_20 : f32 to vector<4x4x64xf32>
    %41 = arith.mulf %40, %37 : vector<4x4x64xf32>
    %42 = arith.select %39, %37, %41 : vector<4x4x64xi1>, vector<4x4x64xf32>
    %c0_21 = arith.constant 0 : index
    %c0_22 = arith.constant 0 : index
    %c0_23 = arith.constant 0 : index
    %43 = vector.load %arg4[%c0_21, %c0_22, %c0_23] : memref<4x4x64xf32, #tpu.memory_space<vmem>>, vector<4x4x64xf32>
    %44 = arith.mulf %42, %43 : vector<4x4x64xf32>
    %45 = vector.shape_cast %44 : vector<4x4x64xf32> to vector<1x4x4x64xf32>
    %cst_24 = arith.constant dense<0.000000e+00> : vector<1xf32>
    %46 = vector.multi_reduction <add>, %45, %cst_24 [1, 2, 3] : vector<1x4x4x64xf32> to vector<1xf32>
    %47 = vector.shape_cast %46 : vector<1xf32> to vector<1x1x1x1xf32>
    %48 = vector.extract %47[0, 0, 0, 0] : f32 from vector<1x1x1x1xf32>
    %49 = vector.broadcast %48 : f32 to vector<1x1x1xf32>
    %50 = vector.shape_cast %49 : vector<1x1x1xf32> to vector<1x1x1xf32>
    %51 = vector.broadcast %50 : vector<1x1x1xf32> to vector<1x1x128xf32>
    %cst_25 = arith.constant 0.000000e+00 : f32
    %52 = vector.broadcast %cst_25 : f32 to vector<1x1x128xf32>
    %53 = arith.cmpf oge, %51, %52 : vector<1x1x128xf32>
    %cst_26 = arith.constant 0.000000e+00 : f32
    %54 = vector.broadcast %cst_26 : f32 to vector<1x1x128xf32>
    %55 = arith.subf %54, %51 : vector<1x1x128xf32>
    %56 = math.exp %55 : vector<1x1x128xf32>
    %cst_27 = arith.constant 1.000000e+00 : f32
    %57 = vector.broadcast %cst_27 : f32 to vector<1x1x128xf32>
    %58 = arith.addf %57, %56 : vector<1x1x128xf32>
    %cst_28 = arith.constant 1.000000e+00 : f32
    %59 = vector.broadcast %cst_28 : f32 to vector<1x1x128xf32>
    %60 = arith.divf %59, %58 : vector<1x1x128xf32>
    %61 = math.exp %51 : vector<1x1x128xf32>
    %62 = math.exp %51 : vector<1x1x128xf32>
    %cst_29 = arith.constant 1.000000e+00 : f32
    %63 = vector.broadcast %cst_29 : f32 to vector<1x1x128xf32>
    %64 = arith.addf %63, %62 : vector<1x1x128xf32>
    %65 = arith.divf %61, %64 : vector<1x1x128xf32>
    %66 = arith.select %53, %60, %65 : vector<1x1x128xi1>, vector<1x1x128xf32>
    %c0_30 = arith.constant 0 : index
    %c0_31 = arith.constant 0 : index
    %c0_32 = arith.constant 0 : index
    %67 = vector.load %arg5[%c0_30, %c0_31, %c0_32] : memref<1x1x128xf32, #tpu.memory_space<vmem>>, vector<1x1x128xf32>
    tpu.vector_store %arg5[%c0_30, %c0_31, %c0_32], %66 {strides = array<i32>} : memref<1x1x128xf32, #tpu.memory_space<vmem>>, vector<1x1x128xf32>,
    return
  }
  func.func @transform_0(%arg0: i32) -> (i32, i32, i32, i32) {
    %c0_i32 = arith.constant 0 : i32
    %c0_i32_0 = arith.constant 0 : i32
    %c0_i32_1 = arith.constant 0 : i32
    %c0_i32_2 = arith.constant 0 : i32
    return %arg0, %c0_i32, %c0_i32_0, %c0_i32_1 : i32, i32, i32, i32
  }
  func.func @transform_1(%arg0: i32) -> (i32, i32, i32) {
    %c0_i32 = arith.constant 0 : i32
    %c0_i32_0 = arith.constant 0 : i32
    %c0_i32_1 = arith.constant 0 : i32
    %c0_i32_2 = arith.constant 0 : i32
    return %c0_i32, %c0_i32_0, %c0_i32_1 : i32, i32, i32
  }
  func.func @transform_2(%arg0: i32) -> (i32, i32, i32) {
    %c0_i32 = arith.constant 0 : i32
    %c0_i32_0 = arith.constant 0 : i32
    %c0_i32_1 = arith.constant 0 : i32
    %c0_i32_2 = arith.constant 0 : i32
    return %c0_i32, %c0_i32_0, %c0_i32_1 : i32, i32, i32
  }
  func.func @transform_3(%arg0: i32) -> (i32, i32, i32) {
    %c0_i32 = arith.constant 0 : i32
    %c0_i32_0 = arith.constant 0 : i32
    %c0_i32_1 = arith.constant 0 : i32
    %c0_i32_2 = arith.constant 0 : i32
    return %c0_i32, %c0_i32_0, %c0_i32_1 : i32, i32, i32
  }
  func.func @transform_4(%arg0: i32) -> (i32, i32, i32) {
    %c0_i32 = arith.constant 0 : i32
    %c0_i32_0 = arith.constant 0 : i32
    %c0_i32_1 = arith.constant 0 : i32
    return %arg0, %c0_i32, %c0_i32_0 : i32, i32, i32
  }
}

</mosaic_0001>

<bundles_post_ra>
// kernel: _lambda_.4
= control target key start
LH: loop header
LB: loop body
LE: loop exit
PB: predicated region body
PF: predicated region fallthrough
CT: control target
= control target key end

     0   :  { %s12026_s12 = smov 0   ;;  %s14160_s0 = inlined_call_operand.vmem [shape: bf16[2,33,33,12], index: 0, kind: input, shape index: {}]   ;;  %s14161_s1 = inlined_call_operand.vmem [shape: bf16[4,12,8], index: 1, kind: input, shape index: {}]   ;;  %s14162_s2 = inlined_call_operand.vmem [shape: f32[1,1,8], index: 2, kind: input, shape index: {}]   ;;  %s14163_s3 = inlined_call_operand.vmem [shape: bf16[2,32,32,8], index: 3, kind: output, shape index: {}]  }
   0x1 LB: > { %s9545_s13 = sadd.s32 4294967295, %s12004_s12   ;;  %p9549_p0 = scmp.ge.s32.totalorder %s12004_s12, 1  ;;  %s12004_s12 = sphi %s12026_s12, %s13_s12  }
   0x2   : > { %p137_p1 = scmp.lt.s32.totalorder %s12004_s12, 3 }
   0x4   : > { %p138_p2 = pnand %p9549_p0, %p137_p1 }
   0x6   : > { %141 = sbr.rel (%p138_p2) target bundleno = 791 (0x317), region = 32 }
   0xd   : > { %v12037_v0 = vld [vmem:[%s14161_s1 + $0x8] sm:$0x3f]   ;;  %vm388_vm0 = vcmask 1045504   ;;  %p161_p3 = scmp.lt.s32.totalorder %s9545_s13, 1  ;;  %vm355_vm1 = vsmask.f32 7424 }
   0xe   : > { %11714 = vmatprep.subr.msk.bf16.mxu0 %vm388_vm0, %v12037_v0  ;;  %11715 = vmatprep.subr.msk.bf16.mxu1 %vm388_vm0, %v12037_v0  ;;  %v12045_v1 = vsel %vm388_vm0, %v12037_v0, 0  ;;  %vm381_vm2 = vcmask 97280   ;;  %vm9361_vm3 = vcmask 60416  }
   0xf   : > { %10563 = vmatpush3.bf16.msra.mxu0 %v12045_v1  ;;  %10569 = vmatpush3.bf16.msra.mxu1 %v12045_v1  ;;  %s14351_s13 = smov (!%p161_p3, %s9545_s13), 1 }
  0x10   : > { %11716 = vmatprep.subr.msk.bf16.mxu0 %vm388_vm0, %v12037_v0  ;;  %11717 = vmatprep.subr.msk.bf16.mxu1 %vm388_vm0, %v12037_v0  ;;  %s11842_s16 = smul.u32 660, %s14351_s13  ;;  %s10049_s30 = sshll.u32 %s14351_s13, 9 }
  0x11   : > { %s13508_s6 = scalar_lea.vmem %s14163_s3, %s10049_s30 }
  0x12   : > { %s12059_s19 = scalar_lea.vmem %s14160_s0, %s11842_s16 }
  0x13   : > { %v11852_v2 = vld [vmem:[%s12059_s19] sm:$0xff]   ;;  %v11853_v3 = vld [vmem:[%s12059_s19 + $0x8] sm:$0xff]   ;;  %v11854_v8 = vld [vmem:[%s12059_s19 + $0x14] sm:$0xff]  }
  0x14   : > { %v357_v4 = vshrl.u32 %v11852_v2, 16  ;;  %v359_v5 = vshll.u32 %v11852_v2, 16  ;;  %v364_v6 = vshll.u32 %v11853_v3, 16  ;;  %v368_v7 = vshrl.u32 %v11853_v3, 16  ;;  %v11855_v9 = vld [vmem:[%s12059_s19 + $0x1c] sm:$0xff]   ;;  %v11858_v13 = vld [vmem:[%s12059_s19 + $0x28] sm:$0xff]  }
  0x15   : > { %v11856_v12 = vld [vmem:[%s12059_s19 + $0x10] ss:$0 sps:$4 sm:$0x11]   ;;  %v455_v14 = vshrl.u32 %v11854_v8, 16  ;;  %v457_v15 = vshll.u32 %v11854_v8, 16  ;;  %v462_v16 = vshll.u32 %v11855_v9, 16 }
  0x16   : > { %v361_v10 = vrot.slane %v359_v5, 1  ;;  %v366_v11 = vrot.slane %v364_v6, 1  ;;  %v466_v17 = vshrl.u32 %v11855_v9, 16  ;;  %v372_v20 = vshll.u32 %v11856_v12, 16  ;;  %v11859_v27 = vld [vmem:[%s12059_s19 + $0x30] sm:$0xff]   ;;  %v11860_v32 = vld [vmem:[%s12059_s19 + $0x3c] sm:$0xff]  }
  0x17   : > { %v11857_v21 = vld [vmem:[%s12059_s19 + $0x24] ss:$0 sps:$4 sm:$0x11]   ;;  %v459_v22 = vrot.slane %v457_v15, 1  ;;  %v464_v23 = vrot.slane %v462_v16, 1  ;;  %v543_v28 = vshrl.u32 %v11858_v13, 16 }
  0x18   : > { %v362_v18 = vor.u32 %v361_v10, %v357_v4  ;;  %v370_v19 = vor.u32 %v368_v7, %v366_v11  ;;  %v374_v25 = vrot.slane %v372_v20, 1  ;;  %v470_v26 = vshll.u32 %v11857_v21, 16  ;;  %v11861_v37 = vld [vmem:[%s12059_s19 + $0x44] sm:$0xff]   ;;  %v11864_v42 = vld [vmem:[%s12059_s19 + $0x50] sm:$0xff]   ;;  %v11865_v47 = vld [vmem:[%s12059_s19 + $0x58] sm:$0xff]  }
  0x19   : > { %v460_v29 = vor.u32 %v459_v22, %v455_v14  ;;  %v468_v30 = vor.u32 %v466_v17, %v464_v23  ;;  %v545_v31 = vshll.u32 %v11858_v13, 16  ;;  %v550_v35 = vshll.u32 %v11859_v27, 16  ;;  %v11862_v50 = vld [vmem:[%s12059_s19 + $0x38] ss:$0 sps:$4 sm:$0x11]   ;;  %v11866_v62 = vld [vmem:[%s12059_s19 + $0x64] sm:$0xff]  }
  0x1a   : > { %v367_v24 = vsel %vm355_vm1, %v362_v18, %v366_v11  ;;  %v375_v33 = vsel %vm355_vm1, %v370_v19, %v374_v25  ;;  %v472_v34 = vrot.slane %v470_v26, 1  ;;  %v554_v36 = vshrl.u32 %v11859_v27, 16  ;;  %v11863_v53 = vld [vmem:[%s12059_s19 + $0x4c] ss:$0 sps:$4 sm:$0x11]   ;;  %v11870_v18 = vld [vmem:[%s12059_s19 + $0x78] sm:$0xff]  }
  0x1b   : > { %10564 = vmatprep.mubr.msk.bf16.mxu0 %vm381_vm2, %v367_v24  ;;  %v12075_v38 = vsel %vm355_vm1, %v460_v29, %v464_v23  ;;  %v547_v39 = vrot.slane %v545_v31, 1  ;;  %v631_v40 = vshrl.u32 %v11860_v32, 16  ;;  %v633_v41 = vshll.u32 %v11860_v32, 16  ;;  %v11867_v7 = vld [vmem:[%s12059_s19 + $0x6c] sm:$0xff]   ;;  %v11871_v25 = vld [vmem:[%s12059_s19 + $0x80] sm:$0xff]  }
  0x1c   : > { %14226 = vst [vmem:[#allocation2_spill] sm:$0xff] %v12075_v38  ;;  %10565 = vmatmul.mubr.msk.bf16.vlgmr.msra.gmra.mrb[0].mxu0 %vm381_vm2, %v375_v33  ;;  %10570 = vmatprep.mubr.msk.bf16.mxu1 %vm381_vm2, %v12075_v38  ;;  %v12082_v43 = vsel %vm355_vm1, %v468_v30, %v472_v34  ;;  %v552_v44 = vrot.slane %v550_v35, 1  ;;  %v638_v45 = vshll.u32 %v11861_v37, 16  ;;  %v642_v46 = vshrl.u32 %v11861_v37, 16  ;;  %v11872_v30 = vld [vmem:[%s12059_s19 + $0x8c] sm:$0xff]   ;;  %v11873_v35 = vld [vmem:[%s12059_s19 + $0x94] sm:$0xff]  }
  0x1d   : > { %14227 = vst [vmem:[#allocation3_spill] sm:$0xff] %v12082_v43  ;;  %10575 = vmatpush3.bf16.msra.mxu0 %v12045_v1  ;;  %10571 = vmatmul.mubr.msk.bf16.vlgmr.msra.gmra.mrb[0].mxu1 %vm381_vm2, %v12082_v43  ;;  %v548_v48 = vor.u32 %v547_v39, %v543_v28  ;;  %v635_v49 = vrot.slane %v633_v41, 1  ;;  %v558_v56 = vshll.u32 %v11862_v50, 16  ;;  %v719_v57 = vshrl.u32 %v11864_v42, 16  ;;  %v12883_v43 = vld [vmem:[%s12059_s19 + $0x10c] sm:$0xff]   ;;  %v12901_v38 = vld [vmem:[%s12059_s19 + $0x120] sm:$0xff]  }
  0x1e   : > { %11718 = vmatprep.subr.msk.bf16.mxu0 %vm388_vm0, %v12037_v0  ;;  %10581 = vmatpush3.bf16.msra.mxu1 %v12045_v1  ;;  %v556_v51 = vor.u32 %v554_v36, %v552_v44  ;;  %v640_v52 = vrot.slane %v638_v45, 1  ;;  %v646_v59 = vshll.u32 %v11863_v53, 16  ;;  %v721_v60 = vshll.u32 %v11864_v42, 16  ;;  %v11868_v14 = vld [vmem:[%s12059_s19 + $0x60] ss:$0 sps:$4 sm:$0x11]  }
  0x1f   : > { %v12094_v54 = vsel %vm355_vm1, %v548_v48, %v552_v44  ;;  %v636_v55 = vor.u32 %v635_v49, %v631_v40  ;;  %11719 = vmatprep.subr.msk.bf16.mxu1 %vm388_vm0, %v12037_v0  ;;  %v726_v61 = vshll.u32 %v11865_v47, 16  ;;  %v560_v2 = vrot.slane %v558_v56, 1  ;;  %v11869_v17 = vld [vmem:[%s12059_s19 + $0x74] ss:$0 sps:$4 sm:$0x11]   ;;  %v11876_v45 = vld [vmem:[%s12059_s19 + $0xa0] sm:$0xff]  }
  0x20   : > { %14228 = vst [vmem:[#allocation4_spill] sm:$0xff] %v12094_v54  ;;  %10576 = vmatprep.mubr.msk.bf16.mxu0 %vm381_vm2, %v12094_v54  ;;  %v644_v58 = vor.u32 %v642_v46, %v640_v52  ;;  %v730_v3 = vshrl.u32 %v11865_v47, 16  ;;  %v648_v4 = vrot.slane %v646_v59, 1  ;;  %v723_v5 = vrot.slane %v721_v60, 1  ;;  %v12890_v54 = vld [vmem:[%s12059_s19 + $0x118] sm:$0xff]  }
  0x21   : > { %v12102_v63 = vsel %vm355_vm1, %v636_v55, %v640_v52  ;;  %v728_v6 = vrot.slane %v726_v61, 1  ;;  %v12108_v8 = vsel %vm355_vm1, %v556_v51, %v560_v2  ;;  %v807_v9 = vshrl.u32 %v11866_v62, 16  ;;  %v11874_v48 = vld [vmem:[%s12059_s19 + $0x88] ss:$0 sps:$4 sm:$0x11]  }
  0x22   : > { %14229 = vst [vmem:[#allocation5_spill] sm:$0xff] %v12102_v63  ;;  %10582 = vmatprep.mubr.msk.bf16.mxu1 %vm381_vm2, %v12102_v63  ;;  %14230 = vst [vmem:[#allocation6_spill] sm:$0xff] %v12108_v8  ;;  %v809_v10 = vshll.u32 %v11866_v62, 16  ;;  %v12113_v11 = vsel %vm355_vm1, %v644_v58, %v648_v4  ;;  %v724_v12 = vor.u32 %v723_v5, %v719_v57  ;;  %v814_v13 = vshll.u32 %v11867_v7, 16  ;;  %v11877_v52 = vld [vmem:[%s12059_s19 + $0xa8] sm:$0xff]   ;;  %v11878_v4 = vld [vmem:[%s12059_s19 + $0xb4] sm:$0xff]  }
  0x23   : > { %14231 = vst [vmem:[#allocation7_spill] sm:$0xff] %v12113_v11  ;;  %v818_v16 = vshrl.u32 %v11867_v7, 16  ;;  %v732_v20 = vor.u32 %v730_v3, %v728_v6  ;;  %v734_v22 = vshll.u32 %v11868_v14, 16  ;;  %v822_v24 = vshll.u32 %v11869_v17, 16  ;;  %v12869_v63 = vld [vmem:[%s12059_s19 + $0x104] sm:$0xff]  }
  0x24   : > { %10577 = vmatmul.mubr.msk.bf16.vlgmr.msra.gmra.mrb[4].mxu0 %vm381_vm2, %v12108_v8  ;;  %v811_v15 = vrot.slane %v809_v10, 1  ;;  %v12123_v19 = vsel %vm355_vm1, %v724_v12, %v728_v6  ;;  %v816_v21 = vrot.slane %v814_v13, 1  ;;  %v895_v28 = vshrl.u32 %v11870_v18, 16  ;;  %v11875_v51 = vld [vmem:[%s12059_s19 + $0x9c] ss:$0 sps:$4 sm:$0x11]  }
  0x25   : > { %10583 = vmatmul.mubr.msk.bf16.vlgmr.msra.gmra.mrb[4].mxu1 %vm381_vm2, %v12113_v11  ;;  %10587 = vmatpush3.bf16.msra.mxu0 %v12045_v1  ;;  %14232 = vst [vmem:[#allocation8_spill] sm:$0xff] %v12123_v19  ;;  %v736_v27 = vrot.slane %v734_v22, 1  ;;  %v897_v29 = vshll.u32 %v11870_v18, 16  ;;  %v824_v32 = vrot.slane %v822_v24, 1  ;;  %v902_v33 = vshll.u32 %v11871_v25, 16  ;;  %v11879_v12 = vld [vmem:[%s12059_s19 + $0xbc] sm:$0xff]  }
  0x26   : > { %10593 = vmatpush3.bf16.msra.mxu1 %v12045_v1  ;;  %11720 = vmatprep.subr.msk.bf16.mxu0 %vm388_vm0, %v12037_v0  ;;  %v812_v23 = vor.u32 %v811_v15, %v807_v9  ;;  %v820_v26 = vor.u32 %v818_v16, %v816_v21  ;;  %v906_v34 = vshrl.u32 %v11871_v25, 16  ;;  %v983_v39 = vshrl.u32 %v11872_v30, 16  ;;  %v11880_v17 = vld [vmem:[%s12059_s19 + $0xb0] ss:$0 sps:$4 sm:$0x11]   ;;  %v11882_v18 = vld [vmem:[%s12059_s19 + $0xc8] sm:$0xff]  }
  0x27   : > { %10588 = vmatprep.mubr.msk.bf16.mxu0 %vm381_vm2, %v12123_v19  ;;  %11721 = vmatprep.subr.msk.bf16.mxu1 %vm388_vm0, %v12037_v0  ;;  %v12140_v36 = vsel %vm355_vm1, %v732_v20, %v736_v27  ;;  %v899_v37 = vrot.slane %v897_v29, 1  ;;  %v904_v41 = vrot.slane %v902_v33, 1  ;;  %v985_v42 = vshll.u32 %v11872_v30, 16  ;;  %v11881_v27 = vld [vmem:[%s12059_s19 + $0xc4] ss:$0 sps:$4 sm:$0x11]  }
  0x28   : > { %v12134_v31 = vsel %vm355_vm1, %v812_v23, %v816_v21  ;;  %14234 = vst [vmem:[#allocation10_spill] sm:$0xff] %v12140_v36  ;;  %v12143_v40 = vsel %vm355_vm1, %v820_v26, %v824_v32  ;;  %v990_v44 = vshll.u32 %v11873_v35, 16  ;;  %v994_v47 = vshrl.u32 %v11873_v35, 16  ;;  %v11883_v23 = vld [vmem:[%s12059_s19 + $0xd0] sm:$0xff]   ;;  %v12857_v11 = vld [vmem:[%s12059_s19 + $0xe4] sm:$0xff]   ;;  %v12878_v8 = vld [vmem:[%s12059_s19 + $0xf8] sm:$0xff]  }
  0x29   : > { %14233 = vst [vmem:[#allocation9_spill] sm:$0xff] %v12134_v31  ;;  %10594 = vmatprep.mubr.msk.bf16.mxu1 %vm381_vm2, %v12134_v31  ;;  %14235 = vst [vmem:[#allocation11_spill] sm:$0xff] %v12143_v40  ;;  %v900_v46 = vor.u32 %v899_v37, %v895_v28  ;;  %v987_v49 = vrot.slane %v985_v42, 1  ;;  %v908_v55 = vor.u32 %v906_v34, %v904_v41  ;;  %v910_v56 = vshll.u32 %v11874_v48, 16  ;;  %v11884_v42 = vld [vmem:[%s12059_s19 + $0xdc] sm:$0xff]   ;;  %v11885_v48 = vld [vmem:[%s12059_s19 + $0xe4] sm:$0xff]  }
  0x2a   : > { %v992_v50 = vrot.slane %v990_v44, 1  ;;  %v1071_v57 = vshrl.u32 %v11876_v45, 16  ;;  %v998_v60 = vshll.u32 %v11875_v51, 16  ;;  %v1073_v61 = vshll.u32 %v11876_v45, 16  ;;  %v12864_v19 = vld [vmem:[%s12059_s19 + $0xf0] sm:$0xff]  }
  0x2b   : > { %v12156_v53 = vsel %vm355_vm1, %v900_v46, %v904_v41  ;;  %v988_v58 = vor.u32 %v987_v49, %v983_v39  ;;  %v912_v62 = vrot.slane %v910_v56, 1  ;;  %v1078_v2 = vshll.u32 %v11877_v52, 16  ;;  %v11886_v56 = vld [vmem:[%s12059_s19 + $0xd8] ss:$0 sps:$4 sm:$0x11]  }
  0x2c   : > { %10589 = vmatmul.mubr.msk.bf16.vlgmr.msra.gmra.mrb[8].mxu0 %vm381_vm2, %v12140_v36  ;;  %14236 = vst [vmem:[#allocation12_spill] sm:$0xff] %v12156_v53  ;;  %v996_v59 = vor.u32 %v994_v47, %v992_v50  ;;  %v1082_v3 = vshrl.u32 %v11877_v52, 16  ;;  %v1000_v6 = vrot.slane %v998_v60, 1  ;;  %v1075_v7 = vrot.slane %v1073_v61, 1  ;;  %v11888_v60 = vld [vmem:[%s12059_s19 + $0xf0] sm:$0xff]  }
  0x2d   : > { %10595 = vmatmul.mubr.msk.bf16.vlgmr.msra.gmra.mrb[8].mxu1 %vm381_vm2, %v12143_v40  ;;  %10599 = vmatpush3.bf16.msra.mxu0 %v12045_v1  ;;  %v12166_v5 = vsel %vm355_vm1, %v988_v58, %v992_v50  ;;  %v12171_v9 = vsel %vm355_vm1, %v908_v55, %v912_v62  ;;  %v1080_v10 = vrot.slane %v1078_v2, 1  ;;  %v1159_v13 = vshrl.u32 %v11878_v4, 16  ;;  %v12852_v36 = vld [vmem:[%s12059_s19 + $0xd0] sm:$0xff]  }
  0x2e   : > { %10605 = vmatpush3.bf16.msra.mxu1 %v12045_v1  ;;  %11722 = vmatprep.subr.msk.bf16.mxu0 %vm388_vm0, %v12037_v0  ;;  %14237 = vst [vmem:[#allocation13_spill] sm:$0xff] %v12166_v5  ;;  %14238 = vst [vmem:[#allocation14_spill] sm:$0xff] %v12171_v9  ;;  %v1161_v14 = vshll.u32 %v11878_v4, 16  ;;  %v12175_v15 = vsel %vm355_vm1, %v996_v59, %v1000_v6  ;;  %v1076_v16 = vor.u32 %v1075_v7, %v1071_v57  ;;  %v11887_v59 = vld [vmem:[%s12059_s19 + $0xec] ss:$0 sps:$4 sm:$0x11]  }
  0x2f   : > { %10600 = vmatprep.mubr.msk.bf16.mxu0 %vm381_vm2, %v12156_v53  ;;  %11723 = vmatprep.subr.msk.bf16.mxu1 %vm388_vm0, %v12037_v0  ;;  %14239 = vst [vmem:[#allocation15_spill] sm:$0xff] %v12175_v15  ;;  %v1166_v21 = vshll.u32 %v11879_v12, 16  ;;  %v1170_v22 = vshrl.u32 %v11879_v12, 16  ;;  %v1084_v25 = vor.u32 %v1082_v3, %v1080_v10  ;;  %v1086_v26 = vshll.u32 %v11880_v17, 16  ;;  %v11889_v7 = vld [vmem:[%s12059_s19 + $0xf8] sm:$0xff]   ;;  %v12631_v53 = vld [vmem:[%s12059_s19 + $0x260] sm:$0xff]  }
  0x30   : > { %10606 = vmatprep.mubr.msk.bf16.mxu1 %vm381_vm2, %v12166_v5  ;;  %v1163_v20 = vrot.slane %v1161_v14, 1  ;;  %v12186_v24 = vsel %vm355_vm1, %v1076_v16, %v1080_v10  ;;  %v1247_v30 = vshrl.u32 %v11882_v18, 16  ;;  %v1174_v33 = vshll.u32 %v11881_v27, 16  ;;  %v11890_v16 = vld [vmem:[%s12059_s19 + $0x104] sm:$0xff]  }
  0x31   : > { %14240 = vst [vmem:[#allocation16_spill] sm:$0xff] %v12186_v24  ;;  %v1168_v29 = vrot.slane %v1166_v21, 1  ;;  %v1088_v32 = vrot.slane %v1086_v26, 1  ;;  %v1249_v34 = vshll.u32 %v11882_v18, 16  ;;  %v1254_v35 = vshll.u32 %v11883_v23, 16 }
  0x32   : > { %v1164_v28 = vor.u32 %v1163_v20, %v1159_v13  ;;  %v1258_v41 = vshrl.u32 %v11883_v23, 16  ;;  %v1176_v45 = vrot.slane %v1174_v33, 1  ;;  %v1335_v49 = vshrl.u32 %v11884_v42, 16 }
  0x33   : > { %v1172_v39 = vor.u32 %v1170_v22, %v1168_v29  ;;  %v12203_v44 = vsel %vm355_vm1, %v1084_v25, %v1088_v32  ;;  %v1251_v46 = vrot.slane %v1249_v34, 1  ;;  %v1256_v47 = vrot.slane %v1254_v35, 1  ;;  %v11891_v22 = vld [vmem:[%s12059_s19 + $0x10c] sm:$0xff]   ;;  %v11894_v32 = vld [vmem:[%s12059_s19 + $0x118] sm:$0xff]  }
  0x34   : > { %10601 = vmatmul.mubr.msk.bf16.vlgmr.msra.gmra.mrb[12].mxu0 %vm381_vm2, %v12171_v9  ;;  %v12197_v37 = vsel %vm355_vm1, %v1164_v28, %v1168_v29  ;;  %14242 = vst [vmem:[#allocation18_spill] sm:$0xff] %v12203_v44  ;;  %v1337_v50 = vshll.u32 %v11884_v42, 16  ;;  %v1342_v55 = vshll.u32 %v11885_v48, 16  ;;  %v1346_v58 = vshrl.u32 %v11885_v48, 16 }
  0x35   : > { %10607 = vmatmul.mubr.msk.bf16.vlgmr.msra.gmra.mrb[12].mxu1 %vm381_vm2, %v12175_v15  ;;  %10611 = vmatpush3.bf16.msra.mxu0 %v12045_v1  ;;  %14241 = vst [vmem:[#allocation17_spill] sm:$0xff] %v12197_v37  ;;  %v12207_v51 = vsel %vm355_vm1, %v1172_v39, %v1176_v45  ;;  %v1252_v52 = vor.u32 %v1251_v46, %v1247_v30  ;;  %v1262_v3 = vshll.u32 %v11886_v56, 16  ;;  %v1350_v6 = vshll.u32 %v11887_v59, 16  ;;  %v11892_v35 = vld [vmem:[%s12059_s19 + $0x100] ss:$0 sps:$4 sm:$0x11]  }
  0x36   : > { %10617 = vmatpush3.bf16.msra.mxu1 %v12045_v1  ;;  %10612 = vmatprep.mubr.msk.bf16.mxu0 %vm381_vm2, %v12186_v24  ;;  %14243 = vst [vmem:[#allocation19_spill] sm:$0xff] %v12207_v51  ;;  %v1339_v57 = vrot.slane %v1337_v50, 1  ;;  %v1260_v62 = vor.u32 %v1258_v41, %v1256_v47  ;;  %v1344_v2 = vrot.slane %v1342_v55, 1  ;;  %v1423_v13 = vshrl.u32 %v11888_v60, 16  ;;  %v11895_v45 = vld [vmem:[%s12059_s19 + $0x120] sm:$0xff]  }
  0x37   : > { %11724 = vmatprep.subr.msk.bf16.mxu0 %vm388_vm0, %v12037_v0  ;;  %11725 = vmatprep.subr.msk.bf16.mxu1 %vm388_vm0, %v12037_v0  ;;  %v12218_v61 = vsel %vm355_vm1, %v1252_v52, %v1256_v47  ;;  %v1264_v12 = vrot.slane %v1262_v3, 1  ;;  %v1425_v14 = vshll.u32 %v11888_v60, 16  ;;  %v1352_v18 = vrot.slane %v1350_v6, 1  ;;  %v11893_v42 = vld [vmem:[%s12059_s19 + $0x114] ss:$0 sps:$4 sm:$0x11]  }
  0x38   : > { %10618 = vmatprep.mubr.msk.bf16.mxu1 %vm381_vm2, %v12197_v37  ;;  %14244 = vst [vmem:[#allocation20_spill] sm:$0xff] %v12218_v61  ;;  %v1340_v4 = vor.u32 %v1339_v57, %v1335_v49  ;;  %v1348_v10 = vor.u32 %v1346_v58, %v1344_v2  ;;  %v1430_v20 = vshll.u32 %v11889_v7, 16  ;;  %v1434_v21 = vshrl.u32 %v11889_v7, 16  ;;  %v12261_v60 = vld [vmem:[%s12059_s19 + $0x12c] sm:$0xff]   ;;  %v12272_v7 = vld [vmem:[%s12059_s19 + $0x134] sm:$0xff]  }
  0x39   : > { %v12236_v23 = vsel %vm355_vm1, %v1260_v62, %v1264_v12  ;;  %v1427_v25 = vrot.slane %v1425_v14, 1  ;;  %v1511_v26 = vshrl.u32 %v11890_v16, 16  ;;  %v1513_v29 = vshll.u32 %v11890_v16, 16  ;;  %v11898_v16 = vld [vmem:[%s12059_s19 + $0x128] ss:$0 sps:$4 sm:$0x11]  }
  0x3a   : > { %v12230_v17 = vsel %vm355_vm1, %v1340_v4, %v1344_v2  ;;  %14246 = vst [vmem:[#allocation22_spill] sm:$0xff] %v12236_v23  ;;  %v12239_v27 = vsel %vm355_vm1, %v1348_v10, %v1352_v18  ;;  %v1432_v28 = vrot.slane %v1430_v20, 1  ;;  %v1518_v30 = vshll.u32 %v11891_v22, 16  ;;  %v12281_v18 = vld [vmem:[%s12059_s19 + $0x140] sm:$0xff]  }
  0x3b   : > { %14245 = vst [vmem:[#allocation21_spill] sm:$0xff] %v12230_v17  ;;  %14247 = vst [vmem:[#allocation23_spill] sm:$0xff] %v12239_v27  ;;  %v1428_v33 = vor.u32 %v1427_v25, %v1423_v13  ;;  %v1522_v34 = vshrl.u32 %v11891_v22, 16  ;;  %v1515_v39 = vrot.slane %v1513_v29, 1  ;;  %v1438_v48 = vshll.u32 %v11892_v35, 16  ;;  %v12286_v25 = vld [vmem:[%s12059_s19 + $0x148] sm:$0xff]  }
  0x3c   : > { %10613 = vmatmul.mubr.msk.bf16.vlgmr.msra.gmra.mrb[16].mxu0 %vm381_vm2, %v12203_v44  ;;  %v1520_v41 = vrot.slane %v1518_v30, 1  ;;  %v1436_v47 = vor.u32 %v1434_v21, %v1432_v28  ;;  %v1599_v49 = vshrl.u32 %v11894_v32, 16  ;;  %v1526_v55 = vshll.u32 %v11893_v42, 16  ;;  %v11899_v29 = vld [vmem:[%s12059_s19 + $0x13c] ss:$0 sps:$4 sm:$0x11]  }
  0x3d   : > { %10619 = vmatmul.mubr.msk.bf16.vlgmr.msra.gmra.mrb[16].mxu1 %vm381_vm2, %v12207_v51  ;;  %10623 = vmatpush3.bf16.msra.mxu0 %v12045_v1  ;;  %v12251_v46 = vsel %vm355_vm1, %v1428_v33, %v1432_v28  ;;  %v1516_v50 = vor.u32 %v1515_v39, %v1511_v26  ;;  %v1601_v56 = vshll.u32 %v11894_v32, 16  ;;  %v1440_v57 = vrot.slane %v1438_v48, 1  ;;  %v11935_v44 = vld [vmem:[%s12059_s19 + $0x22c] ss:$0 sps:$4 sm:$0x11]  }
  0x3e   : > { %10629 = vmatpush3.bf16.msra.mxu1 %v12045_v1  ;;  %10624 = vmatprep.mubr.msk.bf16.mxu0 %vm381_vm2, %v12218_v61  ;;  %14248 = vst [vmem:[#allocation24_spill] sm:$0xff] %v12251_v46  ;;  %v1524_v52 = vor.u32 %v1522_v34, %v1520_v41  ;;  %v1606_v58 = vshll.u32 %v11895_v45, 16  ;;  %v1610_v59 = vshrl.u32 %v11895_v45, 16  ;;  %v1528_v2 = vrot.slane %v1526_v55, 1 }
  0x3f   : > { %11726 = vmatprep.subr.msk.bf16.mxu0 %vm388_vm0, %v12037_v0  ;;  %11727 = vmatprep.subr.msk.bf16.mxu1 %vm388_vm0, %v12037_v0  ;;  %v12264_v62 = vsel %vm355_vm1, %v1516_v50, %v1520_v41  ;;  %v1603_v3 = vrot.slane %v1601_v56, 1  ;;  %v12269_v4 = vsel %vm355_vm1, %v1436_v47, %v1440_v57  ;;  %v1687_v10 = vshrl.u32 %v12261_v60, 16  ;;  %v12317_v56 = vld [vmem:[%s12059_s19 + $0x15c] sm:$0xff]  }
  0x40   : > { %10630 = vmatprep.mubr.msk.bf16.mxu1 %vm381_vm2, %v12230_v17  ;;  %14249 = vst [vmem:[#allocation25_spill] sm:$0xff] %v12264_v62  ;;  %14250 = vst [vmem:[#allocation26_spill] sm:$0xff] %v12269_v4  ;;  %v1608_v6 = vrot.slane %v1606_v58, 1  ;;  %v1689_v12 = vshll.u32 %v12261_v60, 16  ;;  %v12277_v13 = vsel %vm355_vm1, %v1524_v52, %v1528_v2  ;;  %v1694_v21 = vshll.u32 %v12272_v7, 16 }
  0x41   : > { %14251 = vst [vmem:[#allocation27_spill] sm:$0xff] %v12277_v13  ;;  %v1604_v14 = vor.u32 %v1603_v3, %v1599_v49  ;;  %v1698_v22 = vshrl.u32 %v12272_v7, 16  ;;  %v1614_v28 = vshll.u32 %v11898_v16, 16  ;;  %v1775_v34 = vshrl.u32 %v12281_v18, 16  ;;  %v12312_v49 = vld [vmem:[%s12059_s19 + $0x154] sm:$0xff]  }
  0x42   : > { %v1691_v20 = vrot.slane %v1689_v12, 1  ;;  %v1612_v30 = vor.u32 %v1610_v59, %v1608_v6  ;;  %v1696_v33 = vrot.slane %v1694_v21, 1  ;;  %v1702_v39 = vshll.u32 %v11899_v29, 16  ;;  %v11905_v16 = vld [vmem:[%s12059_s19 + $0x164] ss:$0 sps:$4 sm:$0x11]  }
  0x43   : > { %v12291_v26 = vsel %vm355_vm1, %v1604_v14, %v1608_v6  ;;  %v1616_v35 = vrot.slane %v1614_v28, 1  ;;  %v1777_v41 = vshll.u32 %v12281_v18, 16  ;;  %v1782_v42 = vshll.u32 %v12286_v25, 16 }
  0x44   : > { %10625 = vmatmul.mubr.msk.bf16.vlgmr.msra.gmra.mrb[20].mxu0 %vm381_vm2, %v12236_v23  ;;  %14252 = vst [vmem:[#allocation28_spill] sm:$0xff] %v12291_v26  ;;  %v1692_v32 = vor.u32 %v1691_v20, %v1687_v10  ;;  %v1700_v47 = vor.u32 %v1698_v22, %v1696_v33  ;;  %v1786_v48 = vshrl.u32 %v12286_v25, 16  ;;  %v1704_v50 = vrot.slane %v1702_v39, 1  ;;  %v11904_v10 = vld [vmem:[%s12059_s19 + $0x150] ss:$0 sps:$4 sm:$0x11]  }
  0x45   : > { %10631 = vmatmul.mubr.msk.bf16.vlgmr.msra.gmra.mrb[20].mxu1 %vm381_vm2, %v12239_v27  ;;  %10635 = vmatpush3.bf16.msra.mxu0 %v12045_v1  ;;  %v1779_v52 = vrot.slane %v1777_v41, 1  ;;  %v1784_v55 = vrot.slane %v1782_v42, 1  ;;  %v12320_v57 = vsel %vm355_vm1, %v1612_v30, %v1616_v35  ;;  %v1863_v58 = vshrl.u32 %v12312_v49, 16  ;;  %v12332_v20 = vld [vmem:[%s12059_s19 + $0x168] sm:$0xff]   ;;  %v12351_v42 = vld [vmem:[%s12059_s19 + $0x17c] sm:$0xff]   ;;  %v12532_v23 = vld [vmem:[%s12059_s19 + $0x210] sm:$0xff]  }
  0x46   : > { %10641 = vmatpush3.bf16.msra.mxu1 %v12045_v1  ;;  %10636 = vmatprep.mubr.msk.bf16.mxu0 %vm381_vm2, %v12251_v46  ;;  %v12304_v45 = vsel %vm355_vm1, %v1692_v32, %v1696_v33  ;;  %14254 = vst [vmem:[#allocation30_spill] sm:$0xff] %v12320_v57  ;;  %v1865_v59 = vshll.u32 %v12312_v49, 16  ;;  %v12325_v2 = vsel %vm355_vm1, %v1700_v47, %v1704_v50  ;;  %v1870_v6 = vshll.u32 %v12317_v56, 16  ;;  %v12343_v33 = vld [vmem:[%s12059_s19 + $0x170] sm:$0xff]  }
  0x47   : > { %11728 = vmatprep.subr.msk.bf16.mxu0 %vm388_vm0, %v12037_v0  ;;  %11729 = vmatprep.subr.msk.bf16.mxu1 %vm388_vm0, %v12037_v0  ;;  %14253 = vst [vmem:[#allocation29_spill] sm:$0xff] %v12304_v45  ;;  %14255 = vst [vmem:[#allocation31_spill] sm:$0xff] %v12325_v2  ;;  %v1780_v3 = vor.u32 %v1779_v52, %v1775_v34  ;;  %v1874_v14 = vshrl.u32 %v12317_v56, 16  ;;  %v1790_v28 = vshll.u32 %v11904_v10, 16  ;;  %v1878_v32 = vshll.u32 %v11905_v16, 16 }
  0x48   : > { %10642 = vmatprep.mubr.msk.bf16.mxu1 %vm381_vm2, %v12264_v62  ;;  %v1867_v12 = vrot.slane %v1865_v59, 1  ;;  %v1872_v22 = vrot.slane %v1870_v6, 1  ;;  %v1788_v29 = vor.u32 %v1786_v48, %v1784_v55  ;;  %v1951_v39 = vshrl.u32 %v12332_v20, 16  ;;  %v11928_v27 = vld [vmem:[%s12059_s19 + $0x1f0] ss:$0 sps:$4 sm:$0x11]  }
  0x49   : > { %v12337_v21 = vsel %vm355_vm1, %v1780_v3, %v1784_v55  ;;  %v1792_v35 = vrot.slane %v1790_v28, 1  ;;  %v1953_v41 = vshll.u32 %v12332_v20, 16  ;;  %v1880_v48 = vrot.slane %v1878_v32, 1  ;;  %v12363_v55 = vld [vmem:[%s12059_s19 + $0x184] sm:$0xff]  }
  0x4a   : > { %14256 = vst [vmem:[#allocation32_spill] sm:$0xff] %v12337_v21  ;;  %v1868_v30 = vor.u32 %v1867_v12, %v1863_v58  ;;  %v1876_v34 = vor.u32 %v1874_v14, %v1872_v22  ;;  %v1958_v50 = vshll.u32 %v12343_v33, 16  ;;  %v1962_v52 = vshrl.u32 %v12343_v33, 16  ;;  %v12374_v14 = vld [vmem:[%s12059_s19 + $0x190] sm:$0xff]  }
  0x4b   : > { %v1955_v58 = vrot.slane %v1953_v41, 1  ;;  %v2039_v59 = vshrl.u32 %v12351_v42, 16  ;;  %v12369_v3 = vsel %vm355_vm1, %v1788_v29, %v1792_v35  ;;  %v2041_v10 = vshll.u32 %v12351_v42, 16 }
  0x4c   : > { %10637 = vmatmul.mubr.msk.bf16.vlgmr.msra.gmra.mrb[24].mxu0 %vm381_vm2, %v12269_v4  ;;  %v12354_v47 = vsel %vm355_vm1, %v1868_v30, %v1872_v22  ;;  %14258 = vst [vmem:[#allocation34_spill] sm:$0xff] %v12369_v3  ;;  %v1960_v6 = vrot.slane %v1958_v50, 1  ;;  %v2046_v12 = vshll.u32 %v12363_v55, 16  ;;  %v12377_v16 = vsel %vm355_vm1, %v1876_v34, %v1880_v48  ;;  %v11910_v30 = vld [vmem:[%s12059_s19 + $0x178] ss:$0 sps:$4 sm:$0x11]  }
  0x4d   : > { %10643 = vmatmul.mubr.msk.bf16.vlgmr.msra.gmra.mrb[24].mxu1 %vm381_vm2, %v12277_v13  ;;  %10647 = vmatpush3.bf16.msra.mxu0 %v12045_v1  ;;  %14257 = vst [vmem:[#allocation33_spill] sm:$0xff] %v12354_v47  ;;  %14259 = vst [vmem:[#allocation35_spill] sm:$0xff] %v12377_v16  ;;  %v1956_v22 = vor.u32 %v1955_v58, %v1951_v39  ;;  %v2050_v28 = vshrl.u32 %v12363_v55, 16  ;;  %v2043_v32 = vrot.slane %v2041_v10, 1  ;;  %v1966_v35 = vshll.u32 %v11910_v30, 16 }
  0x4e   : > { %10653 = vmatpush3.bf16.msra.mxu1 %v12045_v1  ;;  %10648 = vmatprep.mubr.msk.bf16.mxu0 %vm381_vm2, %v12291_v26  ;;  %v2048_v41 = vrot.slane %v2046_v12, 1  ;;  %v2127_v34 = vshrl.u32 %v12374_v14, 16  ;;  %v1964_v39 = vor.u32 %v1962_v52, %v1960_v6  ;;  %v2129_v58 = vshll.u32 %v12374_v14, 16  ;;  %v11923_v13 = vld [vmem:[%s12059_s19 + $0x1dc] ss:$0 sps:$4 sm:$0x11]  }
  0x4f   : > { %11730 = vmatprep.subr.msk.bf16.mxu0 %vm388_vm0, %v12037_v0  ;;  %11731 = vmatprep.subr.msk.bf16.mxu1 %vm388_vm0, %v12037_v0  ;;  %v12388_v29 = vsel %vm355_vm1, %v1956_v22, %v1960_v6  ;;  %v2044_v48 = vor.u32 %v2043_v32, %v2039_v59  ;;  %v1968_v12 = vrot.slane %v1966_v35, 1  ;;  %v12481_v26 = vld [vmem:[%s12059_s19 + $0x1e0] sm:$0xff]   ;;  %v2494_v61 = vshll.u32 %v11928_v27, 16 }
  0x50   : > { %10654 = vmatprep.mubr.msk.bf16.mxu1 %vm381_vm2, %v12304_v45  ;;  %14260 = vst [vmem:[#allocation36_spill] sm:$0xff] %v12388_v29  ;;  %v2052_v10 = vor.u32 %v2050_v28, %v2048_v41  ;;  %v2131_v59 = vrot.slane %v2129_v58, 1  ;;  %v12413_v28 = vld [vmem:[%s12059_s19 + $0x1ac] sm:$0xff]   ;;  %v2666_v27 = vshrl.u32 %v12532_v23, 16 }
  0x51   : > { %v12418_v35 = vsel %vm355_vm1, %v1964_v39, %v1968_v12  ;;  %v11917_v39 = vld [vmem:[%s12059_s19 + $0x1b4] ss:$0 sps:$4 sm:$0x11]  }
  0x52   : > { %14262 = vst [vmem:[#allocation38_spill] sm:$0xff] %v12418_v35 }
  0x54   : > { %10649 = vmatmul.mubr.msk.bf16.vlgmr.msra.gmra.mrb[28].mxu0 %vm381_vm2, %v12320_v57  ;;  %v11922_v57 = vld [vmem:[%s12059_s19 + $0x1c8] ss:$0 sps:$4 sm:$0x11]  }
  0x55   : > { %10655 = vmatmul.mubr.msk.bf16.vlgmr.msra.gmra.mrb[28].mxu1 %vm381_vm2, %v12325_v2  ;;  %10659 = vmatpush3.bf16.msra.mxu0 %v12045_v1  ;;  %v12383_v2 = vld [vmem:[%s12059_s19 + $0x198] sm:$0xff]  }
  0x56   : > { %10665 = vmatpush3.bf16.msra.mxu1 %v12045_v1  ;;  %10660 = vmatprep.mubr.msk.bf16.mxu0 %vm381_vm2, %v12337_v21  ;;  %v2134_v22 = vshll.u32 %v12383_v2, 16  ;;  %v2138_v30 = vshrl.u32 %v12383_v2, 16 }
  0x57   : > { %11732 = vmatprep.subr.msk.bf16.mxu0 %vm388_vm0, %v12037_v0  ;;  %11733 = vmatprep.subr.msk.bf16.mxu1 %vm388_vm0, %v12037_v0 }
  0x58   : > { %10666 = vmatprep.mubr.msk.bf16.mxu1 %vm381_vm2, %v12354_v47  ;;  %v11911_v47 = vld [vmem:[%s12059_s19 + $0x18c] ss:$0 sps:$4 sm:$0x11]   ;;  %v2136_v6 = vrot.slane %v2134_v22, 1  ;;  %v2226_v22 = vshrl.u32 %v12413_v28, 16 }
  0x59   : > { %v2054_v50 = vshll.u32 %v11911_v47, 16  ;;  %v12404_v47 = vsel %vm355_vm1, %v2044_v48, %v2048_v41  ;;  %v2132_v48 = vor.u32 %v2131_v59, %v2127_v34 }
  0x5a   : > { %14261 = vst [vmem:[#allocation37_spill] sm:$0xff] %v12404_v47  ;;  %v2140_v34 = vor.u32 %v2138_v30, %v2136_v6 }
  0x5b   : > { %v2056_v52 = vrot.slane %v2054_v50, 1  ;;  %v12433_v21 = vsel %vm355_vm1, %v2132_v48, %v2136_v6 }
  0x5c   : > { %10661 = vmatmul.mubr.msk.bf16.vlgmr.msra.gmra.mrb[32].mxu0 %vm381_vm2, %v12369_v3  ;;  %v12430_v3 = vld [vmem:[%s12059_s19 + $0x1c0] sm:$0xff]   ;;  %14264 = vst [vmem:[#allocation40_spill] sm:$0xff] %v12433_v21 }
  0x5d   : > { %10667 = vmatmul.mubr.msk.bf16.vlgmr.msra.gmra.mrb[32].mxu1 %vm381_vm2, %v12377_v16  ;;  %10671 = vmatpush3.bf16.msra.mxu0 %v12045_v1  ;;  %v12401_v16 = vld [vmem:[%s12059_s19 + $0x1a4] sm:$0xff]   ;;  %v12425_v50 = vsel %vm355_vm1, %v2052_v10, %v2056_v52  ;;  %v2310_v48 = vshll.u32 %v12430_v3, 16  ;;  %v2314_v6 = vshrl.u32 %v12430_v3, 16 }
  0x5e   : > { %10677 = vmatpush3.bf16.msra.mxu1 %v12045_v1  ;;  %10672 = vmatprep.mubr.msk.bf16.mxu0 %vm381_vm2, %v12388_v29  ;;  %v2215_v32 = vshrl.u32 %v12401_v16, 16  ;;  %v2217_v41 = vshll.u32 %v12401_v16, 16  ;;  %v11916_v29 = vld [vmem:[%s12059_s19 + $0x1a0] ss:$0 sps:$4 sm:$0x11]   ;;  %14263 = vst [vmem:[#allocation39_spill] sm:$0xff] %v12425_v50 }
  0x5f   : > { %11734 = vmatprep.subr.msk.bf16.mxu0 %vm388_vm0, %v12037_v0  ;;  %11735 = vmatprep.subr.msk.bf16.mxu1 %vm388_vm0, %v12037_v0  ;;  %v12422_v0 = vld [vmem:[%s12059_s19 + $0x1b8] sm:$0xff]   ;;  %v2142_v45 = vshll.u32 %v11916_v29, 16 }
  0x60   : > { %10678 = vmatprep.mubr.msk.bf16.mxu1 %vm381_vm2, %v12404_v47  ;;  %v2219_v58 = vrot.slane %v2217_v41, 1  ;;  %v2222_v47 = vshll.u32 %v12413_v28, 16  ;;  %v2303_v52 = vshrl.u32 %v12422_v0, 16  ;;  %v2230_v41 = vshll.u32 %v11917_v39, 16 }
  0x61   : > { %v2144_v59 = vrot.slane %v2142_v45, 1  ;;  %v2305_v29 = vshll.u32 %v12422_v0, 16  ;;  %v12459_v45 = vld [vmem:[%s14161_s1 + $0x8] sm:$0x3f]   ;;  %v2312_v39 = vrot.slane %v2310_v48, 1 }
  0x62   : > { %v2220_v12 = vor.u32 %v2219_v58, %v2215_v32  ;;  %v2224_v10 = vrot.slane %v2222_v47, 1  ;;  %v12452_v32 = vld [vmem:[%s12059_s19 + $0x1cc] sm:$0xff]   ;;  %v2232_v58 = vrot.slane %v2230_v41, 1 }
  0x64   : > { %10673 = vmatmul.mubr.msk.bf16.vlgmr.msra.gmra.mrb[36].mxu0 %vm381_vm2, %v12418_v35  ;;  %v12448_v30 = vsel %vm355_vm1, %v2220_v12, %v2224_v10  ;;  %v2228_v47 = vor.u32 %v2226_v22, %v2224_v10  ;;  %v2307_v22 = vrot.slane %v2305_v29, 1  ;;  %v12464_v12 = vld [vmem:[%s12059_s19 + $0x1d4] sm:$0xff]   ;;  %v2391_v10 = vshrl.u32 %v12452_v32, 16 }
  0x65   : > { %10679 = vmatmul.mubr.msk.bf16.vlgmr.msra.gmra.mrb[36].mxu1 %vm381_vm2, %v12425_v50  ;;  %10683 = vmatpush3.bf16.msra.mxu0 %v12045_v1  ;;  %14265 = vst [vmem:[#allocation41_spill] sm:$0xff] %v12448_v30  ;;  %v12471_v50 = vsel %vm355_vm1, %v2140_v34, %v2144_v59  ;;  %v2398_v35 = vshll.u32 %v12464_v12, 16  ;;  %v2402_v48 = vshrl.u32 %v12464_v12, 16  ;;  %v2318_v59 = vshll.u32 %v11922_v57, 16 }
  0x66   : > { %10689 = vmatpush3.bf16.msra.mxu1 %v12045_v1  ;;  %10684 = vmatprep.mubr.msk.bf16.mxu0 %vm381_vm2, %v12433_v21  ;;  %14266 = vst [vmem:[#allocation42_spill] sm:$0xff] %v12471_v50  ;;  %v2308_v21 = vor.u32 %v2307_v22, %v2303_v52  ;;  %v12476_v41 = vsel %vm355_vm1, %v2228_v47, %v2232_v58  ;;  %v2406_v47 = vshll.u32 %v11923_v13, 16  ;;  %v12489_v58 = vld [vmem:[%s12059_s19 + $0x1e8] sm:$0xff]   ;;  %v2481_v57 = vshll.u32 %v12481_v26, 16 }
  0x67   : > { %10690 = vmatprep.mubr.msk.bf16.mxu1 %vm381_vm2, %v12448_v30  ;;  %11736 = vmatprep.subr.msk.bf16.mxu0 %vm388_vm0, %v12459_v45  ;;  %v2393_v30 = vshll.u32 %v12452_v32, 16  ;;  %14267 = vst [vmem:[#allocation43_spill] sm:$0xff] %v12476_v41  ;;  %v2400_v34 = vrot.slane %v2398_v35, 1  ;;  %v2316_v52 = vor.u32 %v2314_v6, %v2312_v39  ;;  %v2320_v4 = vrot.slane %v2318_v59, 1  ;;  %v12497_v35 = vld [vmem:[%s12059_s19 + $0x1f4] sm:$0xff]  }
  0x68   : > { %11737 = vmatprep.subr.msk.bf16.mxu1 %vm388_vm0, %v12459_v45  ;;  %v12484_v62 = vsel %vm355_vm1, %v2308_v21, %v2312_v39  ;;  %v2479_v21 = vshrl.u32 %v12481_v26, 16  ;;  %v2408_v6 = vrot.slane %v2406_v47, 1  ;;  %v2486_v39 = vshll.u32 %v12489_v58, 16 }
  0x69   : > { %v2395_v29 = vrot.slane %v2393_v30, 1  ;;  %14268 = vst [vmem:[#allocation44_spill] sm:$0xff] %v12484_v62  ;;  %v2404_v30 = vor.u32 %v2402_v48, %v2400_v34  ;;  %v2483_v48 = vrot.slane %v2481_v57, 1 }
  0x6a   : > { %v2488_v59 = vrot.slane %v2486_v39, 1  ;;  %v11929_v39 = vld [vmem:[%s12059_s19 + $0x204] ss:$0 sps:$4 sm:$0x11]  }
  0x6b   : > { %v2396_v22 = vor.u32 %v2395_v29, %v2391_v10  ;;  %v2490_v10 = vshrl.u32 %v12489_v58, 16  ;;  %v12508_v29 = vld [vmem:[%s12059_s19 + $0x1fc] sm:$0xff]   ;;  %v12528_v57 = vsel %vm355_vm1, %v2404_v30, %v2408_v6 }
  0x6c   : > { %10685 = vmatmul.mubr.msk.bf16.vlgmr.msra.gmra.mrb[40].mxu0 %vm381_vm2, %v12471_v50  ;;  %v2574_v47 = vshll.u32 %v12508_v29, 16  ;;  %v2578_v50 = vshrl.u32 %v12508_v29, 16  ;;  %14271 = vst [vmem:[#allocation47_spill] sm:$0xff] %v12528_v57 }
  0x6d   : > { %10691 = vmatmul.mubr.msk.bf16.vlgmr.msra.gmra.mrb[40].mxu1 %vm381_vm2, %v12476_v41  ;;  %10695 = vmatpush3.bf16.msra.mxu0 %v12045_v1  ;;  %v12503_v13 = vsel %vm355_vm1, %v2396_v22, %v2400_v34  ;;  %v2567_v34 = vshrl.u32 %v12497_v35, 16  ;;  %v2569_v22 = vshll.u32 %v12497_v35, 16  ;;  %v12520_v41 = vld [vmem:[%s12059_s19 + $0x208] sm:$0xff]   ;;  %v2492_v6 = vor.u32 %v2490_v10, %v2488_v59 }
  0x6e   : > { %10701 = vmatpush3.bf16.msra.mxu1 %v12045_v1  ;;  %10696 = vmatprep.mubr.msk.bf16.mxu0 %vm381_vm2, %v12484_v62  ;;  %14269 = vst [vmem:[#allocation45_spill] sm:$0xff] %v12503_v13  ;;  %v2484_v62 = vor.u32 %v2483_v48, %v2479_v21  ;;  %v2576_v17 = vrot.slane %v2574_v47, 1  ;;  %v2582_v21 = vshll.u32 %v11929_v39, 16  ;;  %v2657_v30 = vshll.u32 %v12520_v41, 16 }
  0x6f   : > { %10702 = vmatprep.mubr.msk.bf16.mxu1 %vm381_vm2, %v12503_v13  ;;  %11738 = vmatprep.subr.msk.bf16.mxu0 %vm388_vm0, %v12459_v45  ;;  %v12523_v13 = vsel %vm355_vm1, %v2316_v52, %v2320_v4  ;;  %v2571_v46 = vrot.slane %v2569_v22, 1  ;;  %v2655_v4 = vshrl.u32 %v12520_v41, 16  ;;  %v2496_v48 = vrot.slane %v2494_v61, 1  ;;  %v12547_v22 = vld [vmem:[%s12059_s19 + $0x21c] sm:$0xff]  }
  0x70   : > { %11739 = vmatprep.subr.msk.bf16.mxu1 %vm388_vm0, %v12459_v45  ;;  %14270 = vst [vmem:[#allocation46_spill] sm:$0xff] %v12523_v13  ;;  %v12535_v51 = vsel %vm355_vm1, %v2484_v62, %v2488_v59  ;;  %v2662_v62 = vshll.u32 %v12532_v23, 16  ;;  %v2584_v47 = vrot.slane %v2582_v21, 1  ;;  %v2659_v61 = vrot.slane %v2657_v30, 1  ;;  %v12560_v59 = vld [vmem:[%s12059_s19 + $0x224] sm:$0xff]  }
  0x71   : > { %14272 = vst [vmem:[#allocation48_spill] sm:$0xff] %v12535_v51  ;;  %v2572_v52 = vor.u32 %v2571_v46, %v2567_v34  ;;  %v2580_v34 = vor.u32 %v2578_v50, %v2576_v17  ;;  %v2743_v39 = vshrl.u32 %v12547_v22, 16  ;;  %v11934_v50 = vld [vmem:[%s12059_s19 + $0x218] ss:$0 sps:$4 sm:$0x11]   ;;  %v12571_v21 = vsel %vm355_vm1, %v2492_v6, %v2496_v48 }
  0x72   : > { %v2664_v10 = vrot.slane %v2662_v62, 1  ;;  %14274 = vst [vmem:[#allocation50_spill] sm:$0xff] %v12571_v21  ;;  %v2754_v62 = vshrl.u32 %v12560_v59, 16  ;;  %v2670_v37 = vshll.u32 %v11934_v50, 16  ;;  %v2758_v48 = vshll.u32 %v11935_v44, 16 }
  0x73   : > { %v12553_v46 = vsel %vm355_vm1, %v2572_v52, %v2576_v17  ;;  %v2660_v17 = vor.u32 %v2659_v61, %v2655_v4  ;;  %v12568_v52 = vld [vmem:[%s12059_s19 + $0x230] sm:$0xff]  }
  0x74   : > { %10697 = vmatmul.mubr.msk.bf16.vlgmr.msra.gmra.mrb[44].mxu0 %vm381_vm2, %v12523_v13  ;;  %14273 = vst [vmem:[#allocation49_spill] sm:$0xff] %v12553_v46  ;;  %v12579_v13 = vsel %vm355_vm1, %v2580_v34, %v2584_v47  ;;  %v2831_v6 = vshrl.u32 %v12568_v52, 16  ;;  %v2833_v24 = vshll.u32 %v12568_v52, 16  ;;  %v2668_v47 = vor.u32 %v2666_v27, %v2664_v10  ;;  %v12604_v27 = vld [vmem:[%s12059_s19 + $0x24c] sm:$0xff]  }
  0x75   : > { %10703 = vmatmul.mubr.msk.bf16.vlgmr.msra.gmra.mrb[44].mxu1 %vm381_vm2, %v12528_v57  ;;  %10707 = vmatpush3.bf16.msra.mxu0 %v12045_v1  ;;  %v2745_v57 = vshll.u32 %v12547_v22, 16  ;;  %14275 = vst [vmem:[#allocation51_spill] sm:$0xff] %v12579_v13  ;;  %v12583_v4 = vsel %vm355_vm1, %v2660_v17, %v2664_v10  ;;  %v12598_v17 = vld [vmem:[%s12059_s19 + $0x244] sm:$0xff]   ;;  %v2760_v44 = vrot.slane %v2758_v48, 1 }
  0x76   : > { %10713 = vmatpush3.bf16.msra.mxu1 %v12045_v1  ;;  %10708 = vmatprep.mubr.msk.bf16.mxu0 %vm381_vm2, %v12535_v51  ;;  %v12576_v51 = vld [vmem:[%s12059_s19 + $0x238] sm:$0xff]   ;;  %14276 = vst [vmem:[#allocation52_spill] sm:$0xff] %v12583_v4  ;;  %v2835_v50 = vrot.slane %v2833_v24, 1  ;;  %v2919_v10 = vshrl.u32 %v12598_v17, 16  ;;  %v2926_v24 = vshll.u32 %v12604_v27, 16 }
  0x77   : > { %10714 = vmatprep.mubr.msk.bf16.mxu1 %vm381_vm2, %v12553_v46  ;;  %11740 = vmatprep.subr.msk.bf16.mxu0 %vm388_vm0, %v12459_v45  ;;  %v2747_v30 = vrot.slane %v2745_v57, 1  ;;  %v2750_v46 = vshll.u32 %v12560_v59, 16  ;;  %v2672_v57 = vrot.slane %v2670_v37, 1  ;;  %v2838_v34 = vshll.u32 %v12576_v51, 16 }
  0x78   : > { %11741 = vmatprep.subr.msk.bf16.mxu1 %vm388_vm0, %v12459_v45  ;;  %v2928_v5 = vrot.slane %v2926_v24, 1 }
  0x79   : > { %v2748_v61 = vor.u32 %v2747_v30, %v2743_v39  ;;  %v2752_v15 = vrot.slane %v2750_v46, 1  ;;  %v2842_v39 = vshrl.u32 %v12576_v51, 16  ;;  %v2840_v30 = vrot.slane %v2838_v34, 1 }
  0x7a   : > { %v12617_v48 = vsel %vm355_vm1, %v2668_v47, %v2672_v57 }
  0x7b   : > { %v12594_v46 = vsel %vm355_vm1, %v2748_v61, %v2752_v15  ;;  %v2756_v37 = vor.u32 %v2754_v62, %v2752_v15  ;;  %v2921_v61 = vshll.u32 %v12598_v17, 16  ;;  %v2836_v15 = vor.u32 %v2835_v50, %v2831_v6  ;;  %v11940_v62 = vld [vmem:[%s12059_s19 + $0x240] ss:$0 sps:$4 sm:$0x11]   ;;  %14278 = vst [vmem:[#allocation54_spill] sm:$0xff] %v12617_v48 }
  0x7c   : > { %10709 = vmatmul.mubr.msk.bf16.vlgmr.msra.gmra.mrb[48].mxu0 %vm381_vm2, %v12571_v21  ;;  %14277 = vst [vmem:[#allocation53_spill] sm:$0xff] %v12594_v46  ;;  %v2846_v9 = vshll.u32 %v11940_v62, 16 }
  0x7d   : > { %10715 = vmatmul.mubr.msk.bf16.vlgmr.msra.gmra.mrb[48].mxu1 %vm381_vm2, %v12579_v13  ;;  %10719 = vmatpush3.bf16.msra.mxu0 %v12045_v1  ;;  %v2923_v34 = vrot.slane %v2921_v61, 1  ;;  %v11941_v13 = vld [vmem:[%s12059_s19 + $0x254] ss:$0 sps:$4 sm:$0x11]   ;;  %v12625_v21 = vsel %vm355_vm1, %v2756_v37, %v2760_v44  ;;  %v12628_v6 = vsel %vm355_vm1, %v2836_v15, %v2840_v30  ;;  %v12638_v61 = vld [vmem:[%s12059_s19 + $0x26c] sm:$0xff]   ;;  %v2844_v37 = vor.u32 %v2842_v39, %v2840_v30 }
  0x7e   : > { %10725 = vmatpush3.bf16.msra.mxu1 %v12045_v1  ;;  %10720 = vmatprep.mubr.msk.bf16.mxu0 %vm381_vm2, %v12583_v4  ;;  %v12622_v4 = vld [vmem:[%s12059_s19 + $0x258] sm:$0xff]   ;;  %14279 = vst [vmem:[#allocation55_spill] sm:$0xff] %v12625_v21  ;;  %14280 = vst [vmem:[#allocation56_spill] sm:$0xff] %v12628_v6  ;;  %v2934_v40 = vshll.u32 %v11941_v13, 16  ;;  %v2848_v13 = vrot.slane %v2846_v9, 1  ;;  %v3095_v39 = vshrl.u32 %v12638_v61, 16 }
  0x7f   : > { %10726 = vmatprep.mubr.msk.bf16.mxu1 %vm381_vm2, %v12594_v46  ;;  %11742 = vmatprep.subr.msk.bf16.mxu0 %vm388_vm0, %v12459_v45  ;;  %v2930_v46 = vshrl.u32 %v12604_v27, 16  ;;  %v2924_v50 = vor.u32 %v2923_v34, %v2919_v10  ;;  %v3007_v57 = vshrl.u32 %v12622_v4, 16  ;;  %v3009_v47 = vshll.u32 %v12622_v4, 16  ;;  %v12648_v15 = vld [vmem:[%s12059_s19 + $0x274] sm:$0xff]  }
  0x80   : > { %11743 = vmatprep.subr.msk.bf16.mxu1 %vm388_vm0, %v12459_v45  ;;  %v3014_v10 = vshll.u32 %v12631_v53, 16  ;;  %v2936_v62 = vrot.slane %v2934_v40, 1  ;;  %v3097_v30 = vshll.u32 %v12638_v61, 16  ;;  %v3018_v40 = vshrl.u32 %v12631_v53, 16 }
  0x81   : > { %v12644_v44 = vsel %vm355_vm1, %v2924_v50, %v2928_v5  ;;  %v2932_v24 = vor.u32 %v2930_v46, %v2928_v5  ;;  %v3011_v34 = vrot.slane %v3009_v47, 1  ;;  %v3102_v50 = vshll.u32 %v12648_v15, 16  ;;  %v11947_v46 = vld [vmem:[%s12059_s19 + $0x268] ss:$0 sps:$4 sm:$0x11]  }
  0x82   : > { %14281 = vst [vmem:[#allocation57_spill] sm:$0xff] %v12644_v44  ;;  %v3016_v9 = vrot.slane %v3014_v10, 1  ;;  %v12665_v47 = vsel %vm355_vm1, %v2844_v37, %v2848_v13  ;;  %v3106_v10 = vshrl.u32 %v12648_v15, 16 }
  0x83   : > { %v3012_v5 = vor.u32 %v3011_v34, %v3007_v57  ;;  %14282 = vst [vmem:[#allocation58_spill] sm:$0xff] %v12665_v47  ;;  %v11948_v57 = vld [vmem:[%s12059_s19 + $0x27c] ss:$0 sps:$4 sm:$0x11]  }
  0x84   : > { %10721 = vmatmul.mubr.msk.bf16.vlgmr.msra.gmra.mrb[52].mxu0 %vm381_vm2, %v12617_v48  ;;  %v12674_v48 = vsel %vm355_vm1, %v2932_v24, %v2936_v62  ;;  %v3110_v37 = vshll.u32 %v11948_v57, 16  ;;  %v3020_v13 = vor.u32 %v3018_v40, %v3016_v9  ;;  %v12734_v40 = vld [vmem:[%s12059_s19 + $0x28] sm:$0xff]   ;;  %v12760_v57 = vld [vmem:[%s12059_s19 + $0x50] sm:$0xff]  }
  0x85   : > { %10727 = vmatmul.mubr.msk.bf16.vlgmr.msra.gmra.mrb[52].mxu1 %vm381_vm2, %v12625_v21  ;;  %10731 = vmatpush3.bf16.msra.mxu0 %v12045_v1  ;;  %v3104_v21 = vrot.slane %v3102_v50, 1  ;;  %14283 = vst [vmem:[#allocation59_spill] sm:$0xff] %v12674_v48  ;;  %v12678_v34 = vsel %vm355_vm1, %v3012_v5, %v3016_v9  ;;  %v11955_v9 = vld [vmem:[%s12059_s19] sm:$0xff]   ;;  %v11957_v50 = vld [vmem:[%s12059_s19 + $0x8] sm:$0xff]  }
  0x86   : > { %10737 = vmatpush3.bf16.msra.mxu1 %v12045_v1  ;;  %10732 = vmatprep.mubr.msk.bf16.mxu0 %vm381_vm2, %v12628_v6  ;;  %v12671_v6 = vld [vmem:[%s14161_s1] sm:$0x3f]   ;;  %14284 = vst [vmem:[#allocation60_spill] sm:$0xff] %v12678_v34  ;;  %v3112_v62 = vrot.slane %v3110_v37, 1 }
  0x87   : > { %10738 = vmatprep.mubr.msk.bf16.mxu1 %vm381_vm2, %v12644_v44  ;;  %11744 = vmatprep.subr.msk.bf16.mxu0 %vm388_vm0, %v12459_v45  ;;  %v3099_v44 = vrot.slane %v3097_v30, 1  ;;  %v12727_v5 = vld [vmem:[%s12059_s19 + $0x1c] sm:$0xff]   ;;  %v12765_v37 = vld [vmem:[%s12059_s19 + $0x64] sm:$0xff]  }
  0x88   : > { %11745 = vmatprep.subr.msk.bf16.mxu1 %vm388_vm0, %v12459_v45  ;;  %v3022_v45 = vshll.u32 %v11947_v46, 16  ;;  %v12739_v46 = vld [vmem:[%s12059_s19 + $0x3c] sm:$0xff]  }
  0x89   : > { %v3100_v31 = vor.u32 %v3099_v44, %v3095_v39  ;;  %v3108_v44 = vor.u32 %v3106_v10, %v3104_v21  ;;  %v12716_v39 = vld [vmem:[%s12059_s19 + $0x14] sm:$0xff]  }
  0x8a   : > { %v3024_v24 = vrot.slane %v3022_v45, 1  ;;  %v12748_v10 = vld [vmem:[%s12059_s19 + $0x30] sm:$0xff]   ;;  %v12753_v45 = vld [vmem:[%s12059_s19 + $0x44] sm:$0xff]  }
  0x8b   : > { %v12686_v30 = vsel %vm355_vm1, %v3100_v31, %v3104_v21  ;;  %v12705_v21 = vsel %vm388_vm0, %v12671_v6, 0 }
  0x8c   : > { %10733 = vmatmul.mubr.msk.bf16.vlgmr.msra.gmra.mrb[56].mxu0 %vm381_vm2, %v12665_v47  ;;  %14285 = vst [vmem:[#allocation61_spill] sm:$0xff] %v12686_v30  ;;  %v12698_v31 = vsel %vm355_vm1, %v3020_v13, %v3024_v24  ;;  %v12774_v13 = vld [vmem:[%s12059_s19 + $0x58] sm:$0xff]   ;;  %v12779_v24 = vld [vmem:[%s12059_s19 + $0x6c] sm:$0xff]  }
  0x8d   : > { %10739 = vmatmul.mubr.msk.bf16.vlgmr.msra.gmra.mrb[56].mxu1 %vm381_vm2, %v12674_v48  ;;  %10743 = vmatpush3.bf16.msra.mxu0 %v12045_v1  ;;  %14286 = vst [vmem:[#allocation62_spill] sm:$0xff] %v12698_v31  ;;  %v12831_v48 = vld [vmem:[%s12059_s19 + $0xbc] sm:$0xff]  }
  0x8e   : > { %10749 = vmatpush3.bf16.msra.mxu1 %v12045_v1  ;;  %10744 = vmatprep.mubr.msk.bf16.mxu0 %vm381_vm2, %v12678_v34  ;;  %v12701_v1 = vsel %vm355_vm1, %v3108_v44, %v3112_v62  ;;  %v12786_v44 = vld [vmem:[%s12059_s19 + $0x78] sm:$0xff]   ;;  %v12791_v62 = vld [vmem:[%s12059_s19 + $0x8c] sm:$0xff]  }
  0x8f   : > { %10750 = vmatprep.mubr.msk.bf16.mxu1 %vm381_vm2, %v12686_v30  ;;  %11746 = vmatprep.subr.msk.bf16.mxu0 %vm388_vm0, %v12671_v6  ;;  %14287 = vst [vmem:[#allocation63_spill] sm:$0xff] %v12701_v1  ;;  %v12817_v30 = vld [vmem:[%s12059_s19 + $0xb4] sm:$0xff]   ;;  %v12838_v34 = vld [vmem:[%s12059_s19 + $0xc8] sm:$0xff]   ;;  %v12843_v47 = vld [vmem:[%s12059_s19 + $0xdc] sm:$0xff]  }
  0x90   : > { %11747 = vmatprep.subr.msk.bf16.mxu1 %vm388_vm0, %v12671_v6 }
  0x94   : > { %10745 = vmatmul.mubr.msk.bf16.vlgmr.msra.gmra.mrb[60].mxu0 %vm381_vm2, %v12698_v31  ;;  %v12826_v31 = vld [vmem:[%s12059_s19 + $0xa8] sm:$0xff]  }
  0x95   : > { %10751 = vmatmul.mubr.msk.bf16.vlgmr.msra.gmra.mrb[60].mxu1 %vm381_vm2, %v12701_v1  ;;  %10755 = vmatpush3.bf16.msra.mxu0 %v12705_v21  ;;  %v12812_v1 = vld [vmem:[%s12059_s19 + $0xa0] sm:$0xff]  }
  0x96   : > { %10761 = vmatpush3.bf16.msra.mxu1 %v12705_v21  ;;  %10756 = vmatprep.mubr.msk.bf16.mxu0 %vm381_vm2, %v11955_v9  ;;  %v12800_v9 = vld [vmem:[%s12059_s19 + $0x80] sm:$0xff]  }
  0x97   : > { %10762 = vmatprep.mubr.msk.bf16.mxu1 %vm381_vm2, %v12716_v39  ;;  %11748 = vmatprep.subr.msk.bf16.mxu0 %vm388_vm0, %v12671_v6 }
  0x98   : > { %11749 = vmatprep.subr.msk.bf16.mxu1 %vm388_vm0, %v12671_v6 }
  0x9c   : > { %10757 = vmatmul.mubr.msk.bf16.vlgmr.msra.gmra.mrb[0].mxu0 %vm381_vm2, %v11957_v50  ;;  %v12805_v50 = vld [vmem:[%s12059_s19 + $0x94] sm:$0xff]  }
  0x9d   : > { %10763 = vmatmul.mubr.msk.bf16.vlgmr.msra.gmra.mrb[0].mxu1 %vm381_vm2, %v12727_v5  ;;  %10767 = vmatpush3.bf16.msra.mxu0 %v12705_v21 }
  0x9e   : > { %10773 = vmatpush3.bf16.msra.mxu1 %v12705_v21  ;;  %10768 = vmatprep.mubr.msk.bf16.mxu0 %vm381_vm2, %v12734_v40 }
  0x9f   : > { %10774 = vmatprep.mubr.msk.bf16.mxu1 %vm381_vm2, %v12739_v46  ;;  %11750 = vmatprep.subr.msk.bf16.mxu0 %vm388_vm0, %v12671_v6 }
  0xa0   : > { %11751 = vmatprep.subr.msk.bf16.mxu1 %vm388_vm0, %v12671_v6 }
  0xa4   : > { %10769 = vmatmul.mubr.msk.bf16.vlgmr.msra.gmra.mrb[4].mxu0 %vm381_vm2, %v12748_v10 }
  0xa5   : > { %10775 = vmatmul.mubr.msk.bf16.vlgmr.msra.gmra.mrb[4].mxu1 %vm381_vm2, %v12753_v45  ;;  %10779 = vmatpush3.bf16.msra.mxu0 %v12705_v21 }
  0xa6   : > { %10785 = vmatpush3.bf16.msra.mxu1 %v12705_v21  ;;  %10780 = vmatprep.mubr.msk.bf16.mxu0 %vm381_vm2, %v12760_v57 }
  0xa7   : > { %10786 = vmatprep.mubr.msk.bf16.mxu1 %vm381_vm2, %v12765_v37  ;;  %11752 = vmatprep.subr.msk.bf16.mxu0 %vm388_vm0, %v12671_v6 }
  0xa8   : > { %11753 = vmatprep.subr.msk.bf16.mxu1 %vm388_vm0, %v12671_v6 }
  0xac   : > { %10781 = vmatmul.mubr.msk.bf16.vlgmr.msra.gmra.mrb[8].mxu0 %vm381_vm2, %v12774_v13 }
  0xad   : > { %10787 = vmatmul.mubr.msk.bf16.vlgmr.msra.gmra.mrb[8].mxu1 %vm381_vm2, %v12779_v24  ;;  %10791 = vmatpush3.bf16.msra.mxu0 %v12705_v21 }
  0xae   : > { %10797 = vmatpush3.bf16.msra.mxu1 %v12705_v21  ;;  %10792 = vmatprep.mubr.msk.bf16.mxu0 %vm381_vm2, %v12786_v44 }
  0xaf   : > { %10798 = vmatprep.mubr.msk.bf16.mxu1 %vm381_vm2, %v12791_v62  ;;  %11754 = vmatprep.subr.msk.bf16.mxu0 %vm388_vm0, %v12671_v6 }
  0xb0   : > { %11755 = vmatprep.subr.msk.bf16.mxu1 %vm388_vm0, %v12671_v6 }
  0xb4   : > { %10793 = vmatmul.mubr.msk.bf16.vlgmr.msra.gmra.mrb[12].mxu0 %vm381_vm2, %v12800_v9 }
  0xb5   : > { %10799 = vmatmul.mubr.msk.bf16.vlgmr.msra.gmra.mrb[12].mxu1 %vm381_vm2, %v12805_v50  ;;  %10803 = vmatpush3.bf16.msra.mxu0 %v12705_v21 }
  0xb6   : > { %10809 = vmatpush3.bf16.msra.mxu1 %v12705_v21  ;;  %10804 = vmatprep.mubr.msk.bf16.mxu0 %vm381_vm2, %v12812_v1 }
  0xb7   : > { %10810 = vmatprep.mubr.msk.bf16.mxu1 %vm381_vm2, %v12817_v30  ;;  %11756 = vmatprep.subr.msk.bf16.mxu0 %vm388_vm0, %v12671_v6 }
  0xb8   : > { %11757 = vmatprep.subr.msk.bf16.mxu1 %vm388_vm0, %v12671_v6 }
  0xbc   : > { %10805 = vmatmul.mubr.msk.bf16.vlgmr.msra.gmra.mrb[16].mxu0 %vm381_vm2, %v12826_v31 }
  0xbd   : > { %10811 = vmatmul.mubr.msk.bf16.vlgmr.msra.gmra.mrb[16].mxu1 %vm381_vm2, %v12831_v48  ;;  %10815 = vmatpush3.bf16.msra.mxu0 %v12705_v21 }
  0xbe   : > { %10821 = vmatpush3.bf16.msra.mxu1 %v12705_v21  ;;  %10816 = vmatprep.mubr.msk.bf16.mxu0 %vm381_vm2, %v12838_v34 }
  0xbf   : > { %10822 = vmatprep.mubr.msk.bf16.mxu1 %vm381_vm2, %v12843_v47  ;;  %11758 = vmatprep.subr.msk.bf16.mxu0 %vm388_vm0, %v12671_v6 }
  0xc0   : > { %11759 = vmatprep.subr.msk.bf16.mxu1 %vm388_vm0, %v12671_v6 }
  0xc4   : > { %10817 = vmatmul.mubr.msk.bf16.vlgmr.msra.gmra.mrb[20].mxu0 %vm381_vm2, %v12852_v36 }
  0xc5   : > { %10823 = vmatmul.mubr.msk.bf16.vlgmr.msra.gmra.mrb[20].mxu1 %vm381_vm2, %v12857_v11  ;;  %10827 = vmatpush3.bf16.msra.mxu0 %v12705_v21 }
  0xc6   : > { %10833 = vmatpush3.bf16.msra.mxu1 %v12705_v21  ;;  %10828 = vmatprep.mubr.msk.bf16.mxu0 %vm381_vm2, %v12864_v19 }
  0xc7   : > { %10834 = vmatprep.mubr.msk.bf16.mxu1 %vm381_vm2, %v12869_v63  ;;  %11760 = vmatprep.subr.msk.bf16.mxu0 %vm388_vm0, %v12671_v6 }
  0xc8   : > { %11761 = vmatprep.subr.msk.bf16.mxu1 %vm388_vm0, %v12671_v6 }
  0xcc   : > { %10829 = vmatmul.mubr.msk.bf16.vlgmr.msra.gmra.mrb[24].mxu0 %vm381_vm2, %v12878_v8 }
  0xcd   : > { %10835 = vmatmul.mubr.msk.bf16.vlgmr.msra.gmra.mrb[24].mxu1 %vm381_vm2, %v12883_v43  ;;  %10839 = vmatpush3.bf16.msra.mxu0 %v12705_v21 }
  0xce   : > { %10845 = vmatpush3.bf16.msra.mxu1 %v12705_v21  ;;  %10840 = vmatprep.mubr.msk.bf16.mxu0 %vm381_vm2, %v12890_v54 }
  0xcf   : > { %10846 = vmatprep.mubr.msk.bf16.mxu1 %vm381_vm2, %v12261_v60  ;;  %11762 = vmatprep.subr.msk.bf16.mxu0 %vm388_vm0, %v12671_v6  ;;  %v13004_v60 = vld [vmem:[%s14161_s1 + $0x10] sm:$0x3f]  }
  0xd0   : > { %11763 = vmatprep.subr.msk.bf16.mxu1 %vm388_vm0, %v12671_v6 }
  0xd4   : > { %10841 = vmatmul.mubr.msk.bf16.vlgmr.msra.gmra.mrb[28].mxu0 %vm381_vm2, %v12901_v38 }
  0xd5   : > { %10847 = vmatmul.mubr.msk.bf16.vlgmr.msra.gmra.mrb[28].mxu1 %vm381_vm2, %v12272_v7  ;;  %10851 = vmatpush3.bf16.msra.mxu0 %v12705_v21  ;;  %v13022_v7 = vsel %vm388_vm0, %v13004_v60, 0 }
  0xd6   : > { %10857 = vmatpush3.bf16.msra.mxu1 %v12705_v21  ;;  %10852 = vmatprep.mubr.msk.bf16.mxu0 %vm381_vm2, %v12281_v18  ;;  %v11993_v18 = vld [vmem:[%s12059_s19 + $0x17c] sm:$0xff]  }
  0xd7   : > { %10858 = vmatprep.mubr.msk.bf16.mxu1 %vm381_vm2, %v12312_v49  ;;  %11764 = vmatprep.subr.msk.bf16.mxu0 %vm388_vm0, %v12671_v6  ;;  %v11995_v49 = vld [vmem:[%s12059_s19 + $0x184] sm:$0xff]  }
  0xd8   : > { %11765 = vmatprep.subr.msk.bf16.mxu1 %vm388_vm0, %v12671_v6 }
  0xdc   : > { %10853 = vmatmul.mubr.msk.bf16.vlgmr.msra.gmra.mrb[32].mxu0 %vm381_vm2, %v12286_v25  ;;  %v11994_v25 = vld [vmem:[%s12059_s19 + $0x190] sm:$0xff]  }
  0xdd   : > { %10859 = vmatmul.mubr.msk.bf16.vlgmr.msra.gmra.mrb[32].mxu1 %vm381_vm2, %v12317_v56  ;;  %10863 = vmatpush3.bf16.msra.mxu0 %v12705_v21  ;;  %v11996_v56 = vld [vmem:[%s12059_s19 + $0x198] sm:$0xff]  }
  0xde   : > { %10869 = vmatpush3.bf16.msra.mxu1 %v12705_v21  ;;  %10864 = vmatprep.mubr.msk.bf16.mxu0 %vm381_vm2, %v12332_v20 }
  0xdf   : > { %10870 = vmatprep.mubr.msk.bf16.mxu1 %vm381_vm2, %v12351_v42  ;;  %11766 = vmatprep.subr.msk.bf16.mxu0 %vm388_vm0, %v12671_v6 }
  0xe0   : > { %11767 = vmatprep.subr.msk.bf16.mxu1 %vm388_vm0, %v12671_v6 }
  0xe4   : > { %10865 = vmatmul.mubr.msk.bf16.vlgmr.msra.gmra.mrb[36].mxu0 %vm381_vm2, %v12343_v33 }
  0xe5   : > { %10871 = vmatmul.mubr.msk.bf16.vlgmr.msra.gmra.mrb[36].mxu1 %vm381_vm2, %v12363_v55  ;;  %10875 = vmatpush3.bf16.msra.mxu0 %v12705_v21 }
  0xe6   : > { %10881 = vmatpush3.bf16.msra.mxu1 %v12705_v21  ;;  %10876 = vmatprep.mubr.msk.bf16.mxu0 %vm381_vm2, %v12374_v14 }
  0xe7   : > { %10882 = vmatprep.mubr.msk.bf16.mxu1 %vm381_vm2, %v12401_v16  ;;  %11768 = vmatprep.subr.msk.bf16.mxu0 %vm388_vm0, %v12671_v6 }
  0xe8   : > { %11769 = vmatprep.subr.msk.bf16.mxu1 %vm388_vm0, %v12671_v6 }
  0xec   : > { %10877 = vmatmul.mubr.msk.bf16.vlgmr.msra.gmra.mrb[40].mxu0 %vm381_vm2, %v12383_v2 }
  0xed   : > { %10883 = vmatmul.mubr.msk.bf16.vlgmr.msra.gmra.mrb[40].mxu1 %vm381_vm2, %v12413_v28  ;;  %10887 = vmatpush3.bf16.msra.mxu0 %v12705_v21 }
  0xee   : > { %10893 = vmatpush3.bf16.msra.mxu1 %v12705_v21  ;;  %10888 = vmatprep.mubr.msk.bf16.mxu0 %vm381_vm2, %v12422_v0 }
  0xef   : > { %10894 = vmatprep.mubr.msk.bf16.mxu1 %vm381_vm2, %v12452_v32  ;;  %11770 = vmatprep.subr.msk.bf16.mxu0 %vm388_vm0, %v12671_v6 }
  0xf0   : > { %11771 = vmatprep.subr.msk.bf16.mxu1 %vm388_vm0, %v12671_v6 }
  0xf4   : > { %10889 = vmatmul.mubr.msk.bf16.vlgmr.msra.gmra.mrb[44].mxu0 %vm381_vm2, %v12430_v3 }
  0xf5   : > { %10895 = vmatmul.mubr.msk.bf16.vlgmr.msra.gmra.mrb[44].mxu1 %vm381_vm2, %v12464_v12  ;;  %10899 = vmatpush3.bf16.msra.mxu0 %v12705_v21 }
  0xf6   : > { %10905 = vmatpush3.bf16.msra.mxu1 %v12705_v21  ;;  %10900 = vmatprep.mubr.msk.bf16.mxu0 %vm381_vm2, %v12481_v26 }
  0xf7   : > { %10906 = vmatprep.mubr.msk.bf16.mxu1 %vm381_vm2, %v12497_v35  ;;  %11772 = vmatprep.subr.msk.bf16.mxu0 %vm388_vm0, %v12671_v6 }
  0xf8   : > { %11773 = vmatprep.subr.msk.bf16.mxu1 %vm388_vm0, %v12671_v6 }
  0xfc   : > { %10901 = vmatmul.mubr.msk.bf16.vlgmr.msra.gmra.mrb[48].mxu0 %vm381_vm2, %v12489_v58 }
  0xfd   : > { %10907 = vmatmul.mubr.msk.bf16.vlgmr.msra.gmra.mrb[48].mxu1 %vm381_vm2, %v12508_v29  ;;  %10911 = vmatpush3.bf16.msra.mxu0 %v12705_v21 }
  0xfe   : > { %10917 = vmatpush3.bf16.msra.mxu1 %v12705_v21  ;;  %10912 = vmatprep.mubr.msk.bf16.mxu0 %vm381_vm2, %v12520_v41 }
  0xff   : > { %10918 = vmatprep.mubr.msk.bf16.mxu1 %vm381_vm2, %v12547_v22  ;;  %11774 = vmatprep.subr.msk.bf16.mxu0 %vm388_vm0, %v12671_v6 }
 0x100   : > { %11775 = vmatprep.subr.msk.bf16.mxu1 %vm388_vm0, %v12671_v6 }
 0x104   : > { %10913 = vmatmul.mubr.msk.bf16.vlgmr.msra.gmra.mrb[52].mxu0 %vm381_vm2, %v12532_v23 }
 0x105   : > { %10919 = vmatmul.mubr.msk.bf16.vlgmr.msra.gmra.mrb[52].mxu1 %vm381_vm2, %v12560_v59  ;;  %10923 = vmatpush3.bf16.msra.mxu0 %v12705_v21 }
 0x106   : > { %10929 = vmatpush3.bf16.msra.mxu1 %v12705_v21  ;;  %10924 = vmatprep.mubr.msk.bf16.mxu0 %vm381_vm2, %v12568_v52 }
 0x107   : > { %10930 = vmatprep.mubr.msk.bf16.mxu1 %vm381_vm2, %v12598_v17  ;;  %11776 = vmatprep.subr.msk.bf16.mxu0 %vm388_vm0, %v12671_v6 }
 0x108   : > { %11777 = vmatprep.subr.msk.bf16.mxu1 %vm388_vm0, %v12671_v6  ;;  %v14304_v6 = vld [vmem:[#allocation17_spill] sm:$0xff] }
 0x10c   : > { %10925 = vmatmul.mubr.msk.bf16.vlgmr.msra.gmra.mrb[56].mxu0 %vm381_vm2, %v12576_v51 }
 0x10d   : > { %10931 = vmatmul.mubr.msk.bf16.vlgmr.msra.gmra.mrb[56].mxu1 %vm381_vm2, %v12604_v27  ;;  %10935 = vmatpush3.bf16.msra.mxu0 %v12705_v21 }
 0x10e   : > { %10941 = vmatpush3.bf16.msra.mxu1 %v12705_v21  ;;  %10936 = vmatprep.mubr.msk.bf16.mxu0 %vm381_vm2, %v12622_v4  ;;  %v14312_v21 = vld [vmem:[#allocation25_spill] sm:$0xff] }
 0x10f   : > { %10942 = vmatprep.mubr.msk.bf16.mxu1 %vm381_vm2, %v12638_v61  ;;  %11778 = vmatprep.subr.msk.bf16.mxu0 %vm388_vm0, %v13004_v60 }
 0x110   : > { %11779 = vmatprep.subr.msk.bf16.mxu1 %vm388_vm0, %v13004_v60 }
 0x114   : > { %10937 = vmatmul.mubr.msk.bf16.vlgmr.msra.gmra.mrb[60].mxu0 %vm381_vm2, %v12631_v53 }
 0x115   : > { %10943 = vmatmul.mubr.msk.bf16.vlgmr.msra.gmra.mrb[60].mxu1 %vm381_vm2, %v12648_v15  ;;  %10947 = vmatpush3.bf16.msra.mxu0 %v13022_v7 }
 0x116   : > { %10953 = vmatpush3.bf16.msra.mxu1 %v13022_v7  ;;  %10948 = vmatprep.mubr.msk.bf16.mxu0 %vm381_vm2, %v12716_v39  ;;  %v14313_v39 = vld [vmem:[#allocation28_spill] sm:$0xff] }
 0x117   : > { %10954 = vmatprep.mubr.msk.bf16.mxu1 %vm381_vm2, %v12734_v40  ;;  %11780 = vmatprep.subr.msk.bf16.mxu0 %vm388_vm0, %v13004_v60  ;;  %v14315_v40 = vld [vmem:[#allocation30_spill] sm:$0xff] }
 0x118   : > { %11781 = vmatprep.subr.msk.bf16.mxu1 %vm388_vm0, %v13004_v60 }
 0x11c   : > { %10949 = vmatmul.mubr.msk.bf16.vlgmr.msra.gmra.mrb[0].mxu0 %vm381_vm2, %v12727_v5  ;;  %v14314_v5 = vld [vmem:[#allocation27_spill] sm:$0xff] }
 0x11d   : > { %10955 = vmatmul.mubr.msk.bf16.vlgmr.msra.gmra.mrb[0].mxu1 %vm381_vm2, %v12748_v10  ;;  %10959 = vmatpush3.bf16.msra.mxu0 %v13022_v7  ;;  %v14317_v10 = vld [vmem:[#allocation32_spill] sm:$0xff] }
 0x11e   : > { %10965 = vmatpush3.bf16.msra.mxu1 %v13022_v7  ;;  %10960 = vmatprep.mubr.msk.bf16.mxu0 %vm381_vm2, %v12739_v46  ;;  %v14316_v46 = vld [vmem:[#allocation29_spill] sm:$0xff] }
 0x11f   : > { %10966 = vmatprep.mubr.msk.bf16.mxu1 %vm381_vm2, %v12760_v57  ;;  %11782 = vmatprep.subr.msk.bf16.mxu0 %vm388_vm0, %v13004_v60  ;;  %v14319_v57 = vld [vmem:[#allocation34_spill] sm:$0xff] }
 0x120   : > { %11783 = vmatprep.subr.msk.bf16.mxu1 %vm388_vm0, %v13004_v60 }
 0x124   : > { %10961 = vmatmul.mubr.msk.bf16.vlgmr.msra.gmra.mrb[4].mxu0 %vm381_vm2, %v12753_v45  ;;  %v14318_v45 = vld [vmem:[#allocation31_spill] sm:$0xff] }
 0x125   : > { %10967 = vmatmul.mubr.msk.bf16.vlgmr.msra.gmra.mrb[4].mxu1 %vm381_vm2, %v12774_v13  ;;  %10971 = vmatpush3.bf16.msra.mxu0 %v13022_v7  ;;  %v14321_v13 = vld [vmem:[#allocation36_spill] sm:$0xff] }
 0x126   : > { %10977 = vmatpush3.bf16.msra.mxu1 %v13022_v7  ;;  %10972 = vmatprep.mubr.msk.bf16.mxu0 %vm381_vm2, %v12765_v37  ;;  %v14320_v37 = vld [vmem:[#allocation33_spill] sm:$0xff] }
 0x127   : > { %10978 = vmatprep.mubr.msk.bf16.mxu1 %vm381_vm2, %v12786_v44  ;;  %11784 = vmatprep.subr.msk.bf16.mxu0 %vm388_vm0, %v13004_v60  ;;  %v14323_v44 = vld [vmem:[#allocation38_spill] sm:$0xff] }
 0x128   : > { %11785 = vmatprep.subr.msk.bf16.mxu1 %vm388_vm0, %v13004_v60 }
 0x12c   : > { %10973 = vmatmul.mubr.msk.bf16.vlgmr.msra.gmra.mrb[8].mxu0 %vm381_vm2, %v12779_v24  ;;  %v14322_v24 = vld [vmem:[#allocation35_spill] sm:$0xff] }
 0x12d   : > { %10979 = vmatmul.mubr.msk.bf16.vlgmr.msra.gmra.mrb[8].mxu1 %vm381_vm2, %v12800_v9  ;;  %10983 = vmatpush3.bf16.msra.mxu0 %v13022_v7  ;;  %v14325_v9 = vld [vmem:[#allocation40_spill] sm:$0xff] }
 0x12e   : > { %10989 = vmatpush3.bf16.msra.mxu1 %v13022_v7  ;;  %10984 = vmatprep.mubr.msk.bf16.mxu0 %vm381_vm2, %v12791_v62  ;;  %v14324_v62 = vld [vmem:[#allocation37_spill] sm:$0xff] }
 0x12f   : > { %10990 = vmatprep.mubr.msk.bf16.mxu1 %vm381_vm2, %v12812_v1  ;;  %11786 = vmatprep.subr.msk.bf16.mxu0 %vm388_vm0, %v13004_v60  ;;  %v14311_v1 = vld [vmem:[#allocation26_spill] sm:$0xff] }
 0x130   : > { %11787 = vmatprep.subr.msk.bf16.mxu1 %vm388_vm0, %v13004_v60 }
 0x134   : > { %10985 = vmatmul.mubr.msk.bf16.vlgmr.msra.gmra.mrb[12].mxu0 %vm381_vm2, %v12805_v50  ;;  %v14326_v50 = vld [vmem:[#allocation39_spill] sm:$0xff] }
 0x135   : > { %10991 = vmatmul.mubr.msk.bf16.vlgmr.msra.gmra.mrb[12].mxu1 %vm381_vm2, %v12826_v31  ;;  %10995 = vmatpush3.bf16.msra.mxu0 %v13022_v7  ;;  %v14310_v31 = vld [vmem:[#allocation23_spill] sm:$0xff] }
 0x136   : > { %11001 = vmatpush3.bf16.msra.mxu1 %v13022_v7  ;;  %10996 = vmatprep.mubr.msk.bf16.mxu0 %vm381_vm2, %v12817_v30  ;;  %v14309_v30 = vld [vmem:[#allocation24_spill] sm:$0xff] }
 0x137   : > { %11002 = vmatprep.mubr.msk.bf16.mxu1 %vm381_vm2, %v12838_v34  ;;  %11788 = vmatprep.subr.msk.bf16.mxu0 %vm388_vm0, %v13004_v60  ;;  %v14308_v34 = vld [vmem:[#allocation21_spill] sm:$0xff] }
 0x138   : > { %11789 = vmatprep.subr.msk.bf16.mxu1 %vm388_vm0, %v13004_v60 }
 0x13c   : > { %10997 = vmatmul.mubr.msk.bf16.vlgmr.msra.gmra.mrb[16].mxu0 %vm381_vm2, %v12831_v48  ;;  %v14303_v48 = vld [vmem:[#allocation18_spill] sm:$0xff] }
 0x13d   : > { %11003 = vmatmul.mubr.msk.bf16.vlgmr.msra.gmra.mrb[16].mxu1 %vm381_vm2, %v12852_v36  ;;  %11007 = vmatpush3.bf16.msra.mxu0 %v13022_v7  ;;  %v11992_v36 = vld [vmem:[%s12059_s19 + $0x170] sm:$0xff]  }
 0x13e   : > { %11013 = vmatpush3.bf16.msra.mxu1 %v13022_v7  ;;  %11008 = vmatprep.mubr.msk.bf16.mxu0 %vm381_vm2, %v12843_v47  ;;  %v14307_v47 = vld [vmem:[#allocation22_spill] sm:$0xff] }
 0x13f   : > { %11014 = vmatprep.mubr.msk.bf16.mxu1 %vm381_vm2, %v12864_v19  ;;  %11790 = vmatprep.subr.msk.bf16.mxu0 %vm388_vm0, %v13004_v60  ;;  %v11991_v19 = vld [vmem:[%s12059_s19 + $0x15c] sm:$0xff]  }
 0x140   : > { %11791 = vmatprep.subr.msk.bf16.mxu1 %vm388_vm0, %v13004_v60 }
 0x144   : > { %11009 = vmatmul.mubr.msk.bf16.vlgmr.msra.gmra.mrb[20].mxu0 %vm381_vm2, %v12857_v11  ;;  %v11990_v11 = vld [vmem:[%s12059_s19 + $0x168] sm:$0xff]  }
 0x145   : > { %11015 = vmatmul.mubr.msk.bf16.vlgmr.msra.gmra.mrb[20].mxu1 %vm381_vm2, %v12878_v8  ;;  %11019 = vmatpush3.bf16.msra.mxu0 %v13022_v7  ;;  %v11989_v8 = vld [vmem:[%s12059_s19 + $0x154] sm:$0xff]  }
 0x146   : > { %11025 = vmatpush3.bf16.msra.mxu1 %v13022_v7  ;;  %11020 = vmatprep.mubr.msk.bf16.mxu0 %vm381_vm2, %v12869_v63  ;;  %v11985_v63 = vld [vmem:[%s12059_s19 + $0x12c] sm:$0xff]  }
 0x147   : > { %11026 = vmatprep.mubr.msk.bf16.mxu1 %vm381_vm2, %v12890_v54  ;;  %11792 = vmatprep.subr.msk.bf16.mxu0 %vm388_vm0, %v13004_v60  ;;  %v11986_v54 = vld [vmem:[%s12059_s19 + $0x140] sm:$0xff]  }
 0x148   : > { %11793 = vmatprep.subr.msk.bf16.mxu1 %vm388_vm0, %v13004_v60 }
 0x14c   : > { %11021 = vmatmul.mubr.msk.bf16.vlgmr.msra.gmra.mrb[24].mxu0 %vm381_vm2, %v12883_v43  ;;  %v11988_v43 = vld [vmem:[%s12059_s19 + $0x148] sm:$0xff]  }
 0x14d   : > { %11027 = vmatmul.mubr.msk.bf16.vlgmr.msra.gmra.mrb[24].mxu1 %vm381_vm2, %v12901_v38  ;;  %11031 = vmatpush3.bf16.msra.mxu0 %v13022_v7  ;;  %v11987_v38 = vld [vmem:[%s12059_s19 + $0x134] sm:$0xff]  }
 0x14e   : > { %11037 = vmatpush3.bf16.msra.mxu1 %v13022_v7  ;;  %11032 = vmatprep.mubr.msk.bf16.mxu0 %vm381_vm2, %v11985_v63  ;;  %v14329_v63 = vld [vmem:[#allocation44_spill] sm:$0xff] }
 0x14f   : > { %11038 = vmatprep.mubr.msk.bf16.mxu1 %vm381_vm2, %v11986_v54  ;;  %11794 = vmatprep.subr.msk.bf16.mxu0 %vm388_vm0, %v13004_v60  ;;  %v14330_v54 = vld [vmem:[#allocation43_spill] sm:$0xff] }
 0x150   : > { %11795 = vmatprep.subr.msk.bf16.mxu1 %vm388_vm0, %v13004_v60 }
 0x154   : > { %11033 = vmatmul.mubr.msk.bf16.vlgmr.msra.gmra.mrb[28].mxu0 %vm381_vm2, %v11987_v38  ;;  %v14331_v38 = vld [vmem:[#allocation46_spill] sm:$0xff] }
 0x155   : > { %11039 = vmatmul.mubr.msk.bf16.vlgmr.msra.gmra.mrb[28].mxu1 %vm381_vm2, %v11988_v43  ;;  %11043 = vmatpush3.bf16.msra.mxu0 %v13022_v7  ;;  %v14332_v43 = vld [vmem:[#allocation45_spill] sm:$0xff] }
 0x156   : > { %11049 = vmatpush3.bf16.msra.mxu1 %v13022_v7  ;;  %11044 = vmatprep.mubr.msk.bf16.mxu0 %vm381_vm2, %v11989_v8  ;;  %v14333_v8 = vld [vmem:[#allocation48_spill] sm:$0xff] }
 0x157   : > { %11050 = vmatprep.mubr.msk.bf16.mxu1 %vm381_vm2, %v11990_v11  ;;  %11796 = vmatprep.subr.msk.bf16.mxu0 %vm388_vm0, %v13004_v60  ;;  %v14334_v11 = vld [vmem:[#allocation47_spill] sm:$0xff] }
 0x158   : > { %11797 = vmatprep.subr.msk.bf16.mxu1 %vm388_vm0, %v13004_v60 }
 0x15c   : > { %11045 = vmatmul.mubr.msk.bf16.vlgmr.msra.gmra.mrb[32].mxu0 %vm381_vm2, %v11991_v19  ;;  %v14335_v19 = vld [vmem:[#allocation50_spill] sm:$0xff] }
 0x15d   : > { %11051 = vmatmul.mubr.msk.bf16.vlgmr.msra.gmra.mrb[32].mxu1 %vm381_vm2, %v11992_v36  ;;  %11055 = vmatpush3.bf16.msra.mxu0 %v13022_v7  ;;  %v14336_v36 = vld [vmem:[#allocation49_spill] sm:$0xff] }
 0x15e   : > { %11061 = vmatpush3.bf16.msra.mxu1 %v13022_v7  ;;  %11056 = vmatprep.mubr.msk.bf16.mxu0 %vm381_vm2, %v11993_v18  ;;  %v14337_v18 = vld [vmem:[#allocation52_spill] sm:$0xff] }
 0x15f   : > { %11062 = vmatprep.mubr.msk.bf16.mxu1 %vm381_vm2, %v11994_v25  ;;  %11798 = vmatprep.subr.msk.bf16.mxu0 %vm388_vm0, %v13004_v60  ;;  %v14338_v25 = vld [vmem:[#allocation51_spill] sm:$0xff] }
 0x160   : > { %11799 = vmatprep.subr.msk.bf16.mxu1 %vm388_vm0, %v13004_v60 }
 0x164   : > { %11057 = vmatmul.mubr.msk.bf16.vlgmr.msra.gmra.mrb[36].mxu0 %vm381_vm2, %v11995_v49  ;;  %v14339_v49 = vld [vmem:[#allocation54_spill] sm:$0xff] }
 0x165   : > { %11063 = vmatmul.mubr.msk.bf16.vlgmr.msra.gmra.mrb[36].mxu1 %vm381_vm2, %v11996_v56  ;;  %11067 = vmatpush3.bf16.msra.mxu0 %v13022_v7  ;;  %v14340_v56 = vld [vmem:[#allocation53_spill] sm:$0xff] }
 0x166   : > { %11073 = vmatpush3.bf16.msra.mxu1 %v13022_v7  ;;  %11068 = vmatprep.mubr.msk.bf16.mxu0 %vm381_vm2, %v12401_v16  ;;  %v14288_v16 = vld [vmem:[#allocation2_spill] sm:$0xff] }
 0x167   : > { %11074 = vmatprep.mubr.msk.bf16.mxu1 %vm381_vm2, %v12422_v0  ;;  %11800 = vmatprep.subr.msk.bf16.mxu0 %vm388_vm0, %v13004_v60  ;;  %v14290_v0 = vld [vmem:[#allocation3_spill] sm:$0xff] }
 0x168   : > { %11801 = vmatprep.subr.msk.bf16.mxu1 %vm388_vm0, %v13004_v60 }
 0x16c   : > { %11069 = vmatmul.mubr.msk.bf16.vlgmr.msra.gmra.mrb[40].mxu0 %vm381_vm2, %v12413_v28  ;;  %v14289_v28 = vld [vmem:[#allocation4_spill] sm:$0xff] }
 0x16d   : > { %11075 = vmatmul.mubr.msk.bf16.vlgmr.msra.gmra.mrb[40].mxu1 %vm381_vm2, %v12430_v3  ;;  %11079 = vmatpush3.bf16.msra.mxu0 %v13022_v7 }
 0x16e   : > { %11085 = vmatpush3.bf16.msra.mxu1 %v13022_v7  ;;  %11080 = vmatprep.mubr.msk.bf16.mxu0 %vm381_vm2, %v12452_v32  ;;  %v14291_v32 = vld [vmem:[#allocation6_spill] sm:$0xff] }
 0x16f   : > { %11086 = vmatprep.mubr.msk.bf16.mxu1 %vm381_vm2, %v12481_v26  ;;  %11802 = vmatprep.subr.msk.bf16.mxu0 %vm388_vm0, %v13004_v60  ;;  %v13243_v26 = vld [vmem:[%s12059_s19 + $0x288] sm:$0xff]  }
 0x170   : > { %11803 = vmatprep.subr.msk.bf16.mxu1 %vm388_vm0, %v13004_v60  ;;  %v8135_v33 = vshll.u32 %v13243_v26, 16 }
 0x174   : > { %11081 = vmatmul.mubr.msk.bf16.vlgmr.msra.gmra.mrb[44].mxu0 %vm381_vm2, %v12464_v12  ;;  %v14292_v12 = vld [vmem:[#allocation5_spill] sm:$0xff] }
 0x175   : > { %11087 = vmatmul.mubr.msk.bf16.vlgmr.msra.gmra.mrb[44].mxu1 %vm381_vm2, %v12489_v58  ;;  %11091 = vmatpush3.bf16.msra.mxu0 %v13022_v7  ;;  %v14294_v58 = vld [vmem:[#allocation7_spill] sm:$0xff] }
 0x176   : > { %11097 = vmatpush3.bf16.msra.mxu1 %v13022_v7  ;;  %11092 = vmatprep.mubr.msk.bf16.mxu0 %vm381_vm2, %v12497_v35  ;;  %v14295_v35 = vld [vmem:[#allocation10_spill] sm:$0xff] }
 0x177   : > { %11098 = vmatprep.mubr.msk.bf16.mxu1 %vm381_vm2, %v12520_v41  ;;  %11804 = vmatprep.subr.msk.bf16.mxu0 %vm388_vm0, %v13004_v60  ;;  %v14293_v41 = vld [vmem:[#allocation8_spill] sm:$0xff] }
 0x178   : > { %11805 = vmatprep.subr.msk.bf16.mxu1 %vm388_vm0, %v13004_v60 }
 0x17c   : > { %11093 = vmatmul.mubr.msk.bf16.vlgmr.msra.gmra.mrb[48].mxu0 %vm381_vm2, %v12508_v29  ;;  %v14296_v29 = vld [vmem:[#allocation9_spill] sm:$0xff] }
 0x17d   : > { %11099 = vmatmul.mubr.msk.bf16.vlgmr.msra.gmra.mrb[48].mxu1 %vm381_vm2, %v12532_v23  ;;  %11103 = vmatpush3.bf16.msra.mxu0 %v13022_v7  ;;  %v11950_v23 = vld [vmem:[%s12059_s19 + $0x280] sm:$0xff]  }
 0x17e   : > { %11109 = vmatpush3.bf16.msra.mxu1 %v13022_v7  ;;  %11104 = vmatprep.mubr.msk.bf16.mxu0 %vm381_vm2, %v12547_v22  ;;  %v8131_v2 = vshll.u32 %v11950_v23, 16  ;;  %v8129_v20 = vshrl.u32 %v11950_v23, 16  ;;  %v14297_v22 = vld [vmem:[#allocation12_spill] sm:$0xff] }
 0x17f   : > { %11110 = vmatprep.mubr.msk.bf16.mxu1 %vm381_vm2, %v12568_v52  ;;  %11806 = vmatprep.subr.msk.bf16.mxu0 %vm388_vm0, %v13004_v60  ;;  %v14299_v52 = vld [vmem:[#allocation14_spill] sm:$0xff] }
 0x180   : > { %11807 = vmatprep.subr.msk.bf16.mxu1 %vm388_vm0, %v13004_v60  ;;  %v8133_v42 = vrot.slane %v8131_v2, 1  ;;  %v14342_v2 = vld [vmem:[#allocation55_spill] sm:$0xff] }
 0x182   : > { %v8134_v55 = vor.u32 %v8133_v42, %v8129_v20  ;;  %v14343_v20 = vld [vmem:[#allocation58_spill] sm:$0xff]  ;;  %v11953_v42 = vld [vmem:[%s12059_s19 + $0x290] ss:$0 sps:$4 sm:$0x11]  }
 0x184   : > { %11105 = vmatmul.mubr.msk.bf16.vlgmr.msra.gmra.mrb[52].mxu0 %vm381_vm2, %v12560_v59  ;;  %v14298_v59 = vld [vmem:[#allocation11_spill] sm:$0xff] }
 0x185   : > { %11111 = vmatmul.mubr.msk.bf16.vlgmr.msra.gmra.mrb[52].mxu1 %vm381_vm2, %v12576_v51  ;;  %11115 = vmatpush3.bf16.msra.mxu0 %v13022_v7  ;;  %v13238_v51 = vld [vmem:[%s14161_s1 + $0x18] sm:$0x3f]  }
 0x186   : > { %11121 = vmatpush3.bf16.msra.mxu1 %v13022_v7  ;;  %11116 = vmatprep.mubr.msk.bf16.mxu0 %vm381_vm2, %v12598_v17  ;;  %v13261_v3 = vsel %vm388_vm0, %v13238_v51, 0  ;;  %v14301_v17 = vld [vmem:[#allocation16_spill] sm:$0xff] }
 0x187   : > { %11122 = vmatprep.mubr.msk.bf16.mxu1 %vm381_vm2, %v12622_v4  ;;  %11808 = vmatprep.subr.msk.bf16.mxu0 %vm388_vm0, %v13004_v60  ;;  %v14300_v4 = vld [vmem:[#allocation13_spill] sm:$0xff] }
 0x188   : > { %11809 = vmatprep.subr.msk.bf16.mxu1 %vm388_vm0, %v13004_v60  ;;  %v14327_v60 = vld [vmem:[#allocation42_spill] sm:$0xff] }
 0x18c   : > { %11117 = vmatmul.mubr.msk.bf16.vlgmr.msra.gmra.mrb[56].mxu0 %vm381_vm2, %v12604_v27  ;;  %v14302_v27 = vld [vmem:[#allocation15_spill] sm:$0xff] }
 0x18d   : > { %11123 = vmatmul.mubr.msk.bf16.vlgmr.msra.gmra.mrb[56].mxu1 %vm381_vm2, %v12631_v53  ;;  %11127 = vmatpush3.bf16.msra.mxu0 %v13022_v7  ;;  %v13257_v53 = vrot.slane %v8135_v33, 1  ;;  %v14344_v33 = vld [vmem:[#allocation57_spill] sm:$0xff] }
 0x18e   : > { %11133 = vmatpush3.bf16.msra.mxu1 %v13022_v7  ;;  %11128 = vmatprep.mubr.msk.bf16.mxu0 %vm381_vm2, %v12638_v61  ;;  %v14305_v61 = vld [vmem:[#allocation20_spill] sm:$0xff]  ;;  %v14328_v7 = vld [vmem:[#allocation41_spill] sm:$0xff] }
 0x18f   : > { %11134 = vmatprep.mubr.msk.bf16.mxu1 %vm381_vm2, %v11950_v23  ;;  %11810 = vmatprep.subr.msk.bf16.mxu0 %vm388_vm0, %v13238_v51  ;;  %v13265_v14 = vsel %vm355_vm1, %v8134_v55, %v13257_v53  ;;  %v14341_v23 = vld [vmem:[#allocation56_spill] sm:$0xff] }
 0x190   : > { %11811 = vmatprep.subr.msk.bf16.mxu1 %vm388_vm0, %v13238_v51  ;;  %v14345_v55 = vld [vmem:[#allocation60_spill] sm:$0xff] }
 0x194   : > { %11129 = vmatmul.mubr.msk.bf16.vlgmr.msra.gmra.mrb[60].mxu0 %vm381_vm2, %v12648_v15  ;;  %v14306_v15 = vld [vmem:[#allocation19_spill] sm:$0xff] }
 0x195   : > { %11135 = vmatmul.mubr.msk.bf16.vlgmr.msra.gmra.mrb[60].mxu1 %vm381_vm2, %v13243_v26  ;;  %11139 = vmatpush3.bf16.msra.mxu0 %v13261_v3 }
 0x196   : > { %11145 = vmatpush3.bf16.msra.mxu1 %v13261_v3  ;;  %11140 = vmatprep.mubr.msk.bf16.mxu0 %vm381_vm2, %v14288_v16  ;;  %v8139_v16 = vshrl.u32 %v13243_v26, 16 }
 0x197   : > { %11146 = vmatprep.mubr.msk.bf16.mxu1 %vm381_vm2, %v14289_v28  ;;  %11812 = vmatprep.subr.msk.bf16.mxu0 %vm388_vm0, %v13238_v51  ;;  %v8143_v28 = vshll.u32 %v11953_v42, 16 }
 0x198   : > { %11813 = vmatprep.subr.msk.bf16.mxu1 %vm388_vm0, %v13238_v51 }
 0x19c   : > { %11141 = vmatmul.mubr.msk.bf16.vlgmr.msra.gmra.mrb[0].mxu0 %vm381_vm2, %v14290_v0  ;;  %v14346_v0 = vld [vmem:[#allocation59_spill] sm:$0xff] }
 0x19d   : > { %11147 = vmatmul.mubr.msk.bf16.vlgmr.msra.gmra.mrb[0].mxu1 %vm381_vm2, %v14291_v32  ;;  %11151 = vmatpush3.bf16.msra.mxu0 %v13261_v3  ;;  %v14347_v32 = vld [vmem:[#allocation62_spill] sm:$0xff] }
 0x19e   : > { %11157 = vmatpush3.bf16.msra.mxu1 %v13261_v3  ;;  %11152 = vmatprep.mubr.msk.bf16.mxu0 %vm381_vm2, %v14292_v12  ;;  %v14348_v12 = vld [vmem:[#allocation61_spill] sm:$0xff] }
 0x19f   : > { %11158 = vmatprep.mubr.msk.bf16.mxu1 %vm381_vm2, %v14293_v41  ;;  %11814 = vmatprep.subr.msk.bf16.mxu0 %vm388_vm0, %v13238_v51  ;;  %v8141_v41 = vor.u32 %v8139_v16, %v13257_v53 }
 0x1a0   : > { %11815 = vmatprep.subr.msk.bf16.mxu1 %vm388_vm0, %v13238_v51 }
 0x1a4   : > { %11153 = vmatmul.mubr.msk.bf16.vlgmr.msra.gmra.mrb[4].mxu0 %vm381_vm2, %v14294_v58  ;;  %v14349_v58 = vld [vmem:[#allocation63_spill] sm:$0xff] }
 0x1a5   : > { %11159 = vmatmul.mubr.msk.bf16.vlgmr.msra.gmra.mrb[4].mxu1 %vm381_vm2, %v14295_v35  ;;  %11163 = vmatpush3.bf16.msra.mxu0 %v13261_v3 }
 0x1a6   : > { %11169 = vmatpush3.bf16.msra.mxu1 %v13261_v3  ;;  %11164 = vmatprep.mubr.msk.bf16.mxu0 %vm381_vm2, %v14296_v29 }
 0x1a7   : > { %11170 = vmatprep.mubr.msk.bf16.mxu1 %vm381_vm2, %v14297_v22  ;;  %11816 = vmatprep.subr.msk.bf16.mxu0 %vm388_vm0, %v13238_v51 }
 0x1a8   : > { %11817 = vmatprep.subr.msk.bf16.mxu1 %vm388_vm0, %v13238_v51 }
 0x1ac   : > { %11165 = vmatmul.mubr.msk.bf16.vlgmr.msra.gmra.mrb[8].mxu0 %vm381_vm2, %v14298_v59 }
 0x1ad   : > { %11171 = vmatmul.mubr.msk.bf16.vlgmr.msra.gmra.mrb[8].mxu1 %vm381_vm2, %v14299_v52  ;;  %11175 = vmatpush3.bf16.msra.mxu0 %v13261_v3 }
 0x1ae   : > { %11181 = vmatpush3.bf16.msra.mxu1 %v13261_v3  ;;  %11176 = vmatprep.mubr.msk.bf16.mxu0 %vm381_vm2, %v14300_v4 }
 0x1af   : > { %11182 = vmatprep.mubr.msk.bf16.mxu1 %vm381_vm2, %v14301_v17  ;;  %11818 = vmatprep.subr.msk.bf16.mxu0 %vm388_vm0, %v13238_v51 }
 0x1b0   : > { %11819 = vmatprep.subr.msk.bf16.mxu1 %vm388_vm0, %v13238_v51 }
 0x1b4   : > { %11177 = vmatmul.mubr.msk.bf16.vlgmr.msra.gmra.mrb[12].mxu0 %vm381_vm2, %v14302_v27 }
 0x1b5   : > { %11183 = vmatmul.mubr.msk.bf16.vlgmr.msra.gmra.mrb[12].mxu1 %vm381_vm2, %v14303_v48  ;;  %11187 = vmatpush3.bf16.msra.mxu0 %v13261_v3 }
 0x1b6   : > { %11193 = vmatpush3.bf16.msra.mxu1 %v13261_v3  ;;  %11188 = vmatprep.mubr.msk.bf16.mxu0 %vm381_vm2, %v14304_v6 }
 0x1b7   : > { %11194 = vmatprep.mubr.msk.bf16.mxu1 %vm381_vm2, %v14305_v61  ;;  %11820 = vmatprep.subr.msk.bf16.mxu0 %vm388_vm0, %v13238_v51 }
 0x1b8   : > { %11821 = vmatprep.subr.msk.bf16.mxu1 %vm388_vm0, %v13238_v51 }
 0x1bc   : > { %11189 = vmatmul.mubr.msk.bf16.vlgmr.msra.gmra.mrb[16].mxu0 %vm381_vm2, %v14306_v15 }
 0x1bd   : > { %11195 = vmatmul.mubr.msk.bf16.vlgmr.msra.gmra.mrb[16].mxu1 %vm381_vm2, %v14307_v47  ;;  %11199 = vmatpush3.bf16.msra.mxu0 %v13261_v3 }
 0x1be   : > { %11205 = vmatpush3.bf16.msra.mxu1 %v13261_v3  ;;  %11200 = vmatprep.mubr.msk.bf16.mxu0 %vm381_vm2, %v14308_v34 }
 0x1bf   : > { %11206 = vmatprep.mubr.msk.bf16.mxu1 %vm381_vm2, %v14309_v30  ;;  %11822 = vmatprep.subr.msk.bf16.mxu0 %vm388_vm0, %v13238_v51 }
 0x1c0   : > { %11823 = vmatprep.subr.msk.bf16.mxu1 %vm388_vm0, %v13238_v51 }
 0x1c4   : > { %11201 = vmatmul.mubr.msk.bf16.vlgmr.msra.gmra.mrb[20].mxu0 %vm381_vm2, %v14310_v31 }
 0x1c5   : > { %11207 = vmatmul.mubr.msk.bf16.vlgmr.msra.gmra.mrb[20].mxu1 %vm381_vm2, %v14311_v1  ;;  %11211 = vmatpush3.bf16.msra.mxu0 %v13261_v3 }
 0x1c6   : > { %11217 = vmatpush3.bf16.msra.mxu1 %v13261_v3  ;;  %11212 = vmatprep.mubr.msk.bf16.mxu0 %vm381_vm2, %v14312_v21 }
 0x1c7   : > { %11218 = vmatprep.mubr.msk.bf16.mxu1 %vm381_vm2, %v14313_v39  ;;  %11824 = vmatprep.subr.msk.bf16.mxu0 %vm388_vm0, %v13238_v51 }
 0x1c8   : > { %11825 = vmatprep.subr.msk.bf16.mxu1 %vm388_vm0, %v13238_v51 }
 0x1cc   : > { %11213 = vmatmul.mubr.msk.bf16.vlgmr.msra.gmra.mrb[24].mxu0 %vm381_vm2, %v14314_v5 }
 0x1cd   : > { %11219 = vmatmul.mubr.msk.bf16.vlgmr.msra.gmra.mrb[24].mxu1 %vm381_vm2, %v14315_v40  ;;  %11223 = vmatpush3.bf16.msra.mxu0 %v13261_v3 }
 0x1ce   : > { %11229 = vmatpush3.bf16.msra.mxu1 %v13261_v3  ;;  %11224 = vmatprep.mubr.msk.bf16.mxu0 %vm381_vm2, %v14316_v46 }
 0x1cf   : > { %11230 = vmatprep.mubr.msk.bf16.mxu1 %vm381_vm2, %v14317_v10  ;;  %11826 = vmatprep.subr.msk.bf16.mxu0 %vm388_vm0, %v13238_v51 }
 0x1d0   : > { %11827 = vmatprep.subr.msk.bf16.mxu1 %vm388_vm0, %v13238_v51 }
 0x1d4   : > { %11225 = vmatmul.mubr.msk.bf16.vlgmr.msra.gmra.mrb[28].mxu0 %vm381_vm2, %v14318_v45 }
 0x1d5   : > { %11231 = vmatmul.mubr.msk.bf16.vlgmr.msra.gmra.mrb[28].mxu1 %vm381_vm2, %v14319_v57  ;;  %11235 = vmatpush3.bf16.msra.mxu0 %v13261_v3 }
 0x1d6   : > { %11241 = vmatpush3.bf16.msra.mxu1 %v13261_v3  ;;  %11236 = vmatprep.mubr.msk.bf16.mxu0 %vm381_vm2, %v14320_v37 }
 0x1d7   : > { %11242 = vmatprep.mubr.msk.bf16.mxu1 %vm381_vm2, %v14321_v13  ;;  %11828 = vmatprep.subr.msk.bf16.mxu0 %vm388_vm0, %v13238_v51 }
 0x1d8   : > { %11829 = vmatprep.subr.msk.bf16.mxu1 %vm388_vm0, %v13238_v51 }
 0x1dc   : > { %11237 = vmatmul.mubr.msk.bf16.vlgmr.msra.gmra.mrb[32].mxu0 %vm381_vm2, %v14322_v24 }
 0x1dd   : > { %11243 = vmatmul.mubr.msk.bf16.vlgmr.msra.gmra.mrb[32].mxu1 %vm381_vm2, %v14323_v44  ;;  %11247 = vmatpush3.bf16.msra.mxu0 %v13261_v3 }
 0x1de   : > { %11253 = vmatpush3.bf16.msra.mxu1 %v13261_v3  ;;  %11248 = vmatprep.mubr.msk.bf16.mxu0 %vm381_vm2, %v14324_v62 }
 0x1df   : > { %11254 = vmatprep.mubr.msk.bf16.mxu1 %vm381_vm2, %v14325_v9  ;;  %11830 = vmatprep.subr.msk.bf16.mxu0 %vm388_vm0, %v13238_v51 }
 0x1e0   : > { %11831 = vmatprep.subr.msk.bf16.mxu1 %vm388_vm0, %v13238_v51 }
 0x1e4   : > { %11249 = vmatmul.mubr.msk.bf16.vlgmr.msra.gmra.mrb[36].mxu0 %vm381_vm2, %v14326_v50 }
 0x1e5   : > { %11255 = vmatmul.mubr.msk.bf16.vlgmr.msra.gmra.mrb[36].mxu1 %vm381_vm2, %v14327_v60  ;;  %11259 = vmatpush3.bf16.msra.mxu0 %v13261_v3 }
 0x1e6   : > { %11265 = vmatpush3.bf16.msra.mxu1 %v13261_v3  ;;  %11260 = vmatprep.mubr.msk.bf16.mxu0 %vm381_vm2, %v14328_v7 }
 0x1e7   : > { %11266 = vmatprep.mubr.msk.bf16.mxu1 %vm381_vm2, %v14329_v63  ;;  %11832 = vmatprep.subr.msk.bf16.mxu0 %vm388_vm0, %v13238_v51 }
 0x1e8   : > { %11833 = vmatprep.subr.msk.bf16.mxu1 %vm388_vm0, %v13238_v51 }
 0x1ec   : > { %11261 = vmatmul.mubr.msk.bf16.vlgmr.msra.gmra.mrb[40].mxu0 %vm381_vm2, %v14330_v54 }
 0x1ed   : > { %11267 = vmatmul.mubr.msk.bf16.vlgmr.msra.gmra.mrb[40].mxu1 %vm381_vm2, %v14331_v38  ;;  %11271 = vmatpush3.bf16.msra.mxu0 %v13261_v3 }
 0x1ee   : > { %11277 = vmatpush3.bf16.msra.mxu1 %v13261_v3  ;;  %11272 = vmatprep.mubr.msk.bf16.mxu0 %vm381_vm2, %v14332_v43 }
 0x1ef   : > { %11278 = vmatprep.mubr.msk.bf16.mxu1 %vm381_vm2, %v14333_v8  ;;  %11834 = vmatprep.subr.msk.bf16.mxu0 %vm388_vm0, %v13238_v51 }
 0x1f0   : > { %11835 = vmatprep.subr.msk.bf16.mxu1 %vm388_vm0, %v13238_v51 }
 0x1f4   : > { %11273 = vmatmul.mubr.msk.bf16.vlgmr.msra.gmra.mrb[44].mxu0 %vm381_vm2, %v14334_v11 }
 0x1f5   : > { %11279 = vmatmul.mubr.msk.bf16.vlgmr.msra.gmra.mrb[44].mxu1 %vm381_vm2, %v14335_v19  ;;  %11283 = vmatpush3.bf16.msra.mxu0 %v13261_v3 }
 0x1f6   : > { %11289 = vmatpush3.bf16.msra.mxu1 %v13261_v3  ;;  %11284 = vmatprep.mubr.msk.bf16.mxu0 %vm381_vm2, %v14336_v36 }
 0x1f7   : > { %11290 = vmatprep.mubr.msk.bf16.mxu1 %vm381_vm2, %v14337_v18  ;;  %11836 = vmatprep.subr.msk.bf16.mxu0 %vm388_vm0, %v13238_v51 }
 0x1f8   : > { %11837 = vmatprep.subr.msk.bf16.mxu1 %vm388_vm0, %v13238_v51 }
 0x1fc   : > { %11285 = vmatmul.mubr.msk.bf16.vlgmr.msra.gmra.mrb[48].mxu0 %vm381_vm2, %v14338_v25 }
 0x1fd   : > { %11291 = vmatmul.mubr.msk.bf16.vlgmr.msra.gmra.mrb[48].mxu1 %vm381_vm2, %v14339_v49  ;;  %11295 = vmatpush3.bf16.msra.mxu0 %v13261_v3 }
 0x1fe   : > { %11301 = vmatpush3.bf16.msra.mxu1 %v13261_v3  ;;  %11296 = vmatprep.mubr.msk.bf16.mxu0 %vm381_vm2, %v14340_v56 }
 0x1ff   : > { %11302 = vmatprep.mubr.msk.bf16.mxu1 %vm381_vm2, %v14341_v23  ;;  %11838 = vmatprep.subr.msk.bf16.mxu0 %vm388_vm0, %v13238_v51 }
 0x200   : > { %11839 = vmatprep.subr.msk.bf16.mxu1 %vm388_vm0, %v13238_v51 }
 0x204   : > { %11297 = vmatmul.mubr.msk.bf16.vlgmr.msra.gmra.mrb[52].mxu0 %vm381_vm2, %v14342_v2 }
 0x205   : > { %11303 = vmatmul.mubr.msk.bf16.vlgmr.msra.gmra.mrb[52].mxu1 %vm381_vm2, %v14343_v20  ;;  %11307 = vmatpush3.bf16.msra.mxu0 %v13261_v3 }
 0x206   : > { %11313 = vmatpush3.bf16.msra.mxu1 %v13261_v3  ;;  %11308 = vmatprep.mubr.msk.bf16.mxu0 %vm381_vm2, %v14344_v33 }
 0x207   : > { %11314 = vmatprep.mubr.msk.bf16.mxu1 %vm381_vm2, %v14345_v55  ;;  %11840 = vmatprep.subr.msk.bf16.mxu0 %vm388_vm0, %v13238_v51 }
 0x208   : > { %11841 = vmatprep.subr.msk.bf16.mxu1 %vm388_vm0, %v13238_v51  ;;  %v8145_v51 = vrot.slane %v8143_v28, 1 }
 0x20a   : > { %v8146_v26 = vsel %vm355_vm1, %v8141_v41, %v8145_v51 }
 0x20c   : > { %11309 = vmatmul.mubr.msk.bf16.vlgmr.msra.gmra.mrb[56].mxu0 %vm381_vm2, %v14346_v0 }
 0x20d   : > { %11315 = vmatmul.mubr.msk.bf16.vlgmr.msra.gmra.mrb[56].mxu1 %vm381_vm2, %v14347_v32  ;;  %11319 = vmatpush3.bf16.msra.mxu0 %v13261_v3 }
 0x20e   : > { %11325 = vmatpush3.bf16.msra.mxu1 %v13261_v3  ;;  %11320 = vmatprep.mubr.msk.bf16.mxu0 %vm381_vm2, %v14348_v12  ;;  %v13497_v3 = vld [vmem:[%s14162_s2] ss:$0 sm:$0xff] }
 0x20f   : > { %11326 = vmatprep.mubr.msk.bf16.mxu1 %vm381_vm2, %v13265_v14 }
 0x214   : > { %11321 = vmatmul.mubr.msk.bf16.vlgmr.msra.gmra.mrb[60].mxu0 %vm381_vm2, %v14349_v58 }
 0x215   : > { %11327 = vmatmul.mubr.msk.bf16.vlgmr.msra.gmra.mrb[60].mxu1 %vm381_vm2, %v8146_v26 }
 0x26f   : > { %v11142_v35 = vpop.f32.mrb[0].mxu0 }
 0x270   : > { %v8339_v29 = vadd.f32 %v11142_v35, %v13497_v3  ;;  %v11148_v53 = vpop.f32.mrb[0].mxu1  ;;  %v6641_v22 = vpop.f32.mrb[1].mxu0 }
 0x271   : > { %v8343_v14 = vadd.f32 %v11148_v53, %v13497_v3  ;;  %v8337_v59 = vadd.f32 %v13497_v3, %v6641_v22  ;;  %v6690_v52 = vpop.f32.mrb[1].mxu1  ;;  %v11143_v4 = vpop.f32.mrb[2].mxu0 }
 0x272   : > { %vm8467_vm4 = vcmp.ge.f32.partialorder %v8339_v29, 0.0  ;;  %v8595_v17 = vmul.f32 0.2, %v8339_v29  ;;  %v8341_v27 = vadd.f32 %v13497_v3, %v6690_v52  ;;  %v8340_v48 = vadd.f32 %v11143_v4, %v13497_v3  ;;  %v11149_v6 = vpop.f32.mrb[2].mxu1  ;;  %v6644_v61 = vpop.f32.mrb[3].mxu0 }
 0x273   : > { %vm8471_vm5 = vcmp.ge.f32.partialorder %v8343_v14, 0.0  ;;  %v8599_v15 = vmul.f32 0.2, %v8343_v14  ;;  %vm8465_vm6 = vcmp.ge.f32.partialorder %v8337_v59, 0.0  ;;  %v8593_v47 = vmul.f32 0.2, %v8337_v59 }
 0x274   : > { %v8723_v34 = vsel %vm8467_vm4, %v8339_v29, %v8595_v17  ;;  %vm8469_vm7 = vcmp.ge.f32.partialorder %v8341_v27, 0.0  ;;  %v8597_v30 = vmul.f32 0.2, %v8341_v27  ;;  %vm8468_vm8 = vcmp.ge.f32.partialorder %v8340_v48, 0.0  ;;  %v6693_v31 = vpop.f32.mrb[3].mxu1 }
 0x275   : > { %v10052_v1 = vpack.c.bf16 %v8723_v34, %v8723_v34  ;;  %v8727_v21 = vsel %vm8471_vm5, %v8343_v14, %v8599_v15  ;;  %v8721_v39 = vsel %vm8465_vm6, %v8337_v59, %v8593_v47  ;;  %v8596_v5 = vmul.f32 0.2, %v8340_v48 }
 0x276   : > { %v10056_v40 = vpack.c.bf16 %v8727_v21, %v8727_v21  ;;  %v10050_v46 = vpack.c.bf16 %v8721_v39, %v8721_v39  ;;  %v8725_v10 = vsel %vm8469_vm7, %v8341_v27, %v8597_v30  ;;  %v8344_v45 = vadd.f32 %v11149_v6, %v13497_v3 }
 0x277   : > { %9364 = vst.msk [vmem:[%s13508_s6 + $0x8] sm:$0xf] %vm9361_vm3, %v10052_v1  ;;  %v10054_v57 = vpack.c.bf16 %v8725_v10, %v8725_v10  ;;  %v8724_v37 = vsel %vm8468_vm8, %v8340_v48, %v8596_v5  ;;  %v8338_v13 = vadd.f32 %v13497_v3, %v6644_v61  ;;  %v8342_v24 = vadd.f32 %v13497_v3, %v6693_v31  ;;  %v11154_v44 = vpop.f32.mrb[4].mxu0 }
 0x278   : > { %9368 = vst.msk [vmem:[%s13508_s6 + $0x18] sm:$0xf] %vm9361_vm3, %v10056_v40  ;;  %9362 = vst.msk [vmem:[%s13508_s6] sm:$0xf] %vm9361_vm3, %v10050_v46  ;;  %v10053_v62 = vpack.c.bf16 %v8724_v37, %v8724_v37  ;;  %vm8472_vm9 = vcmp.ge.f32.partialorder %v8344_v45, 0.0  ;;  %v8347_v50 = vadd.f32 %v11154_v44, %v13497_v3  ;;  %v11160_v60 = vpop.f32.mrb[4].mxu1 }
 0x279   : > { %v8600_v9 = vmul.f32 0.2, %v8344_v45  ;;  %v6739_v7 = vpop.f32.mrb[5].mxu0  ;;  %9366 = vst.msk [vmem:[%s13508_s6 + $0x10] sm:$0xf] %vm9361_vm3, %v10054_v57  ;;  %vm8466_vm10 = vcmp.ge.f32.partialorder %v8338_v13, 0.0  ;;  %v8351_v8 = vadd.f32 %v11160_v60, %v13497_v3 }
 0x27a   : > { %v8594_v63 = vmul.f32 0.2, %v8338_v13  ;;  %vm8470_vm11 = vcmp.ge.f32.partialorder %v8342_v24, 0.0  ;;  %v8598_v54 = vmul.f32 0.2, %v8342_v24  ;;  %vm8475_vm12 = vcmp.ge.f32.partialorder %v8347_v50, 0.0 }
 0x27b   : > { %9365 = vst.msk [vmem:[%s13508_s6 + $0xc] sm:$0xf] %vm9361_vm3, %v10053_v62  ;;  %v8728_v38 = vsel %vm8472_vm9, %v8344_v45, %v8600_v9  ;;  %v8603_v43 = vmul.f32 0.2, %v8347_v50  ;;  %v6788_v11 = vpop.f32.mrb[5].mxu1  ;;  %v11155_v19 = vpop.f32.mrb[6].mxu0  ;;  %v8345_v49 = vadd.f32 %v13497_v3, %v6739_v7 }
 0x27c   : > { %v10057_v36 = vpack.c.bf16 %v8728_v38, %v8728_v38  ;;  %v8722_v18 = vsel %vm8466_vm10, %v8338_v13, %v8594_v63  ;;  %v8726_v25 = vsel %vm8470_vm11, %v8342_v24, %v8598_v54  ;;  %v11161_v56 = vpop.f32.mrb[6].mxu1  ;;  %v6742_v23 = vpop.f32.mrb[7].mxu0  ;;  %vm8479_vm13 = vcmp.ge.f32.partialorder %v8351_v8, 0.0 }
 0x27d   : > { %v10051_v2 = vpack.c.bf16 %v8722_v18, %v8722_v18  ;;  %v10055_v20 = vpack.c.bf16 %v8726_v25, %v8726_v25  ;;  %v8731_v33 = vsel %vm8475_vm12, %v8347_v50, %v8603_v43  ;;  %v6791_v42 = vpop.f32.mrb[7].mxu1  ;;  %v8607_v16 = vmul.f32 0.2, %v8351_v8 }
 0x27e   : > { %9369 = vst.msk [vmem:[%s13508_s6 + $0x1c] sm:$0xf] %vm9361_vm3, %v10057_v36  ;;  %v10060_v55 = vpack.c.bf16 %v8731_v33, %v8731_v33  ;;  %vm8473_vm14 = vcmp.ge.f32.partialorder %v8345_v49, 0.0  ;;  %v8601_v28 = vmul.f32 0.2, %v8345_v49  ;;  %v8349_v0 = vadd.f32 %v13497_v3, %v6788_v11 }
 0x27f   : > { %9363 = vst.msk [vmem:[%s13508_s6 + $0x4] sm:$0xf] %vm9361_vm3, %v10051_v2  ;;  %9367 = vst.msk [vmem:[%s13508_s6 + $0x14] sm:$0xf] %vm9361_vm3, %v10055_v20  ;;  %v8348_v32 = vadd.f32 %v11155_v19, %v13497_v3  ;;  %v8352_v12 = vadd.f32 %v11161_v56, %v13497_v3  ;;  %v8346_v41 = vadd.f32 %v13497_v3, %v6742_v23  ;;  %v11166_v35 = vpop.f32.mrb[8].mxu0 }
 0x280   : > { %9372 = vst.msk [vmem:[%s13508_s6 + $0x28] sm:$0xf] %vm9361_vm3, %v10060_v55  ;;  %v8735_v51 = vsel %vm8479_vm13, %v8351_v8, %v8607_v16  ;;  %v8729_v26 = vsel %vm8473_vm14, %v8345_v49, %v8601_v28  ;;  %v8350_v58 = vadd.f32 %v13497_v3, %v6791_v42  ;;  %vm8477_vm15 = vcmp.ge.f32.partialorder %v8349_v0, 0.0  ;;  %v11172_v14 = vpop.f32.mrb[8].mxu1  ;;  %v6837_v59 = vpop.f32.mrb[9].mxu0 }
 0x281   : > { %v10064_v29 = vpack.c.bf16 %v8735_v51, %v8735_v51  ;;  %v10058_v53 = vpack.c.bf16 %v8729_v26, %v8729_v26  ;;  %v8605_v22 = vmul.f32 0.2, %v8349_v0  ;;  %vm8476_vm0 = vcmp.ge.f32.partialorder %v8348_v32, 0.0  ;;  %v6886_v48 = vpop.f32.mrb[9].mxu1  ;;  %v11167_v6 = vpop.f32.mrb[10].mxu0 }
 0x282   : > { %v8604_v52 = vmul.f32 0.2, %v8348_v32  ;;  %vm8480_vm1 = vcmp.ge.f32.partialorder %v8352_v12, 0.0  ;;  %v8608_v4 = vmul.f32 0.2, %v8352_v12  ;;  %vm8474_vm2 = vcmp.ge.f32.partialorder %v8346_v41, 0.0 }
 0x283   : > { %9376 = vst.msk [vmem:[%s13508_s6 + $0x38] sm:$0xf] %vm9361_vm3, %v10064_v29  ;;  %9370 = vst.msk [vmem:[%s13508_s6 + $0x20] sm:$0xf] %vm9361_vm3, %v10058_v53  ;;  %v8733_v17 = vsel %vm8477_vm15, %v8349_v0, %v8605_v22  ;;  %v8602_v27 = vmul.f32 0.2, %v8346_v41  ;;  %v8355_v5 = vadd.f32 %v11166_v35, %v13497_v3  ;;  %v8359_v45 = vadd.f32 %v11172_v14, %v13497_v3 }
 0x284   : > { %vm8478_vm4 = vcmp.ge.f32.partialorder %v8350_v58, 0.0  ;;  %v10062_v61 = vpack.c.bf16 %v8733_v17, %v8733_v17  ;;  %v8732_v15 = vsel %vm8476_vm0, %v8348_v32, %v8604_v52  ;;  %v8736_v47 = vsel %vm8480_vm1, %v8352_v12, %v8608_v4  ;;  %v11173_v30 = vpop.f32.mrb[10].mxu1  ;;  %v6840_v31 = vpop.f32.mrb[11].mxu0 }
 0x285   : > { %v8606_v34 = vmul.f32 0.2, %v8350_v58  ;;  %v10061_v1 = vpack.c.bf16 %v8732_v15, %v8732_v15  ;;  %v10065_v21 = vpack.c.bf16 %v8736_v47, %v8736_v47  ;;  %v8730_v39 = vsel %vm8474_vm2, %v8346_v41, %v8602_v27  ;;  %v6889_v40 = vpop.f32.mrb[11].mxu1 }
 0x286   : > { %9374 = vst.msk [vmem:[%s13508_s6 + $0x30] sm:$0xf] %vm9361_vm3, %v10062_v61  ;;  %v10059_v46 = vpack.c.bf16 %v8730_v39, %v8730_v39  ;;  %v8353_v57 = vadd.f32 %v13497_v3, %v6837_v59  ;;  %vm8483_vm5 = vcmp.ge.f32.partialorder %v8355_v5, 0.0  ;;  %v8611_v13 = vmul.f32 0.2, %v8355_v5 }
 0x287   : > { %v8734_v10 = vsel %vm8478_vm4, %v8350_v58, %v8606_v34  ;;  %9373 = vst.msk [vmem:[%s13508_s6 + $0x2c] sm:$0xf] %vm9361_vm3, %v10061_v1  ;;  %9377 = vst.msk [vmem:[%s13508_s6 + $0x3c] sm:$0xf] %vm9361_vm3, %v10065_v21  ;;  %v8357_v24 = vadd.f32 %v13497_v3, %v6886_v48  ;;  %vm8487_vm6 = vcmp.ge.f32.partialorder %v8359_v45, 0.0  ;;  %v8356_v60 = vadd.f32 %v11167_v6, %v13497_v3  ;;  %v11178_v7 = vpop.f32.mrb[12].mxu0 }
 0x288   : > { %v10063_v37 = vpack.c.bf16 %v8734_v10, %v8734_v10  ;;  %9371 = vst.msk [vmem:[%s13508_s6 + $0x24] sm:$0xf] %vm9361_vm3, %v10059_v46  ;;  %v8615_v44 = vmul.f32 0.2, %v8359_v45  ;;  %vm8481_vm7 = vcmp.ge.f32.partialorder %v8353_v57, 0.0  ;;  %v8739_v9 = vsel %vm8483_vm5, %v8355_v5, %v8611_v13  ;;  %v11184_v63 = vpop.f32.mrb[12].mxu1 }
 0x289   : > { %v8609_v62 = vmul.f32 0.2, %v8353_v57  ;;  %vm8485_vm8 = vcmp.ge.f32.partialorder %v8357_v24, 0.0  ;;  %v8613_v50 = vmul.f32 0.2, %v8357_v24  ;;  %v10068_v54 = vpack.c.bf16 %v8739_v9, %v8739_v9  ;;  %v6935_v11 = vpop.f32.mrb[13].mxu0 }
 0x28a   : > { %9375 = vst.msk [vmem:[%s13508_s6 + $0x34] sm:$0xf] %vm9361_vm3, %v10063_v37  ;;  %v8743_v38 = vsel %vm8487_vm6, %v8359_v45, %v8615_v44  ;;  %v8360_v8 = vadd.f32 %v11173_v30, %v13497_v3  ;;  %v6984_v19 = vpop.f32.mrb[13].mxu1  ;;  %vm8484_vm9 = vcmp.ge.f32.partialorder %v8356_v60, 0.0  ;;  %v11179_v49 = vpop.f32.mrb[14].mxu0  ;;  %v8354_v42 = vadd.f32 %v13497_v3, %v6840_v31 }
 0x28b   : > { %v8737_v43 = vsel %vm8481_vm7, %v8353_v57, %v8609_v62  ;;  %v10072_v36 = vpack.c.bf16 %v8743_v38, %v8743_v38  ;;  %v8741_v25 = vsel %vm8485_vm8, %v8357_v24, %v8613_v50  ;;  %v11185_v56 = vpop.f32.mrb[14].mxu1  ;;  %9380 = vst.msk [vmem:[%s13508_s6 + $0x48] sm:$0xf] %vm9361_vm3, %v10068_v54  ;;  %v8612_v2 = vmul.f32 0.2, %v8356_v60  ;;  %v6938_v33 = vpop.f32.mrb[15].mxu0 }
 0x28c   : > { %v10066_v18 = vpack.c.bf16 %v8737_v43, %v8737_v43  ;;  %v10070_v23 = vpack.c.bf16 %v8741_v25, %v8741_v25  ;;  %vm8488_vm10 = vcmp.ge.f32.partialorder %v8360_v8, 0.0  ;;  %v8616_v20 = vmul.f32 0.2, %v8360_v8  ;;  %v6987_v0 = vpop.f32.mrb[15].mxu1 }
 0x28d   : > { %9384 = vst.msk [vmem:[%s13508_s6 + $0x58] sm:$0xf] %vm9361_vm3, %v10072_v36  ;;  %v8358_v55 = vadd.f32 %v13497_v3, %v6889_v40  ;;  %v8363_v16 = vadd.f32 %v11178_v7, %v13497_v3  ;;  %v8367_v28 = vadd.f32 %v11184_v63, %v13497_v3  ;;  %v8740_v32 = vsel %vm8484_vm9, %v8356_v60, %v8612_v2 }
 0x28e   : > { %9378 = vst.msk [vmem:[%s13508_s6 + $0x40] sm:$0xf] %vm9361_vm3, %v10066_v18  ;;  %9382 = vst.msk [vmem:[%s13508_s6 + $0x50] sm:$0xf] %vm9361_vm3, %v10070_v23  ;;  %v8744_v12 = vsel %vm8488_vm10, %v8360_v8, %v8616_v20  ;;  %v8361_v41 = vadd.f32 %v13497_v3, %v6935_v11  ;;  %v8365_v51 = vadd.f32 %v13497_v3, %v6984_v19  ;;  %vm8482_vm11 = vcmp.ge.f32.partialorder %v8354_v42, 0.0 }
 0x28f   : > { %v10069_v26 = vpack.c.bf16 %v8740_v32, %v8740_v32  ;;  %v10073_v58 = vpack.c.bf16 %v8744_v12, %v8744_v12  ;;  %v8610_v35 = vmul.f32 0.2, %v8354_v42  ;;  %vm8486_vm12 = vcmp.ge.f32.partialorder %v8358_v55, 0.0  ;;  %v11190_v59 = vpop.f32.mrb[16].mxu0 }
 0x290   : > { %v8614_v29 = vmul.f32 0.2, %v8358_v55  ;;  %vm8491_vm13 = vcmp.ge.f32.partialorder %v8363_v16, 0.0  ;;  %v8619_v53 = vmul.f32 0.2, %v8363_v16  ;;  %vm8495_vm14 = vcmp.ge.f32.partialorder %v8367_v28, 0.0 }
 0x291   : > { %9381 = vst.msk [vmem:[%s13508_s6 + $0x4c] sm:$0xf] %vm9361_vm3, %v10069_v26  ;;  %9385 = vst.msk [vmem:[%s13508_s6 + $0x5c] sm:$0xf] %vm9361_vm3, %v10073_v58  ;;  %v8738_v22 = vsel %vm8482_vm11, %v8354_v42, %v8610_v35  ;;  %v8623_v14 = vmul.f32 0.2, %v8367_v28  ;;  %v8364_v5 = vadd.f32 %v11179_v49, %v13497_v3  ;;  %v8368_v45 = vadd.f32 %v11185_v56, %v13497_v3 }
 0x292   : > { %vm8489_vm15 = vcmp.ge.f32.partialorder %v8361_v41, 0.0  ;;  %v11196_v52 = vpop.f32.mrb[16].mxu1  ;;  %v10067_v4 = vpack.c.bf16 %v8738_v22, %v8738_v22  ;;  %v8742_v17 = vsel %vm8486_vm12, %v8358_v55, %v8614_v29  ;;  %v8747_v27 = vsel %vm8491_vm13, %v8363_v16, %v8619_v53  ;;  %v7033_v6 = vpop.f32.mrb[17].mxu0 }
 0x293   : > { %v8617_v48 = vmul.f32 0.2, %v8361_v41  ;;  %v7082_v61 = vpop.f32.mrb[17].mxu1  ;;  %v10071_v15 = vpack.c.bf16 %v8742_v17, %v8742_v17  ;;  %v10076_v47 = vpack.c.bf16 %v8747_v27, %v8747_v27  ;;  %v8751_v34 = vsel %vm8495_vm14, %v8367_v28, %v8623_v14  ;;  %v11191_v30 = vpop.f32.mrb[18].mxu0 }
 0x294   : > { %vm8493_vm0 = vcmp.ge.f32.partialorder %v8365_v51, 0.0  ;;  %v11197_v31 = vpop.f32.mrb[18].mxu1  ;;  %9379 = vst.msk [vmem:[%s13508_s6 + $0x44] sm:$0xf] %vm9361_vm3, %v10067_v4  ;;  %v10080_v1 = vpack.c.bf16 %v8751_v34, %v8751_v34  ;;  %v8621_v39 = vmul.f32 0.2, %v8365_v51  ;;  %v8362_v57 = vadd.f32 %v13497_v3, %v6938_v33 }
 0x295   : > { %v8745_v21 = vsel %vm8489_vm15, %v8361_v41, %v8617_v48  ;;  %v7036_v40 = vpop.f32.mrb[19].mxu0  ;;  %v13583_v46 = vpop.f32.mrb[19].mxu1  ;;  %9383 = vst.msk [vmem:[%s13508_s6 + $0x54] sm:$0xf] %vm9361_vm3, %v10071_v15  ;;  %9388 = vst.msk [vmem:[%s13508_s6 + $0x68] sm:$0xf] %vm9361_vm3, %v10076_v47  ;;  %v8366_v37 = vadd.f32 %v13497_v3, %v6987_v0  ;;  %v8371_v44 = vadd.f32 %v11190_v59, %v13497_v3 }
 0x296   : > { %v10074_v10 = vpack.c.bf16 %v8745_v21, %v8745_v21  ;;  %9392 = vst.msk [vmem:[%s13508_s6 + $0x78] sm:$0xf] %vm9361_vm3, %v10080_v1  ;;  %v8749_v13 = vsel %vm8493_vm0, %v8365_v51, %v8621_v39  ;;  %vm8492_vm1 = vcmp.ge.f32.partialorder %v8364_v5, 0.0  ;;  %v8620_v24 = vmul.f32 0.2, %v8364_v5 }
 0x297   : > { %v10078_v62 = vpack.c.bf16 %v8749_v13, %v8749_v13  ;;  %vm8496_vm2 = vcmp.ge.f32.partialorder %v8368_v45, 0.0  ;;  %v8624_v9 = vmul.f32 0.2, %v8368_v45  ;;  %vm8490_vm4 = vcmp.ge.f32.partialorder %v8362_v57, 0.0  ;;  %v11202_v63 = vpop.f32.mrb[20].mxu0 }
 0x298   : > { %9386 = vst.msk [vmem:[%s13508_s6 + $0x60] sm:$0xf] %vm9361_vm3, %v10074_v10  ;;  %v8748_v50 = vsel %vm8492_vm1, %v8364_v5, %v8620_v24  ;;  %v8618_v60 = vmul.f32 0.2, %v8362_v57  ;;  %vm8494_vm5 = vcmp.ge.f32.partialorder %v8366_v37, 0.0  ;;  %vm8499_vm6 = vcmp.ge.f32.partialorder %v8371_v44, 0.0 }
 0x299   : > { %v8622_v7 = vmul.f32 0.2, %v8366_v37  ;;  %9390 = vst.msk [vmem:[%s13508_s6 + $0x70] sm:$0xf] %vm9361_vm3, %v10078_v62  ;;  %v10077_v54 = vpack.c.bf16 %v8748_v50, %v8748_v50  ;;  %v8752_v38 = vsel %vm8496_vm2, %v8368_v45, %v8624_v9  ;;  %v8627_v43 = vmul.f32 0.2, %v8371_v44 }
 0x29a   : > { %v11208_v8 = vpop.f32.mrb[20].mxu1  ;;  %v7131_v11 = vpop.f32.mrb[21].mxu0  ;;  %v10081_v19 = vpack.c.bf16 %v8752_v38, %v8752_v38  ;;  %v8746_v36 = vsel %vm8490_vm4, %v8362_v57, %v8618_v60  ;;  %v8375_v25 = vadd.f32 %v11196_v52, %v13497_v3  ;;  %v8369_v33 = vadd.f32 %v13497_v3, %v7033_v6 }
 0x29b   : > { %v8750_v18 = vsel %vm8494_vm5, %v8366_v37, %v8622_v7  ;;  %v13601_v49 = vpop.f32.mrb[21].mxu1  ;;  %v13603_v56 = vpop.f32.mrb[22].mxu0  ;;  %9389 = vst.msk [vmem:[%s13508_s6 + $0x6c] sm:$0xf] %vm9361_vm3, %v10077_v54  ;;  %v10075_v23 = vpack.c.bf16 %v8746_v36, %v8746_v36  ;;  %v8755_v20 = vsel %vm8499_vm6, %v8371_v44, %v8627_v43  ;;  %v8373_v0 = vadd.f32 %v13497_v3, %v7082_v61 }
 0x29c   : > { %v10079_v2 = vpack.c.bf16 %v8750_v18, %v8750_v18  ;;  %v13608_v42 = vpop.f32.mrb[22].mxu1  ;;  %v13610_v55 = vpop.f32.mrb[23].mxu0  ;;  %9393 = vst.msk [vmem:[%s13508_s6 + $0x7c] sm:$0xf] %vm9361_vm3, %v10081_v19  ;;  %v10084_v16 = vpack.c.bf16 %v8755_v20, %v8755_v20  ;;  %vm8503_vm7 = vcmp.ge.f32.partialorder %v8375_v25, 0.0  ;;  %vm8497_vm8 = vcmp.ge.f32.partialorder %v8369_v33, 0.0 }
 0x29d   : > { %v8631_v28 = vmul.f32 0.2, %v8375_v25  ;;  %v13615_v32 = vpop.f32.mrb[23].mxu1  ;;  %9387 = vst.msk [vmem:[%s13508_s6 + $0x64] sm:$0xf] %vm9361_vm3, %v10075_v23  ;;  %v8372_v41 = vadd.f32 %v11191_v30, %v13497_v3  ;;  %v8376_v51 = vadd.f32 %v11197_v31, %v13497_v3  ;;  %vm8501_vm9 = vcmp.ge.f32.partialorder %v8373_v0, 0.0 }
 0x29e   : > { %9391 = vst.msk [vmem:[%s13508_s6 + $0x74] sm:$0xf] %vm9361_vm3, %v10079_v2  ;;  %v8625_v12 = vmul.f32 0.2, %v8369_v33  ;;  %9396 = vst.msk [vmem:[%s13508_s6 + $0x88] sm:$0xf] %vm9361_vm3, %v10084_v16  ;;  %v8370_v35 = vadd.f32 %v13497_v3, %v7036_v40  ;;  %v8374_v34 = vadd.f32 %v13497_v3, %v13583_v46  ;;  %v8379_v30 = vadd.f32 %v11202_v63, %v13497_v3 }
 0x29f   : > { %v8759_v26 = vsel %vm8503_vm7, %v8375_v25, %v8631_v28  ;;  %v8629_v58 = vmul.f32 0.2, %v8373_v0  ;;  %vm8500_vm10 = vcmp.ge.f32.partialorder %v8372_v41, 0.0  ;;  %v8628_v22 = vmul.f32 0.2, %v8372_v41  ;;  %v13626_v4 = vpop.f32.mrb[24].mxu0 }
 0x2a0   : > { %v10088_v29 = vpack.c.bf16 %v8759_v26, %v8759_v26  ;;  %v8753_v53 = vsel %vm8497_vm8, %v8369_v33, %v8625_v12  ;;  %vm8504_vm11 = vcmp.ge.f32.partialorder %v8376_v51, 0.0  ;;  %v8632_v52 = vmul.f32 0.2, %v8376_v51  ;;  %v11220_v6 = vpop.f32.mrb[24].mxu1  ;;  %v13630_v61 = vpop.f32.mrb[25].mxu0 }
 0x2a1   : > { %v10082_v14 = vpack.c.bf16 %v8753_v53, %v8753_v53  ;;  %v8757_v59 = vsel %vm8501_vm9, %v8373_v0, %v8629_v58  ;;  %v8756_v27 = vsel %vm8500_vm10, %v8372_v41, %v8628_v22  ;;  %vm8498_vm12 = vcmp.ge.f32.partialorder %v8370_v35, 0.0  ;;  %v13637_v31 = vpop.f32.mrb[25].mxu1  ;;  %v13639_v1 = vpop.f32.mrb[26].mxu0 }
 0x2a2   : > { %9400 = vst.msk [vmem:[%s13508_s6 + $0x98] sm:$0xf] %vm9361_vm3, %v10088_v29  ;;  %v10086_v17 = vpack.c.bf16 %v8757_v59, %v8757_v59  ;;  %v8626_v48 = vmul.f32 0.2, %v8370_v35  ;;  %v10085_v15 = vpack.c.bf16 %v8756_v27, %v8756_v27  ;;  %v8760_v47 = vsel %vm8504_vm11, %v8376_v51, %v8632_v52  ;;  %v13645_v10 = vpop.f32.mrb[26].mxu1  ;;  %v13647_v45 = vpop.f32.mrb[27].mxu0 }
 0x2a3   : > { %9394 = vst.msk [vmem:[%s13508_s6 + $0x80] sm:$0xf] %vm9361_vm3, %v10082_v14  ;;  %v10089_v21 = vpack.c.bf16 %v8760_v47, %v8760_v47  ;;  %v8383_v5 = vadd.f32 %v11208_v8, %v13497_v3  ;;  %v8377_v40 = vadd.f32 %v13497_v3, %v7131_v11  ;;  %vm8502_vm13 = vcmp.ge.f32.partialorder %v8374_v34, 0.0  ;;  %v13651_v37 = vpop.f32.mrb[27].mxu1 }
 0x2a4   : > { %9398 = vst.msk [vmem:[%s13508_s6 + $0x90] sm:$0xf] %vm9361_vm3, %v10086_v17  ;;  %v8754_v39 = vsel %vm8498_vm12, %v8370_v35, %v8626_v48  ;;  %9397 = vst.msk [vmem:[%s13508_s6 + $0x8c] sm:$0xf] %vm9361_vm3, %v10085_v15  ;;  %v8630_v57 = vmul.f32 0.2, %v8374_v34  ;;  %v8381_v9 = vadd.f32 %v13497_v3, %v13601_v49  ;;  %v8380_v50 = vadd.f32 %v13603_v56, %v13497_v3 }
 0x2a5   : > { %v10083_v46 = vpack.c.bf16 %v8754_v39, %v8754_v39  ;;  %vm8507_vm14 = vcmp.ge.f32.partialorder %v8379_v30, 0.0  ;;  %9401 = vst.msk [vmem:[%s13508_s6 + $0x9c] sm:$0xf] %vm9361_vm3, %v10089_v21  ;;  %v8635_v13 = vmul.f32 0.2, %v8379_v30  ;;  %vm8511_vm15 = vcmp.ge.f32.partialorder %v8383_v5, 0.0 }
 0x2a6   : > { %v8639_v24 = vmul.f32 0.2, %v8383_v5  ;;  %vm8505_vm0 = vcmp.ge.f32.partialorder %v8377_v40, 0.0  ;;  %v8758_v44 = vsel %vm8502_vm13, %v8374_v34, %v8630_v57  ;;  %v8633_v62 = vmul.f32 0.2, %v8377_v40 }
 0x2a7   : > { %9395 = vst.msk [vmem:[%s13508_s6 + $0x84] sm:$0xf] %vm9361_vm3, %v10083_v46  ;;  %v10087_v60 = vpack.c.bf16 %v8758_v44, %v8758_v44  ;;  %v8763_v7 = vsel %vm8507_vm14, %v8379_v30, %v8635_v13  ;;  %v8384_v54 = vadd.f32 %v13608_v42, %v13497_v3  ;;  %vm8509_vm1 = vcmp.ge.f32.partialorder %v8381_v9, 0.0  ;;  %v13663_v11 = vpop.f32.mrb[28].mxu0 }
 0x2a8   : > { %v8767_v63 = vsel %vm8511_vm15, %v8383_v5, %v8639_v24  ;;  %v10092_v38 = vpack.c.bf16 %v8763_v7, %v8763_v7  ;;  %v8761_v8 = vsel %vm8505_vm0, %v8377_v40, %v8633_v62  ;;  %v8637_v36 = vmul.f32 0.2, %v8381_v9  ;;  %v13667_v25 = vpop.f32.mrb[28].mxu1  ;;  %v13677_v2 = vpop.f32.mrb[29].mxu0 }
 0x2a9   : > { %v10096_v43 = vpack.c.bf16 %v8767_v63, %v8767_v63  ;;  %9399 = vst.msk [vmem:[%s13508_s6 + $0x94] sm:$0xf] %vm9361_vm3, %v10087_v60  ;;  %v10090_v19 = vpack.c.bf16 %v8761_v8, %v8761_v8  ;;  %vm8508_vm2 = vcmp.ge.f32.partialorder %v8380_v50, 0.0  ;;  %v8636_v18 = vmul.f32 0.2, %v8380_v50  ;;  %v13679_v20 = vpop.f32.mrb[29].mxu1 }
 0x2aa   : > { %9404 = vst.msk [vmem:[%s13508_s6 + $0xa8] sm:$0xf] %vm9361_vm3, %v10092_v38  ;;  %vm8512_vm4 = vcmp.ge.f32.partialorder %v8384_v54, 0.0  ;;  %v8640_v49 = vmul.f32 0.2, %v8384_v54  ;;  %v8378_v56 = vadd.f32 %v13497_v3, %v13610_v55  ;;  %v8382_v23 = vadd.f32 %v13497_v3, %v13615_v32  ;;  %v13687_v55 = vpop.f32.mrb[30].mxu0 }
 0x2ab   : > { %9408 = vst.msk [vmem:[%s13508_s6 + $0xb8] sm:$0xf] %vm9361_vm3, %v10096_v43  ;;  %9402 = vst.msk [vmem:[%s13508_s6 + $0xa0] sm:$0xf] %vm9361_vm3, %v10090_v19  ;;  %v8765_v33 = vsel %vm8509_vm1, %v8381_v9, %v8637_v36  ;;  %v8764_v42 = vsel %vm8508_vm2, %v8380_v50, %v8636_v18  ;;  %v8387_v16 = vadd.f32 %v13626_v4, %v13497_v3  ;;  %v13689_v0 = vpop.f32.mrb[30].mxu1  ;;  %v13691_v51 = vpop.f32.mrb[31].mxu0 }
 0x2ac   : > { %v8391_v28 = vadd.f32 %v11220_v6, %v13497_v3  ;;  %v10094_v32 = vpack.c.bf16 %v8765_v33, %v8765_v33  ;;  %v10093_v12 = vpack.c.bf16 %v8764_v42, %v8764_v42  ;;  %v8768_v41 = vsel %vm8512_vm4, %v8384_v54, %v8640_v49  ;;  %v13693_v26 = vpop.f32.mrb[31].mxu1 }
 0x2ad   : > { %vm8506_vm5 = vcmp.ge.f32.partialorder %v8378_v56, 0.0  ;;  %v10097_v58 = vpack.c.bf16 %v8768_v41, %v8768_v41  ;;  %v8634_v35 = vmul.f32 0.2, %v8378_v56  ;;  %vm8510_vm6 = vcmp.ge.f32.partialorder %v8382_v23, 0.0 }
 0x2ae   : > { %v8638_v29 = vmul.f32 0.2, %v8382_v23  ;;  %9406 = vst.msk [vmem:[%s13508_s6 + $0xb0] sm:$0xf] %vm9361_vm3, %v10094_v32  ;;  %9405 = vst.msk [vmem:[%s13508_s6 + $0xac] sm:$0xf] %vm9361_vm3, %v10093_v12  ;;  %v8385_v52 = vadd.f32 %v13497_v3, %v13630_v61  ;;  %v8389_v4 = vadd.f32 %v13497_v3, %v13637_v31  ;;  %v8388_v31 = vadd.f32 %v13639_v1, %v13497_v3 }
 0x2af   : > { %vm8515_vm7 = vcmp.ge.f32.partialorder %v8387_v16, 0.0  ;;  %v8643_v53 = vmul.f32 0.2, %v8387_v16  ;;  %vm8519_vm8 = vcmp.ge.f32.partialorder %v8391_v28, 0.0  ;;  %v8647_v22 = vmul.f32 0.2, %v8391_v28 }
 0x2b0   : > { %9409 = vst.msk [vmem:[%s13508_s6 + $0xbc] sm:$0xf] %vm9361_vm3, %v10097_v58  ;;  %v8762_v14 = vsel %vm8506_vm5, %v8378_v56, %v8634_v35  ;;  %v8766_v59 = vsel %vm8510_vm6, %v8382_v23, %v8638_v29  ;;  %v13705_v15 = vpop.f32.mrb[32].mxu0  ;;  %vm8513_vm9 = vcmp.ge.f32.partialorder %v8385_v52, 0.0  ;;  %v8641_v30 = vmul.f32 0.2, %v8385_v52 }
 0x2b1   : > { %v10091_v17 = vpack.c.bf16 %v8762_v14, %v8762_v14  ;;  %v10095_v27 = vpack.c.bf16 %v8766_v59, %v8766_v59  ;;  %v8771_v48 = vsel %vm8515_vm7, %v8387_v16, %v8643_v53  ;;  %v8775_v6 = vsel %vm8519_vm8, %v8391_v28, %v8647_v22  ;;  %v13707_v21 = vpop.f32.mrb[32].mxu1  ;;  %v13709_v39 = vpop.f32.mrb[33].mxu0 }
 0x2b2   : > { %v10100_v47 = vpack.c.bf16 %v8771_v48, %v8771_v48  ;;  %v10104_v34 = vpack.c.bf16 %v8775_v6, %v8775_v6  ;;  %vm8517_vm10 = vcmp.ge.f32.partialorder %v8389_v4, 0.0  ;;  %v8645_v61 = vmul.f32 0.2, %v8389_v4  ;;  %v13719_v40 = vpop.f32.mrb[33].mxu1  ;;  %v13721_v46 = vpop.f32.mrb[34].mxu0 }
 0x2b3   : > { %9403 = vst.msk [vmem:[%s13508_s6 + $0xa4] sm:$0xf] %vm9361_vm3, %v10091_v17  ;;  %9407 = vst.msk [vmem:[%s13508_s6 + $0xb4] sm:$0xf] %vm9361_vm3, %v10095_v27  ;;  %v8392_v5 = vadd.f32 %v13645_v10, %v13497_v3  ;;  %v8769_v57 = vsel %vm8513_vm9, %v8385_v52, %v8641_v30  ;;  %v8386_v13 = vadd.f32 %v13497_v3, %v13647_v45  ;;  %v13733_v10 = vpop.f32.mrb[34].mxu1  ;;  %v13735_v44 = vpop.f32.mrb[35].mxu0 }
 0x2b4   : > { %9412 = vst.msk [vmem:[%s13508_s6 + $0xc8] sm:$0xf] %vm9361_vm3, %v10100_v47  ;;  %9416 = vst.msk [vmem:[%s13508_s6 + $0xd8] sm:$0xf] %vm9361_vm3, %v10104_v34  ;;  %v8390_v24 = vadd.f32 %v13497_v3, %v13651_v37  ;;  %v8395_v1 = vadd.f32 %v13663_v11, %v13497_v3  ;;  %v10098_v62 = vpack.c.bf16 %v8769_v57, %v8769_v57  ;;  %vm8516_vm11 = vcmp.ge.f32.partialorder %v8388_v31, 0.0  ;;  %v13737_v60 = vpop.f32.mrb[35].mxu1 }
 0x2b5   : > { %v8773_v9 = vsel %vm8517_vm10, %v8389_v4, %v8645_v61  ;;  %v8644_v50 = vmul.f32 0.2, %v8388_v31  ;;  %vm8520_vm12 = vcmp.ge.f32.partialorder %v8392_v5, 0.0  ;;  %v8648_v45 = vmul.f32 0.2, %v8392_v5 }
 0x2b6   : > { %v10102_v7 = vpack.c.bf16 %v8773_v9, %v8773_v9  ;;  %vm8514_vm13 = vcmp.ge.f32.partialorder %v8386_v13, 0.0  ;;  %9410 = vst.msk [vmem:[%s13508_s6 + $0xc0] sm:$0xf] %vm9361_vm3, %v10098_v62  ;;  %v8642_v63 = vmul.f32 0.2, %v8386_v13  ;;  %vm8518_vm14 = vcmp.ge.f32.partialorder %v8390_v24, 0.0 }
 0x2b7   : > { %v8772_v37 = vsel %vm8516_vm11, %v8388_v31, %v8644_v50  ;;  %v8646_v54 = vmul.f32 0.2, %v8390_v24  ;;  %v8776_v43 = vsel %vm8520_vm12, %v8392_v5, %v8648_v45  ;;  %vm8523_vm15 = vcmp.ge.f32.partialorder %v8395_v1, 0.0  ;;  %v13745_v49 = vpop.f32.mrb[36].mxu0 }
 0x2b8   : > { %9414 = vst.msk [vmem:[%s13508_s6 + $0xd0] sm:$0xf] %vm9361_vm3, %v10102_v7  ;;  %v10101_v38 = vpack.c.bf16 %v8772_v37, %v8772_v37  ;;  %v8651_v8 = vmul.f32 0.2, %v8395_v1  ;;  %v10105_v11 = vpack.c.bf16 %v8776_v43, %v8776_v43  ;;  %v8770_v19 = vsel %vm8514_vm13, %v8386_v13, %v8642_v63  ;;  %v13751_v16 = vpop.f32.mrb[36].mxu1  ;;  %v13753_v28 = vpop.f32.mrb[37].mxu0 }
 0x2b9   : > { %v8774_v36 = vsel %vm8518_vm14, %v8390_v24, %v8646_v54  ;;  %v8399_v18 = vadd.f32 %v13667_v25, %v13497_v3  ;;  %v10099_v56 = vpack.c.bf16 %v8770_v19, %v8770_v19  ;;  %v8393_v42 = vadd.f32 %v13497_v3, %v13677_v2  ;;  %v13759_v41 = vpop.f32.mrb[37].mxu1  ;;  %v13761_v58 = vpop.f32.mrb[38].mxu0 }
 0x2ba   : > { %9413 = vst.msk [vmem:[%s13508_s6 + $0xcc] sm:$0xf] %vm9361_vm3, %v10101_v38  ;;  %v10103_v23 = vpack.c.bf16 %v8774_v36, %v8774_v36  ;;  %v8779_v33 = vsel %vm8523_vm15, %v8395_v1, %v8651_v8  ;;  %9417 = vst.msk [vmem:[%s13508_s6 + $0xdc] sm:$0xf] %vm9361_vm3, %v10105_v11  ;;  %v8397_v12 = vadd.f32 %v13497_v3, %v13679_v20  ;;  %v13771_v53 = vpop.f32.mrb[38].mxu1  ;;  %v13773_v20 = vpop.f32.mrb[39].mxu0 }
 0x2bb   : > { %v10108_v25 = vpack.c.bf16 %v8779_v33, %v8779_v33  ;;  %vm8527_vm0 = vcmp.ge.f32.partialorder %v8399_v18, 0.0  ;;  %v8655_v32 = vmul.f32 0.2, %v8399_v18  ;;  %9411 = vst.msk [vmem:[%s13508_s6 + $0xc4] sm:$0xf] %vm9361_vm3, %v10099_v56  ;;  %vm8521_vm1 = vcmp.ge.f32.partialorder %v8393_v42, 0.0 }
 0x2bc   : > { %9415 = vst.msk [vmem:[%s13508_s6 + $0xd4] sm:$0xf] %vm9361_vm3, %v10103_v23  ;;  %v8649_v2 = vmul.f32 0.2, %v8393_v42  ;;  %v8396_v35 = vadd.f32 %v13687_v55, %v13497_v3  ;;  %v8400_v29 = vadd.f32 %v13689_v0, %v13497_v3  ;;  %vm8525_vm2 = vcmp.ge.f32.partialorder %v8397_v12, 0.0  ;;  %v13779_v52 = vpop.f32.mrb[39].mxu1 }
 0x2bd   : > { %9420 = vst.msk [vmem:[%s13508_s6 + $0xe8] sm:$0xf] %vm9361_vm3, %v10108_v25  ;;  %v8783_v22 = vsel %vm8527_vm0, %v8399_v18, %v8655_v32  ;;  %v8653_v14 = vmul.f32 0.2, %v8397_v12  ;;  %v8394_v59 = vadd.f32 %v13497_v3, %v13691_v51  ;;  %v8398_v61 = vadd.f32 %v13497_v3, %v13693_v26 }
 0x2be   : > { %v10112_v55 = vpack.c.bf16 %v8783_v22, %v8783_v22  ;;  %v8777_v4 = vsel %vm8521_vm1, %v8393_v42, %v8649_v2  ;;  %vm8524_vm4 = vcmp.ge.f32.partialorder %v8396_v35, 0.0  ;;  %v8652_v0 = vmul.f32 0.2, %v8396_v35 }
 0x2bf   : > { %v10106_v17 = vpack.c.bf16 %v8777_v4, %v8777_v4  ;;  %v8781_v27 = vsel %vm8525_vm2, %v8397_v12, %v8653_v14  ;;  %vm8528_vm5 = vcmp.ge.f32.partialorder %v8400_v29, 0.0  ;;  %v8656_v48 = vmul.f32 0.2, %v8400_v29  ;;  %v13789_v5 = vpop.f32.mrb[40].mxu0 }
 0x2c0   : > { %9424 = vst.msk [vmem:[%s13508_s6 + $0xf8] sm:$0xf] %vm9361_vm3, %v10112_v55  ;;  %v10110_v6 = vpack.c.bf16 %v8781_v27, %v8781_v27  ;;  %v8780_v47 = vsel %vm8524_vm4, %v8396_v35, %v8652_v0  ;;  %vm8522_vm6 = vcmp.ge.f32.partialorder %v8394_v59, 0.0  ;;  %v8650_v34 = vmul.f32 0.2, %v8394_v59  ;;  %v13797_v62 = vpop.f32.mrb[40].mxu1 }
 0x2c1   : > { %9418 = vst.msk [vmem:[%s13508_s6 + $0xe0] sm:$0xf] %vm9361_vm3, %v10106_v17  ;;  %v10109_v51 = vpack.c.bf16 %v8780_v47, %v8780_v47  ;;  %v8784_v30 = vsel %vm8528_vm5, %v8400_v29, %v8656_v48  ;;  %v8403_v31 = vadd.f32 %v13705_v15, %v13497_v3  ;;  %v8407_v24 = vadd.f32 %v13707_v21, %v13497_v3  ;;  %v13799_v26 = vpop.f32.mrb[41].mxu0  ;;  %v13803_v50 = vpop.f32.mrb[41].mxu1 }
 0x2c2   : > { %9422 = vst.msk [vmem:[%s13508_s6 + $0xf0] sm:$0xf] %vm9361_vm3, %v10110_v6  ;;  %v10113_v57 = vpack.c.bf16 %v8784_v30, %v8784_v30  ;;  %v8778_v13 = vsel %vm8522_vm6, %v8394_v59, %v8650_v34  ;;  %v8401_v1 = vadd.f32 %v13497_v3, %v13709_v39  ;;  %vm8526_vm7 = vcmp.ge.f32.partialorder %v8398_v61, 0.0  ;;  %v13805_v7 = vpop.f32.mrb[42].mxu0  ;;  %v13815_v38 = vpop.f32.mrb[42].mxu1 }
 0x2c3   : > { %9421 = vst.msk [vmem:[%s13508_s6 + $0xec] sm:$0xf] %vm9361_vm3, %v10109_v51  ;;  %v10107_v15 = vpack.c.bf16 %v8778_v13, %v8778_v13  ;;  %v8654_v9 = vmul.f32 0.2, %v8398_v61  ;;  %vm8531_vm8 = vcmp.ge.f32.partialorder %v8403_v31, 0.0  ;;  %vm8535_vm9 = vcmp.ge.f32.partialorder %v8407_v24, 0.0 }
 0x2c4   : > { %9425 = vst.msk [vmem:[%s13508_s6 + $0xfc] sm:$0xf] %vm9361_vm3, %v10113_v57  ;;  %v8659_v21 = vmul.f32 0.2, %v8403_v31  ;;  %v8663_v45 = vmul.f32 0.2, %v8407_v24  ;;  %v8405_v63 = vadd.f32 %v13497_v3, %v13719_v40  ;;  %v8404_v54 = vadd.f32 %v13721_v46, %v13497_v3 }
 0x2c5   : > { %vm8529_vm10 = vcmp.ge.f32.partialorder %v8401_v1, 0.0  ;;  %9419 = vst.msk [vmem:[%s13508_s6 + $0xe4] sm:$0xf] %vm9361_vm3, %v10107_v15  ;;  %v8782_v39 = vsel %vm8526_vm7, %v8398_v61, %v8654_v9  ;;  %v8657_v37 = vmul.f32 0.2, %v8401_v1  ;;  %v13817_v43 = vpop.f32.mrb[43].mxu0  ;;  %v8408_v36 = vadd.f32 %v13733_v10, %v13497_v3 }
 0x2c6   : > { %v10111_v8 = vpack.c.bf16 %v8782_v39, %v8782_v39  ;;  %v8787_v11 = vsel %vm8531_vm8, %v8403_v31, %v8659_v21  ;;  %v8791_v19 = vsel %vm8535_vm9, %v8407_v24, %v8663_v45  ;;  %v13822_v18 = vpop.f32.mrb[43].mxu1  ;;  %vm8533_vm11 = vcmp.ge.f32.partialorder %v8405_v63, 0.0  ;;  %v13861_v34 = vld [vmem:[%s14162_s2] ss:$0 sm:$0xff] }
 0x2c7   : > { %v10116_v56 = vpack.c.bf16 %v8787_v11, %v8787_v11  ;;  %v10120_v40 = vpack.c.bf16 %v8791_v19, %v8791_v19  ;;  %v8785_v23 = vsel %vm8529_vm10, %v8401_v1, %v8657_v37  ;;  %v8661_v33 = vmul.f32 0.2, %v8405_v63  ;;  %v13834_v12 = vpop.f32.mrb[44].mxu0 }
 0x2c8   : > { %9423 = vst.msk [vmem:[%s13508_s6 + $0xf4] sm:$0xf] %vm9361_vm3, %v10111_v8  ;;  %v10114_v46 = vpack.c.bf16 %v8785_v23, %v8785_v23  ;;  %vm8532_vm12 = vcmp.ge.f32.partialorder %v8404_v54, 0.0  ;;  %v8660_v42 = vmul.f32 0.2, %v8404_v54  ;;  %vm8536_vm13 = vcmp.ge.f32.partialorder %v8408_v36, 0.0 }
 0x2c9   : > { %9428 = vst.msk [vmem:[%s13508_s6 + $0x108] sm:$0xf] %vm9361_vm3, %v10116_v56  ;;  %9432 = vst.msk [vmem:[%s13508_s6 + $0x118] sm:$0xf] %vm9361_vm3, %v10120_v40  ;;  %v8664_v25 = vmul.f32 0.2, %v8408_v36  ;;  %v8402_v10 = vadd.f32 %v13497_v3, %v13735_v44  ;;  %v8406_v32 = vadd.f32 %v13497_v3, %v13737_v60  ;;  %v8789_v2 = vsel %vm8533_vm11, %v8405_v63, %v8661_v33 }
 0x2ca   : > { %9426 = vst.msk [vmem:[%s13508_s6 + $0x100] sm:$0xf] %vm9361_vm3, %v10114_v46  ;;  %v8788_v35 = vsel %vm8532_vm12, %v8404_v54, %v8660_v42  ;;  %v8411_v29 = vadd.f32 %v13745_v49, %v13497_v3  ;;  %v8415_v22 = vadd.f32 %v13751_v16, %v13497_v3  ;;  %v13842_v14 = vpop.f32.mrb[44].mxu1  ;;  %v13844_v44 = vpop.f32.mrb[45].mxu0  ;;  %v10118_v59 = vpack.c.bf16 %v8789_v2, %v8789_v2 }
 0x2cb   : > { %v10117_v60 = vpack.c.bf16 %v8788_v35, %v8788_v35  ;;  %v8792_v55 = vsel %vm8536_vm13, %v8408_v36, %v8664_v25  ;;  %vm8530_vm14 = vcmp.ge.f32.partialorder %v8402_v10, 0.0  ;;  %v13846_v4 = vpop.f32.mrb[45].mxu1  ;;  %v13848_v0 = vpop.f32.mrb[46].mxu0  ;;  %v8658_v27 = vmul.f32 0.2, %v8402_v10 }
 0x2cc   : > { %v10121_v17 = vpack.c.bf16 %v8792_v55, %v8792_v55  ;;  %vm8534_vm15 = vcmp.ge.f32.partialorder %v8406_v32, 0.0  ;;  %v8662_v49 = vmul.f32 0.2, %v8406_v32  ;;  %v13850_v48 = vpop.f32.mrb[46].mxu1  ;;  %9430 = vst.msk [vmem:[%s13508_s6 + $0x110] sm:$0xf] %vm9361_vm3, %v10118_v59  ;;  %v8409_v51 = vadd.f32 %v13861_v34, %v13753_v28 }
 0x2cd   : > { %9429 = vst.msk [vmem:[%s13508_s6 + $0x10c] sm:$0xf] %vm9361_vm3, %v10117_v60  ;;  %vm8539_vm0 = vcmp.ge.f32.partialorder %v8411_v29, 0.0  ;;  %v8667_v3 = vmul.f32 0.2, %v8411_v29  ;;  %vm8543_vm1 = vcmp.ge.f32.partialorder %v8415_v22, 0.0  ;;  %v8786_v6 = vsel %vm8530_vm14, %v8402_v10, %v8658_v27 }
 0x2ce   : > { %v8671_v16 = vmul.f32 0.2, %v8415_v22  ;;  %9433 = vst.msk [vmem:[%s13508_s6 + $0x11c] sm:$0xf] %vm9361_vm3, %v10121_v17  ;;  %v8790_v47 = vsel %vm8534_vm15, %v8406_v32, %v8662_v49  ;;  %v8413_v30 = vadd.f32 %v13861_v34, %v13759_v41  ;;  %v13867_v61 = vpop.f32.mrb[47].mxu0  ;;  %v13869_v31 = vpop.f32.mrb[47].mxu1  ;;  %v10115_v57 = vpack.c.bf16 %v8786_v6, %v8786_v6 }
 0x2cf   : > { %v10119_v13 = vpack.c.bf16 %v8790_v47, %v8790_v47  ;;  %v8795_v24 = vsel %vm8539_vm0, %v8411_v29, %v8667_v3  ;;  %vm8537_vm2 = vcmp.ge.f32.partialorder %v8409_v51, 0.0  ;;  %v8665_v21 = vmul.f32 0.2, %v8409_v51  ;;  %v13879_v39 = vpop.f32.mrb[48].mxu0 }
 0x2d0   : > { %v8799_v1 = vsel %vm8543_vm1, %v8415_v22, %v8671_v16  ;;  %v10124_v15 = vpack.c.bf16 %v8795_v24, %v8795_v24  ;;  %9427 = vst.msk [vmem:[%s13508_s6 + $0x104] sm:$0xf] %vm9361_vm3, %v10115_v57  ;;  %vm8541_vm4 = vcmp.ge.f32.partialorder %v8413_v30, 0.0  ;;  %v8669_v28 = vmul.f32 0.2, %v8413_v30  ;;  %v13891_v8 = vpop.f32.mrb[48].mxu1 }
 0x2d1   : > { %v10128_v9 = vpack.c.bf16 %v8799_v1, %v8799_v1  ;;  %9431 = vst.msk [vmem:[%s13508_s6 + $0x114] sm:$0xf] %vm9361_vm3, %v10119_v13  ;;  %v8412_v41 = vadd.f32 %v13861_v34, %v13761_v58  ;;  %v8416_v45 = vadd.f32 %v13861_v34, %v13771_v53  ;;  %v8793_v37 = vsel %vm8537_vm2, %v8409_v51, %v8665_v21  ;;  %v13893_v53 = vpop.f32.mrb[49].mxu0  ;;  %v13895_v56 = vpop.f32.mrb[49].mxu1 }
 0x2d2   : > { %9436 = vst.msk [vmem:[%s13508_s6 + $0x128] sm:$0xf] %vm9361_vm3, %v10124_v15  ;;  %v8410_v63 = vadd.f32 %v13861_v34, %v13773_v20  ;;  %v8414_v54 = vadd.f32 %v13861_v34, %v13779_v52  ;;  %v8419_v58 = vadd.f32 %v13861_v34, %v13789_v5  ;;  %v10122_v11 = vpack.c.bf16 %v8793_v37, %v8793_v37  ;;  %v13897_v40 = vpop.f32.mrb[50].mxu0  ;;  %v13899_v23 = vpop.f32.mrb[50].mxu1 }
 0x2d3   : > { %9440 = vst.msk [vmem:[%s13508_s6 + $0x138] sm:$0xf] %vm9361_vm3, %v10128_v9  ;;  %v8797_v19 = vsel %vm8541_vm4, %v8413_v30, %v8669_v28  ;;  %vm8540_vm5 = vcmp.ge.f32.partialorder %v8412_v41, 0.0  ;;  %v8668_v36 = vmul.f32 0.2, %v8412_v41  ;;  %vm8544_vm6 = vcmp.ge.f32.partialorder %v8416_v45, 0.0 }
 0x2d4   : > { %v10126_v20 = vpack.c.bf16 %v8797_v19, %v8797_v19  ;;  %v8672_v52 = vmul.f32 0.2, %v8416_v45  ;;  %vm8538_vm7 = vcmp.ge.f32.partialorder %v8410_v63, 0.0  ;;  %v13901_v5 = vpop.f32.mrb[51].mxu0  ;;  %9434 = vst.msk [vmem:[%s13508_s6 + $0x120] sm:$0xf] %vm9361_vm3, %v10122_v11  ;;  %v8423_v59 = vadd.f32 %v13861_v34, %v13797_v62 }
 0x2d5   : > { %v8796_v46 = vsel %vm8540_vm5, %v8412_v41, %v8668_v36  ;;  %v8666_v33 = vmul.f32 0.2, %v8410_v63  ;;  %vm8542_vm8 = vcmp.ge.f32.partialorder %v8414_v54, 0.0  ;;  %v8670_v42 = vmul.f32 0.2, %v8414_v54  ;;  %v13905_v25 = vpop.f32.mrb[51].mxu1 }
 0x2d6   : > { %9438 = vst.msk [vmem:[%s13508_s6 + $0x130] sm:$0xf] %vm9361_vm3, %v10126_v20  ;;  %v10125_v10 = vpack.c.bf16 %v8796_v46, %v8796_v46  ;;  %v8800_v32 = vsel %vm8544_vm6, %v8416_v45, %v8672_v52  ;;  %vm8547_vm9 = vcmp.ge.f32.partialorder %v8419_v58, 0.0  ;;  %v8675_v2 = vmul.f32 0.2, %v8419_v58 }
 0x2d7   : > { %v10129_v35 = vpack.c.bf16 %v8800_v32, %v8800_v32  ;;  %v8794_v29 = vsel %vm8538_vm7, %v8410_v63, %v8666_v33  ;;  %v8798_v22 = vsel %vm8542_vm8, %v8414_v54, %v8670_v42  ;;  %v8417_v27 = vadd.f32 %v13861_v34, %v13799_v26  ;;  %v13919_v6 = vpop.f32.mrb[52].mxu0 }
 0x2d8   : > { %9437 = vst.msk [vmem:[%s13508_s6 + $0x12c] sm:$0xf] %vm9361_vm3, %v10125_v10  ;;  %v10123_v60 = vpack.c.bf16 %v8794_v29, %v8794_v29  ;;  %v10127_v55 = vpack.c.bf16 %v8798_v22, %v8798_v22  ;;  %v8803_v17 = vsel %vm8547_vm9, %v8419_v58, %v8675_v2  ;;  %vm8551_vm10 = vcmp.ge.f32.partialorder %v8423_v59, 0.0  ;;  %v13929_v51 = vpop.f32.mrb[52].mxu1  ;;  %v13931_v30 = vpop.f32.mrb[53].mxu0 }
 0x2d9   : > { %9441 = vst.msk [vmem:[%s13508_s6 + $0x13c] sm:$0xf] %vm9361_vm3, %v10129_v35  ;;  %v10132_v49 = vpack.c.bf16 %v8803_v17, %v8803_v17  ;;  %v8679_v3 = vmul.f32 0.2, %v8423_v59  ;;  %v8421_v16 = vadd.f32 %v13861_v34, %v13803_v50  ;;  %vm8545_vm11 = vcmp.ge.f32.partialorder %v8417_v27, 0.0  ;;  %v13937_v24 = vpop.f32.mrb[53].mxu1 }
 0x2da   : > { %9435 = vst.msk [vmem:[%s13508_s6 + $0x124] sm:$0xf] %vm9361_vm3, %v10123_v60  ;;  %9439 = vst.msk [vmem:[%s13508_s6 + $0x134] sm:$0xf] %vm9361_vm3, %v10127_v55  ;;  %v8673_v62 = vmul.f32 0.2, %v8417_v27  ;;  %v8420_v47 = vadd.f32 %v13861_v34, %v13805_v7  ;;  %v8424_v26 = vadd.f32 %v13861_v34, %v13815_v38  ;;  %v8418_v13 = vadd.f32 %v13861_v34, %v13817_v43 }
 0x2db   : > { %9444 = vst.msk [vmem:[%s13508_s6 + $0x148] sm:$0xf] %vm9361_vm3, %v10132_v49  ;;  %v8807_v50 = vsel %vm8551_vm10, %v8423_v59, %v8679_v3  ;;  %vm8549_vm12 = vcmp.ge.f32.partialorder %v8421_v16, 0.0  ;;  %v8677_v57 = vmul.f32 0.2, %v8421_v16  ;;  %v13939_v1 = vpop.f32.mrb[54].mxu0  ;;  %v8422_v19 = vadd.f32 %v13861_v34, %v13822_v18 }
 0x2dc   : > { %v10136_v7 = vpack.c.bf16 %v8807_v50, %v8807_v50  ;;  %v8801_v38 = vsel %vm8545_vm11, %v8417_v27, %v8673_v62  ;;  %vm8548_vm13 = vcmp.ge.f32.partialorder %v8420_v47, 0.0  ;;  %v8676_v15 = vmul.f32 0.2, %v8420_v47  ;;  %v13941_v9 = vpop.f32.mrb[54].mxu1  ;;  %v13943_v21 = vpop.f32.mrb[55].mxu0 }
 0x2dd   : > { %v10130_v28 = vpack.c.bf16 %v8801_v38, %v8801_v38  ;;  %v8805_v41 = vsel %vm8549_vm12, %v8421_v16, %v8677_v57  ;;  %vm8552_vm14 = vcmp.ge.f32.partialorder %v8424_v26, 0.0  ;;  %v8680_v45 = vmul.f32 0.2, %v8424_v26  ;;  %v13945_v37 = vpop.f32.mrb[55].mxu1 }
 0x2de   : > { %9448 = vst.msk [vmem:[%s13508_s6 + $0x158] sm:$0xf] %vm9361_vm3, %v10136_v7  ;;  %v10134_v43 = vpack.c.bf16 %v8805_v41, %v8805_v41  ;;  %v8804_v63 = vsel %vm8548_vm13, %v8420_v47, %v8676_v15  ;;  %vm8546_vm15 = vcmp.ge.f32.partialorder %v8418_v13, 0.0  ;;  %v8674_v54 = vmul.f32 0.2, %v8418_v13 }
 0x2df   : > { %9442 = vst.msk [vmem:[%s13508_s6 + $0x140] sm:$0xf] %vm9361_vm3, %v10130_v28  ;;  %v10133_v58 = vpack.c.bf16 %v8804_v63, %v8804_v63  ;;  %v8808_v11 = vsel %vm8552_vm14, %v8424_v26, %v8680_v45  ;;  %v8427_v36 = vadd.f32 %v13861_v34, %v13834_v12  ;;  %v8431_v46 = vadd.f32 %v13861_v34, %v13842_v14  ;;  %v13963_v18 = vpop.f32.mrb[56].mxu0 }
 0x2e0   : > { %9446 = vst.msk [vmem:[%s13508_s6 + $0x150] sm:$0xf] %vm9361_vm3, %v10134_v43  ;;  %v10137_v20 = vpack.c.bf16 %v8808_v11, %v8808_v11  ;;  %v8802_v52 = vsel %vm8546_vm15, %v8418_v13, %v8674_v54  ;;  %v8425_v33 = vadd.f32 %v13861_v34, %v13844_v44  ;;  %vm8550_vm0 = vcmp.ge.f32.partialorder %v8422_v19, 0.0  ;;  %v13973_v29 = vpop.f32.mrb[56].mxu1  ;;  %v13975_v22 = vpop.f32.mrb[57].mxu0 }
 0x2e1   : > { %9445 = vst.msk [vmem:[%s13508_s6 + $0x14c] sm:$0xf] %vm9361_vm3, %v10133_v58  ;;  %v10131_v42 = vpack.c.bf16 %v8802_v52, %v8802_v52  ;;  %v8678_v10 = vmul.f32 0.2, %v8422_v19  ;;  %vm8555_vm1 = vcmp.ge.f32.partialorder %v8427_v36, 0.0  ;;  %vm8559_vm2 = vcmp.ge.f32.partialorder %v8431_v46, 0.0 }
 0x2e2   : > { %9449 = vst.msk [vmem:[%s13508_s6 + $0x15c] sm:$0xf] %vm9361_vm3, %v10137_v20  ;;  %v8683_v12 = vmul.f32 0.2, %v8427_v36  ;;  %v8687_v32 = vmul.f32 0.2, %v8431_v46  ;;  %v8429_v44 = vadd.f32 %v13861_v34, %v13846_v4  ;;  %v8428_v35 = vadd.f32 %v13861_v34, %v13848_v0 }
 0x2e3   : > { %vm8553_vm4 = vcmp.ge.f32.partialorder %v8425_v33, 0.0  ;;  %9443 = vst.msk [vmem:[%s13508_s6 + $0x144] sm:$0xf] %vm9361_vm3, %v10131_v42  ;;  %v8806_v14 = vsel %vm8550_vm0, %v8422_v19, %v8678_v10  ;;  %v8681_v2 = vmul.f32 0.2, %v8425_v33  ;;  %v8432_v17 = vadd.f32 %v13861_v34, %v13850_v48  ;;  %v13979_v27 = vpop.f32.mrb[57].mxu1 }
 0x2e4   : > { %v10135_v59 = vpack.c.bf16 %v8806_v14, %v8806_v14  ;;  %v8811_v60 = vsel %vm8555_vm1, %v8427_v36, %v8683_v12  ;;  %v8815_v55 = vsel %vm8559_vm2, %v8431_v46, %v8687_v32  ;;  %v13981_v49 = vpop.f32.mrb[58].mxu0  ;;  %vm8557_vm5 = vcmp.ge.f32.partialorder %v8429_v44, 0.0  ;;  %v13984_v16 = vpop.f32.mrb[58].mxu1 }
 0x2e5   : > { %v10140_v4 = vpack.c.bf16 %v8811_v60, %v8811_v60  ;;  %v10144_v3 = vpack.c.bf16 %v8815_v55, %v8815_v55  ;;  %v8809_v0 = vsel %vm8553_vm4, %v8425_v33, %v8681_v2  ;;  %v13986_v62 = vpop.f32.mrb[59].mxu0  ;;  %v8685_v26 = vmul.f32 0.2, %v8429_v44  ;;  %v13990_v50 = vpop.f32.mrb[59].mxu1 }
 0x2e6   : > { %9447 = vst.msk [vmem:[%s13508_s6 + $0x154] sm:$0xf] %vm9361_vm3, %v10135_v59  ;;  %v10138_v47 = vpack.c.bf16 %v8809_v0, %v8809_v0  ;;  %vm8556_vm6 = vcmp.ge.f32.partialorder %v8428_v35, 0.0  ;;  %v8684_v48 = vmul.f32 0.2, %v8428_v35  ;;  %vm8560_vm7 = vcmp.ge.f32.partialorder %v8432_v17, 0.0 }
 0x2e7   : > { %9452 = vst.msk [vmem:[%s13508_s6 + $0x168] sm:$0xf] %vm9361_vm3, %v10140_v4  ;;  %9456 = vst.msk [vmem:[%s13508_s6 + $0x178] sm:$0xf] %vm9361_vm3, %v10144_v3  ;;  %v8688_v57 = vmul.f32 0.2, %v8432_v17  ;;  %v8426_v13 = vadd.f32 %v13861_v34, %v13867_v61  ;;  %v8430_v7 = vadd.f32 %v13861_v34, %v13869_v31  ;;  %v8813_v38 = vsel %vm8557_vm5, %v8429_v44, %v8685_v26 }
 0x2e8   : > { %9450 = vst.msk [vmem:[%s13508_s6 + $0x160] sm:$0xf] %vm9361_vm3, %v10138_v47  ;;  %v8812_v15 = vsel %vm8556_vm6, %v8428_v35, %v8684_v48  ;;  %v8435_v28 = vadd.f32 %v13861_v34, %v13879_v39  ;;  %v8439_v41 = vadd.f32 %v13861_v34, %v13891_v8  ;;  %v10142_v45 = vpack.c.bf16 %v8813_v38, %v8813_v38  ;;  %v14007_v63 = vpop.f32.mrb[60].mxu0  ;;  %v14009_v11 = vpop.f32.mrb[60].mxu1 }
 0x2e9   : > { %v10141_v43 = vpack.c.bf16 %v8812_v15, %v8812_v15  ;;  %v8816_v61 = vsel %vm8560_vm7, %v8432_v17, %v8688_v57  ;;  %vm8554_vm8 = vcmp.ge.f32.partialorder %v8426_v13, 0.0  ;;  %v8682_v54 = vmul.f32 0.2, %v8426_v13  ;;  %v14021_v46 = vpop.f32.mrb[61].mxu0  ;;  %v14023_v33 = vpop.f32.mrb[61].mxu1 }
 0x2ea   : > { %v10145_v31 = vpack.c.bf16 %v8816_v61, %v8816_v61  ;;  %vm8558_vm9 = vcmp.ge.f32.partialorder %v8430_v7, 0.0  ;;  %v8686_v58 = vmul.f32 0.2, %v8430_v7  ;;  %9454 = vst.msk [vmem:[%s13508_s6 + $0x170] sm:$0xf] %vm9361_vm3, %v10142_v45  ;;  %vm8563_vm10 = vcmp.ge.f32.partialorder %v8435_v28, 0.0 }
 0x2eb   : > { %9453 = vst.msk [vmem:[%s13508_s6 + $0x16c] sm:$0xf] %vm9361_vm3, %v10141_v43  ;;  %v8691_v39 = vmul.f32 0.2, %v8435_v28  ;;  %vm8567_vm11 = vcmp.ge.f32.partialorder %v8439_v41, 0.0  ;;  %v8810_v19 = vsel %vm8554_vm8, %v8426_v13, %v8682_v54  ;;  %v8433_v20 = vadd.f32 %v13861_v34, %v13893_v53  ;;  %v14025_v14 = vpop.f32.mrb[62].mxu0 }
 0x2ec   : > { %v8695_v8 = vmul.f32 0.2, %v8439_v41  ;;  %9457 = vst.msk [vmem:[%s13508_s6 + $0x17c] sm:$0xf] %vm9361_vm3, %v10145_v31  ;;  %v8814_v36 = vsel %vm8558_vm9, %v8430_v7, %v8686_v58  ;;  %v8437_v52 = vadd.f32 %v13861_v34, %v13895_v56  ;;  %v10139_v42 = vpack.c.bf16 %v8810_v19, %v8810_v19  ;;  %v14027_v2 = vpop.f32.mrb[62].mxu1  ;;  %v14029_v56 = vpop.f32.mrb[63].mxu0 }
 0x2ed   : > { %v10143_v10 = vpack.c.bf16 %v8814_v36, %v8814_v36  ;;  %v8819_v12 = vsel %vm8563_vm10, %v8435_v28, %v8691_v39  ;;  %vm8561_vm12 = vcmp.ge.f32.partialorder %v8433_v20, 0.0  ;;  %v8689_v35 = vmul.f32 0.2, %v8433_v20  ;;  %v14031_v59 = vpop.f32.mrb[63].mxu1 }
 0x2ee   : > { %v8823_v32 = vsel %vm8567_vm11, %v8439_v41, %v8695_v8  ;;  %v10148_v53 = vpack.c.bf16 %v8819_v12, %v8819_v12  ;;  %9451 = vst.msk [vmem:[%s13508_s6 + $0x164] sm:$0xf] %vm9361_vm3, %v10139_v42  ;;  %vm8565_vm13 = vcmp.ge.f32.partialorder %v8437_v52, 0.0  ;;  %v8693_v60 = vmul.f32 0.2, %v8437_v52 }
 0x2ef   : > { %v10152_v44 = vpack.c.bf16 %v8823_v32, %v8823_v32  ;;  %9455 = vst.msk [vmem:[%s13508_s6 + $0x174] sm:$0xf] %vm9361_vm3, %v10143_v10  ;;  %v8436_v55 = vadd.f32 %v13861_v34, %v13897_v40  ;;  %v8440_v17 = vadd.f32 %v13861_v34, %v13899_v23  ;;  %v8817_v4 = vsel %vm8561_vm12, %v8433_v20, %v8689_v35 }
 0x2f0   : > { %9460 = vst.msk [vmem:[%s13508_s6 + $0x188] sm:$0xf] %vm9361_vm3, %v10148_v53  ;;  %v8434_v3 = vadd.f32 %v13861_v34, %v13901_v5  ;;  %v8438_v0 = vadd.f32 %v13861_v34, %v13905_v25  ;;  %v8443_v47 = vadd.f32 %v13861_v34, %v13919_v6  ;;  %v10146_v40 = vpack.c.bf16 %v8817_v4, %v8817_v4 }
 0x2f1   : > { %9464 = vst.msk [vmem:[%s13508_s6 + $0x198] sm:$0xf] %vm9361_vm3, %v10152_v44  ;;  %v8821_v26 = vsel %vm8565_vm13, %v8437_v52, %v8693_v60  ;;  %vm8564_vm14 = vcmp.ge.f32.partialorder %v8436_v55, 0.0  ;;  %v8692_v48 = vmul.f32 0.2, %v8436_v55  ;;  %vm8568_vm15 = vcmp.ge.f32.partialorder %v8440_v17, 0.0 }
 0x2f2   : > { %v10150_v23 = vpack.c.bf16 %v8821_v26, %v8821_v26  ;;  %v8696_v57 = vmul.f32 0.2, %v8440_v17  ;;  %vm8562_vm0 = vcmp.ge.f32.partialorder %v8434_v3, 0.0  ;;  %9458 = vst.msk [vmem:[%s13508_s6 + $0x180] sm:$0xf] %vm9361_vm3, %v10146_v40  ;;  %vm8566_vm1 = vcmp.ge.f32.partialorder %v8438_v0, 0.0 }
 0x2f3   : > { %v8820_v13 = vsel %vm8564_vm14, %v8436_v55, %v8692_v48  ;;  %v8690_v5 = vmul.f32 0.2, %v8434_v3  ;;  %v8694_v7 = vmul.f32 0.2, %v8438_v0  ;;  %vm8571_vm2 = vcmp.ge.f32.partialorder %v8443_v47, 0.0 }
 0x2f4   : > { %9462 = vst.msk [vmem:[%s13508_s6 + $0x190] sm:$0xf] %vm9361_vm3, %v10150_v23  ;;  %v10149_v25 = vpack.c.bf16 %v8820_v13, %v8820_v13  ;;  %v8824_v6 = vsel %vm8568_vm15, %v8440_v17, %v8696_v57  ;;  %v8699_v38 = vmul.f32 0.2, %v8443_v47  ;;  %v8447_v45 = vadd.f32 %v13861_v34, %v13929_v51 }
 0x2f5   : > { %v10153_v15 = vpack.c.bf16 %v8824_v6, %v8824_v6  ;;  %v8818_v28 = vsel %vm8562_vm0, %v8434_v3, %v8690_v5  ;;  %v8822_v41 = vsel %vm8566_vm1, %v8438_v0, %v8694_v7  ;;  %v8441_v54 = vadd.f32 %v13861_v34, %v13931_v30 }
 0x2f6   : > { %9461 = vst.msk [vmem:[%s13508_s6 + $0x18c] sm:$0xf] %vm9361_vm3, %v10149_v25  ;;  %v10147_v43 = vpack.c.bf16 %v8818_v28, %v8818_v28  ;;  %v10151_v61 = vpack.c.bf16 %v8822_v41, %v8822_v41  ;;  %v8827_v31 = vsel %vm8571_vm2, %v8443_v47, %v8699_v38  ;;  %vm8575_vm4 = vcmp.ge.f32.partialorder %v8447_v45, 0.0 }
 0x2f7   : > { %9465 = vst.msk [vmem:[%s13508_s6 + $0x19c] sm:$0xf] %vm9361_vm3, %v10153_v15  ;;  %v10156_v58 = vpack.c.bf16 %v8827_v31, %v8827_v31  ;;  %v8703_v39 = vmul.f32 0.2, %v8447_v45  ;;  %v8445_v8 = vadd.f32 %v13861_v34, %v13937_v24  ;;  %vm8569_vm5 = vcmp.ge.f32.partialorder %v8441_v54, 0.0 }
 0x2f8   : > { %9459 = vst.msk [vmem:[%s13508_s6 + $0x184] sm:$0xf] %vm9361_vm3, %v10147_v43  ;;  %9463 = vst.msk [vmem:[%s13508_s6 + $0x194] sm:$0xf] %vm9361_vm3, %v10151_v61  ;;  %v8697_v51 = vmul.f32 0.2, %v8441_v54  ;;  %v8444_v19 = vadd.f32 %v13861_v34, %v13939_v1  ;;  %v8448_v30 = vadd.f32 %v13861_v34, %v13941_v9  ;;  %v8442_v24 = vadd.f32 %v13861_v34, %v13943_v21 }
 0x2f9   : > { %9468 = vst.msk [vmem:[%s13508_s6 + $0x1a8] sm:$0xf] %vm9361_vm3, %v10156_v58  ;;  %v8831_v36 = vsel %vm8575_vm4, %v8447_v45, %v8703_v39  ;;  %vm8573_vm6 = vcmp.ge.f32.partialorder %v8445_v8, 0.0  ;;  %v8701_v20 = vmul.f32 0.2, %v8445_v8  ;;  %v8446_v60 = vadd.f32 %v13861_v34, %v13945_v37 }
 0x2fa   : > { %v10160_v52 = vpack.c.bf16 %v8831_v36, %v8831_v36  ;;  %v8825_v42 = vsel %vm8569_vm5, %v8441_v54, %v8697_v51  ;;  %vm8572_vm7 = vcmp.ge.f32.partialorder %v8444_v19, 0.0  ;;  %v8700_v10 = vmul.f32 0.2, %v8444_v19 }
 0x2fb   : > { %v10154_v12 = vpack.c.bf16 %v8825_v42, %v8825_v42  ;;  %v8829_v32 = vsel %vm8573_vm6, %v8445_v8, %v8701_v20  ;;  %vm8576_vm8 = vcmp.ge.f32.partialorder %v8448_v30, 0.0  ;;  %v8704_v1 = vmul.f32 0.2, %v8448_v30 }
 0x2fc   : > { %9472 = vst.msk [vmem:[%s13508_s6 + $0x1b8] sm:$0xf] %vm9361_vm3, %v10160_v52  ;;  %v10158_v9 = vpack.c.bf16 %v8829_v32, %v8829_v32  ;;  %v8828_v53 = vsel %vm8572_vm7, %v8444_v19, %v8700_v10  ;;  %vm8570_vm9 = vcmp.ge.f32.partialorder %v8442_v24, 0.0  ;;  %v8698_v44 = vmul.f32 0.2, %v8442_v24 }
 0x2fd   : > { %9466 = vst.msk [vmem:[%s13508_s6 + $0x1a0] sm:$0xf] %vm9361_vm3, %v10154_v12  ;;  %v10157_v21 = vpack.c.bf16 %v8828_v53, %v8828_v53  ;;  %v8832_v35 = vsel %vm8576_vm8, %v8448_v30, %v8704_v1  ;;  %v8451_v55 = vadd.f32 %v13861_v34, %v13963_v18  ;;  %v8455_v3 = vadd.f32 %v13861_v34, %v13973_v29 }
 0x2fe   : > { %9470 = vst.msk [vmem:[%s13508_s6 + $0x1b0] sm:$0xf] %vm9361_vm3, %v10158_v9  ;;  %v10161_v17 = vpack.c.bf16 %v8832_v35, %v8832_v35  ;;  %v8826_v4 = vsel %vm8570_vm9, %v8442_v24, %v8698_v44  ;;  %v8449_v0 = vadd.f32 %v13861_v34, %v13975_v22  ;;  %vm8574_vm10 = vcmp.ge.f32.partialorder %v8446_v60, 0.0 }
 0x2ff   : > { %9469 = vst.msk [vmem:[%s13508_s6 + $0x1ac] sm:$0xf] %vm9361_vm3, %v10157_v21  ;;  %v10155_v47 = vpack.c.bf16 %v8826_v4, %v8826_v4  ;;  %v8702_v40 = vmul.f32 0.2, %v8446_v60  ;;  %vm8579_vm11 = vcmp.ge.f32.partialorder %v8451_v55, 0.0  ;;  %vm8583_vm12 = vcmp.ge.f32.partialorder %v8455_v3, 0.0 }
 0x300   : > { %9473 = vst.msk [vmem:[%s13508_s6 + $0x1bc] sm:$0xf] %vm9361_vm3, %v10161_v17  ;;  %v8707_v37 = vmul.f32 0.2, %v8451_v55  ;;  %v8711_v18 = vmul.f32 0.2, %v8455_v3  ;;  %v8453_v22 = vadd.f32 %v13861_v34, %v13979_v27  ;;  %v8452_v48 = vadd.f32 %v13861_v34, %v13981_v49 }
 0x301   : > { %vm8577_vm13 = vcmp.ge.f32.partialorder %v8449_v0, 0.0  ;;  %9467 = vst.msk [vmem:[%s13508_s6 + $0x1a4] sm:$0xf] %vm9361_vm3, %v10155_v47  ;;  %v8830_v26 = vsel %vm8574_vm10, %v8446_v60, %v8702_v40  ;;  %v8705_v29 = vmul.f32 0.2, %v8449_v0  ;;  %v8456_v5 = vadd.f32 %v13861_v34, %v13984_v16 }
 0x302   : > { %v10159_v23 = vpack.c.bf16 %v8830_v26, %v8830_v26  ;;  %v8835_v57 = vsel %vm8579_vm11, %v8451_v55, %v8707_v37  ;;  %v8839_v13 = vsel %vm8583_vm12, %v8455_v3, %v8711_v18  ;;  %vm8581_vm14 = vcmp.ge.f32.partialorder %v8453_v22, 0.0 }
 0x303   : > { %v10164_v7 = vpack.c.bf16 %v8835_v57, %v8835_v57  ;;  %v10168_v25 = vpack.c.bf16 %v8839_v13, %v8839_v13  ;;  %v8833_v6 = vsel %vm8577_vm13, %v8449_v0, %v8705_v29  ;;  %v8709_v15 = vmul.f32 0.2, %v8453_v22 }
 0x304   : > { %9471 = vst.msk [vmem:[%s13508_s6 + $0x1b4] sm:$0xf] %vm9361_vm3, %v10159_v23  ;;  %v10162_v38 = vpack.c.bf16 %v8833_v6, %v8833_v6  ;;  %vm8580_vm15 = vcmp.ge.f32.partialorder %v8452_v48, 0.0  ;;  %v8708_v27 = vmul.f32 0.2, %v8452_v48  ;;  %vm8584_vm0 = vcmp.ge.f32.partialorder %v8456_v5, 0.0 }
 0x305   : > { %9476 = vst.msk [vmem:[%s13508_s6 + $0x1c8] sm:$0xf] %vm9361_vm3, %v10164_v7  ;;  %9480 = vst.msk [vmem:[%s13508_s6 + $0x1d8] sm:$0xf] %vm9361_vm3, %v10168_v25  ;;  %v8712_v49 = vmul.f32 0.2, %v8456_v5  ;;  %v8450_v16 = vadd.f32 %v13861_v34, %v13986_v62  ;;  %v8454_v28 = vadd.f32 %v13861_v34, %v13990_v50  ;;  %v8837_v41 = vsel %vm8581_vm14, %v8453_v22, %v8709_v15 }
 0x306   : > { %9474 = vst.msk [vmem:[%s13508_s6 + $0x1c0] sm:$0xf] %vm9361_vm3, %v10162_v38  ;;  %v8836_v45 = vsel %vm8580_vm15, %v8452_v48, %v8708_v27  ;;  %v8459_v43 = vadd.f32 %v13861_v34, %v14007_v63  ;;  %v8463_v61 = vadd.f32 %v13861_v34, %v14009_v11  ;;  %v10166_v31 = vpack.c.bf16 %v8837_v41, %v8837_v41 }
 0x307   : > { %v10165_v54 = vpack.c.bf16 %v8836_v45, %v8836_v45  ;;  %v8840_v58 = vsel %vm8584_vm0, %v8456_v5, %v8712_v49  ;;  %vm8578_vm1 = vcmp.ge.f32.partialorder %v8450_v16, 0.0  ;;  %v8706_v39 = vmul.f32 0.2, %v8450_v16 }
 0x308   : > { %v10169_v62 = vpack.c.bf16 %v8840_v58, %v8840_v58  ;;  %vm8582_vm2 = vcmp.ge.f32.partialorder %v8454_v28, 0.0  ;;  %v8710_v8 = vmul.f32 0.2, %v8454_v28  ;;  %9478 = vst.msk [vmem:[%s13508_s6 + $0x1d0] sm:$0xf] %vm9361_vm3, %v10166_v31  ;;  %vm8587_vm4 = vcmp.ge.f32.partialorder %v8459_v43, 0.0 }
 0x309   : > { %9477 = vst.msk [vmem:[%s13508_s6 + $0x1cc] sm:$0xf] %vm9361_vm3, %v10165_v54  ;;  %v8715_v50 = vmul.f32 0.2, %v8459_v43  ;;  %vm8591_vm5 = vcmp.ge.f32.partialorder %v8463_v61, 0.0  ;;  %v8834_v11 = vsel %vm8578_vm1, %v8450_v16, %v8706_v39  ;;  %v8457_v19 = vadd.f32 %v13861_v34, %v14021_v46 }
 0x30a   : > { %v8719_v63 = vmul.f32 0.2, %v8463_v61  ;;  %9481 = vst.msk [vmem:[%s13508_s6 + $0x1dc] sm:$0xf] %vm9361_vm3, %v10169_v62  ;;  %v8838_v51 = vsel %vm8582_vm2, %v8454_v28, %v8710_v8  ;;  %v8461_v30 = vadd.f32 %v13861_v34, %v14023_v33  ;;  %v10163_v36 = vpack.c.bf16 %v8834_v11, %v8834_v11 }
 0x30b   : > { %v10167_v20 = vpack.c.bf16 %v8838_v51, %v8838_v51  ;;  %v8843_v24 = vsel %vm8587_vm4, %v8459_v43, %v8715_v50  ;;  %vm8585_vm6 = vcmp.ge.f32.partialorder %v8457_v19, 0.0  ;;  %v8713_v12 = vmul.f32 0.2, %v8457_v19 }
 0x30c   : > { %v8847_v52 = vsel %vm8591_vm5, %v8463_v61, %v8719_v63  ;;  %v10172_v42 = vpack.c.bf16 %v8843_v24, %v8843_v24  ;;  %9475 = vst.msk [vmem:[%s13508_s6 + $0x1c4] sm:$0xf] %vm9361_vm3, %v10163_v36  ;;  %vm8589_vm7 = vcmp.ge.f32.partialorder %v8461_v30, 0.0  ;;  %v8717_v32 = vmul.f32 0.2, %v8461_v30 }
 0x30d   : > { %v10176_v10 = vpack.c.bf16 %v8847_v52, %v8847_v52  ;;  %9479 = vst.msk [vmem:[%s13508_s6 + $0x1d4] sm:$0xf] %vm9361_vm3, %v10167_v20  ;;  %v8460_v46 = vadd.f32 %v13861_v34, %v14025_v14  ;;  %v8464_v33 = vadd.f32 %v13861_v34, %v14027_v2  ;;  %v8841_v1 = vsel %vm8585_vm6, %v8457_v19, %v8713_v12 }
 0x30e   : > { %9484 = vst.msk [vmem:[%s13508_s6 + $0x1e8] sm:$0xf] %vm9361_vm3, %v10172_v42  ;;  %v8458_v9 = vadd.f32 %v13861_v34, %v14029_v56  ;;  %v8462_v53 = vadd.f32 %v13861_v34, %v14031_v59  ;;  %v10170_v44 = vpack.c.bf16 %v8841_v1, %v8841_v1  ;;  %v8845_v21 = vsel %vm8589_vm7, %v8461_v30, %v8717_v32 }
 0x30f   : > { %9488 = vst.msk [vmem:[%s13508_s6 + $0x1f8] sm:$0xf] %vm9361_vm3, %v10176_v10  ;;  %vm8588_vm8 = vcmp.ge.f32.partialorder %v8460_v46, 0.0  ;;  %v8716_v35 = vmul.f32 0.2, %v8460_v46  ;;  %v10174_v14 = vpack.c.bf16 %v8845_v21, %v8845_v21  ;;  %vm8592_vm9 = vcmp.ge.f32.partialorder %v8464_v33, 0.0 }
 0x310   : > { %v8720_v2 = vmul.f32 0.2, %v8464_v33  ;;  %vm8586_vm10 = vcmp.ge.f32.partialorder %v8458_v9, 0.0  ;;  %9482 = vst.msk [vmem:[%s13508_s6 + $0x1e0] sm:$0xf] %vm9361_vm3, %v10170_v44  ;;  %vm8590_vm11 = vcmp.ge.f32.partialorder %v8462_v53, 0.0 }
 0x311   : > { %v8844_v60 = vsel %vm8588_vm8, %v8460_v46, %v8716_v35  ;;  %v8714_v55 = vmul.f32 0.2, %v8458_v9  ;;  %v8718_v56 = vmul.f32 0.2, %v8462_v53  ;;  %9486 = vst.msk [vmem:[%s13508_s6 + $0x1f0] sm:$0xf] %vm9361_vm3, %v10174_v14 }
 0x312   : > { %v10173_v34 = vpack.c.bf16 %v8844_v60, %v8844_v60  ;;  %v8848_v59 = vsel %vm8592_vm9, %v8464_v33, %v8720_v2 }
 0x313   : > { %v10177_v17 = vpack.c.bf16 %v8848_v59, %v8848_v59  ;;  %v8842_v4 = vsel %vm8586_vm10, %v8458_v9, %v8714_v55  ;;  %v8846_v3 = vsel %vm8590_vm11, %v8462_v53, %v8718_v56 }
 0x314   : > { %9485 = vst.msk [vmem:[%s13508_s6 + $0x1ec] sm:$0xf] %vm9361_vm3, %v10173_v34  ;;  %v10171_v0 = vpack.c.bf16 %v8842_v4, %v8842_v4  ;;  %v10175_v47 = vpack.c.bf16 %v8846_v3, %v8846_v3 }
 0x315   : > { %9489 = vst.msk [vmem:[%s13508_s6 + $0x1fc] sm:$0xf] %vm9361_vm3, %v10177_v17 }
 0x316   : > { %9483 = vst.msk [vmem:[%s13508_s6 + $0x1e4] sm:$0xf] %vm9361_vm3, %v10171_v0  ;;  %9487 = vst.msk [vmem:[%s13508_s6 + $0x1f4] sm:$0xf] %vm9361_vm3, %v10175_v47 }
 0x317 PF: > { %s13_s12 = sadd.s32 1, %s12004_s12  }
 0x318   : > { %p10_p4 = scmp.ge.s32.totalorder %s13_s12, 4  }
 0x31a   :  { %12 = sbr.rel (!%p10_p4) target bundleno = 1 (0x1), region = 65 }

// kernel: _lambda_.5
= control target key start
LH: loop header
LB: loop body
LE: loop exit
PB: predicated region body
PF: predicated region fallthrough
CT: control target
= control target key end

     0   :  { %s4737_s12 = smov 0   ;;  %s5850_s0 = inlined_call_operand.vmem [shape: bf16[2,17,17,32], index: 0, kind: input, shape index: {}]   ;;  %s5851_s1 = inlined_call_operand.vmem [shape: bf16[4,32,16], index: 1, kind: input, shape index: {}]   ;;  %s5852_s2 = inlined_call_operand.vmem [shape: f32[1,1,16], index: 2, kind: input, shape index: {}]   ;;  %s5853_s3 = inlined_call_operand.vmem [shape: bf16[2,16,16,16], index: 3, kind: output, shape index: {}]  }
   0x1 LB: > { %s3756_s13 = sadd.s32 4294967295, %s4713_s12   ;;  %p3760_p0 = scmp.ge.s32.totalorder %s4713_s12, 1  ;;  %s4713_s12 = sphi %s4737_s12, %s13_s12  }
   0x2   : > { %p137_p1 = scmp.lt.s32.totalorder %s4713_s12, 3 }
   0x4   : > { %p138_p2 = pnand %p3760_p0, %p137_p1 }
   0x5   : > { %v4748_v0 = vld [vmem:[%s5851_s1 + $0x10] sm:$0xff] (!%p138_p2)   ;;  %v4715_v1 = vmov (!%p138_p2), 0.0   ;;  %v4757_v2 = vld [vmem:[%s5851_s1 + $0x18] sm:$0xff] (!%p138_p2)   ;;  %p161_p3 = scmp.lt.s32.totalorder (!%p138_p2), %s3756_s13, 1  ;;  %vm4716_vm0 = vmmov (!%p138_p2), 0   ;;  %vm265_vm2 = vcmask (!%p138_p2), 261120  }
   0x6   : > { %141 = sbr.rel (%p138_p2) target bundleno = 498 (0x1f2), region = 32  ;;  %4142 = vmatprep.subr.bf16.mxu0 (!%p138_p2), %v4715_v1  ;;  %4150 = vmatprep.subr.bf16.mxu1 (!%p138_p2), %v4715_v1  ;;  %vm240_vm1 = vsmask.f32 (!%p138_p2), 7424  ;;  %vm3668_vm5 = vcmask (!%p138_p2), 125952  }
   0x7   : > { %4143 = vmatpush3.bf16.msra.mxu0 (!%p138_p2), %v4748_v0  ;;  %4151 = vmatpush3.bf16.msra.mxu1 (!%p138_p2), %v4748_v0 }
   0x8   : > { %4144 = vmatprep.subr.bf16.mxu0 (!%p138_p2), %v4715_v1  ;;  %4152 = vmatprep.subr.bf16.mxu1 (!%p138_p2), %v4715_v1 }
   0x9   : > { %4146 = vmatprep.mubr.msk.bf16.mxu0 (!%p138_p2), %vm4716_vm0, %v4715_v1  ;;  %4154 = vmatprep.mubr.msk.bf16.mxu1 (!%p138_p2), %vm4716_vm0, %v4715_v1 }
   0xb   : > { %4145 = vmatpush3.bf16.msra.mxu0 (!%p138_p2), %v4757_v2  ;;  %4153 = vmatpush3.bf16.msra.mxu1 (!%p138_p2), %v4757_v2 }
   0xc   : > { %4158 = vmatprep.subr.bf16.mxu0 (!%p138_p2), %v4715_v1  ;;  %4166 = vmatprep.subr.bf16.mxu1 (!%p138_p2), %v4715_v1 }
   0xd   : > { %s5855_s13 = smov (!%p161_p3, %s3756_s13), 1 }
   0xe   : > { %s4654_s18 = smul.u32 204, %s5855_s13  ;;  %s3917_s9 = sshll.u32 %s5855_s13, 7 }
   0xf   : > { %s5725_s14 = scalar_lea.vmem %s5853_s3, %s3917_s9 }
  0x10   : > { %s4775_s21 = scalar_lea.vmem %s5850_s0, %s4654_s18 }
  0x11   : > { %v4778_v3 = vld [vmem:[%s4775_s21] sm:$0xff]   ;;  %v4668_v4 = vld [vmem:[%s4775_s21 + $0x8] ss:$0 sps:$4 sm:$0x11]   ;;  %v4782_v5 = vld [vmem:[%s4775_s21 + $0xc] sm:$0xff]  }
  0x12   : > { %v242_v6 = vshrl.u32 %v4778_v3, 16  ;;  %v244_v7 = vshll.u32 %v4778_v3, 16  ;;  %v249_v8 = vshll.u32 %v4668_v4, 16  ;;  %v4670_v9 = vld [vmem:[%s4775_s21 + $0x14] ss:$0 sps:$4 sm:$0x11]  }
  0x13   : > { %v319_v10 = vshrl.u32 %v4782_v5, 16  ;;  %v321_v11 = vshll.u32 %v4782_v5, 16  ;;  %v326_v14 = vshll.u32 %v4670_v9, 16  ;;  %v4790_v15 = vld [vmem:[%s4775_s21 + $0x18] sm:$0xff]   ;;  %v4796_v22 = vld [vmem:[%s4775_s21 + $0x24] sm:$0xff]   ;;  %v4803_v30 = vld [vmem:[%s4775_s21 + $0x30] sm:$0xff]  }
  0x14   : > { %v246_v12 = vrot.slane %v244_v7, 1  ;;  %v251_v13 = vrot.slane %v249_v8, 1  ;;  %v4672_v17 = vld [vmem:[%s4775_s21 + $0x20] ss:$0 sps:$4 sm:$0x11]   ;;  %v383_v20 = vshrl.u32 %v4790_v15, 16 }
  0x15   : > { %v323_v16 = vrot.slane %v321_v11, 1  ;;  %v328_v19 = vrot.slane %v326_v14, 1  ;;  %v385_v21 = vshll.u32 %v4790_v15, 16  ;;  %v390_v24 = vshll.u32 %v4672_v17, 16  ;;  %v4817_v39 = vld [vmem:[%s4775_s21 + $0x3c] sm:$0xff]   ;;  %v4828_v46 = vld [vmem:[%s4775_s21 + $0x48] sm:$0xff]  }
  0x16   : > { %v247_v18 = vor.u32 %v246_v12, %v242_v6  ;;  %v4674_v25 = vld [vmem:[%s4775_s21 + $0x2c] ss:$0 sps:$4 sm:$0x11]   ;;  %v447_v28 = vshrl.u32 %v4796_v22, 16  ;;  %v449_v29 = vshll.u32 %v4796_v22, 16  ;;  %v513_v37 = vshll.u32 %v4803_v30, 16 }
  0x17   : > { %v324_v23 = vor.u32 %v323_v16, %v319_v10  ;;  %v387_v27 = vrot.slane %v385_v21, 1  ;;  %v454_v32 = vshll.u32 %v4674_v25, 16  ;;  %v392_v34 = vrot.slane %v390_v24, 1  ;;  %v4676_v36 = vld [vmem:[%s4775_s21 + $0x38] ss:$0 sps:$4 sm:$0x11]  }
  0x18   : > { %v252_v26 = vsel %vm240_vm1, %v247_v18, %v251_v13  ;;  %v451_v35 = vrot.slane %v449_v29, 1  ;;  %v511_v41 = vshrl.u32 %v4803_v30, 16  ;;  %v518_v42 = vshll.u32 %v4676_v36, 16  ;;  %v4678_v44 = vld [vmem:[%s4775_s21 + $0x44] ss:$0 sps:$4 sm:$0x11]  }
  0x19   : > { %4147 = vmatmul.mubr.msk.bf16.vlgmr.msra.gmra.mrb[0].mxu0 %vm265_vm2, %v252_v26  ;;  %v4807_v31 = vsel %vm240_vm1, %v324_v23, %v328_v19  ;;  %v388_v33 = vor.u32 %v387_v27, %v383_v20  ;;  %v456_v38 = vrot.slane %v454_v32, 1  ;;  %v515_v43 = vrot.slane %v513_v37, 1  ;;  %v4835_v48 = vld [vmem:[%s4775_s21 + $0x54] sm:$0xff]   ;;  %v4680_v55 = vld [vmem:[%s4775_s21 + $0x50] ss:$0 sps:$4 sm:$0x11]  }
  0x1a   : > { %4155 = vmatmul.mubr.msk.bf16.vlgmr.msra.gmra.mrb[0].mxu1 %vm265_vm2, %v4807_v31  ;;  %4159 = vmatpush3.bf16.msra.mxu0 %v4748_v0  ;;  %v452_v40 = vor.u32 %v451_v35, %v447_v28  ;;  %v577_v45 = vshll.u32 %v4817_v39, 16  ;;  %v575_v50 = vshrl.u32 %v4817_v39, 16  ;;  %v582_v52 = vshll.u32 %v4678_v44, 16  ;;  %v4682_v57 = vld [vmem:[%s4775_s21 + $0x5c] ss:$0 sps:$4 sm:$0x11]  }
  0x1b   : > { %4167 = vmatpush3.bf16.msra.mxu1 %v4748_v0  ;;  %4160 = vmatprep.subr.bf16.mxu0 %v4715_v1  ;;  %v4832_v47 = vsel %vm240_vm1, %v388_v33, %v392_v34  ;;  %v520_v53 = vrot.slane %v518_v42, 1  ;;  %v516_v54 = vor.u32 %v515_v43, %v511_v41  ;;  %v641_v56 = vshll.u32 %v4828_v46, 16  ;;  %v4861_v63 = vld [vmem:[%s4775_s21 + $0x60] sm:$0xff]   ;;  %v4684_v11 = vld [vmem:[%s4775_s21 + $0x68] ss:$0 sps:$4 sm:$0x11]  }
  0x1c   : > { %4168 = vmatprep.subr.bf16.mxu1 %v4715_v1  ;;  %4162 = vmatprep.mubr.msk.bf16.mxu0 %vm4716_vm0, %v4715_v1  ;;  %v4840_v49 = vsel %vm240_vm1, %v452_v40, %v456_v38  ;;  %v579_v51 = vrot.slane %v577_v45, 1  ;;  %v705_v58 = vshll.u32 %v4835_v48, 16  ;;  %v584_v60 = vrot.slane %v582_v52, 1  ;;  %v4876_v12 = vld [vmem:[%s4775_s21 + $0x6c] sm:$0xff]   ;;  %v4901_v28 = vld [vmem:[%s4775_s21 + $0x78] sm:$0xff]   ;;  %v4909_v33 = vld [vmem:[%s4775_s21 + $0x84] sm:$0xff]  }
  0x1d   : > { %4170 = vmatprep.mubr.msk.bf16.mxu1 %vm4716_vm0, %v4715_v1  ;;  %v639_v61 = vshrl.u32 %v4828_v46, 16  ;;  %v703_v62 = vshrl.u32 %v4835_v48, 16  ;;  %v4866_v4 = vsel %vm240_vm1, %v516_v54, %v520_v53  ;;  %v643_v6 = vrot.slane %v641_v56, 1  ;;  %v4686_v14 = vld [vmem:[%s4775_s21 + $0x74] ss:$0 sps:$4 sm:$0x11]  }
  0x1e   : > { %4161 = vmatpush3.bf16.msra.mxu0 %v4757_v2  ;;  %v580_v59 = vor.u32 %v579_v51, %v575_v50  ;;  %v646_v7 = vshll.u32 %v4680_v55, 16  ;;  %v707_v8 = vrot.slane %v705_v58, 1  ;;  %v710_v9 = vshll.u32 %v4682_v57, 16  ;;  %v4688_v36 = vld [vmem:[%s4775_s21 + $0x80] ss:$0 sps:$4 sm:$0x11]  }
  0x1f   : > { %4169 = vmatpush3.bf16.msra.mxu1 %v4757_v2  ;;  %4174 = vmatprep.subr.bf16.mxu0 %v4715_v1  ;;  %v769_v13 = vshll.u32 %v4861_v63, 16  ;;  %v644_v16 = vor.u32 %v643_v6, %v639_v61  ;;  %v833_v20 = vshll.u32 %v4876_v12, 16  ;;  %v774_v21 = vshll.u32 %v4684_v11, 16  ;;  %v4690_v37 = vld [vmem:[%s4775_s21 + $0x8c] ss:$0 sps:$4 sm:$0x11]  }
  0x20   : > { %4182 = vmatprep.subr.bf16.mxu1 %v4715_v1  ;;  %v4872_v10 = vsel %vm240_vm1, %v580_v59, %v584_v60  ;;  %v648_v17 = vrot.slane %v646_v7, 1  ;;  %v708_v18 = vor.u32 %v707_v8, %v703_v62  ;;  %v712_v19 = vrot.slane %v710_v9, 1  ;;  %v4935_v53 = vld [vmem:[%s4775_s21 + $0x90] sm:$0xff]   ;;  %v4943_v56 = vld [vmem:[%s4775_s21 + $0x9c] sm:$0xff]  }
  0x21   : > { %4163 = vmatmul.mubr.msk.bf16.vlgmr.msra.gmra.mrb[4].mxu0 %vm265_vm2, %v4832_v47  ;;  %v767_v23 = vshrl.u32 %v4861_v63, 16  ;;  %v771_v24 = vrot.slane %v769_v13, 1  ;;  %v831_v26 = vshrl.u32 %v4876_v12, 16  ;;  %v838_v27 = vshll.u32 %v4686_v14, 16  ;;  %v4968_v14 = vld [vmem:[%s4775_s21 + $0xa8] sm:$0xff]  }
  0x22   : > { %4171 = vmatmul.mubr.msk.bf16.vlgmr.msra.gmra.mrb[4].mxu1 %vm265_vm2, %v4840_v49  ;;  %4175 = vmatpush3.bf16.msra.mxu0 %v4748_v0  ;;  %v4897_v25 = vsel %vm240_vm1, %v644_v16, %v648_v17  ;;  %v4906_v29 = vsel %vm240_vm1, %v708_v18, %v712_v19  ;;  %v835_v32 = vrot.slane %v833_v20, 1  ;;  %v776_v34 = vrot.slane %v774_v21, 1  ;;  %v4692_v59 = vld [vmem:[%s4775_s21 + $0x98] ss:$0 sps:$4 sm:$0x11]  }
  0x23   : > { %4183 = vmatpush3.bf16.msra.mxu1 %v4748_v0  ;;  %4176 = vmatprep.subr.bf16.mxu0 %v4715_v1  ;;  %v772_v35 = vor.u32 %v771_v24, %v767_v23  ;;  %v897_v38 = vshll.u32 %v4901_v28, 16  ;;  %v840_v41 = vrot.slane %v838_v27, 1  ;;  %v961_v42 = vshll.u32 %v4909_v33, 16  ;;  %v4694_v6 = vld [vmem:[%s4775_s21 + $0xa4] ss:$0 sps:$4 sm:$0x11]  }
  0x24   : > { %4184 = vmatprep.subr.bf16.mxu1 %v4715_v1  ;;  %4178 = vmatprep.mubr.msk.bf16.mxu0 %vm4716_vm0, %v4715_v1  ;;  %v836_v40 = vor.u32 %v835_v32, %v831_v26  ;;  %v895_v44 = vshrl.u32 %v4901_v28, 16  ;;  %v902_v50 = vshll.u32 %v4688_v36, 16  ;;  %v959_v51 = vshrl.u32 %v4909_v33, 16  ;;  %v4977_v20 = vld [vmem:[%s4775_s21 + $0xb4] sm:$0xff]  }
  0x25   : > { %4186 = vmatprep.mubr.msk.bf16.mxu1 %vm4716_vm0, %v4715_v1  ;;  %v4929_v43 = vsel %vm240_vm1, %v772_v35, %v776_v34  ;;  %v899_v45 = vrot.slane %v897_v38, 1  ;;  %v966_v52 = vshll.u32 %v4690_v37, 16  ;;  %v963_v55 = vrot.slane %v961_v42, 1  ;;  %v4696_v24 = vld [vmem:[%s4775_s21 + $0xb0] ss:$0 sps:$4 sm:$0x11]  }
  0x26   : > { %4177 = vmatpush3.bf16.msra.mxu0 %v4757_v2  ;;  %v4940_v54 = vsel %vm240_vm1, %v836_v40, %v840_v41  ;;  %v904_v58 = vrot.slane %v902_v50, 1  ;;  %v1025_v60 = vshll.u32 %v4935_v53, 16  ;;  %v1089_v7 = vshll.u32 %v4943_v56, 16  ;;  %v4698_v34 = vld [vmem:[%s4775_s21 + $0xbc] ss:$0 sps:$4 sm:$0x11]  }
  0x27   : > { %4185 = vmatpush3.bf16.msra.mxu1 %v4757_v2  ;;  %4190 = vmatprep.subr.bf16.mxu0 %v4715_v1  ;;  %v900_v57 = vor.u32 %v899_v45, %v895_v44  ;;  %v964_v61 = vor.u32 %v963_v55, %v959_v51  ;;  %v968_v62 = vrot.slane %v966_v52, 1  ;;  %v1023_v9 = vshrl.u32 %v4935_v53, 16 }
  0x28   : > { %4198 = vmatprep.subr.bf16.mxu1 %v4715_v1  ;;  %v1027_v11 = vrot.slane %v1025_v60, 1  ;;  %v1030_v13 = vshll.u32 %v4692_v59, 16  ;;  %v1087_v17 = vshrl.u32 %v4943_v56, 16  ;;  %v1091_v18 = vrot.slane %v1089_v7, 1  ;;  %v5043_v59 = vld [vmem:[%s5851_s1 + $0x8] sm:$0xff]  }
  0x29   : > { %4179 = vmatmul.mubr.msk.bf16.vlgmr.msra.gmra.mrb[8].mxu0 %vm265_vm2, %v4866_v4  ;;  %v4964_v8 = vsel %vm240_vm1, %v900_v57, %v904_v58  ;;  %v4973_v16 = vsel %vm240_vm1, %v964_v61, %v968_v62  ;;  %v1094_v19 = vshll.u32 %v4694_v6, 16  ;;  %v1153_v26 = vshll.u32 %v4968_v14, 16 }
  0x2a   : > { %4187 = vmatmul.mubr.msk.bf16.vlgmr.msra.gmra.mrb[8].mxu1 %vm265_vm2, %v4872_v10  ;;  %4191 = vmatpush3.bf16.msra.mxu0 %v4748_v0  ;;  %v1028_v21 = vor.u32 %v1027_v11, %v1023_v9  ;;  %v1032_v23 = vrot.slane %v1030_v13, 1  ;;  %v1092_v27 = vor.u32 %v1091_v18, %v1087_v17  ;;  %v1217_v35 = vshll.u32 %v4977_v20, 16 }
  0x2b   : > { %4199 = vmatpush3.bf16.msra.mxu1 %v4748_v0  ;;  %4192 = vmatprep.subr.bf16.mxu0 %v4715_v1  ;;  %v1096_v32 = vrot.slane %v1094_v19, 1  ;;  %v1151_v37 = vshrl.u32 %v4968_v14, 16  ;;  %v1155_v38 = vrot.slane %v1153_v26, 1  ;;  %v1158_v40 = vshll.u32 %v4696_v24, 16 }
  0x2c   : > { %4200 = vmatprep.subr.bf16.mxu1 %v4715_v1  ;;  %4194 = vmatprep.mubr.msk.bf16.mxu0 %vm4716_vm0, %v4715_v1  ;;  %v4998_v36 = vsel %vm240_vm1, %v1028_v21, %v1032_v23  ;;  %v1215_v42 = vshrl.u32 %v4977_v20, 16  ;;  %v1219_v44 = vrot.slane %v1217_v35, 1  ;;  %v1222_v45 = vshll.u32 %v4698_v34, 16 }
  0x2d   : > { %4202 = vmatprep.mubr.msk.bf16.mxu1 %vm4716_vm0, %v4715_v1  ;;  %v5004_v41 = vsel %vm240_vm1, %v1092_v27, %v1096_v32  ;;  %v1156_v50 = vor.u32 %v1155_v38, %v1151_v37  ;;  %v1160_v51 = vrot.slane %v1158_v40, 1 }
  0x2e   : > { %4193 = vmatpush3.bf16.msra.mxu0 %v4757_v2  ;;  %v1220_v52 = vor.u32 %v1219_v44, %v1215_v42  ;;  %v1224_v55 = vrot.slane %v1222_v45, 1 }
  0x2f   : > { %4201 = vmatpush3.bf16.msra.mxu1 %v4757_v2  ;;  %4206 = vmatprep.subr.bf16.mxu0 %v4715_v1  ;;  %v5022_v57 = vsel %vm240_vm1, %v1156_v50, %v1160_v51 }
  0x30   : > { %4214 = vmatprep.subr.bf16.mxu1 %v4715_v1  ;;  %v5032_v58 = vsel %vm240_vm1, %v1220_v52, %v1224_v55 }
  0x31   : > { %4195 = vmatmul.mubr.msk.bf16.vlgmr.msra.gmra.mrb[12].mxu0 %vm265_vm2, %v4897_v25 }
  0x32   : > { %4203 = vmatmul.mubr.msk.bf16.vlgmr.msra.gmra.mrb[12].mxu1 %vm265_vm2, %v4906_v29  ;;  %4207 = vmatpush3.bf16.msra.mxu0 %v4748_v0 }
  0x33   : > { %4215 = vmatpush3.bf16.msra.mxu1 %v4748_v0  ;;  %4208 = vmatprep.subr.bf16.mxu0 %v4715_v1 }
  0x34   : > { %4216 = vmatprep.subr.bf16.mxu1 %v4715_v1  ;;  %4210 = vmatprep.mubr.msk.bf16.mxu0 %vm4716_vm0, %v4715_v1 }
  0x35   : > { %4218 = vmatprep.mubr.msk.bf16.mxu1 %vm4716_vm0, %v4715_v1 }
  0x36   : > { %4209 = vmatpush3.bf16.msra.mxu0 %v4757_v2 }
  0x37   : > { %4217 = vmatpush3.bf16.msra.mxu1 %v4757_v2  ;;  %4222 = vmatprep.subr.bf16.mxu0 %v4715_v1 }
  0x38   : > { %4230 = vmatprep.subr.bf16.mxu1 %v4715_v1 }
  0x39   : > { %4211 = vmatmul.mubr.msk.bf16.vlgmr.msra.gmra.mrb[16].mxu0 %vm265_vm2, %v4929_v43 }
  0x3a   : > { %4219 = vmatmul.mubr.msk.bf16.vlgmr.msra.gmra.mrb[16].mxu1 %vm265_vm2, %v4940_v54  ;;  %4223 = vmatpush3.bf16.msra.mxu0 %v4748_v0 }
  0x3b   : > { %4231 = vmatpush3.bf16.msra.mxu1 %v4748_v0  ;;  %4224 = vmatprep.subr.bf16.mxu0 %v4715_v1 }
  0x3c   : > { %4232 = vmatprep.subr.bf16.mxu1 %v4715_v1  ;;  %4226 = vmatprep.mubr.msk.bf16.mxu0 %vm4716_vm0, %v4715_v1 }
  0x3d   : > { %4234 = vmatprep.mubr.msk.bf16.mxu1 %vm4716_vm0, %v4715_v1 }
  0x3e   : > { %4225 = vmatpush3.bf16.msra.mxu0 %v4757_v2 }
  0x3f   : > { %4233 = vmatpush3.bf16.msra.mxu1 %v4757_v2  ;;  %4238 = vmatprep.subr.bf16.mxu0 %v4715_v1 }
  0x40   : > { %4246 = vmatprep.subr.bf16.mxu1 %v4715_v1 }
  0x41   : > { %4227 = vmatmul.mubr.msk.bf16.vlgmr.msra.gmra.mrb[20].mxu0 %vm265_vm2, %v4964_v8 }
  0x42   : > { %4235 = vmatmul.mubr.msk.bf16.vlgmr.msra.gmra.mrb[20].mxu1 %vm265_vm2, %v4973_v16  ;;  %4239 = vmatpush3.bf16.msra.mxu0 %v4748_v0 }
  0x43   : > { %4247 = vmatpush3.bf16.msra.mxu1 %v4748_v0  ;;  %4240 = vmatprep.subr.bf16.mxu0 %v4715_v1 }
  0x44   : > { %4248 = vmatprep.subr.bf16.mxu1 %v4715_v1  ;;  %4242 = vmatprep.mubr.msk.bf16.mxu0 %vm4716_vm0, %v4715_v1 }
  0x45   : > { %4250 = vmatprep.mubr.msk.bf16.mxu1 %vm4716_vm0, %v4715_v1 }
  0x46   : > { %4241 = vmatpush3.bf16.msra.mxu0 %v4757_v2 }
  0x47   : > { %4249 = vmatpush3.bf16.msra.mxu1 %v4757_v2  ;;  %4254 = vmatprep.subr.bf16.mxu0 %v4715_v1 }
  0x48   : > { %4262 = vmatprep.subr.bf16.mxu1 %v4715_v1 }
  0x49   : > { %4243 = vmatmul.mubr.msk.bf16.vlgmr.msra.gmra.mrb[24].mxu0 %vm265_vm2, %v4998_v36 }
  0x4a   : > { %4251 = vmatmul.mubr.msk.bf16.vlgmr.msra.gmra.mrb[24].mxu1 %vm265_vm2, %v5004_v41  ;;  %4255 = vmatpush3.bf16.msra.mxu0 %v4748_v0 }
  0x4b   : > { %4263 = vmatpush3.bf16.msra.mxu1 %v4748_v0  ;;  %4256 = vmatprep.subr.bf16.mxu0 %v4715_v1  ;;  %v5027_v0 = vld [vmem:[%s5851_s1] sm:$0xff]  }
  0x4c   : > { %4264 = vmatprep.subr.bf16.mxu1 %v4715_v1  ;;  %4258 = vmatprep.mubr.msk.bf16.mxu0 %vm4716_vm0, %v4715_v1 }
  0x4d   : > { %4266 = vmatprep.mubr.msk.bf16.mxu1 %vm4716_vm0, %v4715_v1 }
  0x4e   : > { %4257 = vmatpush3.bf16.msra.mxu0 %v4757_v2 }
  0x4f   : > { %4265 = vmatpush3.bf16.msra.mxu1 %v4757_v2  ;;  %4270 = vmatprep.subr.bf16.mxu0 %v4715_v1  ;;  %v5168_v2 = vld [vmem:[%s5851_s1 + $0x20] sm:$0xff]  }
  0x50   : > { %4278 = vmatprep.subr.bf16.mxu1 %v4715_v1 }
  0x51   : > { %4259 = vmatmul.mubr.msk.bf16.vlgmr.msra.gmra.mrb[28].mxu0 %vm265_vm2, %v5022_v57 }
  0x52   : > { %4267 = vmatmul.mubr.msk.bf16.vlgmr.msra.gmra.mrb[28].mxu1 %vm265_vm2, %v5032_v58  ;;  %4271 = vmatpush3.bf16.msra.mxu0 %v5027_v0 }
  0x53   : > { %4279 = vmatpush3.bf16.msra.mxu1 %v5027_v0  ;;  %4272 = vmatprep.subr.bf16.mxu0 %v4715_v1 }
  0x54   : > { %4280 = vmatprep.subr.bf16.mxu1 %v4715_v1  ;;  %4274 = vmatprep.mubr.msk.bf16.mxu0 %vm4716_vm0, %v4715_v1 }
  0x55   : > { %4282 = vmatprep.mubr.msk.bf16.mxu1 %vm4716_vm0, %v4715_v1 }
  0x56   : > { %4273 = vmatpush3.bf16.msra.mxu0 %v5043_v59 }
  0x57   : > { %4281 = vmatpush3.bf16.msra.mxu1 %v5043_v59  ;;  %4286 = vmatprep.subr.bf16.mxu0 %v4715_v1 }
  0x58   : > { %4294 = vmatprep.subr.bf16.mxu1 %v4715_v1 }
  0x59   : > { %4275 = vmatmul.mubr.msk.bf16.vlgmr.msra.gmra.mrb[32].mxu0 %vm265_vm2, %v4778_v3  ;;  %v5181_v3 = vld [vmem:[%s5851_s1 + $0x28] sm:$0xff]  }
  0x5a   : > { %4283 = vmatmul.mubr.msk.bf16.vlgmr.msra.gmra.mrb[32].mxu1 %vm265_vm2, %v4782_v5  ;;  %4287 = vmatpush3.bf16.msra.mxu0 %v5027_v0 }
  0x5b   : > { %4295 = vmatpush3.bf16.msra.mxu1 %v5027_v0  ;;  %4288 = vmatprep.subr.bf16.mxu0 %v4715_v1 }
  0x5c   : > { %4296 = vmatprep.subr.bf16.mxu1 %v4715_v1  ;;  %4290 = vmatprep.mubr.msk.bf16.mxu0 %vm4716_vm0, %v4715_v1 }
  0x5d   : > { %4298 = vmatprep.mubr.msk.bf16.mxu1 %vm4716_vm0, %v4715_v1 }
  0x5e   : > { %4289 = vmatpush3.bf16.msra.mxu0 %v5043_v59 }
  0x5f   : > { %4297 = vmatpush3.bf16.msra.mxu1 %v5043_v59  ;;  %4302 = vmatprep.subr.bf16.mxu0 %v4715_v1 }
  0x60   : > { %4310 = vmatprep.subr.bf16.mxu1 %v4715_v1 }
  0x61   : > { %4291 = vmatmul.mubr.msk.bf16.vlgmr.msra.gmra.mrb[36].mxu0 %vm265_vm2, %v4790_v15 }
  0x62   : > { %4299 = vmatmul.mubr.msk.bf16.vlgmr.msra.gmra.mrb[36].mxu1 %vm265_vm2, %v4796_v22  ;;  %4303 = vmatpush3.bf16.msra.mxu0 %v5027_v0 }
  0x63   : > { %4311 = vmatpush3.bf16.msra.mxu1 %v5027_v0  ;;  %4304 = vmatprep.subr.bf16.mxu0 %v4715_v1 }
  0x64   : > { %4312 = vmatprep.subr.bf16.mxu1 %v4715_v1  ;;  %4306 = vmatprep.mubr.msk.bf16.mxu0 %vm4716_vm0, %v4715_v1 }
  0x65   : > { %4314 = vmatprep.mubr.msk.bf16.mxu1 %vm4716_vm0, %v4715_v1 }
  0x66   : > { %4305 = vmatpush3.bf16.msra.mxu0 %v5043_v59 }
  0x67   : > { %4313 = vmatpush3.bf16.msra.mxu1 %v5043_v59  ;;  %4318 = vmatprep.subr.bf16.mxu0 %v4715_v1 }
  0x68   : > { %4326 = vmatprep.subr.bf16.mxu1 %v4715_v1 }
  0x69   : > { %4307 = vmatmul.mubr.msk.bf16.vlgmr.msra.gmra.mrb[40].mxu0 %vm265_vm2, %v4803_v30 }
  0x6a   : > { %4315 = vmatmul.mubr.msk.bf16.vlgmr.msra.gmra.mrb[40].mxu1 %vm265_vm2, %v4817_v39  ;;  %4319 = vmatpush3.bf16.msra.mxu0 %v5027_v0 }
  0x6b   : > { %4327 = vmatpush3.bf16.msra.mxu1 %v5027_v0  ;;  %4320 = vmatprep.subr.bf16.mxu0 %v4715_v1 }
  0x6c   : > { %4328 = vmatprep.subr.bf16.mxu1 %v4715_v1  ;;  %4322 = vmatprep.mubr.msk.bf16.mxu0 %vm4716_vm0, %v4715_v1 }
  0x6d   : > { %4330 = vmatprep.mubr.msk.bf16.mxu1 %vm4716_vm0, %v4715_v1 }
  0x6e   : > { %4321 = vmatpush3.bf16.msra.mxu0 %v5043_v59 }
  0x6f   : > { %4329 = vmatpush3.bf16.msra.mxu1 %v5043_v59  ;;  %4334 = vmatprep.subr.bf16.mxu0 %v4715_v1 }
  0x70   : > { %4342 = vmatprep.subr.bf16.mxu1 %v4715_v1 }
  0x71   : > { %4323 = vmatmul.mubr.msk.bf16.vlgmr.msra.gmra.mrb[44].mxu0 %vm265_vm2, %v4828_v46 }
  0x72   : > { %4331 = vmatmul.mubr.msk.bf16.vlgmr.msra.gmra.mrb[44].mxu1 %vm265_vm2, %v4835_v48  ;;  %4335 = vmatpush3.bf16.msra.mxu0 %v5027_v0 }
  0x73   : > { %4343 = vmatpush3.bf16.msra.mxu1 %v5027_v0  ;;  %4336 = vmatprep.subr.bf16.mxu0 %v4715_v1 }
  0x74   : > { %4344 = vmatprep.subr.bf16.mxu1 %v4715_v1  ;;  %4338 = vmatprep.mubr.msk.bf16.mxu0 %vm4716_vm0, %v4715_v1 }
  0x75   : > { %4346 = vmatprep.mubr.msk.bf16.mxu1 %vm4716_vm0, %v4715_v1 }
  0x76   : > { %4337 = vmatpush3.bf16.msra.mxu0 %v5043_v59 }
  0x77   : > { %4345 = vmatpush3.bf16.msra.mxu1 %v5043_v59  ;;  %4350 = vmatprep.subr.bf16.mxu0 %v4715_v1 }
  0x78   : > { %4358 = vmatprep.subr.bf16.mxu1 %v4715_v1 }
  0x79   : > { %4339 = vmatmul.mubr.msk.bf16.vlgmr.msra.gmra.mrb[48].mxu0 %vm265_vm2, %v4861_v63 }
  0x7a   : > { %4347 = vmatmul.mubr.msk.bf16.vlgmr.msra.gmra.mrb[48].mxu1 %vm265_vm2, %v4876_v12  ;;  %4351 = vmatpush3.bf16.msra.mxu0 %v5027_v0 }
  0x7b   : > { %4359 = vmatpush3.bf16.msra.mxu1 %v5027_v0  ;;  %4352 = vmatprep.subr.bf16.mxu0 %v4715_v1 }
  0x7c   : > { %4360 = vmatprep.subr.bf16.mxu1 %v4715_v1  ;;  %4354 = vmatprep.mubr.msk.bf16.mxu0 %vm4716_vm0, %v4715_v1 }
  0x7d   : > { %4362 = vmatprep.mubr.msk.bf16.mxu1 %vm4716_vm0, %v4715_v1 }
  0x7e   : > { %4353 = vmatpush3.bf16.msra.mxu0 %v5043_v59 }
  0x7f   : > { %4361 = vmatpush3.bf16.msra.mxu1 %v5043_v59  ;;  %4366 = vmatprep.subr.bf16.mxu0 %v4715_v1 }
  0x80   : > { %4374 = vmatprep.subr.bf16.mxu1 %v4715_v1 }
  0x81   : > { %4355 = vmatmul.mubr.msk.bf16.vlgmr.msra.gmra.mrb[52].mxu0 %vm265_vm2, %v4901_v28 }
  0x82   : > { %4363 = vmatmul.mubr.msk.bf16.vlgmr.msra.gmra.mrb[52].mxu1 %vm265_vm2, %v4909_v33  ;;  %4367 = vmatpush3.bf16.msra.mxu0 %v5027_v0 }
  0x83   : > { %4375 = vmatpush3.bf16.msra.mxu1 %v5027_v0  ;;  %4368 = vmatprep.subr.bf16.mxu0 %v4715_v1 }
  0x84   : > { %4376 = vmatprep.subr.bf16.mxu1 %v4715_v1  ;;  %4370 = vmatprep.mubr.msk.bf16.mxu0 %vm4716_vm0, %v4715_v1 }
  0x85   : > { %4378 = vmatprep.mubr.msk.bf16.mxu1 %vm4716_vm0, %v4715_v1 }
  0x86   : > { %4369 = vmatpush3.bf16.msra.mxu0 %v5043_v59 }
  0x87   : > { %4377 = vmatpush3.bf16.msra.mxu1 %v5043_v59  ;;  %4382 = vmatprep.subr.bf16.mxu0 %v4715_v1 }
  0x88   : > { %4390 = vmatprep.subr.bf16.mxu1 %v4715_v1 }
  0x89   : > { %4371 = vmatmul.mubr.msk.bf16.vlgmr.msra.gmra.mrb[56].mxu0 %vm265_vm2, %v4935_v53 }
  0x8a   : > { %4379 = vmatmul.mubr.msk.bf16.vlgmr.msra.gmra.mrb[56].mxu1 %vm265_vm2, %v4943_v56  ;;  %4383 = vmatpush3.bf16.msra.mxu0 %v5027_v0 }
  0x8b   : > { %4391 = vmatpush3.bf16.msra.mxu1 %v5027_v0  ;;  %4384 = vmatprep.subr.bf16.mxu0 %v4715_v1 }
  0x8c   : > { %4392 = vmatprep.subr.bf16.mxu1 %v4715_v1  ;;  %4386 = vmatprep.mubr.msk.bf16.mxu0 %vm4716_vm0, %v4715_v1 }
  0x8d   : > { %4394 = vmatprep.mubr.msk.bf16.mxu1 %vm4716_vm0, %v4715_v1 }
  0x8e   : > { %4385 = vmatpush3.bf16.msra.mxu0 %v5043_v59 }
  0x8f   : > { %4393 = vmatpush3.bf16.msra.mxu1 %v5043_v59  ;;  %4398 = vmatprep.subr.bf16.mxu0 %v4715_v1 }
  0x90   : > { %4406 = vmatprep.subr.bf16.mxu1 %v4715_v1 }
  0x91   : > { %4387 = vmatmul.mubr.msk.bf16.vlgmr.msra.gmra.mrb[60].mxu0 %vm265_vm2, %v4968_v14 }
  0x92   : > { %4395 = vmatmul.mubr.msk.bf16.vlgmr.msra.gmra.mrb[60].mxu1 %vm265_vm2, %v4977_v20  ;;  %4399 = vmatpush3.bf16.msra.mxu0 %v5168_v2 }
  0x93   : > { %4407 = vmatpush3.bf16.msra.mxu1 %v5168_v2  ;;  %4400 = vmatprep.subr.bf16.mxu0 %v4715_v1 }
  0x94   : > { %4408 = vmatprep.subr.bf16.mxu1 %v4715_v1  ;;  %4402 = vmatprep.mubr.msk.bf16.mxu0 %vm4716_vm0, %v4715_v1 }
  0x95   : > { %4410 = vmatprep.mubr.msk.bf16.mxu1 %vm4716_vm0, %v4715_v1 }
  0x96   : > { %4401 = vmatpush3.bf16.msra.mxu0 %v5181_v3 }
  0x97   : > { %4409 = vmatpush3.bf16.msra.mxu1 %v5181_v3  ;;  %4414 = vmatprep.subr.bf16.mxu0 %v4715_v1 }
  0x98   : > { %4422 = vmatprep.subr.bf16.mxu1 %v4715_v1 }
  0x99   : > { %4403 = vmatmul.mubr.msk.bf16.vlgmr.msra.gmra.mrb[64].mxu0 %vm265_vm2, %v4782_v5  ;;  %v5304_v5 = vld [vmem:[%s4775_s21 + $0xc0] sm:$0xff]  }
  0x9a   : > { %4411 = vmatmul.mubr.msk.bf16.vlgmr.msra.gmra.mrb[64].mxu1 %vm265_vm2, %v4790_v15  ;;  %4415 = vmatpush3.bf16.msra.mxu0 %v5168_v2  ;;  %v5309_v15 = vld [vmem:[%s5851_s1 + $0x30] sm:$0xff]   ;;  %v3320_v9 = vshll.u32 %v5304_v5, 16 }
  0x9b   : > { %4423 = vmatpush3.bf16.msra.mxu1 %v5168_v2  ;;  %4416 = vmatprep.subr.bf16.mxu0 %v4715_v1 }
  0x9c   : > { %4424 = vmatprep.subr.bf16.mxu1 %v4715_v1  ;;  %4418 = vmatprep.mubr.msk.bf16.mxu0 %vm4716_vm0, %v4715_v1  ;;  %v3322_v21 = vrot.slane %v3320_v9, 1 }
  0x9d   : > { %4426 = vmatprep.mubr.msk.bf16.mxu1 %vm4716_vm0, %v4715_v1 }
  0x9e   : > { %4417 = vmatpush3.bf16.msra.mxu0 %v5181_v3 }
  0x9f   : > { %4425 = vmatpush3.bf16.msra.mxu1 %v5181_v3  ;;  %4430 = vmatprep.subr.bf16.mxu0 %v4715_v1 }
  0xa0   : > { %4438 = vmatprep.subr.bf16.mxu1 %v4715_v1 }
  0xa1   : > { %4419 = vmatmul.mubr.msk.bf16.vlgmr.msra.gmra.mrb[68].mxu0 %vm265_vm2, %v4796_v22  ;;  %v5322_v22 = vld [vmem:[%s5851_s1 + $0x38] sm:$0xff]  }
  0xa2   : > { %4427 = vmatmul.mubr.msk.bf16.vlgmr.msra.gmra.mrb[68].mxu1 %vm265_vm2, %v4803_v30  ;;  %4431 = vmatpush3.bf16.msra.mxu0 %v5168_v2 }
  0xa3   : > { %4439 = vmatpush3.bf16.msra.mxu1 %v5168_v2  ;;  %4432 = vmatprep.subr.bf16.mxu0 %v4715_v1 }
  0xa4   : > { %4440 = vmatprep.subr.bf16.mxu1 %v4715_v1  ;;  %4434 = vmatprep.mubr.msk.bf16.mxu0 %vm4716_vm0, %v4715_v1 }
  0xa5   : > { %4442 = vmatprep.mubr.msk.bf16.mxu1 %vm4716_vm0, %v4715_v1 }
  0xa6   : > { %4433 = vmatpush3.bf16.msra.mxu0 %v5181_v3 }
  0xa7   : > { %4441 = vmatpush3.bf16.msra.mxu1 %v5181_v3  ;;  %4446 = vmatprep.subr.bf16.mxu0 %v4715_v1 }
  0xa8   : > { %4454 = vmatprep.subr.bf16.mxu1 %v4715_v1 }
  0xa9   : > { %4435 = vmatmul.mubr.msk.bf16.vlgmr.msra.gmra.mrb[72].mxu0 %vm265_vm2, %v4817_v39 }
  0xaa   : > { %4443 = vmatmul.mubr.msk.bf16.vlgmr.msra.gmra.mrb[72].mxu1 %vm265_vm2, %v4828_v46  ;;  %4447 = vmatpush3.bf16.msra.mxu0 %v5168_v2 }
  0xab   : > { %4455 = vmatpush3.bf16.msra.mxu1 %v5168_v2  ;;  %4448 = vmatprep.subr.bf16.mxu0 %v4715_v1 }
  0xac   : > { %4456 = vmatprep.subr.bf16.mxu1 %v4715_v1  ;;  %4450 = vmatprep.mubr.msk.bf16.mxu0 %vm4716_vm0, %v4715_v1 }
  0xad   : > { %4458 = vmatprep.mubr.msk.bf16.mxu1 %vm4716_vm0, %v4715_v1 }
  0xae   : > { %4449 = vmatpush3.bf16.msra.mxu0 %v5181_v3 }
  0xaf   : > { %4457 = vmatpush3.bf16.msra.mxu1 %v5181_v3  ;;  %4462 = vmatprep.subr.bf16.mxu0 %v4715_v1 }
  0xb0   : > { %4470 = vmatprep.subr.bf16.mxu1 %v4715_v1 }
  0xb1   : > { %4451 = vmatmul.mubr.msk.bf16.vlgmr.msra.gmra.mrb[76].mxu0 %vm265_vm2, %v4835_v48 }
  0xb2   : > { %4459 = vmatmul.mubr.msk.bf16.vlgmr.msra.gmra.mrb[76].mxu1 %vm265_vm2, %v4861_v63  ;;  %4463 = vmatpush3.bf16.msra.mxu0 %v5168_v2 }
  0xb3   : > { %4471 = vmatpush3.bf16.msra.mxu1 %v5168_v2  ;;  %4464 = vmatprep.subr.bf16.mxu0 %v4715_v1 }
  0xb4   : > { %4472 = vmatprep.subr.bf16.mxu1 %v4715_v1  ;;  %4466 = vmatprep.mubr.msk.bf16.mxu0 %vm4716_vm0, %v4715_v1 }
  0xb5   : > { %4474 = vmatprep.mubr.msk.bf16.mxu1 %vm4716_vm0, %v4715_v1 }
  0xb6   : > { %4465 = vmatpush3.bf16.msra.mxu0 %v5181_v3 }
  0xb7   : > { %4473 = vmatpush3.bf16.msra.mxu1 %v5181_v3  ;;  %4478 = vmatprep.subr.bf16.mxu0 %v4715_v1 }
  0xb8   : > { %4486 = vmatprep.subr.bf16.mxu1 %v4715_v1 }
  0xb9   : > { %4467 = vmatmul.mubr.msk.bf16.vlgmr.msra.gmra.mrb[80].mxu0 %vm265_vm2, %v4876_v12 }
  0xba   : > { %4475 = vmatmul.mubr.msk.bf16.vlgmr.msra.gmra.mrb[80].mxu1 %vm265_vm2, %v4901_v28  ;;  %4479 = vmatpush3.bf16.msra.mxu0 %v5168_v2 }
  0xbb   : > { %4487 = vmatpush3.bf16.msra.mxu1 %v5168_v2  ;;  %4480 = vmatprep.subr.bf16.mxu0 %v4715_v1 }
  0xbc   : > { %4488 = vmatprep.subr.bf16.mxu1 %v4715_v1  ;;  %4482 = vmatprep.mubr.msk.bf16.mxu0 %vm4716_vm0, %v4715_v1 }
  0xbd   : > { %4490 = vmatprep.mubr.msk.bf16.mxu1 %vm4716_vm0, %v4715_v1 }
  0xbe   : > { %4481 = vmatpush3.bf16.msra.mxu0 %v5181_v3 }
  0xbf   : > { %4489 = vmatpush3.bf16.msra.mxu1 %v5181_v3  ;;  %4494 = vmatprep.subr.bf16.mxu0 %v4715_v1 }
  0xc0   : > { %4502 = vmatprep.subr.bf16.mxu1 %v4715_v1 }
  0xc1   : > { %4483 = vmatmul.mubr.msk.bf16.vlgmr.msra.gmra.mrb[84].mxu0 %vm265_vm2, %v4909_v33 }
  0xc2   : > { %4491 = vmatmul.mubr.msk.bf16.vlgmr.msra.gmra.mrb[84].mxu1 %vm265_vm2, %v4935_v53  ;;  %4495 = vmatpush3.bf16.msra.mxu0 %v5168_v2 }
  0xc3   : > { %4503 = vmatpush3.bf16.msra.mxu1 %v5168_v2  ;;  %4496 = vmatprep.subr.bf16.mxu0 %v4715_v1 }
  0xc4   : > { %4504 = vmatprep.subr.bf16.mxu1 %v4715_v1  ;;  %4498 = vmatprep.mubr.msk.bf16.mxu0 %vm4716_vm0, %v4715_v1 }
  0xc5   : > { %4506 = vmatprep.mubr.msk.bf16.mxu1 %vm4716_vm0, %v4715_v1 }
  0xc6   : > { %4497 = vmatpush3.bf16.msra.mxu0 %v5181_v3 }
  0xc7   : > { %4505 = vmatpush3.bf16.msra.mxu1 %v5181_v3  ;;  %4510 = vmatprep.subr.bf16.mxu0 %v4715_v1 }
  0xc8   : > { %4518 = vmatprep.subr.bf16.mxu1 %v4715_v1 }
  0xc9   : > { %4499 = vmatmul.mubr.msk.bf16.vlgmr.msra.gmra.mrb[88].mxu0 %vm265_vm2, %v4943_v56 }
  0xca   : > { %4507 = vmatmul.mubr.msk.bf16.vlgmr.msra.gmra.mrb[88].mxu1 %vm265_vm2, %v4968_v14  ;;  %4511 = vmatpush3.bf16.msra.mxu0 %v5168_v2 }
  0xcb   : > { %4519 = vmatpush3.bf16.msra.mxu1 %v5168_v2  ;;  %4512 = vmatprep.subr.bf16.mxu0 %v4715_v1 }
  0xcc   : > { %4520 = vmatprep.subr.bf16.mxu1 %v4715_v1  ;;  %4514 = vmatprep.mubr.msk.bf16.mxu0 %vm4716_vm0, %v4715_v1 }
  0xcd   : > { %4522 = vmatprep.mubr.msk.bf16.mxu1 %vm4716_vm0, %v4715_v1 }
  0xce   : > { %4513 = vmatpush3.bf16.msra.mxu0 %v5181_v3 }
  0xcf   : > { %4521 = vmatpush3.bf16.msra.mxu1 %v5181_v3  ;;  %4526 = vmatprep.subr.bf16.mxu0 %v4715_v1 }
  0xd0   : > { %4534 = vmatprep.subr.bf16.mxu1 %v4715_v1 }
  0xd1   : > { %4515 = vmatmul.mubr.msk.bf16.vlgmr.msra.gmra.mrb[92].mxu0 %vm265_vm2, %v4977_v20  ;;  %v3318_v20 = vshrl.u32 %v5304_v5, 16 }
  0xd2   : > { %4523 = vmatmul.mubr.msk.bf16.vlgmr.msra.gmra.mrb[92].mxu1 %vm265_vm2, %v5304_v5  ;;  %4527 = vmatpush3.bf16.msra.mxu0 %v5309_v15 }
  0xd3   : > { %4535 = vmatpush3.bf16.msra.mxu1 %v5309_v15  ;;  %4528 = vmatprep.subr.bf16.mxu0 %v4715_v1  ;;  %v3323_v26 = vor.u32 %v3322_v21, %v3318_v20 }
  0xd4   : > { %4536 = vmatprep.subr.bf16.mxu1 %v4715_v1  ;;  %4530 = vmatprep.mubr.msk.bf16.mxu0 %vm4716_vm0, %v4715_v1 }
  0xd5   : > { %4538 = vmatprep.mubr.msk.bf16.mxu1 %vm4716_vm0, %v4715_v1 }
  0xd6   : > { %4529 = vmatpush3.bf16.msra.mxu0 %v5322_v22 }
  0xd7   : > { %4537 = vmatpush3.bf16.msra.mxu1 %v5322_v22  ;;  %4542 = vmatprep.subr.bf16.mxu0 %v4715_v1 }
  0xd8   : > { %4550 = vmatprep.subr.bf16.mxu1 %v4715_v1 }
  0xd9   : > { %4531 = vmatmul.mubr.msk.bf16.vlgmr.msra.gmra.mrb[96].mxu0 %vm265_vm2, %v4807_v31 }
  0xda   : > { %4539 = vmatmul.mubr.msk.bf16.vlgmr.msra.gmra.mrb[96].mxu1 %vm265_vm2, %v4832_v47  ;;  %4543 = vmatpush3.bf16.msra.mxu0 %v5309_v15 }
  0xdb   : > { %4551 = vmatpush3.bf16.msra.mxu1 %v5309_v15  ;;  %4544 = vmatprep.subr.bf16.mxu0 %v4715_v1 }
  0xdc   : > { %4552 = vmatprep.subr.bf16.mxu1 %v4715_v1  ;;  %4546 = vmatprep.mubr.msk.bf16.mxu0 %vm4716_vm0, %v4715_v1 }
  0xdd   : > { %4554 = vmatprep.mubr.msk.bf16.mxu1 %vm4716_vm0, %v4715_v1 }
  0xde   : > { %4545 = vmatpush3.bf16.msra.mxu0 %v5322_v22 }
  0xdf   : > { %4553 = vmatpush3.bf16.msra.mxu1 %v5322_v22  ;;  %4558 = vmatprep.subr.bf16.mxu0 %v4715_v1 }
  0xe0   : > { %4566 = vmatprep.subr.bf16.mxu1 %v4715_v1 }
  0xe1   : > { %4547 = vmatmul.mubr.msk.bf16.vlgmr.msra.gmra.mrb[100].mxu0 %vm265_vm2, %v4840_v49 }
  0xe2   : > { %4555 = vmatmul.mubr.msk.bf16.vlgmr.msra.gmra.mrb[100].mxu1 %vm265_vm2, %v4866_v4  ;;  %4559 = vmatpush3.bf16.msra.mxu0 %v5309_v15 }
  0xe3   : > { %4567 = vmatpush3.bf16.msra.mxu1 %v5309_v15  ;;  %4560 = vmatprep.subr.bf16.mxu0 %v4715_v1 }
  0xe4   : > { %4568 = vmatprep.subr.bf16.mxu1 %v4715_v1  ;;  %4562 = vmatprep.mubr.msk.bf16.mxu0 %vm4716_vm0, %v4715_v1 }
  0xe5   : > { %4570 = vmatprep.mubr.msk.bf16.mxu1 %vm4716_vm0, %v4715_v1 }
  0xe6   : > { %4561 = vmatpush3.bf16.msra.mxu0 %v5322_v22 }
  0xe7   : > { %4569 = vmatpush3.bf16.msra.mxu1 %v5322_v22  ;;  %4574 = vmatprep.subr.bf16.mxu0 %v4715_v1 }
  0xe8   : > { %4582 = vmatprep.subr.bf16.mxu1 %v4715_v1 }
  0xe9   : > { %4563 = vmatmul.mubr.msk.bf16.vlgmr.msra.gmra.mrb[104].mxu0 %vm265_vm2, %v4872_v10 }
  0xea   : > { %4571 = vmatmul.mubr.msk.bf16.vlgmr.msra.gmra.mrb[104].mxu1 %vm265_vm2, %v4897_v25  ;;  %4575 = vmatpush3.bf16.msra.mxu0 %v5309_v15 }
  0xeb   : > { %4583 = vmatpush3.bf16.msra.mxu1 %v5309_v15  ;;  %4576 = vmatprep.subr.bf16.mxu0 %v4715_v1 }
  0xec   : > { %v5374_v30 = vpop.f32.mrb[0].mxu0  ;;  %4584 = vmatprep.subr.bf16.mxu1 %v4715_v1  ;;  %4578 = vmatprep.mubr.msk.bf16.mxu0 %vm4716_vm0, %v4715_v1 }
  0xed   : > { %v5379_v31 = vpop.f32.mrb[0].mxu1  ;;  %v4148_v39 = vpop.f32.mrb[1].mxu0  ;;  %4586 = vmatprep.mubr.msk.bf16.mxu1 %vm4716_vm0, %v4715_v1 }
  0xee   : > { %v4156_v46 = vpop.f32.mrb[1].mxu1  ;;  %4577 = vmatpush3.bf16.msra.mxu0 %v5322_v22  ;;  %v5384_v47 = vpop.f32.mrb[2].mxu0 }
  0xef   : > { %4585 = vmatpush3.bf16.msra.mxu1 %v5322_v22  ;;  %v5387_v48 = vpop.f32.mrb[2].mxu1  ;;  %v4149_v49 = vpop.f32.mrb[3].mxu0  ;;  %4590 = vmatprep.subr.bf16.mxu0 %v4715_v1 }
  0xf0   : > { %v4157_v63 = vpop.f32.mrb[3].mxu1  ;;  %4598 = vmatprep.subr.bf16.mxu1 %v4715_v1 }
  0xf1   : > { %4579 = vmatmul.mubr.msk.bf16.vlgmr.msra.gmra.mrb[108].mxu0 %vm265_vm2, %v4906_v29 }
  0xf2   : > { %4587 = vmatmul.mubr.msk.bf16.vlgmr.msra.gmra.mrb[108].mxu1 %vm265_vm2, %v4929_v43  ;;  %4591 = vmatpush3.bf16.msra.mxu0 %v5309_v15 }
  0xf3   : > { %4599 = vmatpush3.bf16.msra.mxu1 %v5309_v15  ;;  %4592 = vmatprep.subr.bf16.mxu0 %v4715_v1 }
  0xf4   : > { %v5398_v4 = vpop.f32.mrb[4].mxu0  ;;  %4600 = vmatprep.subr.bf16.mxu1 %v4715_v1  ;;  %4594 = vmatprep.mubr.msk.bf16.mxu0 %vm4716_vm0, %v4715_v1 }
  0xf5   : > { %v5403_v10 = vpop.f32.mrb[4].mxu1  ;;  %v4164_v12 = vpop.f32.mrb[5].mxu0  ;;  %4602 = vmatprep.mubr.msk.bf16.mxu1 %vm4716_vm0, %v4715_v1 }
  0xf6   : > { %v4172_v25 = vpop.f32.mrb[5].mxu1  ;;  %4593 = vmatpush3.bf16.msra.mxu0 %v5322_v22  ;;  %v5408_v28 = vpop.f32.mrb[6].mxu0 }
  0xf7   : > { %4601 = vmatpush3.bf16.msra.mxu1 %v5322_v22  ;;  %v5411_v29 = vpop.f32.mrb[6].mxu1  ;;  %v4165_v33 = vpop.f32.mrb[7].mxu0  ;;  %4606 = vmatprep.subr.bf16.mxu0 %v4715_v1 }
  0xf8   : > { %v4173_v43 = vpop.f32.mrb[7].mxu1  ;;  %4614 = vmatprep.subr.bf16.mxu1 %v4715_v1 }
  0xf9   : > { %4595 = vmatmul.mubr.msk.bf16.vlgmr.msra.gmra.mrb[112].mxu0 %vm265_vm2, %v4940_v54 }
  0xfa   : > { %4603 = vmatmul.mubr.msk.bf16.vlgmr.msra.gmra.mrb[112].mxu1 %vm265_vm2, %v4964_v8  ;;  %4607 = vmatpush3.bf16.msra.mxu0 %v5309_v15  ;;  %v4706_v8 = vld [vmem:[%s4775_s21 + $0xc8] ss:$0 sps:$4 sm:$0x11]  }
  0xfb   : > { %4615 = vmatpush3.bf16.msra.mxu1 %v5309_v15  ;;  %4608 = vmatprep.subr.bf16.mxu0 %v4715_v1  ;;  %v3325_v23 = vshll.u32 %v4706_v8, 16 }
  0xfc   : > { %v5422_v53 = vpop.f32.mrb[8].mxu0  ;;  %4616 = vmatprep.subr.bf16.mxu1 %v4715_v1  ;;  %4610 = vmatprep.mubr.msk.bf16.mxu0 %vm4716_vm0, %v4715_v1 }
  0xfd   : > { %v5427_v56 = vpop.f32.mrb[8].mxu1  ;;  %v4180_v60 = vpop.f32.mrb[9].mxu0  ;;  %4618 = vmatprep.mubr.msk.bf16.mxu1 %vm4716_vm0, %v4715_v1  ;;  %v3327_v27 = vrot.slane %v3325_v23, 1 }
  0xfe   : > { %v4188_v54 = vpop.f32.mrb[9].mxu1  ;;  %4609 = vmatpush3.bf16.msra.mxu0 %v5322_v22  ;;  %v5432_v61 = vpop.f32.mrb[10].mxu0 }
  0xff   : > { %4617 = vmatpush3.bf16.msra.mxu1 %v5322_v22  ;;  %v5435_v62 = vpop.f32.mrb[10].mxu1  ;;  %v4181_v6 = vpop.f32.mrb[11].mxu0  ;;  %4622 = vmatprep.subr.bf16.mxu0 %v4715_v1 }
 0x100   : > { %v4189_v7 = vpop.f32.mrb[11].mxu1  ;;  %4630 = vmatprep.subr.bf16.mxu1 %v4715_v1 }
 0x101   : > { %4611 = vmatmul.mubr.msk.bf16.vlgmr.msra.gmra.mrb[116].mxu0 %vm265_vm2, %v4973_v16 }
 0x102   : > { %4619 = vmatmul.mubr.msk.bf16.vlgmr.msra.gmra.mrb[116].mxu1 %vm265_vm2, %v4998_v36  ;;  %4623 = vmatpush3.bf16.msra.mxu0 %v5309_v15 }
 0x103   : > { %4631 = vmatpush3.bf16.msra.mxu1 %v5309_v15  ;;  %4624 = vmatprep.subr.bf16.mxu0 %v4715_v1 }
 0x104   : > { %v5448_v11 = vpop.f32.mrb[12].mxu0  ;;  %4632 = vmatprep.subr.bf16.mxu1 %v4715_v1  ;;  %4626 = vmatprep.mubr.msk.bf16.mxu0 %vm4716_vm0, %v4715_v1 }
 0x105   : > { %v5453_v13 = vpop.f32.mrb[12].mxu1  ;;  %v4196_v14 = vpop.f32.mrb[13].mxu0  ;;  %4634 = vmatprep.mubr.msk.bf16.mxu1 %vm4716_vm0, %v4715_v1 }
 0x106   : > { %v4204_v16 = vpop.f32.mrb[13].mxu1  ;;  %4625 = vmatpush3.bf16.msra.mxu0 %v5322_v22  ;;  %v5458_v17 = vpop.f32.mrb[14].mxu0 }
 0x107   : > { %4633 = vmatpush3.bf16.msra.mxu1 %v5322_v22  ;;  %v5461_v18 = vpop.f32.mrb[14].mxu1  ;;  %v4197_v19 = vpop.f32.mrb[15].mxu0  ;;  %4638 = vmatprep.subr.bf16.mxu0 %v4715_v1 }
 0x108   : > { %v4205_v24 = vpop.f32.mrb[15].mxu1  ;;  %4646 = vmatprep.subr.bf16.mxu1 %v4715_v1 }
 0x109   : > { %4627 = vmatmul.mubr.msk.bf16.vlgmr.msra.gmra.mrb[120].mxu0 %vm265_vm2, %v5004_v41  ;;  %v3328_v41 = vsel %vm240_vm1, %v3323_v26, %v3327_v27 }
 0x10a   : > { %4635 = vmatmul.mubr.msk.bf16.vlgmr.msra.gmra.mrb[120].mxu1 %vm265_vm2, %v5022_v57  ;;  %4639 = vmatpush3.bf16.msra.mxu0 %v5309_v15 }
 0x10b   : > { %4647 = vmatpush3.bf16.msra.mxu1 %v5309_v15  ;;  %4640 = vmatprep.subr.bf16.mxu0 %v4715_v1 }
 0x10c   : > { %v5473_v32 = vpop.f32.mrb[16].mxu0  ;;  %4648 = vmatprep.subr.bf16.mxu1 %v4715_v1  ;;  %4642 = vmatprep.mubr.msk.bf16.mxu0 %vm4716_vm0, %v4715_v1 }
 0x10d   : > { %v5478_v34 = vpop.f32.mrb[16].mxu1  ;;  %v4212_v35 = vpop.f32.mrb[17].mxu0  ;;  %4650 = vmatprep.mubr.msk.bf16.mxu1 %vm4716_vm0, %v4715_v1 }
 0x10e   : > { %v4220_v36 = vpop.f32.mrb[17].mxu1  ;;  %4641 = vmatpush3.bf16.msra.mxu0 %v5322_v22  ;;  %v5483_v37 = vpop.f32.mrb[18].mxu0 }
 0x10f   : > { %4649 = vmatpush3.bf16.msra.mxu1 %v5322_v22  ;;  %v5486_v38 = vpop.f32.mrb[18].mxu1  ;;  %v4213_v40 = vpop.f32.mrb[19].mxu0 }
 0x110   : > { %v4221_v42 = vpop.f32.mrb[19].mxu1 }
 0x111   : > { %4643 = vmatmul.mubr.msk.bf16.vlgmr.msra.gmra.mrb[124].mxu0 %vm265_vm2, %v5032_v58 }
 0x112   : > { %4651 = vmatmul.mubr.msk.bf16.vlgmr.msra.gmra.mrb[124].mxu1 %vm265_vm2, %v3328_v41 }
 0x114   : > { %v5492_v44 = vpop.f32.mrb[20].mxu0 }
 0x115   : > { %v5494_v1 = vpop.f32.mrb[20].mxu1  ;;  %v4228_v45 = vpop.f32.mrb[21].mxu0 }
 0x116   : > { %v4236_v50 = vpop.f32.mrb[21].mxu1  ;;  %v5496_v51 = vpop.f32.mrb[22].mxu0 }
 0x117   : > { %v5498_v52 = vpop.f32.mrb[22].mxu1  ;;  %v4229_v55 = vpop.f32.mrb[23].mxu0 }
 0x118   : > { %v4237_v57 = vpop.f32.mrb[23].mxu1 }
 0x11c   : > { %v5500_v0 = vpop.f32.mrb[24].mxu0 }
 0x11d   : > { %v5502_v59 = vpop.f32.mrb[24].mxu1  ;;  %v4244_v2 = vpop.f32.mrb[25].mxu0 }
 0x11e   : > { %v4252_v58 = vpop.f32.mrb[25].mxu1  ;;  %v5504_v3 = vpop.f32.mrb[26].mxu0 }
 0x11f   : > { %v5506_v5 = vpop.f32.mrb[26].mxu1  ;;  %v4245_v15 = vpop.f32.mrb[27].mxu0 }
 0x120   : > { %v4253_v22 = vpop.f32.mrb[27].mxu1 }
 0x124   : > { %v5508_v39 = vpop.f32.mrb[28].mxu0 }
 0x125   : > { %v5510_v46 = vpop.f32.mrb[28].mxu1  ;;  %v4260_v49 = vpop.f32.mrb[29].mxu0 }
 0x126   : > { %v4268_v63 = vpop.f32.mrb[29].mxu1  ;;  %v5512_v12 = vpop.f32.mrb[30].mxu0 }
 0x127   : > { %v5514_v25 = vpop.f32.mrb[30].mxu1  ;;  %v4261_v33 = vpop.f32.mrb[31].mxu0 }
 0x128   : > { %v4269_v43 = vpop.f32.mrb[31].mxu1 }
 0x12c   : > { %v1318_v60 = vpop.f32.mrb[32].mxu0 }
 0x12d   : > { %v5517_v54 = vadd.f32 %v1318_v60, %v5374_v30  ;;  %v1361_v6 = vpop.f32.mrb[32].mxu1  ;;  %v4276_v7 = vpop.f32.mrb[33].mxu0 }
 0x12e   : > { %v5520_v8 = vadd.f32 %v1361_v6, %v5379_v31  ;;  %v4284_v9 = vpop.f32.mrb[33].mxu1  ;;  %v1321_v14 = vpop.f32.mrb[34].mxu0 }
 0x12f   : > { %v5523_v16 = vadd.f32 %v1321_v14, %v5384_v47  ;;  %v1364_v19 = vpop.f32.mrb[34].mxu1  ;;  %v4277_v20 = vpop.f32.mrb[35].mxu0 }
 0x130   : > { %v5526_v21 = vadd.f32 %v1364_v19, %v5387_v48  ;;  %v4285_v23 = vpop.f32.mrb[35].mxu1 }
 0x134   : > { %v1404_v24 = vpop.f32.mrb[36].mxu0 }
 0x135   : > { %v5529_v30 = vadd.f32 %v1404_v24, %v5398_v4  ;;  %v1447_v26 = vpop.f32.mrb[36].mxu1  ;;  %v4292_v27 = vpop.f32.mrb[37].mxu0 }
 0x136   : > { %v5532_v31 = vadd.f32 %v1447_v26, %v5403_v10  ;;  %v4300_v35 = vpop.f32.mrb[37].mxu1  ;;  %v1407_v36 = vpop.f32.mrb[38].mxu0 }
 0x137   : > { %v5535_v47 = vadd.f32 %v1407_v36, %v5408_v28  ;;  %v1450_v40 = vpop.f32.mrb[38].mxu1  ;;  %v4293_v41 = vpop.f32.mrb[39].mxu0 }
 0x138   : > { %v5538_v48 = vadd.f32 %v1450_v40, %v5411_v29  ;;  %v4301_v42 = vpop.f32.mrb[39].mxu1 }
 0x13c   : > { %v1490_v45 = vpop.f32.mrb[40].mxu0 }
 0x13d   : > { %v5541_v4 = vadd.f32 %v1490_v45, %v5422_v53  ;;  %v1533_v50 = vpop.f32.mrb[40].mxu1  ;;  %v4308_v55 = vpop.f32.mrb[41].mxu0 }
 0x13e   : > { %v5544_v10 = vadd.f32 %v1533_v50, %v5427_v56  ;;  %v4316_v57 = vpop.f32.mrb[41].mxu1  ;;  %v1493_v2 = vpop.f32.mrb[42].mxu0 }
 0x13f   : > { %v5547_v28 = vadd.f32 %v1493_v2, %v5432_v61  ;;  %v1536_v58 = vpop.f32.mrb[42].mxu1  ;;  %v4309_v15 = vpop.f32.mrb[43].mxu0 }
 0x140   : > { %v5550_v29 = vadd.f32 %v1536_v58, %v5435_v62  ;;  %v4317_v22 = vpop.f32.mrb[43].mxu1 }
 0x144   : > { %v1576_v49 = vpop.f32.mrb[44].mxu0 }
 0x145   : > { %v5553_v53 = vadd.f32 %v1576_v49, %v5448_v11  ;;  %v1619_v63 = vpop.f32.mrb[44].mxu1  ;;  %v4324_v33 = vpop.f32.mrb[45].mxu0 }
 0x146   : > { %v5556_v56 = vadd.f32 %v1619_v63, %v5453_v13  ;;  %v4332_v43 = vpop.f32.mrb[45].mxu1  ;;  %v1579_v60 = vpop.f32.mrb[46].mxu0 }
 0x147   : > { %v5559_v61 = vadd.f32 %v1579_v60, %v5458_v17  ;;  %v1622_v6 = vpop.f32.mrb[46].mxu1  ;;  %v4325_v7 = vpop.f32.mrb[47].mxu0 }
 0x148   : > { %v5562_v62 = vadd.f32 %v1622_v6, %v5461_v18  ;;  %v4333_v9 = vpop.f32.mrb[47].mxu1 }
 0x14c   : > { %v1662_v14 = vpop.f32.mrb[48].mxu0 }
 0x14d   : > { %v5565_v11 = vadd.f32 %v1662_v14, %v5473_v32  ;;  %v1705_v19 = vpop.f32.mrb[48].mxu1  ;;  %v4340_v20 = vpop.f32.mrb[49].mxu0 }
 0x14e   : > { %v5568_v13 = vadd.f32 %v1705_v19, %v5478_v34  ;;  %v4348_v23 = vpop.f32.mrb[49].mxu1  ;;  %v1665_v24 = vpop.f32.mrb[50].mxu0 }
 0x14f   : > { %v5571_v17 = vadd.f32 %v1665_v24, %v5483_v37  ;;  %v1708_v26 = vpop.f32.mrb[50].mxu1  ;;  %v4341_v27 = vpop.f32.mrb[51].mxu0 }
 0x150   : > { %v5574_v18 = vadd.f32 %v1708_v26, %v5486_v38  ;;  %v4349_v35 = vpop.f32.mrb[51].mxu1 }
 0x154   : > { %v1748_v36 = vpop.f32.mrb[52].mxu0 }
 0x155   : > { %v5577_v32 = vadd.f32 %v1748_v36, %v5492_v44  ;;  %v1791_v40 = vpop.f32.mrb[52].mxu1  ;;  %v4356_v41 = vpop.f32.mrb[53].mxu0 }
 0x156   : > { %v5580_v34 = vadd.f32 %v1791_v40, %v5494_v1  ;;  %v4364_v42 = vpop.f32.mrb[53].mxu1  ;;  %v1751_v45 = vpop.f32.mrb[54].mxu0 }
 0x157   : > { %v5583_v37 = vadd.f32 %v1751_v45, %v5496_v51  ;;  %v1794_v50 = vpop.f32.mrb[54].mxu1  ;;  %v4357_v55 = vpop.f32.mrb[55].mxu0 }
 0x158   : > { %v5586_v38 = vadd.f32 %v1794_v50, %v5498_v52  ;;  %v4365_v57 = vpop.f32.mrb[55].mxu1 }
 0x15c   : > { %v1834_v2 = vpop.f32.mrb[56].mxu0 }
 0x15d   : > { %v5589_v44 = vadd.f32 %v1834_v2, %v5500_v0  ;;  %v1877_v58 = vpop.f32.mrb[56].mxu1  ;;  %v4372_v15 = vpop.f32.mrb[57].mxu0 }
 0x15e   : > { %v5592_v1 = vadd.f32 %v1877_v58, %v5502_v59  ;;  %v4380_v22 = vpop.f32.mrb[57].mxu1  ;;  %v1837_v49 = vpop.f32.mrb[58].mxu0 }
 0x15f   : > { %v5595_v51 = vadd.f32 %v1837_v49, %v5504_v3  ;;  %v1880_v63 = vpop.f32.mrb[58].mxu1  ;;  %v4373_v33 = vpop.f32.mrb[59].mxu0 }
 0x160   : > { %v5598_v52 = vadd.f32 %v1880_v63, %v5506_v5  ;;  %v4381_v43 = vpop.f32.mrb[59].mxu1 }
 0x164   : > { %v1920_v60 = vpop.f32.mrb[60].mxu0 }
 0x165   : > { %v5601_v0 = vadd.f32 %v1920_v60, %v5508_v39  ;;  %v1963_v6 = vpop.f32.mrb[60].mxu1  ;;  %v4388_v7 = vpop.f32.mrb[61].mxu0 }
 0x166   : > { %v5604_v59 = vadd.f32 %v1963_v6, %v5510_v46  ;;  %v4396_v9 = vpop.f32.mrb[61].mxu1  ;;  %v1923_v14 = vpop.f32.mrb[62].mxu0 }
 0x167   : > { %v5607_v3 = vadd.f32 %v1923_v14, %v5512_v12  ;;  %v1966_v19 = vpop.f32.mrb[62].mxu1  ;;  %v4389_v20 = vpop.f32.mrb[63].mxu0 }
 0x168   : > { %v5610_v5 = vadd.f32 %v1966_v19, %v5514_v25  ;;  %v4397_v23 = vpop.f32.mrb[63].mxu1 }
 0x16c   : > { %v2021_v24 = vpop.f32.mrb[64].mxu0 }
 0x16d   : > { %v5613_v39 = vadd.f32 %v2021_v24, %v5517_v54  ;;  %v2062_v26 = vpop.f32.mrb[64].mxu1  ;;  %v4404_v27 = vpop.f32.mrb[65].mxu0 }
 0x16e   : > { %v5616_v46 = vadd.f32 %v2062_v26, %v5520_v8  ;;  %v4412_v35 = vpop.f32.mrb[65].mxu1  ;;  %v2024_v36 = vpop.f32.mrb[66].mxu0 }
 0x16f   : > { %v5619_v12 = vadd.f32 %v2024_v36, %v5523_v16  ;;  %v2065_v40 = vpop.f32.mrb[66].mxu1  ;;  %v4405_v41 = vpop.f32.mrb[67].mxu0 }
 0x170   : > { %v5622_v25 = vadd.f32 %v2065_v40, %v5526_v21  ;;  %v4413_v42 = vpop.f32.mrb[67].mxu1 }
 0x174   : > { %v2103_v45 = vpop.f32.mrb[68].mxu0 }
 0x175   : > { %v5625_v54 = vadd.f32 %v2103_v45, %v5529_v30  ;;  %v2144_v50 = vpop.f32.mrb[68].mxu1  ;;  %v4420_v55 = vpop.f32.mrb[69].mxu0 }
 0x176   : > { %v5628_v8 = vadd.f32 %v2144_v50, %v5532_v31  ;;  %v4428_v57 = vpop.f32.mrb[69].mxu1  ;;  %v2106_v2 = vpop.f32.mrb[70].mxu0 }
 0x177   : > { %v5631_v16 = vadd.f32 %v2106_v2, %v5535_v47  ;;  %v2147_v58 = vpop.f32.mrb[70].mxu1  ;;  %v4421_v15 = vpop.f32.mrb[71].mxu0 }
 0x178   : > { %v5634_v21 = vadd.f32 %v2147_v58, %v5538_v48  ;;  %v4429_v22 = vpop.f32.mrb[71].mxu1 }
 0x17c   : > { %v2185_v49 = vpop.f32.mrb[72].mxu0 }
 0x17d   : > { %v5637_v30 = vadd.f32 %v2185_v49, %v5541_v4  ;;  %v2226_v63 = vpop.f32.mrb[72].mxu1  ;;  %v4436_v33 = vpop.f32.mrb[73].mxu0 }
 0x17e   : > { %v5640_v31 = vadd.f32 %v2226_v63, %v5544_v10  ;;  %v4444_v43 = vpop.f32.mrb[73].mxu1  ;;  %v2188_v60 = vpop.f32.mrb[74].mxu0 }
 0x17f   : > { %v5643_v47 = vadd.f32 %v2188_v60, %v5547_v28  ;;  %v2229_v6 = vpop.f32.mrb[74].mxu1  ;;  %v4437_v7 = vpop.f32.mrb[75].mxu0 }
 0x180   : > { %v5646_v48 = vadd.f32 %v2229_v6, %v5550_v29  ;;  %v4445_v9 = vpop.f32.mrb[75].mxu1 }
 0x184   : > { %v2267_v14 = vpop.f32.mrb[76].mxu0 }
 0x185   : > { %v5649_v4 = vadd.f32 %v2267_v14, %v5553_v53  ;;  %v2308_v19 = vpop.f32.mrb[76].mxu1  ;;  %v4452_v20 = vpop.f32.mrb[77].mxu0 }
 0x186   : > { %v5652_v10 = vadd.f32 %v2308_v19, %v5556_v56  ;;  %v4460_v23 = vpop.f32.mrb[77].mxu1  ;;  %v2270_v24 = vpop.f32.mrb[78].mxu0 }
 0x187   : > { %v5655_v28 = vadd.f32 %v2270_v24, %v5559_v61  ;;  %v2311_v26 = vpop.f32.mrb[78].mxu1  ;;  %v4453_v27 = vpop.f32.mrb[79].mxu0 }
 0x188   : > { %v5658_v29 = vadd.f32 %v2311_v26, %v5562_v62  ;;  %v4461_v35 = vpop.f32.mrb[79].mxu1 }
 0x18c   : > { %v2349_v36 = vpop.f32.mrb[80].mxu0 }
 0x18d   : > { %v5661_v53 = vadd.f32 %v2349_v36, %v5565_v11  ;;  %v2390_v40 = vpop.f32.mrb[80].mxu1  ;;  %v4468_v41 = vpop.f32.mrb[81].mxu0 }
 0x18e   : > { %v5664_v56 = vadd.f32 %v2390_v40, %v5568_v13  ;;  %v4476_v42 = vpop.f32.mrb[81].mxu1  ;;  %v2352_v45 = vpop.f32.mrb[82].mxu0 }
 0x18f   : > { %v5667_v61 = vadd.f32 %v2352_v45, %v5571_v17  ;;  %v2393_v50 = vpop.f32.mrb[82].mxu1  ;;  %v4469_v55 = vpop.f32.mrb[83].mxu0 }
 0x190   : > { %v5670_v62 = vadd.f32 %v2393_v50, %v5574_v18  ;;  %v4477_v57 = vpop.f32.mrb[83].mxu1 }
 0x194   : > { %v2431_v2 = vpop.f32.mrb[84].mxu0 }
 0x195   : > { %v5673_v11 = vadd.f32 %v2431_v2, %v5577_v32  ;;  %v2472_v58 = vpop.f32.mrb[84].mxu1  ;;  %v4484_v15 = vpop.f32.mrb[85].mxu0 }
 0x196   : > { %v5676_v13 = vadd.f32 %v2472_v58, %v5580_v34  ;;  %v4492_v22 = vpop.f32.mrb[85].mxu1  ;;  %v2434_v49 = vpop.f32.mrb[86].mxu0 }
 0x197   : > { %v5679_v17 = vadd.f32 %v2434_v49, %v5583_v37  ;;  %v2475_v63 = vpop.f32.mrb[86].mxu1  ;;  %v4485_v33 = vpop.f32.mrb[87].mxu0 }
 0x198   : > { %v5682_v18 = vadd.f32 %v2475_v63, %v5586_v38  ;;  %v4493_v43 = vpop.f32.mrb[87].mxu1 }
 0x19c   : > { %v2513_v60 = vpop.f32.mrb[88].mxu0 }
 0x19d   : > { %v5685_v32 = vadd.f32 %v2513_v60, %v5589_v44  ;;  %v2554_v6 = vpop.f32.mrb[88].mxu1  ;;  %v4500_v7 = vpop.f32.mrb[89].mxu0 }
 0x19e   : > { %v5688_v34 = vadd.f32 %v2554_v6, %v5592_v1  ;;  %v4508_v9 = vpop.f32.mrb[89].mxu1  ;;  %v2516_v14 = vpop.f32.mrb[90].mxu0 }
 0x19f   : > { %v5691_v37 = vadd.f32 %v2516_v14, %v5595_v51  ;;  %v2557_v19 = vpop.f32.mrb[90].mxu1  ;;  %v4501_v20 = vpop.f32.mrb[91].mxu0 }
 0x1a0   : > { %v5694_v38 = vadd.f32 %v2557_v19, %v5598_v52  ;;  %v4509_v23 = vpop.f32.mrb[91].mxu1 }
 0x1a4   : > { %v2595_v24 = vpop.f32.mrb[92].mxu0 }
 0x1a5   : > { %v5697_v44 = vadd.f32 %v2595_v24, %v5601_v0  ;;  %v2644_v26 = vpop.f32.mrb[92].mxu1  ;;  %v4516_v27 = vpop.f32.mrb[93].mxu0  ;;  %v5711_v0 = vld [vmem:[%s5852_s2] ss:$0 sm:$0xff] }
 0x1a6   : > { %v5700_v1 = vadd.f32 %v2644_v26, %v5604_v59  ;;  %v4524_v35 = vpop.f32.mrb[93].mxu1  ;;  %v2598_v36 = vpop.f32.mrb[94].mxu0 }
 0x1a7   : > { %v5703_v51 = vadd.f32 %v2598_v36, %v5607_v3  ;;  %v2647_v40 = vpop.f32.mrb[94].mxu1  ;;  %v4517_v41 = vpop.f32.mrb[95].mxu0 }
 0x1a8   : > { %v5706_v52 = vadd.f32 %v2647_v40, %v5610_v5  ;;  %v4525_v42 = vpop.f32.mrb[95].mxu1 }
 0x1ac   : > { %v2734_v45 = vpop.f32.mrb[96].mxu0 }
 0x1ad   : > { %v3373_v59 = vadd.f32 %v2734_v45, %v5613_v39  ;;  %v2775_v50 = vpop.f32.mrb[96].mxu1  ;;  %v4532_v55 = vpop.f32.mrb[97].mxu0 }
 0x1ae   : > { %v3375_v3 = vadd.f32 %v2775_v50, %v5616_v46  ;;  %v4540_v57 = vpop.f32.mrb[97].mxu1  ;;  %v2737_v2 = vpop.f32.mrb[98].mxu0 }
 0x1af   : > { %v3412_v58 = vadd.f32 %v5711_v0, %v3373_v59  ;;  %v3374_v5 = vadd.f32 %v2737_v2, %v5619_v12  ;;  %v2778_v15 = vpop.f32.mrb[98].mxu1  ;;  %v4533_v22 = vpop.f32.mrb[99].mxu0 }
 0x1b0   : > { %v3414_v49 = vadd.f32 %v5711_v0, %v3375_v3  ;;  %v3376_v63 = vadd.f32 %v2778_v15, %v5622_v25  ;;  %v4541_v33 = vpop.f32.mrb[99].mxu1 }
 0x1b1   : > { %vm3444_vm3 = vcmp.ge.f32.partialorder %v3412_v58, 0.0  ;;  %v3476_v39 = vmul.f32 0.2, %v3412_v58  ;;  %v3413_v43 = vadd.f32 %v5711_v0, %v3374_v5 }
 0x1b2   : > { %vm3446_vm4 = vcmp.ge.f32.partialorder %v3414_v49, 0.0  ;;  %v3478_v46 = vmul.f32 0.2, %v3414_v49  ;;  %v3415_v60 = vadd.f32 %v5711_v0, %v3376_v63 }
 0x1b3   : > { %v3508_v12 = vsel %vm3444_vm3, %v3412_v58, %v3476_v39  ;;  %vm3445_vm6 = vcmp.ge.f32.partialorder %v3413_v43, 0.0  ;;  %v3477_v6 = vmul.f32 0.2, %v3413_v43 }
 0x1b4   : > { %v3918_v25 = vpack.c.bf16 %v3508_v12, %v3508_v12  ;;  %v3510_v7 = vsel %vm3446_vm4, %v3414_v49, %v3478_v46  ;;  %vm3447_vm7 = vcmp.ge.f32.partialorder %v3415_v60, 0.0  ;;  %v3479_v9 = vmul.f32 0.2, %v3415_v60  ;;  %v2816_v14 = vpop.f32.mrb[100].mxu0 }
 0x1b5   : > { %v3920_v19 = vpack.c.bf16 %v3510_v7, %v3510_v7  ;;  %v3509_v20 = vsel %vm3445_vm6, %v3413_v43, %v3477_v6  ;;  %v3377_v23 = vadd.f32 %v2816_v14, %v5625_v54  ;;  %v2857_v24 = vpop.f32.mrb[100].mxu1  ;;  %v4548_v26 = vpop.f32.mrb[101].mxu0 }
 0x1b6   : > { %3669 = vst.msk [vmem:[%s5725_s14] sm:$0xf] %vm3668_vm5, %v3918_v25  ;;  %v3919_v27 = vpack.c.bf16 %v3509_v20, %v3509_v20  ;;  %v3511_v35 = vsel %vm3447_vm7, %v3415_v60, %v3479_v9  ;;  %v3379_v36 = vadd.f32 %v2857_v24, %v5628_v8  ;;  %v4556_v40 = vpop.f32.mrb[101].mxu1  ;;  %v2819_v41 = vpop.f32.mrb[102].mxu0 }
 0x1b7   : > { %3671 = vst.msk [vmem:[%s5725_s14 + $0x8] sm:$0xf] %vm3668_vm5, %v3920_v19  ;;  %v3921_v42 = vpack.c.bf16 %v3511_v35, %v3511_v35  ;;  %v3416_v45 = vadd.f32 %v5711_v0, %v3377_v23  ;;  %v3378_v59 = vadd.f32 %v2819_v41, %v5631_v16  ;;  %v2860_v50 = vpop.f32.mrb[102].mxu1  ;;  %v4549_v54 = vpop.f32.mrb[103].mxu0 }
 0x1b8   : > { %3670 = vst.msk [vmem:[%s5725_s14 + $0x4] sm:$0xf] %vm3668_vm5, %v3919_v27  ;;  %v3418_v55 = vadd.f32 %v5711_v0, %v3379_v36  ;;  %v3380_v3 = vadd.f32 %v2860_v50, %v5634_v21  ;;  %v4557_v57 = vpop.f32.mrb[103].mxu1 }
 0x1b9   : > { %3672 = vst.msk [vmem:[%s5725_s14 + $0xc] sm:$0xf] %vm3668_vm5, %v3921_v42  ;;  %vm3448_vm8 = vcmp.ge.f32.partialorder %v3416_v45, 0.0  ;;  %v3480_v8 = vmul.f32 0.2, %v3416_v45  ;;  %v3417_v2 = vadd.f32 %v5711_v0, %v3378_v59 }
 0x1ba   : > { %vm3450_vm9 = vcmp.ge.f32.partialorder %v3418_v55, 0.0  ;;  %v3482_v58 = vmul.f32 0.2, %v3418_v55  ;;  %v3419_v16 = vadd.f32 %v5711_v0, %v3380_v3 }
 0x1bb   : > { %v3512_v5 = vsel %vm3448_vm8, %v3416_v45, %v3480_v8  ;;  %vm3449_vm10 = vcmp.ge.f32.partialorder %v3417_v2, 0.0  ;;  %v3481_v15 = vmul.f32 0.2, %v3417_v2 }
 0x1bc   : > { %v3922_v22 = vpack.c.bf16 %v3512_v5, %v3512_v5  ;;  %v3514_v49 = vsel %vm3450_vm9, %v3418_v55, %v3482_v58  ;;  %vm3451_vm11 = vcmp.ge.f32.partialorder %v3419_v16, 0.0  ;;  %v3483_v21 = vmul.f32 0.2, %v3419_v16  ;;  %v2898_v63 = vpop.f32.mrb[104].mxu0 }
 0x1bd   : > { %v3924_v33 = vpack.c.bf16 %v3514_v49, %v3514_v49  ;;  %v3513_v39 = vsel %vm3449_vm10, %v3417_v2, %v3481_v15  ;;  %v3381_v43 = vadd.f32 %v2898_v63, %v5637_v30  ;;  %v2939_v46 = vpop.f32.mrb[104].mxu1  ;;  %v4564_v60 = vpop.f32.mrb[105].mxu0 }
 0x1be   : > { %3673 = vst.msk [vmem:[%s5725_s14 + $0x10] sm:$0xf] %vm3668_vm5, %v3922_v22  ;;  %v3923_v12 = vpack.c.bf16 %v3513_v39, %v3513_v39  ;;  %v3515_v6 = vsel %vm3451_vm11, %v3419_v16, %v3483_v21  ;;  %v3383_v25 = vadd.f32 %v2939_v46, %v5640_v31  ;;  %v4572_v7 = vpop.f32.mrb[105].mxu1  ;;  %v2901_v9 = vpop.f32.mrb[106].mxu0 }
 0x1bf   : > { %3675 = vst.msk [vmem:[%s5725_s14 + $0x18] sm:$0xf] %vm3668_vm5, %v3924_v33  ;;  %v3925_v14 = vpack.c.bf16 %v3515_v6, %v3515_v6  ;;  %v3420_v19 = vadd.f32 %v5711_v0, %v3381_v43  ;;  %v3382_v20 = vadd.f32 %v2901_v9, %v5643_v47  ;;  %v2942_v23 = vpop.f32.mrb[106].mxu1  ;;  %v4565_v30 = vpop.f32.mrb[107].mxu0 }
 0x1c0   : > { %3674 = vst.msk [vmem:[%s5725_s14 + $0x14] sm:$0xf] %vm3668_vm5, %v3923_v12  ;;  %v3422_v24 = vadd.f32 %v5711_v0, %v3383_v25  ;;  %v3384_v26 = vadd.f32 %v2942_v23, %v5646_v48  ;;  %v4573_v27 = vpop.f32.mrb[107].mxu1 }
 0x1c1   : > { %3676 = vst.msk [vmem:[%s5725_s14 + $0x1c] sm:$0xf] %vm3668_vm5, %v3925_v14  ;;  %vm3452_vm12 = vcmp.ge.f32.partialorder %v3420_v19, 0.0  ;;  %v3484_v31 = vmul.f32 0.2, %v3420_v19  ;;  %v3421_v35 = vadd.f32 %v5711_v0, %v3382_v20 }
 0x1c2   : > { %vm3454_vm13 = vcmp.ge.f32.partialorder %v3422_v24, 0.0  ;;  %v3486_v36 = vmul.f32 0.2, %v3422_v24  ;;  %v3423_v47 = vadd.f32 %v5711_v0, %v3384_v26 }
 0x1c3   : > { %v3516_v40 = vsel %vm3452_vm12, %v3420_v19, %v3484_v31  ;;  %vm3453_vm14 = vcmp.ge.f32.partialorder %v3421_v35, 0.0  ;;  %v3485_v41 = vmul.f32 0.2, %v3421_v35 }
 0x1c4   : > { %v3926_v42 = vpack.c.bf16 %v3516_v40, %v3516_v40  ;;  %v3518_v45 = vsel %vm3454_vm13, %v3422_v24, %v3486_v36  ;;  %vm3455_vm15 = vcmp.ge.f32.partialorder %v3423_v47, 0.0  ;;  %v3487_v48 = vmul.f32 0.2, %v3423_v47  ;;  %v2980_v59 = vpop.f32.mrb[108].mxu0 }
 0x1c5   : > { %v3928_v50 = vpack.c.bf16 %v3518_v45, %v3518_v45  ;;  %v3517_v54 = vsel %vm3453_vm14, %v3421_v35, %v3485_v41  ;;  %v3385_v55 = vadd.f32 %v2980_v59, %v5649_v4  ;;  %v3021_v3 = vpop.f32.mrb[108].mxu1  ;;  %v4580_v57 = vpop.f32.mrb[109].mxu0 }
 0x1c6   : > { %3677 = vst.msk [vmem:[%s5725_s14 + $0x20] sm:$0xf] %vm3668_vm5, %v3926_v42  ;;  %v3927_v8 = vpack.c.bf16 %v3517_v54, %v3517_v54  ;;  %v3519_v2 = vsel %vm3455_vm15, %v3423_v47, %v3487_v48  ;;  %v3387_v58 = vadd.f32 %v3021_v3, %v5652_v10  ;;  %v4588_v16 = vpop.f32.mrb[109].mxu1  ;;  %v2983_v5 = vpop.f32.mrb[110].mxu0 }
 0x1c7   : > { %3679 = vst.msk [vmem:[%s5725_s14 + $0x28] sm:$0xf] %vm3668_vm5, %v3928_v50  ;;  %v3929_v15 = vpack.c.bf16 %v3519_v2, %v3519_v2  ;;  %v3424_v22 = vadd.f32 %v5711_v0, %v3385_v55  ;;  %v3386_v49 = vadd.f32 %v2983_v5, %v5655_v28  ;;  %v3024_v21 = vpop.f32.mrb[110].mxu1  ;;  %v4581_v4 = vpop.f32.mrb[111].mxu0 }
 0x1c8   : > { %3678 = vst.msk [vmem:[%s5725_s14 + $0x24] sm:$0xf] %vm3668_vm5, %v3927_v8  ;;  %v3426_v63 = vadd.f32 %v5711_v0, %v3387_v58  ;;  %v3388_v33 = vadd.f32 %v3024_v21, %v5658_v29  ;;  %v4589_v39 = vpop.f32.mrb[111].mxu1 }
 0x1c9   : > { %3680 = vst.msk [vmem:[%s5725_s14 + $0x2c] sm:$0xf] %vm3668_vm5, %v3929_v15  ;;  %vm3456_vm0 = vcmp.ge.f32.partialorder %v3424_v22, 0.0  ;;  %v3488_v10 = vmul.f32 0.2, %v3424_v22  ;;  %v3425_v43 = vadd.f32 %v5711_v0, %v3386_v49 }
 0x1ca   : > { %vm3458_vm1 = vcmp.ge.f32.partialorder %v3426_v63, 0.0  ;;  %v3490_v46 = vmul.f32 0.2, %v3426_v63  ;;  %v3427_v28 = vadd.f32 %v5711_v0, %v3388_v33 }
 0x1cb   : > { %v3520_v60 = vsel %vm3456_vm0, %v3424_v22, %v3488_v10  ;;  %vm3457_vm2 = vcmp.ge.f32.partialorder %v3425_v43, 0.0  ;;  %v3489_v12 = vmul.f32 0.2, %v3425_v43 }
 0x1cc   : > { %v3930_v6 = vpack.c.bf16 %v3520_v60, %v3520_v60  ;;  %v3522_v25 = vsel %vm3458_vm1, %v3426_v63, %v3490_v46  ;;  %vm3459_vm3 = vcmp.ge.f32.partialorder %v3427_v28, 0.0  ;;  %v3491_v29 = vmul.f32 0.2, %v3427_v28  ;;  %v3062_v7 = vpop.f32.mrb[112].mxu0 }
 0x1cd   : > { %v3932_v9 = vpack.c.bf16 %v3522_v25, %v3522_v25  ;;  %v3521_v14 = vsel %vm3457_vm2, %v3425_v43, %v3489_v12  ;;  %v3389_v19 = vadd.f32 %v3062_v7, %v5661_v53  ;;  %v3103_v20 = vpop.f32.mrb[112].mxu1  ;;  %v4596_v23 = vpop.f32.mrb[113].mxu0 }
 0x1ce   : > { %3681 = vst.msk [vmem:[%s5725_s14 + $0x30] sm:$0xf] %vm3668_vm5, %v3930_v6  ;;  %v3931_v30 = vpack.c.bf16 %v3521_v14, %v3521_v14  ;;  %v3523_v24 = vsel %vm3459_vm3, %v3427_v28, %v3491_v29  ;;  %v3391_v26 = vadd.f32 %v3103_v20, %v5664_v56  ;;  %v4604_v27 = vpop.f32.mrb[113].mxu1  ;;  %v3065_v31 = vpop.f32.mrb[114].mxu0 }
 0x1cf   : > { %3683 = vst.msk [vmem:[%s5725_s14 + $0x38] sm:$0xf] %vm3668_vm5, %v3932_v9  ;;  %v3933_v35 = vpack.c.bf16 %v3523_v24, %v3523_v24  ;;  %v3428_v36 = vadd.f32 %v5711_v0, %v3389_v19  ;;  %v3390_v47 = vadd.f32 %v3065_v31, %v5667_v61  ;;  %v3106_v40 = vpop.f32.mrb[114].mxu1  ;;  %v4597_v53 = vpop.f32.mrb[115].mxu0 }
 0x1d0   : > { %3682 = vst.msk [vmem:[%s5725_s14 + $0x34] sm:$0xf] %vm3668_vm5, %v3931_v30  ;;  %v3430_v41 = vadd.f32 %v5711_v0, %v3391_v26  ;;  %v3392_v42 = vadd.f32 %v3106_v40, %v5670_v62  ;;  %v4605_v45 = vpop.f32.mrb[115].mxu1 }
 0x1d1   : > { %3684 = vst.msk [vmem:[%s5725_s14 + $0x3c] sm:$0xf] %vm3668_vm5, %v3933_v35  ;;  %vm3460_vm4 = vcmp.ge.f32.partialorder %v3428_v36, 0.0  ;;  %v3492_v56 = vmul.f32 0.2, %v3428_v36  ;;  %v3429_v48 = vadd.f32 %v5711_v0, %v3390_v47 }
 0x1d2   : > { %vm3462_vm6 = vcmp.ge.f32.partialorder %v3430_v41, 0.0  ;;  %v3494_v59 = vmul.f32 0.2, %v3430_v41  ;;  %v3431_v61 = vadd.f32 %v5711_v0, %v3392_v42 }
 0x1d3   : > { %v3524_v50 = vsel %vm3460_vm4, %v3428_v36, %v3492_v56  ;;  %vm3461_vm7 = vcmp.ge.f32.partialorder %v3429_v48, 0.0  ;;  %v3493_v54 = vmul.f32 0.2, %v3429_v48 }
 0x1d4   : > { %v3934_v55 = vpack.c.bf16 %v3524_v50, %v3524_v50  ;;  %v3526_v3 = vsel %vm3462_vm6, %v3430_v41, %v3494_v59  ;;  %vm3463_vm8 = vcmp.ge.f32.partialorder %v3431_v61, 0.0  ;;  %v3495_v62 = vmul.f32 0.2, %v3431_v61  ;;  %v3144_v57 = vpop.f32.mrb[116].mxu0 }
 0x1d5   : > { %v3936_v8 = vpack.c.bf16 %v3526_v3, %v3526_v3  ;;  %v3525_v2 = vsel %vm3461_vm7, %v3429_v48, %v3493_v54  ;;  %v3393_v58 = vadd.f32 %v3144_v57, %v5673_v11  ;;  %v3185_v16 = vpop.f32.mrb[116].mxu1  ;;  %v4612_v5 = vpop.f32.mrb[117].mxu0 }
 0x1d6   : > { %3685 = vst.msk [vmem:[%s5725_s14 + $0x40] sm:$0xf] %vm3668_vm5, %v3934_v55  ;;  %v3935_v15 = vpack.c.bf16 %v3525_v2, %v3525_v2  ;;  %v3527_v22 = vsel %vm3463_vm8, %v3431_v61, %v3495_v62  ;;  %v3395_v49 = vadd.f32 %v3185_v16, %v5676_v13  ;;  %v4620_v21 = vpop.f32.mrb[117].mxu1  ;;  %v3147_v4 = vpop.f32.mrb[118].mxu0 }
 0x1d7   : > { %3687 = vst.msk [vmem:[%s5725_s14 + $0x48] sm:$0xf] %vm3668_vm5, %v3936_v8  ;;  %v3937_v63 = vpack.c.bf16 %v3527_v22, %v3527_v22  ;;  %v3432_v33 = vadd.f32 %v5711_v0, %v3393_v58  ;;  %v3394_v39 = vadd.f32 %v3147_v4, %v5679_v17  ;;  %v3188_v10 = vpop.f32.mrb[118].mxu1  ;;  %v4613_v11 = vpop.f32.mrb[119].mxu0 }
 0x1d8   : > { %3686 = vst.msk [vmem:[%s5725_s14 + $0x44] sm:$0xf] %vm3668_vm5, %v3935_v15  ;;  %v3434_v43 = vadd.f32 %v5711_v0, %v3395_v49  ;;  %v3396_v46 = vadd.f32 %v3188_v10, %v5682_v18  ;;  %v4621_v28 = vpop.f32.mrb[119].mxu1 }
 0x1d9   : > { %3688 = vst.msk [vmem:[%s5725_s14 + $0x4c] sm:$0xf] %vm3668_vm5, %v3937_v63  ;;  %vm3464_vm9 = vcmp.ge.f32.partialorder %v3432_v33, 0.0  ;;  %v3496_v13 = vmul.f32 0.2, %v3432_v33  ;;  %v3433_v60 = vadd.f32 %v5711_v0, %v3394_v39 }
 0x1da   : > { %vm3466_vm10 = vcmp.ge.f32.partialorder %v3434_v43, 0.0  ;;  %v3498_v12 = vmul.f32 0.2, %v3434_v43  ;;  %v3435_v17 = vadd.f32 %v5711_v0, %v3396_v46 }
 0x1db   : > { %v3528_v6 = vsel %vm3464_vm9, %v3432_v33, %v3496_v13  ;;  %vm3465_vm11 = vcmp.ge.f32.partialorder %v3433_v60, 0.0  ;;  %v3497_v25 = vmul.f32 0.2, %v3433_v60 }
 0x1dc   : > { %v3938_v29 = vpack.c.bf16 %v3528_v6, %v3528_v6  ;;  %v3530_v7 = vsel %vm3466_vm10, %v3434_v43, %v3498_v12  ;;  %vm3467_vm12 = vcmp.ge.f32.partialorder %v3435_v17, 0.0  ;;  %v3499_v18 = vmul.f32 0.2, %v3435_v17  ;;  %v3226_v9 = vpop.f32.mrb[120].mxu0 }
 0x1dd   : > { %v3940_v14 = vpack.c.bf16 %v3530_v7, %v3530_v7  ;;  %v3529_v19 = vsel %vm3465_vm11, %v3433_v60, %v3497_v25  ;;  %v3397_v20 = vadd.f32 %v3226_v9, %v5685_v32  ;;  %v3267_v23 = vpop.f32.mrb[120].mxu1  ;;  %v4628_v30 = vpop.f32.mrb[121].mxu0 }
 0x1de   : > { %3689 = vst.msk [vmem:[%s5725_s14 + $0x50] sm:$0xf] %vm3668_vm5, %v3938_v29  ;;  %v3939_v24 = vpack.c.bf16 %v3529_v19, %v3529_v19  ;;  %v3531_v26 = vsel %vm3467_vm12, %v3435_v17, %v3499_v18  ;;  %v3399_v27 = vadd.f32 %v3267_v23, %v5688_v34  ;;  %v4636_v31 = vpop.f32.mrb[121].mxu1  ;;  %v3229_v35 = vpop.f32.mrb[122].mxu0 }
 0x1df   : > { %3691 = vst.msk [vmem:[%s5725_s14 + $0x58] sm:$0xf] %vm3668_vm5, %v3940_v14  ;;  %v3941_v36 = vpack.c.bf16 %v3531_v26, %v3531_v26  ;;  %v3436_v47 = vadd.f32 %v5711_v0, %v3397_v20  ;;  %v3398_v40 = vadd.f32 %v3229_v35, %v5691_v37  ;;  %v3270_v53 = vpop.f32.mrb[122].mxu1  ;;  %v4629_v32 = vpop.f32.mrb[123].mxu0 }
 0x1e0   : > { %3690 = vst.msk [vmem:[%s5725_s14 + $0x54] sm:$0xf] %vm3668_vm5, %v3939_v24  ;;  %v3438_v41 = vadd.f32 %v5711_v0, %v3399_v27  ;;  %v3400_v42 = vadd.f32 %v3270_v53, %v5694_v38  ;;  %v4637_v45 = vpop.f32.mrb[123].mxu1 }
 0x1e1   : > { %3692 = vst.msk [vmem:[%s5725_s14 + $0x5c] sm:$0xf] %vm3668_vm5, %v3941_v36  ;;  %vm3468_vm13 = vcmp.ge.f32.partialorder %v3436_v47, 0.0  ;;  %v3500_v34 = vmul.f32 0.2, %v3436_v47  ;;  %v3437_v56 = vadd.f32 %v5711_v0, %v3398_v40 }
 0x1e2   : > { %vm3470_vm14 = vcmp.ge.f32.partialorder %v3438_v41, 0.0  ;;  %v3502_v48 = vmul.f32 0.2, %v3438_v41  ;;  %v3439_v37 = vadd.f32 %v5711_v0, %v3400_v42 }
 0x1e3   : > { %v3532_v59 = vsel %vm3468_vm13, %v3436_v47, %v3500_v34  ;;  %vm3469_vm15 = vcmp.ge.f32.partialorder %v3437_v56, 0.0  ;;  %v3501_v61 = vmul.f32 0.2, %v3437_v56 }
 0x1e4   : > { %v3942_v50 = vpack.c.bf16 %v3532_v59, %v3532_v59  ;;  %v3534_v54 = vsel %vm3470_vm14, %v3438_v41, %v3502_v48  ;;  %vm3471_vm0 = vcmp.ge.f32.partialorder %v3439_v37, 0.0  ;;  %v3503_v38 = vmul.f32 0.2, %v3439_v37  ;;  %v3308_v55 = vpop.f32.mrb[124].mxu0 }
 0x1e5   : > { %v3944_v3 = vpack.c.bf16 %v3534_v54, %v3534_v54  ;;  %v3533_v62 = vsel %vm3469_vm15, %v3437_v56, %v3501_v61  ;;  %v3401_v57 = vadd.f32 %v3308_v55, %v5697_v44  ;;  %v3366_v8 = vpop.f32.mrb[124].mxu1  ;;  %v4644_v2 = vpop.f32.mrb[125].mxu0 }
 0x1e6   : > { %3693 = vst.msk [vmem:[%s5725_s14 + $0x60] sm:$0xf] %vm3668_vm5, %v3942_v50  ;;  %v3943_v58 = vpack.c.bf16 %v3533_v62, %v3533_v62  ;;  %v3535_v16 = vsel %vm3471_vm0, %v3439_v37, %v3503_v38  ;;  %v3403_v5 = vadd.f32 %v3366_v8, %v5700_v1  ;;  %v4652_v15 = vpop.f32.mrb[125].mxu1  ;;  %v3311_v22 = vpop.f32.mrb[126].mxu0 }
 0x1e7   : > { %3695 = vst.msk [vmem:[%s5725_s14 + $0x68] sm:$0xf] %vm3668_vm5, %v3944_v3  ;;  %v3945_v49 = vpack.c.bf16 %v3535_v16, %v3535_v16  ;;  %v3440_v21 = vadd.f32 %v5711_v0, %v3401_v57  ;;  %v3402_v4 = vadd.f32 %v3311_v22, %v5703_v51  ;;  %v3369_v63 = vpop.f32.mrb[126].mxu1  ;;  %v4645_v44 = vpop.f32.mrb[127].mxu0 }
 0x1e8   : > { %3694 = vst.msk [vmem:[%s5725_s14 + $0x64] sm:$0xf] %vm3668_vm5, %v3943_v58  ;;  %v3442_v33 = vadd.f32 %v5711_v0, %v3403_v5  ;;  %v3404_v39 = vadd.f32 %v3369_v63, %v5706_v52  ;;  %v4653_v10 = vpop.f32.mrb[127].mxu1 }
 0x1e9   : > { %3696 = vst.msk [vmem:[%s5725_s14 + $0x6c] sm:$0xf] %vm3668_vm5, %v3945_v49  ;;  %vm3472_vm1 = vcmp.ge.f32.partialorder %v3440_v21, 0.0  ;;  %v3504_v1 = vmul.f32 0.2, %v3440_v21  ;;  %v3441_v11 = vadd.f32 %v5711_v0, %v3402_v4 }
 0x1ea   : > { %vm3474_vm2 = vcmp.ge.f32.partialorder %v3442_v33, 0.0  ;;  %v3506_v43 = vmul.f32 0.2, %v3442_v33  ;;  %v3443_v51 = vadd.f32 %v5711_v0, %v3404_v39 }
 0x1eb   : > { %v3536_v46 = vsel %vm3472_vm1, %v3440_v21, %v3504_v1  ;;  %vm3473_vm3 = vcmp.ge.f32.partialorder %v3441_v11, 0.0  ;;  %v3505_v28 = vmul.f32 0.2, %v3441_v11 }
 0x1ec   : > { %v3946_v13 = vpack.c.bf16 %v3536_v46, %v3536_v46  ;;  %v3538_v52 = vsel %vm3474_vm2, %v3442_v33, %v3506_v43  ;;  %vm3475_vm4 = vcmp.ge.f32.partialorder %v3443_v51, 0.0  ;;  %v3507_v60 = vmul.f32 0.2, %v3443_v51 }
 0x1ed   : > { %v3948_v12 = vpack.c.bf16 %v3538_v52, %v3538_v52  ;;  %v3537_v17 = vsel %vm3473_vm3, %v3441_v11, %v3505_v28 }
 0x1ee   : > { %3697 = vst.msk [vmem:[%s5725_s14 + $0x70] sm:$0xf] %vm3668_vm5, %v3946_v13  ;;  %v3947_v6 = vpack.c.bf16 %v3537_v17, %v3537_v17  ;;  %v3539_v25 = vsel %vm3475_vm4, %v3443_v51, %v3507_v60 }
 0x1ef   : > { %3699 = vst.msk [vmem:[%s5725_s14 + $0x78] sm:$0xf] %vm3668_vm5, %v3948_v12  ;;  %v3949_v29 = vpack.c.bf16 %v3539_v25, %v3539_v25 }
 0x1f0   : > { %3698 = vst.msk [vmem:[%s5725_s14 + $0x74] sm:$0xf] %vm3668_vm5, %v3947_v6 }
 0x1f1   : > { %3700 = vst.msk [vmem:[%s5725_s14 + $0x7c] sm:$0xf] %vm3668_vm5, %v3949_v29 }
 0x1f2 PF: > { %s13_s12 = sadd.s32 1, %s4713_s12  }
 0x1f3   : > { %p10_p4 = scmp.ge.s32.totalorder %s13_s12, 4  }
 0x1f5   :  { %12 = sbr.rel (!%p10_p4) target bundleno = 1 (0x1), region = 65 }

// kernel: _lambda_.6
= control target key start
LH: loop header
LB: loop body
LE: loop exit
PB: predicated region body
PF: predicated region fallthrough
CT: control target
= control target key end

     0   :  { %s2594_s12 = smov 0   ;;  %s3187_s0 = inlined_call_operand.vmem [shape: bf16[2,9,9,64], index: 0, kind: input, shape index: {}]   ;;  %s3188_s1 = inlined_call_operand.vmem [shape: bf16[4,64,32], index: 1, kind: input, shape index: {}]   ;;  %s3189_s2 = inlined_call_operand.vmem [shape: f32[1,1,32], index: 2, kind: input, shape index: {}]   ;;  %s3190_s3 = inlined_call_operand.vmem [shape: bf16[2,8,8,32], index: 3, kind: output, shape index: {}]  }
   0x1 LB: > { %s1891_s13 = sadd.s32 4294967295, %s2570_s12   ;;  %p1895_p0 = scmp.ge.s32.totalorder %s2570_s12, 1  ;;  %s2570_s12 = sphi %s2594_s12, %s13_s12  }
   0x2   : > { %p137_p1 = scmp.lt.s32.totalorder %s2570_s12, 3 }
   0x4   : > { %p138_p2 = pnand %p1895_p0, %p137_p1 }
   0x5   : > { %v2605_v0 = vld [vmem:[%s3188_s1 + $0x20] sm:$0xff] (!%p138_p2)   ;;  %v2572_v1 = vmov (!%p138_p2), 0.0   ;;  %v2614_v2 = vld [vmem:[%s3188_s1 + $0x28] sm:$0xff] (!%p138_p2)   ;;  %p161_p3 = scmp.lt.s32.totalorder (!%p138_p2), %s1891_s13, 1  ;;  %vm2573_vm0 = vmmov (!%p138_p2), 0   ;;  %v2629_v3 = vld [vmem:[%s3188_s1 + $0x30] sm:$0xff] (!%p138_p2)  }
   0x6   : > { %141 = sbr.rel (%p138_p2) target bundleno = 489 (0x1e9), region = 32  ;;  %2144 = vmatprep.subr.bf16.mxu0 (!%p138_p2), %v2572_v1  ;;  %2156 = vmatprep.subr.bf16.mxu1 (!%p138_p2), %v2572_v1  ;;  %v2651_v7 = vld [vmem:[%s3188_s1 + $0x38] sm:$0xff] (!%p138_p2)   ;;  %vm243_vm1 = vcmask (!%p138_p2), 523264   ;;  %v2777_v61 = vld [vmem:[%s3188_s1] sm:$0xff] (!%p138_p2)   ;;  %v2790_v62 = vld [vmem:[%s3188_s1 + $0x8] sm:$0xff] (!%p138_p2)   ;;  %vm1827_vm4 = vcmask (!%p138_p2), 257024  }
   0x7   : > { %2145 = vmatpush3.bf16.msra.mxu0 (!%p138_p2), %v2605_v0  ;;  %2157 = vmatpush3.bf16.msra.mxu1 (!%p138_p2), %v2605_v0  ;;  %v2803_v63 = vld [vmem:[%s3188_s1 + $0x10] sm:$0xff] (!%p138_p2)  }
   0x8   : > { %2146 = vmatprep.subr.bf16.mxu0 (!%p138_p2), %v2572_v1  ;;  %2158 = vmatprep.subr.bf16.mxu1 (!%p138_p2), %v2572_v1 }
   0x9   : > { %2152 = vmatprep.mubr.msk.bf16.mxu0 (!%p138_p2), %vm2573_vm0, %v2572_v1  ;;  %2164 = vmatprep.mubr.msk.bf16.mxu1 (!%p138_p2), %vm2573_vm0, %v2572_v1 }
   0xb   : > { %2147 = vmatpush3.bf16.msra.mxu0 (!%p138_p2), %v2614_v2  ;;  %2159 = vmatpush3.bf16.msra.mxu1 (!%p138_p2), %v2614_v2 }
   0xc   : > { %2148 = vmatprep.subr.bf16.mxu0 (!%p138_p2), %v2572_v1  ;;  %2160 = vmatprep.subr.bf16.mxu1 (!%p138_p2), %v2572_v1 }
   0xd   : > { %s3192_s13 = smov (!%p161_p3, %s1891_s13), 1 }
   0xe   : > { %s2528_s20 = smul.u32 72, %s3192_s13  ;;  %s1983_s27 = sshll.u32 %s3192_s13, 5 }
   0xf   : > { %2149 = vmatpush3.bf16.msra.mxu0 %v2629_v3  ;;  %2161 = vmatpush3.bf16.msra.mxu1 %v2629_v3  ;;  %s3156_s30 = scalar_lea.vmem %s3190_s3, %s1983_s27 }
  0x10   : > { %s2637_s23 = scalar_lea.vmem %s3187_s0, %s2528_s20  ;;  %2150 = vmatprep.subr.bf16.mxu0 %v2572_v1  ;;  %2162 = vmatprep.subr.bf16.mxu1 %v2572_v1 }
  0x11   : > { %v2640_v4 = vld [vmem:[%s2637_s23] sm:$0xf]  ;;  %v173_v5 = vld [vmem:[%s2637_s23 + $0x4] sm:$0x1]  ;;  %v2644_v6 = vld [vmem:[%s2637_s23 + $0x8] sm:$0xf] }
  0x12   : > { %v1907_v8 = vcombine.low %v2640_v4, %v173_v5  ;;  %v175_v9 = vld [vmem:[%s2637_s23 + $0xc] sm:$0x1]  ;;  %v2663_v17 = vld [vmem:[%s2637_s23 + $0x10] sm:$0xf]  ;;  %v177_v18 = vld [vmem:[%s2637_s23 + $0x14] sm:$0x1] }
  0x13   : > { %v1913_v10 = vcombine.low %v2644_v6, %v175_v9  ;;  %2151 = vmatpush3.bf16.msra.mxu0 %v2651_v7  ;;  %2163 = vmatpush3.bf16.msra.mxu1 %v2651_v7  ;;  %v2667_v20 = vld [vmem:[%s2637_s23 + $0x18] sm:$0xf]  ;;  %v179_v21 = vld [vmem:[%s2637_s23 + $0x1c] sm:$0x1]  ;;  %v1915_v23 = vcombine.low %v2663_v17, %v177_v18  ;;  %v2699_v33 = vld [vmem:[%s2637_s23 + $0x20] sm:$0xf] }
  0x14   : > { %v213_v11 = vshrl.u32 %v1907_v8, 16  ;;  %v215_v12 = vshll.u32 %v1907_v8, 16  ;;  %2168 = vmatprep.subr.bf16.mxu0 %v2572_v1  ;;  %2180 = vmatprep.subr.bf16.mxu1 %v2572_v1  ;;  %v1917_v24 = vcombine.low %v2667_v20, %v179_v21  ;;  %v181_v34 = vld [vmem:[%s2637_s23 + $0x24] sm:$0x1]  ;;  %v2705_v35 = vld [vmem:[%s2637_s23 + $0x28] sm:$0xf] }
  0x15   : > { %v293_v13 = vshrl.u32 %v1913_v10, 16  ;;  %v295_v14 = vshll.u32 %v1913_v10, 16  ;;  %v350_v25 = vshll.u32 %v1915_v23, 16  ;;  %v348_v27 = vshrl.u32 %v1915_v23, 16  ;;  %v183_v36 = vld [vmem:[%s2637_s23 + $0x2c] sm:$0x1] }
  0x16   : > { %v217_v15 = vrot.slane %v215_v12, 1  ;;  %v405_v26 = vshll.u32 %v1917_v24, 16  ;;  %v403_v29 = vshrl.u32 %v1917_v24, 16  ;;  %v1919_v37 = vcombine.low %v2699_v33, %v181_v34  ;;  %v2737_v47 = vld [vmem:[%s2637_s23 + $0x30] sm:$0xf]  ;;  %v2928_v5 = vld [vmem:[%s3188_s1 + $0x58] sm:$0xff]  }
  0x17   : > { %v297_v16 = vrot.slane %v295_v14, 1  ;;  %v352_v28 = vrot.slane %v350_v25, 1  ;;  %v1921_v38 = vcombine.low %v2705_v35, %v183_v36  ;;  %v185_v48 = vld [vmem:[%s2637_s23 + $0x34] sm:$0x1]  ;;  %v2743_v49 = vld [vmem:[%s2637_s23 + $0x38] sm:$0xf] }
  0x18   : > { %v218_v19 = vor.u32 %v217_v15, %v213_v11  ;;  %v407_v30 = vrot.slane %v405_v26, 1  ;;  %v460_v39 = vshll.u32 %v1919_v37, 16  ;;  %v458_v41 = vshrl.u32 %v1919_v37, 16  ;;  %v187_v50 = vld [vmem:[%s2637_s23 + $0x3c] sm:$0x1]  ;;  %v3025_v8 = vld [vmem:[%s3188_s1 + $0x68] sm:$0xff]  }
  0x19   : > { %v2670_v22 = vor.u32 %v297_v16, %v293_v13  ;;  %v2693_v31 = vor.u32 %v352_v28, %v348_v27  ;;  %v515_v40 = vshll.u32 %v1921_v38, 16  ;;  %v513_v43 = vshrl.u32 %v1921_v38, 16  ;;  %v3038_v9 = vld [vmem:[%s3188_s1 + $0x70] sm:$0xff]   ;;  %v3047_v10 = vld [vmem:[%s3188_s1 + $0x78] sm:$0xff]  }
  0x1a   : > { %2153 = vmatmul.mubr.msk.bf16.vlgmr.msra.gmra.mrb[0].mxu0 %vm243_vm1, %v218_v19  ;;  %v2696_v32 = vor.u32 %v407_v30, %v403_v29  ;;  %v462_v42 = vrot.slane %v460_v39, 1  ;;  %v1923_v51 = vcombine.low %v2737_v47, %v185_v48  ;;  %v1925_v52 = vcombine.low %v2743_v49, %v187_v50  ;;  %v189_v19 = vld [vmem:[%s2637_s23 + $0x44] sm:$0x1] }
  0x1b   : > { %2165 = vmatmul.mubr.msk.bf16.vlgmr.msra.gmra.mrb[0].mxu1 %vm243_vm1, %v2670_v22  ;;  %2169 = vmatpush3.bf16.msra.mxu0 %v2605_v0  ;;  %v517_v44 = vrot.slane %v515_v40, 1 }
  0x1c   : > { %2181 = vmatpush3.bf16.msra.mxu1 %v2605_v0  ;;  %2170 = vmatprep.subr.bf16.mxu0 %v2572_v1  ;;  %v2731_v45 = vor.u32 %v462_v42, %v458_v41  ;;  %v570_v53 = vshll.u32 %v1923_v51, 16  ;;  %v625_v54 = vshll.u32 %v1925_v52, 16  ;;  %v568_v55 = vshrl.u32 %v1923_v51, 16 }
  0x1d   : > { %2182 = vmatprep.subr.bf16.mxu1 %v2572_v1  ;;  %2176 = vmatprep.mubr.msk.bf16.mxu0 %vm2573_vm0, %v2572_v1  ;;  %v2734_v46 = vor.u32 %v517_v44, %v513_v43  ;;  %v623_v57 = vshrl.u32 %v1925_v52, 16 }
  0x1e   : > { %2188 = vmatprep.mubr.msk.bf16.mxu1 %vm2573_vm0, %v2572_v1  ;;  %v572_v56 = vrot.slane %v570_v53, 1  ;;  %v627_v58 = vrot.slane %v625_v54, 1 }
  0x1f   : > { %2171 = vmatpush3.bf16.msra.mxu0 %v2614_v2 }
  0x20   : > { %2183 = vmatpush3.bf16.msra.mxu1 %v2614_v2  ;;  %2172 = vmatprep.subr.bf16.mxu0 %v2572_v1  ;;  %v2769_v59 = vor.u32 %v572_v56, %v568_v55  ;;  %v2772_v60 = vor.u32 %v627_v58, %v623_v57 }
  0x21   : > { %2184 = vmatprep.subr.bf16.mxu1 %v2572_v1 }
  0x23   : > { %2173 = vmatpush3.bf16.msra.mxu0 %v2629_v3 }
  0x24   : > { %2185 = vmatpush3.bf16.msra.mxu1 %v2629_v3  ;;  %2174 = vmatprep.subr.bf16.mxu0 %v2572_v1 }
  0x25   : > { %2186 = vmatprep.subr.bf16.mxu1 %v2572_v1 }
  0x27   : > { %2175 = vmatpush3.bf16.msra.mxu0 %v2651_v7 }
  0x28   : > { %2187 = vmatpush3.bf16.msra.mxu1 %v2651_v7  ;;  %2192 = vmatprep.subr.bf16.mxu0 %v2572_v1 }
  0x29   : > { %2204 = vmatprep.subr.bf16.mxu1 %v2572_v1 }
  0x2a   : > { %2177 = vmatmul.mubr.msk.bf16.vlgmr.msra.gmra.mrb[4].mxu0 %vm243_vm1, %v2693_v31 }
  0x2b   : > { %2189 = vmatmul.mubr.msk.bf16.vlgmr.msra.gmra.mrb[4].mxu1 %vm243_vm1, %v2696_v32  ;;  %2193 = vmatpush3.bf16.msra.mxu0 %v2605_v0 }
  0x2c   : > { %2205 = vmatpush3.bf16.msra.mxu1 %v2605_v0  ;;  %2194 = vmatprep.subr.bf16.mxu0 %v2572_v1 }
  0x2d   : > { %2206 = vmatprep.subr.bf16.mxu1 %v2572_v1  ;;  %2200 = vmatprep.mubr.msk.bf16.mxu0 %vm2573_vm0, %v2572_v1 }
  0x2e   : > { %2212 = vmatprep.mubr.msk.bf16.mxu1 %vm2573_vm0, %v2572_v1 }
  0x2f   : > { %2195 = vmatpush3.bf16.msra.mxu0 %v2614_v2 }
  0x30   : > { %2207 = vmatpush3.bf16.msra.mxu1 %v2614_v2  ;;  %2196 = vmatprep.subr.bf16.mxu0 %v2572_v1 }
  0x31   : > { %2208 = vmatprep.subr.bf16.mxu1 %v2572_v1 }
  0x33   : > { %2197 = vmatpush3.bf16.msra.mxu0 %v2629_v3 }
  0x34   : > { %2209 = vmatpush3.bf16.msra.mxu1 %v2629_v3  ;;  %2198 = vmatprep.subr.bf16.mxu0 %v2572_v1 }
  0x35   : > { %2210 = vmatprep.subr.bf16.mxu1 %v2572_v1 }
  0x37   : > { %2199 = vmatpush3.bf16.msra.mxu0 %v2651_v7 }
  0x38   : > { %2211 = vmatpush3.bf16.msra.mxu1 %v2651_v7  ;;  %2216 = vmatprep.subr.bf16.mxu0 %v2572_v1 }
  0x39   : > { %2228 = vmatprep.subr.bf16.mxu1 %v2572_v1 }
  0x3a   : > { %2201 = vmatmul.mubr.msk.bf16.vlgmr.msra.gmra.mrb[8].mxu0 %vm243_vm1, %v2731_v45 }
  0x3b   : > { %2213 = vmatmul.mubr.msk.bf16.vlgmr.msra.gmra.mrb[8].mxu1 %vm243_vm1, %v2734_v46  ;;  %2217 = vmatpush3.bf16.msra.mxu0 %v2605_v0 }
  0x3c   : > { %2229 = vmatpush3.bf16.msra.mxu1 %v2605_v0  ;;  %2218 = vmatprep.subr.bf16.mxu0 %v2572_v1  ;;  %v2812_v0 = vld [vmem:[%s3188_s1 + $0x18] sm:$0xff]  }
  0x3d   : > { %2230 = vmatprep.subr.bf16.mxu1 %v2572_v1  ;;  %2224 = vmatprep.mubr.msk.bf16.mxu0 %vm2573_vm0, %v2572_v1 }
  0x3e   : > { %2236 = vmatprep.mubr.msk.bf16.mxu1 %vm2573_vm0, %v2572_v1 }
  0x3f   : > { %2219 = vmatpush3.bf16.msra.mxu0 %v2614_v2 }
  0x40   : > { %2231 = vmatpush3.bf16.msra.mxu1 %v2614_v2  ;;  %2220 = vmatprep.subr.bf16.mxu0 %v2572_v1  ;;  %v2893_v2 = vld [vmem:[%s3188_s1 + $0x40] sm:$0xff]  }
  0x41   : > { %2232 = vmatprep.subr.bf16.mxu1 %v2572_v1 }
  0x43   : > { %2221 = vmatpush3.bf16.msra.mxu0 %v2629_v3 }
  0x44   : > { %2233 = vmatpush3.bf16.msra.mxu1 %v2629_v3  ;;  %2222 = vmatprep.subr.bf16.mxu0 %v2572_v1  ;;  %v2906_v3 = vld [vmem:[%s3188_s1 + $0x48] sm:$0xff]  }
  0x45   : > { %2234 = vmatprep.subr.bf16.mxu1 %v2572_v1 }
  0x47   : > { %2223 = vmatpush3.bf16.msra.mxu0 %v2651_v7 }
  0x48   : > { %2235 = vmatpush3.bf16.msra.mxu1 %v2651_v7  ;;  %2240 = vmatprep.subr.bf16.mxu0 %v2572_v1  ;;  %v3013_v7 = vld [vmem:[%s2637_s23 + $0x40] sm:$0xf] }
  0x49   : > { %2252 = vmatprep.subr.bf16.mxu1 %v2572_v1 }
  0x4a   : > { %2225 = vmatmul.mubr.msk.bf16.vlgmr.msra.gmra.mrb[12].mxu0 %vm243_vm1, %v2769_v59 }
  0x4b   : > { %2237 = vmatmul.mubr.msk.bf16.vlgmr.msra.gmra.mrb[12].mxu1 %vm243_vm1, %v2772_v60  ;;  %2241 = vmatpush3.bf16.msra.mxu0 %v2777_v61 }
  0x4c   : > { %2253 = vmatpush3.bf16.msra.mxu1 %v2777_v61  ;;  %2242 = vmatprep.subr.bf16.mxu0 %v2572_v1 }
  0x4d   : > { %2254 = vmatprep.subr.bf16.mxu1 %v2572_v1  ;;  %2248 = vmatprep.mubr.msk.bf16.mxu0 %vm2573_vm0, %v2572_v1 }
  0x4e   : > { %2260 = vmatprep.mubr.msk.bf16.mxu1 %vm2573_vm0, %v2572_v1 }
  0x4f   : > { %2243 = vmatpush3.bf16.msra.mxu0 %v2790_v62 }
  0x50   : > { %2255 = vmatpush3.bf16.msra.mxu1 %v2790_v62  ;;  %2244 = vmatprep.subr.bf16.mxu0 %v2572_v1 }
  0x51   : > { %2256 = vmatprep.subr.bf16.mxu1 %v2572_v1 }
  0x53   : > { %2245 = vmatpush3.bf16.msra.mxu0 %v2803_v63 }
  0x54   : > { %2257 = vmatpush3.bf16.msra.mxu1 %v2803_v63  ;;  %2246 = vmatprep.subr.bf16.mxu0 %v2572_v1 }
  0x55   : > { %2258 = vmatprep.subr.bf16.mxu1 %v2572_v1 }
  0x57   : > { %2247 = vmatpush3.bf16.msra.mxu0 %v2812_v0 }
  0x58   : > { %2259 = vmatpush3.bf16.msra.mxu1 %v2812_v0  ;;  %2264 = vmatprep.subr.bf16.mxu0 %v2572_v1 }
  0x59   : > { %2276 = vmatprep.subr.bf16.mxu1 %v2572_v1 }
  0x5a   : > { %2249 = vmatmul.mubr.msk.bf16.vlgmr.msra.gmra.mrb[16].mxu0 %vm243_vm1, %v2640_v4  ;;  %v2919_v4 = vld [vmem:[%s3188_s1 + $0x50] sm:$0xff]  }
  0x5b   : > { %2261 = vmatmul.mubr.msk.bf16.vlgmr.msra.gmra.mrb[16].mxu1 %vm243_vm1, %v2644_v6  ;;  %2265 = vmatpush3.bf16.msra.mxu0 %v2777_v61 }
  0x5c   : > { %2277 = vmatpush3.bf16.msra.mxu1 %v2777_v61  ;;  %2266 = vmatprep.subr.bf16.mxu0 %v2572_v1 }
  0x5d   : > { %2278 = vmatprep.subr.bf16.mxu1 %v2572_v1  ;;  %2272 = vmatprep.mubr.msk.bf16.mxu0 %vm2573_vm0, %v2572_v1 }
  0x5e   : > { %2284 = vmatprep.mubr.msk.bf16.mxu1 %vm2573_vm0, %v2572_v1 }
  0x5f   : > { %2267 = vmatpush3.bf16.msra.mxu0 %v2790_v62 }
  0x60   : > { %2279 = vmatpush3.bf16.msra.mxu1 %v2790_v62  ;;  %2268 = vmatprep.subr.bf16.mxu0 %v2572_v1 }
  0x61   : > { %2280 = vmatprep.subr.bf16.mxu1 %v2572_v1 }
  0x63   : > { %2269 = vmatpush3.bf16.msra.mxu0 %v2803_v63 }
  0x64   : > { %2281 = vmatpush3.bf16.msra.mxu1 %v2803_v63  ;;  %2270 = vmatprep.subr.bf16.mxu0 %v2572_v1 }
  0x65   : > { %2282 = vmatprep.subr.bf16.mxu1 %v2572_v1 }
  0x67   : > { %2271 = vmatpush3.bf16.msra.mxu0 %v2812_v0 }
  0x68   : > { %2283 = vmatpush3.bf16.msra.mxu1 %v2812_v0  ;;  %2288 = vmatprep.subr.bf16.mxu0 %v2572_v1 }
  0x69   : > { %2300 = vmatprep.subr.bf16.mxu1 %v2572_v1 }
  0x6a   : > { %2273 = vmatmul.mubr.msk.bf16.vlgmr.msra.gmra.mrb[20].mxu0 %vm243_vm1, %v2663_v17 }
  0x6b   : > { %2285 = vmatmul.mubr.msk.bf16.vlgmr.msra.gmra.mrb[20].mxu1 %vm243_vm1, %v2667_v20  ;;  %2289 = vmatpush3.bf16.msra.mxu0 %v2777_v61 }
  0x6c   : > { %2301 = vmatpush3.bf16.msra.mxu1 %v2777_v61  ;;  %2290 = vmatprep.subr.bf16.mxu0 %v2572_v1 }
  0x6d   : > { %2302 = vmatprep.subr.bf16.mxu1 %v2572_v1  ;;  %2296 = vmatprep.mubr.msk.bf16.mxu0 %vm2573_vm0, %v2572_v1 }
  0x6e   : > { %2308 = vmatprep.mubr.msk.bf16.mxu1 %vm2573_vm0, %v2572_v1 }
  0x6f   : > { %2291 = vmatpush3.bf16.msra.mxu0 %v2790_v62 }
  0x70   : > { %2303 = vmatpush3.bf16.msra.mxu1 %v2790_v62  ;;  %2292 = vmatprep.subr.bf16.mxu0 %v2572_v1 }
  0x71   : > { %2304 = vmatprep.subr.bf16.mxu1 %v2572_v1 }
  0x73   : > { %2293 = vmatpush3.bf16.msra.mxu0 %v2803_v63 }
  0x74   : > { %2305 = vmatpush3.bf16.msra.mxu1 %v2803_v63  ;;  %2294 = vmatprep.subr.bf16.mxu0 %v2572_v1 }
  0x75   : > { %2306 = vmatprep.subr.bf16.mxu1 %v2572_v1 }
  0x77   : > { %2295 = vmatpush3.bf16.msra.mxu0 %v2812_v0 }
  0x78   : > { %2307 = vmatpush3.bf16.msra.mxu1 %v2812_v0  ;;  %2312 = vmatprep.subr.bf16.mxu0 %v2572_v1 }
  0x79   : > { %2324 = vmatprep.subr.bf16.mxu1 %v2572_v1 }
  0x7a   : > { %2297 = vmatmul.mubr.msk.bf16.vlgmr.msra.gmra.mrb[24].mxu0 %vm243_vm1, %v2699_v33 }
  0x7b   : > { %2309 = vmatmul.mubr.msk.bf16.vlgmr.msra.gmra.mrb[24].mxu1 %vm243_vm1, %v2705_v35  ;;  %2313 = vmatpush3.bf16.msra.mxu0 %v2777_v61 }
  0x7c   : > { %2325 = vmatpush3.bf16.msra.mxu1 %v2777_v61  ;;  %2314 = vmatprep.subr.bf16.mxu0 %v2572_v1 }
  0x7d   : > { %2326 = vmatprep.subr.bf16.mxu1 %v2572_v1  ;;  %2320 = vmatprep.mubr.msk.bf16.mxu0 %vm2573_vm0, %v2572_v1 }
  0x7e   : > { %2332 = vmatprep.mubr.msk.bf16.mxu1 %vm2573_vm0, %v2572_v1 }
  0x7f   : > { %2315 = vmatpush3.bf16.msra.mxu0 %v2790_v62 }
  0x80   : > { %2327 = vmatpush3.bf16.msra.mxu1 %v2790_v62  ;;  %2316 = vmatprep.subr.bf16.mxu0 %v2572_v1 }
  0x81   : > { %2328 = vmatprep.subr.bf16.mxu1 %v2572_v1 }
  0x83   : > { %2317 = vmatpush3.bf16.msra.mxu0 %v2803_v63 }
  0x84   : > { %2329 = vmatpush3.bf16.msra.mxu1 %v2803_v63  ;;  %2318 = vmatprep.subr.bf16.mxu0 %v2572_v1 }
  0x85   : > { %2330 = vmatprep.subr.bf16.mxu1 %v2572_v1 }
  0x87   : > { %2319 = vmatpush3.bf16.msra.mxu0 %v2812_v0 }
  0x88   : > { %2331 = vmatpush3.bf16.msra.mxu1 %v2812_v0  ;;  %2336 = vmatprep.subr.bf16.mxu0 %v2572_v1 }
  0x89   : > { %2348 = vmatprep.subr.bf16.mxu1 %v2572_v1 }
  0x8a   : > { %2321 = vmatmul.mubr.msk.bf16.vlgmr.msra.gmra.mrb[28].mxu0 %vm243_vm1, %v2737_v47 }
  0x8b   : > { %2333 = vmatmul.mubr.msk.bf16.vlgmr.msra.gmra.mrb[28].mxu1 %vm243_vm1, %v2743_v49  ;;  %2337 = vmatpush3.bf16.msra.mxu0 %v2893_v2 }
  0x8c   : > { %2349 = vmatpush3.bf16.msra.mxu1 %v2893_v2  ;;  %2338 = vmatprep.subr.bf16.mxu0 %v2572_v1 }
  0x8d   : > { %2350 = vmatprep.subr.bf16.mxu1 %v2572_v1  ;;  %2344 = vmatprep.mubr.msk.bf16.mxu0 %vm2573_vm0, %v2572_v1 }
  0x8e   : > { %2356 = vmatprep.mubr.msk.bf16.mxu1 %vm2573_vm0, %v2572_v1 }
  0x8f   : > { %2339 = vmatpush3.bf16.msra.mxu0 %v2906_v3 }
  0x90   : > { %2351 = vmatpush3.bf16.msra.mxu1 %v2906_v3  ;;  %2340 = vmatprep.subr.bf16.mxu0 %v2572_v1 }
  0x91   : > { %2352 = vmatprep.subr.bf16.mxu1 %v2572_v1 }
  0x93   : > { %2341 = vmatpush3.bf16.msra.mxu0 %v2919_v4 }
  0x94   : > { %2353 = vmatpush3.bf16.msra.mxu1 %v2919_v4  ;;  %2342 = vmatprep.subr.bf16.mxu0 %v2572_v1 }
  0x95   : > { %2354 = vmatprep.subr.bf16.mxu1 %v2572_v1 }
  0x97   : > { %2343 = vmatpush3.bf16.msra.mxu0 %v2928_v5 }
  0x98   : > { %2355 = vmatpush3.bf16.msra.mxu1 %v2928_v5  ;;  %2360 = vmatprep.subr.bf16.mxu0 %v2572_v1 }
  0x99   : > { %2372 = vmatprep.subr.bf16.mxu1 %v2572_v1 }
  0x9a   : > { %2345 = vmatmul.mubr.msk.bf16.vlgmr.msra.gmra.mrb[32].mxu0 %vm243_vm1, %v2644_v6  ;;  %v3009_v6 = vld [vmem:[%s3188_s1 + $0x60] sm:$0xff]  }
  0x9b   : > { %2357 = vmatmul.mubr.msk.bf16.vlgmr.msra.gmra.mrb[32].mxu1 %vm243_vm1, %v2663_v17  ;;  %2361 = vmatpush3.bf16.msra.mxu0 %v2893_v2 }
  0x9c   : > { %2373 = vmatpush3.bf16.msra.mxu1 %v2893_v2  ;;  %2362 = vmatprep.subr.bf16.mxu0 %v2572_v1 }
  0x9d   : > { %2374 = vmatprep.subr.bf16.mxu1 %v2572_v1  ;;  %2368 = vmatprep.mubr.msk.bf16.mxu0 %vm2573_vm0, %v2572_v1 }
  0x9e   : > { %2380 = vmatprep.mubr.msk.bf16.mxu1 %vm2573_vm0, %v2572_v1 }
  0x9f   : > { %2363 = vmatpush3.bf16.msra.mxu0 %v2906_v3 }
  0xa0   : > { %2375 = vmatpush3.bf16.msra.mxu1 %v2906_v3  ;;  %2364 = vmatprep.subr.bf16.mxu0 %v2572_v1 }
  0xa1   : > { %2376 = vmatprep.subr.bf16.mxu1 %v2572_v1 }
  0xa3   : > { %2365 = vmatpush3.bf16.msra.mxu0 %v2919_v4 }
  0xa4   : > { %2377 = vmatpush3.bf16.msra.mxu1 %v2919_v4  ;;  %2366 = vmatprep.subr.bf16.mxu0 %v2572_v1 }
  0xa5   : > { %2378 = vmatprep.subr.bf16.mxu1 %v2572_v1 }
  0xa7   : > { %2367 = vmatpush3.bf16.msra.mxu0 %v2928_v5 }
  0xa8   : > { %2379 = vmatpush3.bf16.msra.mxu1 %v2928_v5  ;;  %2384 = vmatprep.subr.bf16.mxu0 %v2572_v1 }
  0xa9   : > { %2396 = vmatprep.subr.bf16.mxu1 %v2572_v1 }
  0xaa   : > { %2369 = vmatmul.mubr.msk.bf16.vlgmr.msra.gmra.mrb[36].mxu0 %vm243_vm1, %v2667_v20  ;;  %v1978_v20 = vcombine.low %v3013_v7, %v189_v19 }
  0xab   : > { %2381 = vmatmul.mubr.msk.bf16.vlgmr.msra.gmra.mrb[36].mxu1 %vm243_vm1, %v2699_v33  ;;  %2385 = vmatpush3.bf16.msra.mxu0 %v2893_v2 }
  0xac   : > { %2397 = vmatpush3.bf16.msra.mxu1 %v2893_v2  ;;  %2386 = vmatprep.subr.bf16.mxu0 %v2572_v1  ;;  %v1725_v24 = vshll.u32 %v1978_v20, 16  ;;  %v1723_v30 = vshrl.u32 %v1978_v20, 16 }
  0xad   : > { %2398 = vmatprep.subr.bf16.mxu1 %v2572_v1  ;;  %2392 = vmatprep.mubr.msk.bf16.mxu0 %vm2573_vm0, %v2572_v1 }
  0xae   : > { %2404 = vmatprep.mubr.msk.bf16.mxu1 %vm2573_vm0, %v2572_v1 }
  0xaf   : > { %2387 = vmatpush3.bf16.msra.mxu0 %v2906_v3 }
  0xb0   : > { %2399 = vmatpush3.bf16.msra.mxu1 %v2906_v3  ;;  %2388 = vmatprep.subr.bf16.mxu0 %v2572_v1 }
  0xb1   : > { %2400 = vmatprep.subr.bf16.mxu1 %v2572_v1 }
  0xb3   : > { %2389 = vmatpush3.bf16.msra.mxu0 %v2919_v4 }
  0xb4   : > { %2401 = vmatpush3.bf16.msra.mxu1 %v2919_v4  ;;  %2390 = vmatprep.subr.bf16.mxu0 %v2572_v1 }
  0xb5   : > { %2402 = vmatprep.subr.bf16.mxu1 %v2572_v1 }
  0xb7   : > { %2391 = vmatpush3.bf16.msra.mxu0 %v2928_v5 }
  0xb8   : > { %2403 = vmatpush3.bf16.msra.mxu1 %v2928_v5  ;;  %2408 = vmatprep.subr.bf16.mxu0 %v2572_v1 }
  0xb9   : > { %2420 = vmatprep.subr.bf16.mxu1 %v2572_v1 }
  0xba   : > { %2393 = vmatmul.mubr.msk.bf16.vlgmr.msra.gmra.mrb[40].mxu0 %vm243_vm1, %v2705_v35 }
  0xbb   : > { %2405 = vmatmul.mubr.msk.bf16.vlgmr.msra.gmra.mrb[40].mxu1 %vm243_vm1, %v2737_v47  ;;  %2409 = vmatpush3.bf16.msra.mxu0 %v2893_v2 }
  0xbc   : > { %2421 = vmatpush3.bf16.msra.mxu1 %v2893_v2  ;;  %2410 = vmatprep.subr.bf16.mxu0 %v2572_v1 }
  0xbd   : > { %2422 = vmatprep.subr.bf16.mxu1 %v2572_v1  ;;  %2416 = vmatprep.mubr.msk.bf16.mxu0 %vm2573_vm0, %v2572_v1 }
  0xbe   : > { %2428 = vmatprep.mubr.msk.bf16.mxu1 %vm2573_vm0, %v2572_v1 }
  0xbf   : > { %2411 = vmatpush3.bf16.msra.mxu0 %v2906_v3 }
  0xc0   : > { %2423 = vmatpush3.bf16.msra.mxu1 %v2906_v3  ;;  %2412 = vmatprep.subr.bf16.mxu0 %v2572_v1 }
  0xc1   : > { %2424 = vmatprep.subr.bf16.mxu1 %v2572_v1 }
  0xc3   : > { %2413 = vmatpush3.bf16.msra.mxu0 %v2919_v4 }
  0xc4   : > { %2425 = vmatpush3.bf16.msra.mxu1 %v2919_v4  ;;  %2414 = vmatprep.subr.bf16.mxu0 %v2572_v1 }
  0xc5   : > { %2426 = vmatprep.subr.bf16.mxu1 %v2572_v1 }
  0xc7   : > { %2415 = vmatpush3.bf16.msra.mxu0 %v2928_v5 }
  0xc8   : > { %2427 = vmatpush3.bf16.msra.mxu1 %v2928_v5  ;;  %2432 = vmatprep.subr.bf16.mxu0 %v2572_v1 }
  0xc9   : > { %2444 = vmatprep.subr.bf16.mxu1 %v2572_v1 }
  0xca   : > { %2417 = vmatmul.mubr.msk.bf16.vlgmr.msra.gmra.mrb[44].mxu0 %vm243_vm1, %v2743_v49 }
  0xcb   : > { %2429 = vmatmul.mubr.msk.bf16.vlgmr.msra.gmra.mrb[44].mxu1 %vm243_vm1, %v3013_v7  ;;  %2433 = vmatpush3.bf16.msra.mxu0 %v3009_v6 }
  0xcc   : > { %2445 = vmatpush3.bf16.msra.mxu1 %v3009_v6  ;;  %2434 = vmatprep.subr.bf16.mxu0 %v2572_v1 }
  0xcd   : > { %2446 = vmatprep.subr.bf16.mxu1 %v2572_v1  ;;  %2440 = vmatprep.mubr.msk.bf16.mxu0 %vm2573_vm0, %v2572_v1 }
  0xce   : > { %2452 = vmatprep.mubr.msk.bf16.mxu1 %vm2573_vm0, %v2572_v1 }
  0xcf   : > { %2435 = vmatpush3.bf16.msra.mxu0 %v3025_v8 }
  0xd0   : > { %2447 = vmatpush3.bf16.msra.mxu1 %v3025_v8  ;;  %2436 = vmatprep.subr.bf16.mxu0 %v2572_v1 }
  0xd1   : > { %2448 = vmatprep.subr.bf16.mxu1 %v2572_v1 }
  0xd3   : > { %2437 = vmatpush3.bf16.msra.mxu0 %v3038_v9 }
  0xd4   : > { %2449 = vmatpush3.bf16.msra.mxu1 %v3038_v9  ;;  %2438 = vmatprep.subr.bf16.mxu0 %v2572_v1 }
  0xd5   : > { %2450 = vmatprep.subr.bf16.mxu1 %v2572_v1 }
  0xd7   : > { %2439 = vmatpush3.bf16.msra.mxu0 %v3047_v10 }
  0xd8   : > { %2451 = vmatpush3.bf16.msra.mxu1 %v3047_v10  ;;  %2456 = vmatprep.subr.bf16.mxu0 %v2572_v1 }
  0xd9   : > { %2468 = vmatprep.subr.bf16.mxu1 %v2572_v1 }
  0xda   : > { %2441 = vmatmul.mubr.msk.bf16.vlgmr.msra.gmra.mrb[48].mxu0 %vm243_vm1, %v2670_v22 }
  0xdb   : > { %2453 = vmatmul.mubr.msk.bf16.vlgmr.msra.gmra.mrb[48].mxu1 %vm243_vm1, %v2693_v31  ;;  %2457 = vmatpush3.bf16.msra.mxu0 %v3009_v6  ;;  %v1727_v31 = vrot.slane %v1725_v24, 1 }
  0xdc   : > { %2469 = vmatpush3.bf16.msra.mxu1 %v3009_v6  ;;  %2458 = vmatprep.subr.bf16.mxu0 %v2572_v1 }
  0xdd   : > { %2470 = vmatprep.subr.bf16.mxu1 %v2572_v1  ;;  %2464 = vmatprep.mubr.msk.bf16.mxu0 %vm2573_vm0, %v2572_v1 }
  0xde   : > { %2476 = vmatprep.mubr.msk.bf16.mxu1 %vm2573_vm0, %v2572_v1 }
  0xdf   : > { %2459 = vmatpush3.bf16.msra.mxu0 %v3025_v8 }
  0xe0   : > { %2471 = vmatpush3.bf16.msra.mxu1 %v3025_v8  ;;  %2460 = vmatprep.subr.bf16.mxu0 %v2572_v1 }
  0xe1   : > { %2472 = vmatprep.subr.bf16.mxu1 %v2572_v1 }
  0xe3   : > { %2461 = vmatpush3.bf16.msra.mxu0 %v3038_v9 }
  0xe4   : > { %2473 = vmatpush3.bf16.msra.mxu1 %v3038_v9  ;;  %2462 = vmatprep.subr.bf16.mxu0 %v2572_v1 }
  0xe5   : > { %2474 = vmatprep.subr.bf16.mxu1 %v2572_v1 }
  0xe7   : > { %2463 = vmatpush3.bf16.msra.mxu0 %v3047_v10 }
  0xe8   : > { %2475 = vmatpush3.bf16.msra.mxu1 %v3047_v10  ;;  %2480 = vmatprep.subr.bf16.mxu0 %v2572_v1 }
  0xe9   : > { %2492 = vmatprep.subr.bf16.mxu1 %v2572_v1 }
  0xea   : > { %2465 = vmatmul.mubr.msk.bf16.vlgmr.msra.gmra.mrb[52].mxu0 %vm243_vm1, %v2696_v32  ;;  %v1728_v32 = vor.u32 %v1727_v31, %v1723_v30 }
  0xeb   : > { %2477 = vmatmul.mubr.msk.bf16.vlgmr.msra.gmra.mrb[52].mxu1 %vm243_vm1, %v2731_v45  ;;  %2481 = vmatpush3.bf16.msra.mxu0 %v3009_v6 }
  0xec   : > { %2493 = vmatpush3.bf16.msra.mxu1 %v3009_v6  ;;  %2482 = vmatprep.subr.bf16.mxu0 %v2572_v1 }
  0xed   : > { %v3087_v11 = vpop.f32.mrb[0].mxu0  ;;  %2494 = vmatprep.subr.bf16.mxu1 %v2572_v1  ;;  %2488 = vmatprep.mubr.msk.bf16.mxu0 %vm2573_vm0, %v2572_v1 }
  0xee   : > { %v3092_v12 = vpop.f32.mrb[0].mxu1  ;;  %v2154_v13 = vpop.f32.mrb[1].mxu0  ;;  %2500 = vmatprep.mubr.msk.bf16.mxu1 %vm2573_vm0, %v2572_v1 }
  0xef   : > { %v2166_v14 = vpop.f32.mrb[1].mxu1  ;;  %v284_v15 = vpop.f32.mrb[2].mxu0  ;;  %2483 = vmatpush3.bf16.msra.mxu0 %v3025_v8 }
  0xf0   : > { %v339_v16 = vpop.f32.mrb[2].mxu1  ;;  %2495 = vmatpush3.bf16.msra.mxu1 %v3025_v8  ;;  %v2155_v17 = vpop.f32.mrb[3].mxu0  ;;  %2484 = vmatprep.subr.bf16.mxu0 %v2572_v1 }
  0xf1   : > { %v2167_v18 = vpop.f32.mrb[3].mxu1  ;;  %2496 = vmatprep.subr.bf16.mxu1 %v2572_v1 }
  0xf3   : > { %2485 = vmatpush3.bf16.msra.mxu0 %v3038_v9 }
  0xf4   : > { %2497 = vmatpush3.bf16.msra.mxu1 %v3038_v9  ;;  %2486 = vmatprep.subr.bf16.mxu0 %v2572_v1 }
  0xf5   : > { %2498 = vmatprep.subr.bf16.mxu1 %v2572_v1 }
  0xf7   : > { %2487 = vmatpush3.bf16.msra.mxu0 %v3047_v10 }
  0xf8   : > { %2499 = vmatpush3.bf16.msra.mxu1 %v3047_v10  ;;  %2504 = vmatprep.subr.bf16.mxu0 %v2572_v1 }
  0xf9   : > { %2516 = vmatprep.subr.bf16.mxu1 %v2572_v1 }
  0xfa   : > { %2489 = vmatmul.mubr.msk.bf16.vlgmr.msra.gmra.mrb[56].mxu0 %vm243_vm1, %v2734_v46 }
  0xfb   : > { %2501 = vmatmul.mubr.msk.bf16.vlgmr.msra.gmra.mrb[56].mxu1 %vm243_vm1, %v2769_v59  ;;  %2505 = vmatpush3.bf16.msra.mxu0 %v3009_v6 }
  0xfc   : > { %2517 = vmatpush3.bf16.msra.mxu1 %v3009_v6  ;;  %2506 = vmatprep.subr.bf16.mxu0 %v2572_v1 }
  0xfd   : > { %v391_v21 = vpop.f32.mrb[4].mxu0  ;;  %2518 = vmatprep.subr.bf16.mxu1 %v2572_v1  ;;  %2512 = vmatprep.mubr.msk.bf16.mxu0 %vm2573_vm0, %v2572_v1 }
  0xfe   : > { %v446_v22 = vpop.f32.mrb[4].mxu1  ;;  %v2178_v23 = vpop.f32.mrb[5].mxu0  ;;  %2524 = vmatprep.mubr.msk.bf16.mxu1 %vm2573_vm0, %v2572_v1 }
  0xff   : > { %v2190_v25 = vpop.f32.mrb[5].mxu1  ;;  %v394_v26 = vpop.f32.mrb[6].mxu0  ;;  %2507 = vmatpush3.bf16.msra.mxu0 %v3025_v8 }
 0x100   : > { %v449_v27 = vpop.f32.mrb[6].mxu1  ;;  %2519 = vmatpush3.bf16.msra.mxu1 %v3025_v8  ;;  %v2179_v28 = vpop.f32.mrb[7].mxu0  ;;  %2508 = vmatprep.subr.bf16.mxu0 %v2572_v1 }
 0x101   : > { %v2191_v29 = vpop.f32.mrb[7].mxu1  ;;  %2520 = vmatprep.subr.bf16.mxu1 %v2572_v1 }
 0x103   : > { %2509 = vmatpush3.bf16.msra.mxu0 %v3038_v9 }
 0x104   : > { %2521 = vmatpush3.bf16.msra.mxu1 %v3038_v9  ;;  %2510 = vmatprep.subr.bf16.mxu0 %v2572_v1 }
 0x105   : > { %2522 = vmatprep.subr.bf16.mxu1 %v2572_v1 }
 0x107   : > { %2511 = vmatpush3.bf16.msra.mxu0 %v3047_v10 }
 0x108   : > { %2523 = vmatpush3.bf16.msra.mxu1 %v3047_v10 }
 0x10a   : > { %2513 = vmatmul.mubr.msk.bf16.vlgmr.msra.gmra.mrb[60].mxu0 %vm243_vm1, %v2772_v60 }
 0x10b   : > { %2525 = vmatmul.mubr.msk.bf16.vlgmr.msra.gmra.mrb[60].mxu1 %vm243_vm1, %v1728_v32 }
 0x10d   : > { %v501_v33 = vpop.f32.mrb[8].mxu0 }
 0x10e   : > { %v556_v34 = vpop.f32.mrb[8].mxu1  ;;  %v2202_v35 = vpop.f32.mrb[9].mxu0 }
 0x10f   : > { %v2214_v36 = vpop.f32.mrb[9].mxu1  ;;  %v504_v37 = vpop.f32.mrb[10].mxu0 }
 0x110   : > { %v559_v38 = vpop.f32.mrb[10].mxu1  ;;  %v2203_v39 = vpop.f32.mrb[11].mxu0 }
 0x111   : > { %v2215_v40 = vpop.f32.mrb[11].mxu1 }
 0x11d   : > { %v611_v41 = vpop.f32.mrb[12].mxu0 }
 0x11e   : > { %v666_v1 = vpop.f32.mrb[12].mxu1  ;;  %v2226_v42 = vpop.f32.mrb[13].mxu0 }
 0x11f   : > { %v2238_v43 = vpop.f32.mrb[13].mxu1  ;;  %v614_v44 = vpop.f32.mrb[14].mxu0 }
 0x120   : > { %v669_v45 = vpop.f32.mrb[14].mxu1  ;;  %v2227_v46 = vpop.f32.mrb[15].mxu0 }
 0x121   : > { %v2239_v47 = vpop.f32.mrb[15].mxu1 }
 0x12d   : > { %v733_v48 = vpop.f32.mrb[16].mxu0 }
 0x12e   : > { %v734_v49 = vadd.f32 %v733_v48, %v3087_v11  ;;  %v776_v50 = vpop.f32.mrb[16].mxu1  ;;  %v2250_v51 = vpop.f32.mrb[17].mxu0 }
 0x12f   : > { %v777_v52 = vadd.f32 %v776_v50, %v3092_v12  ;;  %v2262_v53 = vpop.f32.mrb[17].mxu1  ;;  %v736_v54 = vpop.f32.mrb[18].mxu0 }
 0x130   : > { %v779_v55 = vpop.f32.mrb[18].mxu1  ;;  %v2251_v56 = vpop.f32.mrb[19].mxu0 }
 0x131   : > { %v2263_v57 = vpop.f32.mrb[19].mxu1 }
 0x13d   : > { %v819_v58 = vpop.f32.mrb[20].mxu0 }
 0x13e   : > { %v820_v59 = vadd.f32 %v819_v58, %v391_v21  ;;  %v862_v60 = vpop.f32.mrb[20].mxu1  ;;  %v2274_v61 = vpop.f32.mrb[21].mxu0 }
 0x13f   : > { %v863_v62 = vadd.f32 %v862_v60, %v446_v22  ;;  %v2286_v63 = vpop.f32.mrb[21].mxu1  ;;  %v822_v0 = vpop.f32.mrb[22].mxu0 }
 0x140   : > { %v865_v2 = vpop.f32.mrb[22].mxu1  ;;  %v2275_v3 = vpop.f32.mrb[23].mxu0 }
 0x141   : > { %v2287_v4 = vpop.f32.mrb[23].mxu1  ;;  %v3148_v2 = vld [vmem:[%s3189_s2] ss:$0 sm:$0xff] }
 0x14d   : > { %v905_v5 = vpop.f32.mrb[24].mxu0 }
 0x14e   : > { %v906_v6 = vadd.f32 %v905_v5, %v501_v33  ;;  %v948_v7 = vpop.f32.mrb[24].mxu1  ;;  %v2298_v8 = vpop.f32.mrb[25].mxu0 }
 0x14f   : > { %v949_v9 = vadd.f32 %v948_v7, %v556_v34  ;;  %v2310_v10 = vpop.f32.mrb[25].mxu1  ;;  %v908_v11 = vpop.f32.mrb[26].mxu0 }
 0x150   : > { %v951_v12 = vpop.f32.mrb[26].mxu1  ;;  %v2299_v13 = vpop.f32.mrb[27].mxu0 }
 0x151   : > { %v2311_v14 = vpop.f32.mrb[27].mxu1 }
 0x15d   : > { %v991_v15 = vpop.f32.mrb[28].mxu0 }
 0x15e   : > { %v992_v16 = vadd.f32 %v991_v15, %v611_v41  ;;  %v1034_v17 = vpop.f32.mrb[28].mxu1  ;;  %v2322_v18 = vpop.f32.mrb[29].mxu0 }
 0x15f   : > { %v1035_v19 = vadd.f32 %v1034_v17, %v666_v1  ;;  %v2334_v20 = vpop.f32.mrb[29].mxu1  ;;  %v994_v21 = vpop.f32.mrb[30].mxu0 }
 0x160   : > { %v1037_v22 = vpop.f32.mrb[30].mxu1  ;;  %v2323_v23 = vpop.f32.mrb[31].mxu0 }
 0x161   : > { %v2335_v24 = vpop.f32.mrb[31].mxu1 }
 0x16d   : > { %v1107_v25 = vpop.f32.mrb[32].mxu0 }
 0x16e   : > { %v1396_v26 = vadd.f32 %v1107_v25, %v734_v49  ;;  %v1147_v27 = vpop.f32.mrb[32].mxu1  ;;  %v2346_v28 = vpop.f32.mrb[33].mxu0 }
 0x16f   : > { %v1397_v29 = vadd.f32 %v1147_v27, %v777_v52  ;;  %v2358_v30 = vpop.f32.mrb[33].mxu1  ;;  %v1110_v31 = vpop.f32.mrb[34].mxu0 }
 0x170   : > { %v1150_v32 = vpop.f32.mrb[34].mxu1  ;;  %v2347_v33 = vpop.f32.mrb[35].mxu0 }
 0x171   : > { %v2359_v34 = vpop.f32.mrb[35].mxu1 }
 0x17d   : > { %v1187_v35 = vpop.f32.mrb[36].mxu0 }
 0x17e   : > { %v1398_v36 = vadd.f32 %v1187_v35, %v820_v59  ;;  %v1227_v37 = vpop.f32.mrb[36].mxu1  ;;  %v2370_v38 = vpop.f32.mrb[37].mxu0 }
 0x17f   : > { %v1399_v39 = vadd.f32 %v1227_v37, %v863_v62  ;;  %v2382_v40 = vpop.f32.mrb[37].mxu1  ;;  %v1190_v41 = vpop.f32.mrb[38].mxu0 }
 0x180   : > { %v1230_v1 = vpop.f32.mrb[38].mxu1  ;;  %v2371_v42 = vpop.f32.mrb[39].mxu0 }
 0x181   : > { %v2383_v43 = vpop.f32.mrb[39].mxu1 }
 0x18d   : > { %v1267_v44 = vpop.f32.mrb[40].mxu0 }
 0x18e   : > { %v3137_v45 = vadd.f32 %v1267_v44, %v906_v6  ;;  %v1307_v46 = vpop.f32.mrb[40].mxu1  ;;  %v2394_v47 = vpop.f32.mrb[41].mxu0 }
 0x18f   : > { %v3139_v48 = vadd.f32 %v1307_v46, %v949_v9  ;;  %v2406_v49 = vpop.f32.mrb[41].mxu1  ;;  %v1270_v50 = vpop.f32.mrb[42].mxu0 }
 0x190   : > { %v1310_v51 = vpop.f32.mrb[42].mxu1  ;;  %v2395_v52 = vpop.f32.mrb[43].mxu0 }
 0x191   : > { %v2407_v53 = vpop.f32.mrb[43].mxu1 }
 0x19d   : > { %v1347_v54 = vpop.f32.mrb[44].mxu0 }
 0x19e   : > { %v3141_v55 = vadd.f32 %v1347_v54, %v992_v16  ;;  %v1390_v56 = vpop.f32.mrb[44].mxu1  ;;  %v2418_v57 = vpop.f32.mrb[45].mxu0 }
 0x19f   : > { %v3143_v58 = vadd.f32 %v1390_v56, %v1035_v19  ;;  %v2430_v59 = vpop.f32.mrb[45].mxu1  ;;  %v1350_v60 = vpop.f32.mrb[46].mxu0 }
 0x1a0   : > { %v1393_v61 = vpop.f32.mrb[46].mxu1  ;;  %v2419_v62 = vpop.f32.mrb[47].mxu0 }
 0x1a1   : > { %v2431_v63 = vpop.f32.mrb[47].mxu1 }
 0x1ad   : > { %v1471_v0 = vpop.f32.mrb[48].mxu0 }
 0x1ae   : > { %v1772_v3 = vadd.f32 %v1471_v0, %v1396_v26  ;;  %v1511_v4 = vpop.f32.mrb[48].mxu1  ;;  %v2442_v5 = vpop.f32.mrb[49].mxu0 }
 0x1af   : > { %v1773_v6 = vadd.f32 %v1511_v4, %v1397_v29  ;;  %v2454_v7 = vpop.f32.mrb[49].mxu1  ;;  %v1474_v8 = vpop.f32.mrb[50].mxu0 }
 0x1b0   : > { %v1787_v9 = vadd.f32 %v3148_v2, %v1772_v3  ;;  %v1514_v10 = vpop.f32.mrb[50].mxu1  ;;  %v2443_v11 = vpop.f32.mrb[51].mxu0 }
 0x1b1   : > { %v1788_v12 = vadd.f32 %v3148_v2, %v1773_v6  ;;  %v2455_v13 = vpop.f32.mrb[51].mxu1 }
 0x1b2   : > { %vm1795_vm2 = vcmp.ge.f32.partialorder %v1787_v9, 0.0  ;;  %v1803_v14 = vmul.f32 0.2, %v1787_v9 }
 0x1b3   : > { %vm1796_vm3 = vcmp.ge.f32.partialorder %v1788_v12, 0.0  ;;  %v1804_v15 = vmul.f32 0.2, %v1788_v12 }
 0x1b4   : > { %v1811_v16 = vsel %vm1795_vm2, %v1787_v9, %v1803_v14 }
 0x1b5   : > { %v1819_v17 = vpack.c.bf16 %v1811_v16, %v1811_v16  ;;  %v1812_v18 = vsel %vm1796_vm3, %v1788_v12, %v1804_v15 }
 0x1b6   : > { %v1820_v19 = vpack.c.bf16 %v1812_v18, %v1812_v18 }
 0x1b7   : > { %1828 = vst.msk [vmem:[%s3156_s30] sm:$0xf] %vm1827_vm4, %v1819_v17 }
 0x1b8   : > { %1829 = vst.msk [vmem:[%s3156_s30 + $0x4] sm:$0xf] %vm1827_vm4, %v1820_v19 }
 0x1bd   : > { %v1551_v20 = vpop.f32.mrb[52].mxu0 }
 0x1be   : > { %v1774_v21 = vadd.f32 %v1551_v20, %v1398_v36  ;;  %v1591_v22 = vpop.f32.mrb[52].mxu1  ;;  %v2466_v23 = vpop.f32.mrb[53].mxu0 }
 0x1bf   : > { %v1775_v24 = vadd.f32 %v1591_v22, %v1399_v39  ;;  %v2478_v25 = vpop.f32.mrb[53].mxu1  ;;  %v1554_v26 = vpop.f32.mrb[54].mxu0 }
 0x1c0   : > { %v1789_v27 = vadd.f32 %v3148_v2, %v1774_v21  ;;  %v1594_v28 = vpop.f32.mrb[54].mxu1  ;;  %v2467_v29 = vpop.f32.mrb[55].mxu0 }
 0x1c1   : > { %v1790_v30 = vadd.f32 %v3148_v2, %v1775_v24  ;;  %v2479_v31 = vpop.f32.mrb[55].mxu1 }
 0x1c2   : > { %vm1797_vm5 = vcmp.ge.f32.partialorder %v1789_v27, 0.0  ;;  %v1805_v32 = vmul.f32 0.2, %v1789_v27 }
 0x1c3   : > { %vm1798_vm6 = vcmp.ge.f32.partialorder %v1790_v30, 0.0  ;;  %v1806_v33 = vmul.f32 0.2, %v1790_v30 }
 0x1c4   : > { %v1813_v34 = vsel %vm1797_vm5, %v1789_v27, %v1805_v32 }
 0x1c5   : > { %v1821_v35 = vpack.c.bf16 %v1813_v34, %v1813_v34  ;;  %v1814_v36 = vsel %vm1798_vm6, %v1790_v30, %v1806_v33 }
 0x1c6   : > { %v1822_v37 = vpack.c.bf16 %v1814_v36, %v1814_v36 }
 0x1c7   : > { %1830 = vst.msk [vmem:[%s3156_s30 + $0x8] sm:$0xf] %vm1827_vm4, %v1821_v35 }
 0x1c8   : > { %1831 = vst.msk [vmem:[%s3156_s30 + $0xc] sm:$0xf] %vm1827_vm4, %v1822_v37 }
 0x1cd   : > { %v1631_v38 = vpop.f32.mrb[56].mxu0 }
 0x1ce   : > { %v1776_v39 = vadd.f32 %v1631_v38, %v3137_v45  ;;  %v1671_v40 = vpop.f32.mrb[56].mxu1  ;;  %v2490_v41 = vpop.f32.mrb[57].mxu0 }
 0x1cf   : > { %v1777_v1 = vadd.f32 %v1671_v40, %v3139_v48  ;;  %v2502_v42 = vpop.f32.mrb[57].mxu1  ;;  %v1634_v43 = vpop.f32.mrb[58].mxu0 }
 0x1d0   : > { %v1791_v44 = vadd.f32 %v3148_v2, %v1776_v39  ;;  %v1674_v46 = vpop.f32.mrb[58].mxu1  ;;  %v2491_v47 = vpop.f32.mrb[59].mxu0 }
 0x1d1   : > { %v1792_v49 = vadd.f32 %v3148_v2, %v1777_v1  ;;  %v2503_v50 = vpop.f32.mrb[59].mxu1 }
 0x1d2   : > { %vm1799_vm7 = vcmp.ge.f32.partialorder %v1791_v44, 0.0  ;;  %v1807_v51 = vmul.f32 0.2, %v1791_v44 }
 0x1d3   : > { %vm1800_vm8 = vcmp.ge.f32.partialorder %v1792_v49, 0.0  ;;  %v1808_v52 = vmul.f32 0.2, %v1792_v49 }
 0x1d4   : > { %v1815_v45 = vsel %vm1799_vm7, %v1791_v44, %v1807_v51 }
 0x1d5   : > { %v1823_v53 = vpack.c.bf16 %v1815_v45, %v1815_v45  ;;  %v1816_v54 = vsel %vm1800_vm8, %v1792_v49, %v1808_v52 }
 0x1d6   : > { %v1824_v56 = vpack.c.bf16 %v1816_v54, %v1816_v54 }
 0x1d7   : > { %1832 = vst.msk [vmem:[%s3156_s30 + $0x10] sm:$0xf] %vm1827_vm4, %v1823_v53 }
 0x1d8   : > { %1833 = vst.msk [vmem:[%s3156_s30 + $0x14] sm:$0xf] %vm1827_vm4, %v1824_v56 }
 0x1dd   : > { %v1711_v48 = vpop.f32.mrb[60].mxu0 }
 0x1de   : > { %v1778_v57 = vadd.f32 %v1711_v48, %v3141_v55  ;;  %v1766_v59 = vpop.f32.mrb[60].mxu1  ;;  %v2514_v60 = vpop.f32.mrb[61].mxu0 }
 0x1df   : > { %v1779_v61 = vadd.f32 %v1766_v59, %v3143_v58  ;;  %v2526_v62 = vpop.f32.mrb[61].mxu1  ;;  %v1714_v63 = vpop.f32.mrb[62].mxu0 }
 0x1e0   : > { %v1793_v0 = vadd.f32 %v3148_v2, %v1778_v57  ;;  %v1769_v3 = vpop.f32.mrb[62].mxu1  ;;  %v2515_v4 = vpop.f32.mrb[63].mxu0 }
 0x1e1   : > { %v1794_v5 = vadd.f32 %v3148_v2, %v1779_v61  ;;  %v2527_v6 = vpop.f32.mrb[63].mxu1 }
 0x1e2   : > { %vm1801_vm9 = vcmp.ge.f32.partialorder %v1793_v0, 0.0  ;;  %v1809_v7 = vmul.f32 0.2, %v1793_v0 }
 0x1e3   : > { %vm1802_vm10 = vcmp.ge.f32.partialorder %v1794_v5, 0.0  ;;  %v1810_v8 = vmul.f32 0.2, %v1794_v5 }
 0x1e4   : > { %v1817_v55 = vsel %vm1801_vm9, %v1793_v0, %v1809_v7 }
 0x1e5   : > { %v1825_v9 = vpack.c.bf16 %v1817_v55, %v1817_v55  ;;  %v1818_v10 = vsel %vm1802_vm10, %v1794_v5, %v1810_v8 }
 0x1e6   : > { %v1826_v11 = vpack.c.bf16 %v1818_v10, %v1818_v10 }
 0x1e7   : > { %1834 = vst.msk [vmem:[%s3156_s30 + $0x18] sm:$0xf] %vm1827_vm4, %v1825_v9 }
 0x1e8   : > { %1835 = vst.msk [vmem:[%s3156_s30 + $0x1c] sm:$0xf] %vm1827_vm4, %v1826_v11 }
 0x1e9 PF: > { %s13_s12 = sadd.s32 1, %s2570_s12  }
 0x1ea   : > { %p10_p4 = scmp.ge.s32.totalorder %s13_s12, 4  }
 0x1ec   :  { %12 = sbr.rel (!%p10_p4) target bundleno = 1 (0x1), region = 65 }

// kernel: _lambda_.7
= control target key start
LH: loop header
LB: loop body
LE: loop exit
PB: predicated region body
PF: predicated region fallthrough
CT: control target
= control target key end

     0   :  { %s1923_s15 = smov 0   ;;  %s2278_s0 = inlined_call_operand.vmem [shape: bf16[2,5,5,128], index: 0, kind: input, shape index: {}]   ;;  %s2279_s1 = inlined_call_operand.vmem [shape: bf16[4,128,64], index: 1, kind: input, shape index: {}]   ;;  %s2280_s2 = inlined_call_operand.vmem [shape: f32[1,1,64], index: 2, kind: input, shape index: {}]   ;;  %s2281_s3 = inlined_call_operand.vmem [shape: f32[4,4,64], index: 3, kind: input, shape index: {}]   ;;  %s2282_s4 = inlined_call_operand.vmem [shape: f32[2,1,128], index: 4, kind: output, shape index: {}]  }
   0x1 LB: > { %s1272_s16 = sadd.s32 4294967295, %s1894_s15   ;;  %p1276_p0 = scmp.ge.s32.totalorder %s1894_s15, 1  ;;  %s1894_s15 = sphi %s1923_s15, %s14_s15  }
   0x2   : > { %p162_p1 = scmp.lt.s32.totalorder %s1894_s15, 3 }
   0x4   : > { %p163_p2 = pnand %p1276_p0, %p162_p1 }
   0x5   : > { %v1934_v0 = vld [vmem:[%s2279_s1 + $0x40] sm:$0xff] (!%p163_p2)   ;;  %v1896_v1 = vmov (!%p163_p2), 0.0   ;;  %v1943_v2 = vld [vmem:[%s2279_s1 + $0x48] sm:$0xff] (!%p163_p2)   ;;  %p186_p3 = scmp.lt.s32.totalorder (!%p163_p2), %s1272_s16, 1  ;;  %vm1897_vm0 = vmmov (!%p163_p2), 0   ;;  %v1845_v3 = vld [vmem:[%s2279_s1 + $0x50] sm:$0xff] (!%p163_p2)  }
   0x6   : > { %166 = sbr.rel (%p163_p2) target bundleno = 723 (0x2d3), region = 36  ;;  %1510 = vmatprep.subr.bf16.mxu0 (!%p163_p2), %v1896_v1  ;;  %1530 = vmatprep.subr.bf16.mxu1 (!%p163_p2), %v1896_v1  ;;  %v1846_v4 = vld [vmem:[%s2279_s1 + $0x58] sm:$0xff] (!%p163_p2)   ;;  %v1847_v5 = vld [vmem:[%s2279_s1 + $0x60] sm:$0xff] (!%p163_p2)   ;;  %v1848_v10 = vld [vmem:[%s2279_s1 + $0x68] sm:$0xff] (!%p163_p2)   ;;  %vm1193_vm3 = vcmask (!%p163_p2), 519168  }
   0x7   : > { %1511 = vmatpush3.bf16.msra.mxu0 (!%p163_p2), %v1934_v0  ;;  %1531 = vmatpush3.bf16.msra.mxu1 (!%p163_p2), %v1934_v0  ;;  %v1849_v13 = vld [vmem:[%s2279_s1 + $0x70] sm:$0xff] (!%p163_p2)   ;;  %v1850_v14 = vld [vmem:[%s2279_s1 + $0x78] sm:$0xff] (!%p163_p2)   ;;  %v1855_v33 = vld [vmem:[%s2279_s1] sm:$0xff] (!%p163_p2)  }
   0x8   : > { %1512 = vmatprep.subr.bf16.mxu0 (!%p163_p2), %v1896_v1  ;;  %1532 = vmatprep.subr.bf16.mxu1 (!%p163_p2), %v1896_v1  ;;  %v1856_v34 = vld [vmem:[%s2279_s1 + $0x8] sm:$0xff] (!%p163_p2)   ;;  %v1857_v35 = vld [vmem:[%s2279_s1 + $0x10] sm:$0xff] (!%p163_p2)   ;;  %v1858_v36 = vld [vmem:[%s2279_s1 + $0x18] sm:$0xff] (!%p163_p2)  }
   0x9   : > { %1526 = vmatprep.mubr.msk.bf16.mxu0 (!%p163_p2), %vm1897_vm0, %v1896_v1  ;;  %1546 = vmatprep.mubr.msk.bf16.mxu1 (!%p163_p2), %vm1897_vm0, %v1896_v1  ;;  %v1859_v37 = vld [vmem:[%s2279_s1 + $0x20] sm:$0xff] (!%p163_p2)   ;;  %v1860_v38 = vld [vmem:[%s2279_s1 + $0x28] sm:$0xff] (!%p163_p2)   ;;  %v1861_v39 = vld [vmem:[%s2279_s1 + $0x30] sm:$0xff] (!%p163_p2)  }
   0xa   : > { %v1862_v40 = vld [vmem:[%s2279_s1 + $0x38] sm:$0xff] (!%p163_p2)   ;;  %v1863_v41 = vld [vmem:[%s2279_s1 + $0x80] sm:$0xff] (!%p163_p2)   ;;  %v1864_v42 = vld [vmem:[%s2279_s1 + $0x88] sm:$0xff] (!%p163_p2)  }
   0xb   : > { %1513 = vmatpush3.bf16.msra.mxu0 (!%p163_p2), %v1943_v2  ;;  %1533 = vmatpush3.bf16.msra.mxu1 (!%p163_p2), %v1943_v2  ;;  %v1865_v43 = vld [vmem:[%s2279_s1 + $0x90] sm:$0xff] (!%p163_p2)   ;;  %v1866_v44 = vld [vmem:[%s2279_s1 + $0x98] sm:$0xff] (!%p163_p2)   ;;  %v1867_v45 = vld [vmem:[%s2279_s1 + $0xa0] sm:$0xff] (!%p163_p2)  }
   0xc   : > { %1514 = vmatprep.subr.bf16.mxu0 (!%p163_p2), %v1896_v1  ;;  %1534 = vmatprep.subr.bf16.mxu1 (!%p163_p2), %v1896_v1  ;;  %v1868_v46 = vld [vmem:[%s2279_s1 + $0xa8] sm:$0xff] (!%p163_p2)   ;;  %v1869_v47 = vld [vmem:[%s2279_s1 + $0xb0] sm:$0xff] (!%p163_p2)   ;;  %v1870_v48 = vld [vmem:[%s2279_s1 + $0xb8] sm:$0xff] (!%p163_p2)  }
   0xd   : > { %s2284_s16 = smov (!%p186_p3, %s1272_s16), 1  ;;  %v1872_v50 = vld [vmem:[%s2279_s1 + $0xc0] sm:$0xff]   ;;  %v1873_v51 = vld [vmem:[%s2279_s1 + $0xc8] sm:$0xff]   ;;  %v1874_v52 = vld [vmem:[%s2279_s1 + $0xd0] sm:$0xff]  }
   0xe   : > { %s1830_s23 = smul.u32 20, %s2284_s16  ;;  %v1875_v53 = vld [vmem:[%s2279_s1 + $0xd8] sm:$0xff]   ;;  %v1876_v54 = vld [vmem:[%s2279_s1 + $0xe0] sm:$0xff]   ;;  %v1877_v55 = vld [vmem:[%s2279_s1 + $0xe8] sm:$0xff]   ;;  %s193_s26 = scalar_lea.vmem %s2282_s4, %s2284_s16 }
   0xf   : > { %1515 = vmatpush3.bf16.msra.mxu0 %v1845_v3  ;;  %1535 = vmatpush3.bf16.msra.mxu1 %v1845_v3  ;;  %v1878_v56 = vld [vmem:[%s2279_s1 + $0xf0] sm:$0xff]   ;;  %v1879_v57 = vld [vmem:[%s2279_s1 + $0xf8] sm:$0xff]  }
  0x10   : > { %s1967_s28 = scalar_lea.vmem %s2278_s0, %s1830_s23  ;;  %1516 = vmatprep.subr.bf16.mxu0 %v1896_v1  ;;  %1536 = vmatprep.subr.bf16.mxu1 %v1896_v1 }
  0x11   : > { %v1975_v6 = vld [vmem:[%s1967_s28] sm:$0x7]  ;;  %v1978_v7 = vld [vmem:[%s1967_s28 + $0x4] sm:$0x7]  ;;  %v2021_v21 = vld [vmem:[%s1967_s28 + $0x8] sm:$0x7] }
  0x12   : > { %v1294_v8 = vcombine.low %v1975_v6, %v1975_v6  ;;  %v1303_v9 = vcombine.low %v1978_v7, %v1978_v7  ;;  %v2024_v22 = vld [vmem:[%s1967_s28 + $0xc] sm:$0x7]  ;;  %v1304_v23 = vcombine.low %v2021_v21, %v2021_v21  ;;  %v2179_v49 = vld [vmem:[%s1967_s28 + $0x10] sm:$0x7] }
  0x13   : > { %1517 = vmatpush3.bf16.msra.mxu0 %v1846_v4  ;;  %1537 = vmatpush3.bf16.msra.mxu1 %v1846_v4  ;;  %v1305_v24 = vcombine.low %v2024_v22, %v2024_v22  ;;  %v1362_v58 = vcombine.low %v2179_v49, %v2179_v49 }
  0x14   : > { %1518 = vmatprep.subr.bf16.mxu0 %v1896_v1  ;;  %1538 = vmatprep.subr.bf16.mxu1 %v1896_v1  ;;  %v239_v11 = vshll.u32 %v1294_v8, 16  ;;  %v338_v12 = vshll.u32 %v1303_v9, 16  ;;  %v237_v15 = vshrl.u32 %v1294_v8, 16  ;;  %v336_v16 = vshrl.u32 %v1303_v9, 16 }
  0x15   : > { %v389_v25 = vshll.u32 %v1304_v23, 16  ;;  %v440_v26 = vshll.u32 %v1305_v24, 16  ;;  %v387_v27 = vshrl.u32 %v1304_v23, 16  ;;  %v438_v29 = vshrl.u32 %v1305_v24, 16 }
  0x16   : > { %v241_v17 = vrot.slane %v239_v11, 1  ;;  %v340_v18 = vrot.slane %v338_v12, 1  ;;  %v1113_v61 = vshll.u32 %v1362_v58, 16 }
  0x17   : > { %1519 = vmatpush3.bf16.msra.mxu0 %v1847_v5  ;;  %1539 = vmatpush3.bf16.msra.mxu1 %v1847_v5  ;;  %v391_v28 = vrot.slane %v389_v25, 1  ;;  %v442_v30 = vrot.slane %v440_v26, 1 }
  0x18   : > { %1520 = vmatprep.subr.bf16.mxu0 %v1896_v1  ;;  %1540 = vmatprep.subr.bf16.mxu1 %v1896_v1  ;;  %v242_v19 = vor.u32 %v241_v17, %v237_v15  ;;  %v2001_v20 = vor.u32 %v340_v18, %v336_v16 }
  0x19   : > { %v2038_v31 = vor.u32 %v391_v28, %v387_v27  ;;  %v2040_v32 = vor.u32 %v442_v30, %v438_v29 }
  0x1b   : > { %1521 = vmatpush3.bf16.msra.mxu0 %v1848_v10  ;;  %1541 = vmatpush3.bf16.msra.mxu1 %v1848_v10 }
  0x1c   : > { %1522 = vmatprep.subr.bf16.mxu0 %v1896_v1  ;;  %1542 = vmatprep.subr.bf16.mxu1 %v1896_v1 }
  0x1f   : > { %1523 = vmatpush3.bf16.msra.mxu0 %v1849_v13  ;;  %1543 = vmatpush3.bf16.msra.mxu1 %v1849_v13 }
  0x20   : > { %1524 = vmatprep.subr.bf16.mxu0 %v1896_v1  ;;  %1544 = vmatprep.subr.bf16.mxu1 %v1896_v1 }
  0x23   : > { %1525 = vmatpush3.bf16.msra.mxu0 %v1850_v14  ;;  %1545 = vmatpush3.bf16.msra.mxu1 %v1850_v14 }
  0x24   : > { %1550 = vmatprep.subr.bf16.mxu0 %v1896_v1  ;;  %1570 = vmatprep.subr.bf16.mxu1 %v1896_v1 }
  0x26   : > { %1527 = vmatmul.mubr.bf16.vlgmr.msra.gmra.mrb[0].mxu0 %v242_v19  ;;  %1547 = vmatmul.mubr.bf16.vlgmr.msra.gmra.mrb[0].mxu1 %v2001_v20 }
  0x27   : > { %1551 = vmatpush3.bf16.msra.mxu0 %v1934_v0  ;;  %1571 = vmatpush3.bf16.msra.mxu1 %v1934_v0 }
  0x28   : > { %1552 = vmatprep.subr.bf16.mxu0 %v1896_v1  ;;  %1572 = vmatprep.subr.bf16.mxu1 %v1896_v1 }
  0x29   : > { %1566 = vmatprep.mubr.msk.bf16.mxu0 %vm1897_vm0, %v1896_v1  ;;  %1586 = vmatprep.mubr.msk.bf16.mxu1 %vm1897_vm0, %v1896_v1 }
  0x2b   : > { %1553 = vmatpush3.bf16.msra.mxu0 %v1943_v2  ;;  %1573 = vmatpush3.bf16.msra.mxu1 %v1943_v2 }
  0x2c   : > { %1554 = vmatprep.subr.bf16.mxu0 %v1896_v1  ;;  %1574 = vmatprep.subr.bf16.mxu1 %v1896_v1 }
  0x2f   : > { %1555 = vmatpush3.bf16.msra.mxu0 %v1845_v3  ;;  %1575 = vmatpush3.bf16.msra.mxu1 %v1845_v3 }
  0x30   : > { %1556 = vmatprep.subr.bf16.mxu0 %v1896_v1  ;;  %1576 = vmatprep.subr.bf16.mxu1 %v1896_v1 }
  0x33   : > { %1557 = vmatpush3.bf16.msra.mxu0 %v1846_v4  ;;  %1577 = vmatpush3.bf16.msra.mxu1 %v1846_v4 }
  0x34   : > { %1558 = vmatprep.subr.bf16.mxu0 %v1896_v1  ;;  %1578 = vmatprep.subr.bf16.mxu1 %v1896_v1 }
  0x37   : > { %1559 = vmatpush3.bf16.msra.mxu0 %v1847_v5  ;;  %1579 = vmatpush3.bf16.msra.mxu1 %v1847_v5  ;;  %v1111_v5 = vshrl.u32 %v1362_v58, 16 }
  0x38   : > { %1560 = vmatprep.subr.bf16.mxu0 %v1896_v1  ;;  %1580 = vmatprep.subr.bf16.mxu1 %v1896_v1 }
  0x3b   : > { %1561 = vmatpush3.bf16.msra.mxu0 %v1848_v10  ;;  %1581 = vmatpush3.bf16.msra.mxu1 %v1848_v10 }
  0x3c   : > { %1562 = vmatprep.subr.bf16.mxu0 %v1896_v1  ;;  %1582 = vmatprep.subr.bf16.mxu1 %v1896_v1 }
  0x3f   : > { %1563 = vmatpush3.bf16.msra.mxu0 %v1849_v13  ;;  %1583 = vmatpush3.bf16.msra.mxu1 %v1849_v13 }
  0x40   : > { %1564 = vmatprep.subr.bf16.mxu0 %v1896_v1  ;;  %1584 = vmatprep.subr.bf16.mxu1 %v1896_v1 }
  0x43   : > { %1565 = vmatpush3.bf16.msra.mxu0 %v1850_v14  ;;  %1585 = vmatpush3.bf16.msra.mxu1 %v1850_v14 }
  0x44   : > { %1590 = vmatprep.subr.bf16.mxu0 %v1896_v1  ;;  %1610 = vmatprep.subr.bf16.mxu1 %v1896_v1 }
  0x46   : > { %1567 = vmatmul.mubr.bf16.vlgmr.msra.gmra.mrb[4].mxu0 %v2038_v31  ;;  %1587 = vmatmul.mubr.bf16.vlgmr.msra.gmra.mrb[4].mxu1 %v2040_v32 }
  0x47   : > { %1591 = vmatpush3.bf16.msra.mxu0 %v1855_v33  ;;  %1611 = vmatpush3.bf16.msra.mxu1 %v1855_v33 }
  0x48   : > { %1592 = vmatprep.subr.bf16.mxu0 %v1896_v1  ;;  %1612 = vmatprep.subr.bf16.mxu1 %v1896_v1 }
  0x49   : > { %1606 = vmatprep.mubr.msk.bf16.mxu0 %vm1897_vm0, %v1896_v1  ;;  %1626 = vmatprep.mubr.msk.bf16.mxu1 %vm1897_vm0, %v1896_v1 }
  0x4b   : > { %1593 = vmatpush3.bf16.msra.mxu0 %v1856_v34  ;;  %1613 = vmatpush3.bf16.msra.mxu1 %v1856_v34 }
  0x4c   : > { %1594 = vmatprep.subr.bf16.mxu0 %v1896_v1  ;;  %1614 = vmatprep.subr.bf16.mxu1 %v1896_v1 }
  0x4f   : > { %1595 = vmatpush3.bf16.msra.mxu0 %v1857_v35  ;;  %1615 = vmatpush3.bf16.msra.mxu1 %v1857_v35 }
  0x50   : > { %1596 = vmatprep.subr.bf16.mxu0 %v1896_v1  ;;  %1616 = vmatprep.subr.bf16.mxu1 %v1896_v1 }
  0x53   : > { %1597 = vmatpush3.bf16.msra.mxu0 %v1858_v36  ;;  %1617 = vmatpush3.bf16.msra.mxu1 %v1858_v36 }
  0x54   : > { %1598 = vmatprep.subr.bf16.mxu0 %v1896_v1  ;;  %1618 = vmatprep.subr.bf16.mxu1 %v1896_v1 }
  0x57   : > { %1599 = vmatpush3.bf16.msra.mxu0 %v1859_v37  ;;  %1619 = vmatpush3.bf16.msra.mxu1 %v1859_v37 }
  0x58   : > { %1600 = vmatprep.subr.bf16.mxu0 %v1896_v1  ;;  %1620 = vmatprep.subr.bf16.mxu1 %v1896_v1 }
  0x5b   : > { %1601 = vmatpush3.bf16.msra.mxu0 %v1860_v38  ;;  %1621 = vmatpush3.bf16.msra.mxu1 %v1860_v38 }
  0x5c   : > { %1602 = vmatprep.subr.bf16.mxu0 %v1896_v1  ;;  %1622 = vmatprep.subr.bf16.mxu1 %v1896_v1 }
  0x5f   : > { %1603 = vmatpush3.bf16.msra.mxu0 %v1861_v39  ;;  %1623 = vmatpush3.bf16.msra.mxu1 %v1861_v39 }
  0x60   : > { %1604 = vmatprep.subr.bf16.mxu0 %v1896_v1  ;;  %1624 = vmatprep.subr.bf16.mxu1 %v1896_v1 }
  0x63   : > { %1605 = vmatpush3.bf16.msra.mxu0 %v1862_v40  ;;  %1625 = vmatpush3.bf16.msra.mxu1 %v1862_v40 }
  0x64   : > { %1630 = vmatprep.subr.bf16.mxu0 %v1896_v1  ;;  %1650 = vmatprep.subr.bf16.mxu1 %v1896_v1 }
  0x66   : > { %1607 = vmatmul.mubr.bf16.vlgmr.msra.gmra.mrb[8].mxu0 %v1975_v6  ;;  %1627 = vmatmul.mubr.bf16.vlgmr.msra.gmra.mrb[8].mxu1 %v1978_v7  ;;  %v1115_v6 = vrot.slane %v1113_v61, 1 }
  0x67   : > { %1631 = vmatpush3.bf16.msra.mxu0 %v1855_v33  ;;  %1651 = vmatpush3.bf16.msra.mxu1 %v1855_v33 }
  0x68   : > { %1632 = vmatprep.subr.bf16.mxu0 %v1896_v1  ;;  %1652 = vmatprep.subr.bf16.mxu1 %v1896_v1 }
  0x69   : > { %1646 = vmatprep.mubr.msk.bf16.mxu0 %vm1897_vm0, %v1896_v1  ;;  %1666 = vmatprep.mubr.msk.bf16.mxu1 %vm1897_vm0, %v1896_v1 }
  0x6b   : > { %1633 = vmatpush3.bf16.msra.mxu0 %v1856_v34  ;;  %1653 = vmatpush3.bf16.msra.mxu1 %v1856_v34 }
  0x6c   : > { %1634 = vmatprep.subr.bf16.mxu0 %v1896_v1  ;;  %1654 = vmatprep.subr.bf16.mxu1 %v1896_v1 }
  0x6f   : > { %1635 = vmatpush3.bf16.msra.mxu0 %v1857_v35  ;;  %1655 = vmatpush3.bf16.msra.mxu1 %v1857_v35 }
  0x70   : > { %1636 = vmatprep.subr.bf16.mxu0 %v1896_v1  ;;  %1656 = vmatprep.subr.bf16.mxu1 %v1896_v1 }
  0x73   : > { %1637 = vmatpush3.bf16.msra.mxu0 %v1858_v36  ;;  %1657 = vmatpush3.bf16.msra.mxu1 %v1858_v36 }
  0x74   : > { %1638 = vmatprep.subr.bf16.mxu0 %v1896_v1  ;;  %1658 = vmatprep.subr.bf16.mxu1 %v1896_v1 }
  0x77   : > { %1639 = vmatpush3.bf16.msra.mxu0 %v1859_v37  ;;  %1659 = vmatpush3.bf16.msra.mxu1 %v1859_v37 }
  0x78   : > { %1640 = vmatprep.subr.bf16.mxu0 %v1896_v1  ;;  %1660 = vmatprep.subr.bf16.mxu1 %v1896_v1 }
  0x7b   : > { %1641 = vmatpush3.bf16.msra.mxu0 %v1860_v38  ;;  %1661 = vmatpush3.bf16.msra.mxu1 %v1860_v38 }
  0x7c   : > { %1642 = vmatprep.subr.bf16.mxu0 %v1896_v1  ;;  %1662 = vmatprep.subr.bf16.mxu1 %v1896_v1 }
  0x7f   : > { %1643 = vmatpush3.bf16.msra.mxu0 %v1861_v39  ;;  %1663 = vmatpush3.bf16.msra.mxu1 %v1861_v39 }
  0x80   : > { %1644 = vmatprep.subr.bf16.mxu0 %v1896_v1  ;;  %1664 = vmatprep.subr.bf16.mxu1 %v1896_v1 }
  0x83   : > { %1645 = vmatpush3.bf16.msra.mxu0 %v1862_v40  ;;  %1665 = vmatpush3.bf16.msra.mxu1 %v1862_v40 }
  0x84   : > { %1670 = vmatprep.subr.bf16.mxu0 %v1896_v1  ;;  %1690 = vmatprep.subr.bf16.mxu1 %v1896_v1 }
  0x86   : > { %1647 = vmatmul.mubr.bf16.vlgmr.msra.gmra.mrb[12].mxu0 %v2021_v21  ;;  %1667 = vmatmul.mubr.bf16.vlgmr.msra.gmra.mrb[12].mxu1 %v2024_v22 }
  0x87   : > { %1671 = vmatpush3.bf16.msra.mxu0 %v1863_v41  ;;  %1691 = vmatpush3.bf16.msra.mxu1 %v1863_v41 }
  0x88   : > { %1672 = vmatprep.subr.bf16.mxu0 %v1896_v1  ;;  %1692 = vmatprep.subr.bf16.mxu1 %v1896_v1 }
  0x89   : > { %1686 = vmatprep.mubr.msk.bf16.mxu0 %vm1897_vm0, %v1896_v1  ;;  %1706 = vmatprep.mubr.msk.bf16.mxu1 %vm1897_vm0, %v1896_v1 }
  0x8b   : > { %1673 = vmatpush3.bf16.msra.mxu0 %v1864_v42  ;;  %1693 = vmatpush3.bf16.msra.mxu1 %v1864_v42 }
  0x8c   : > { %1674 = vmatprep.subr.bf16.mxu0 %v1896_v1  ;;  %1694 = vmatprep.subr.bf16.mxu1 %v1896_v1 }
  0x8f   : > { %1675 = vmatpush3.bf16.msra.mxu0 %v1865_v43  ;;  %1695 = vmatpush3.bf16.msra.mxu1 %v1865_v43 }
  0x90   : > { %1676 = vmatprep.subr.bf16.mxu0 %v1896_v1  ;;  %1696 = vmatprep.subr.bf16.mxu1 %v1896_v1 }
  0x93   : > { %1677 = vmatpush3.bf16.msra.mxu0 %v1866_v44  ;;  %1697 = vmatpush3.bf16.msra.mxu1 %v1866_v44 }
  0x94   : > { %1678 = vmatprep.subr.bf16.mxu0 %v1896_v1  ;;  %1698 = vmatprep.subr.bf16.mxu1 %v1896_v1 }
  0x97   : > { %1679 = vmatpush3.bf16.msra.mxu0 %v1867_v45  ;;  %1699 = vmatpush3.bf16.msra.mxu1 %v1867_v45 }
  0x98   : > { %1680 = vmatprep.subr.bf16.mxu0 %v1896_v1  ;;  %1700 = vmatprep.subr.bf16.mxu1 %v1896_v1 }
  0x9b   : > { %1681 = vmatpush3.bf16.msra.mxu0 %v1868_v46  ;;  %1701 = vmatpush3.bf16.msra.mxu1 %v1868_v46 }
  0x9c   : > { %1682 = vmatprep.subr.bf16.mxu0 %v1896_v1  ;;  %1702 = vmatprep.subr.bf16.mxu1 %v1896_v1 }
  0x9f   : > { %1683 = vmatpush3.bf16.msra.mxu0 %v1869_v47  ;;  %1703 = vmatpush3.bf16.msra.mxu1 %v1869_v47 }
  0xa0   : > { %1684 = vmatprep.subr.bf16.mxu0 %v1896_v1  ;;  %1704 = vmatprep.subr.bf16.mxu1 %v1896_v1 }
  0xa3   : > { %1685 = vmatpush3.bf16.msra.mxu0 %v1870_v48  ;;  %1705 = vmatpush3.bf16.msra.mxu1 %v1870_v48 }
  0xa4   : > { %1710 = vmatprep.subr.bf16.mxu0 %v1896_v1  ;;  %1730 = vmatprep.subr.bf16.mxu1 %v1896_v1 }
  0xa6   : > { %1687 = vmatmul.mubr.bf16.vlgmr.msra.gmra.mrb[16].mxu0 %v1978_v7  ;;  %1707 = vmatmul.mubr.bf16.vlgmr.msra.gmra.mrb[16].mxu1 %v2021_v21  ;;  %v1116_v7 = vor.u32 %v1115_v6, %v1111_v5  ;;  %v1185_v5 = vld [vmem:[%s2281_s3] sm:$0xf]  ;;  %v1186_v6 = vld [vmem:[%s2281_s3 + $0x4] sm:$0xf] }
  0xa7   : > { %1711 = vmatpush3.bf16.msra.mxu0 %v1863_v41  ;;  %1731 = vmatpush3.bf16.msra.mxu1 %v1863_v41 }
  0xa8   : > { %1712 = vmatprep.subr.bf16.mxu0 %v1896_v1  ;;  %1732 = vmatprep.subr.bf16.mxu1 %v1896_v1 }
  0xa9   : > { %1726 = vmatprep.mubr.msk.bf16.mxu0 %vm1897_vm0, %v1896_v1  ;;  %1746 = vmatprep.mubr.msk.bf16.mxu1 %vm1897_vm0, %v1896_v1 }
  0xab   : > { %1713 = vmatpush3.bf16.msra.mxu0 %v1864_v42  ;;  %1733 = vmatpush3.bf16.msra.mxu1 %v1864_v42 }
  0xac   : > { %1714 = vmatprep.subr.bf16.mxu0 %v1896_v1  ;;  %1734 = vmatprep.subr.bf16.mxu1 %v1896_v1 }
  0xaf   : > { %1715 = vmatpush3.bf16.msra.mxu0 %v1865_v43  ;;  %1735 = vmatpush3.bf16.msra.mxu1 %v1865_v43 }
  0xb0   : > { %1716 = vmatprep.subr.bf16.mxu0 %v1896_v1  ;;  %1736 = vmatprep.subr.bf16.mxu1 %v1896_v1 }
  0xb3   : > { %1717 = vmatpush3.bf16.msra.mxu0 %v1866_v44  ;;  %1737 = vmatpush3.bf16.msra.mxu1 %v1866_v44 }
  0xb4   : > { %1718 = vmatprep.subr.bf16.mxu0 %v1896_v1  ;;  %1738 = vmatprep.subr.bf16.mxu1 %v1896_v1 }
  0xb7   : > { %1719 = vmatpush3.bf16.msra.mxu0 %v1867_v45  ;;  %1739 = vmatpush3.bf16.msra.mxu1 %v1867_v45 }
  0xb8   : > { %1720 = vmatprep.subr.bf16.mxu0 %v1896_v1  ;;  %1740 = vmatprep.subr.bf16.mxu1 %v1896_v1 }
  0xbb   : > { %1721 = vmatpush3.bf16.msra.mxu0 %v1868_v46  ;;  %1741 = vmatpush3.bf16.msra.mxu1 %v1868_v46 }
  0xbc   : > { %1722 = vmatprep.subr.bf16.mxu0 %v1896_v1  ;;  %1742 = vmatprep.subr.bf16.mxu1 %v1896_v1 }
  0xbf   : > { %1723 = vmatpush3.bf16.msra.mxu0 %v1869_v47  ;;  %1743 = vmatpush3.bf16.msra.mxu1 %v1869_v47 }
  0xc0   : > { %1724 = vmatprep.subr.bf16.mxu0 %v1896_v1  ;;  %1744 = vmatprep.subr.bf16.mxu1 %v1896_v1 }
  0xc3   : > { %1725 = vmatpush3.bf16.msra.mxu0 %v1870_v48  ;;  %1745 = vmatpush3.bf16.msra.mxu1 %v1870_v48 }
  0xc4   : > { %1750 = vmatprep.subr.bf16.mxu0 %v1896_v1  ;;  %1770 = vmatprep.subr.bf16.mxu1 %v1896_v1 }
  0xc6   : > { %1727 = vmatmul.mubr.bf16.vlgmr.msra.gmra.mrb[20].mxu0 %v2024_v22  ;;  %1747 = vmatmul.mubr.bf16.vlgmr.msra.gmra.mrb[20].mxu1 %v2179_v49 }
  0xc7   : > { %1751 = vmatpush3.bf16.msra.mxu0 %v1872_v50  ;;  %1771 = vmatpush3.bf16.msra.mxu1 %v1872_v50 }
  0xc8   : > { %1752 = vmatprep.subr.bf16.mxu0 %v1896_v1  ;;  %1772 = vmatprep.subr.bf16.mxu1 %v1896_v1 }
  0xc9   : > { %1766 = vmatprep.mubr.msk.bf16.mxu0 %vm1897_vm0, %v1896_v1  ;;  %1786 = vmatprep.mubr.msk.bf16.mxu1 %vm1897_vm0, %v1896_v1 }
  0xcb   : > { %1753 = vmatpush3.bf16.msra.mxu0 %v1873_v51  ;;  %1773 = vmatpush3.bf16.msra.mxu1 %v1873_v51 }
  0xcc   : > { %1754 = vmatprep.subr.bf16.mxu0 %v1896_v1  ;;  %1774 = vmatprep.subr.bf16.mxu1 %v1896_v1 }
  0xcf   : > { %1755 = vmatpush3.bf16.msra.mxu0 %v1874_v52  ;;  %1775 = vmatpush3.bf16.msra.mxu1 %v1874_v52 }
  0xd0   : > { %1756 = vmatprep.subr.bf16.mxu0 %v1896_v1  ;;  %1776 = vmatprep.subr.bf16.mxu1 %v1896_v1 }
  0xd3   : > { %1757 = vmatpush3.bf16.msra.mxu0 %v1875_v53  ;;  %1777 = vmatpush3.bf16.msra.mxu1 %v1875_v53 }
  0xd4   : > { %1758 = vmatprep.subr.bf16.mxu0 %v1896_v1  ;;  %1778 = vmatprep.subr.bf16.mxu1 %v1896_v1 }
  0xd7   : > { %1759 = vmatpush3.bf16.msra.mxu0 %v1876_v54  ;;  %1779 = vmatpush3.bf16.msra.mxu1 %v1876_v54 }
  0xd8   : > { %1760 = vmatprep.subr.bf16.mxu0 %v1896_v1  ;;  %1780 = vmatprep.subr.bf16.mxu1 %v1896_v1 }
  0xdb   : > { %1761 = vmatpush3.bf16.msra.mxu0 %v1877_v55  ;;  %1781 = vmatpush3.bf16.msra.mxu1 %v1877_v55 }
  0xdc   : > { %1762 = vmatprep.subr.bf16.mxu0 %v1896_v1  ;;  %1782 = vmatprep.subr.bf16.mxu1 %v1896_v1 }
  0xdf   : > { %1763 = vmatpush3.bf16.msra.mxu0 %v1878_v56  ;;  %1783 = vmatpush3.bf16.msra.mxu1 %v1878_v56 }
  0xe0   : > { %1764 = vmatprep.subr.bf16.mxu0 %v1896_v1  ;;  %1784 = vmatprep.subr.bf16.mxu1 %v1896_v1 }
  0xe3   : > { %1765 = vmatpush3.bf16.msra.mxu0 %v1879_v57  ;;  %1785 = vmatpush3.bf16.msra.mxu1 %v1879_v57 }
  0xe4   : > { %1790 = vmatprep.subr.bf16.mxu0 %v1896_v1  ;;  %1810 = vmatprep.subr.bf16.mxu1 %v1896_v1 }
  0xe6   : > { %1767 = vmatmul.mubr.bf16.vlgmr.msra.gmra.mrb[24].mxu0 %v2001_v20  ;;  %1787 = vmatmul.mubr.bf16.vlgmr.msra.gmra.mrb[24].mxu1 %v2038_v31 }
  0xe7   : > { %1791 = vmatpush3.bf16.msra.mxu0 %v1872_v50  ;;  %1811 = vmatpush3.bf16.msra.mxu1 %v1872_v50 }
  0xe8   : > { %1792 = vmatprep.subr.bf16.mxu0 %v1896_v1  ;;  %1812 = vmatprep.subr.bf16.mxu1 %v1896_v1 }
  0xe9   : > { %1806 = vmatprep.mubr.msk.bf16.mxu0 %vm1897_vm0, %v1896_v1  ;;  %1826 = vmatprep.mubr.msk.bf16.mxu1 %vm1897_vm0, %v1896_v1 }
  0xeb   : > { %1793 = vmatpush3.bf16.msra.mxu0 %v1873_v51  ;;  %1813 = vmatpush3.bf16.msra.mxu1 %v1873_v51 }
  0xec   : > { %1794 = vmatprep.subr.bf16.mxu0 %v1896_v1  ;;  %1814 = vmatprep.subr.bf16.mxu1 %v1896_v1 }
  0xef   : > { %1795 = vmatpush3.bf16.msra.mxu0 %v1874_v52  ;;  %1815 = vmatpush3.bf16.msra.mxu1 %v1874_v52 }
  0xf0   : > { %1796 = vmatprep.subr.bf16.mxu0 %v1896_v1  ;;  %1816 = vmatprep.subr.bf16.mxu1 %v1896_v1 }
  0xf3   : > { %1797 = vmatpush3.bf16.msra.mxu0 %v1875_v53  ;;  %1817 = vmatpush3.bf16.msra.mxu1 %v1875_v53 }
  0xf4   : > { %1798 = vmatprep.subr.bf16.mxu0 %v1896_v1  ;;  %1818 = vmatprep.subr.bf16.mxu1 %v1896_v1 }
  0xf7   : > { %1799 = vmatpush3.bf16.msra.mxu0 %v1876_v54  ;;  %1819 = vmatpush3.bf16.msra.mxu1 %v1876_v54 }
  0xf8   : > { %1800 = vmatprep.subr.bf16.mxu0 %v1896_v1  ;;  %1820 = vmatprep.subr.bf16.mxu1 %v1896_v1 }
  0xf9   : > { %v326_v59 = vpop.f32.mrb[0].mxu0  ;;  %v377_v60 = vpop.f32.mrb[0].mxu1 }
  0xfa   : > { %v1528_v62 = vpop.f32.mrb[1].mxu0  ;;  %v1548_v63 = vpop.f32.mrb[1].mxu1 }
  0xfb   : > { %v329_v0 = vpop.f32.mrb[2].mxu0  ;;  %v380_v2 = vpop.f32.mrb[2].mxu1  ;;  %1801 = vmatpush3.bf16.msra.mxu0 %v1877_v55  ;;  %1821 = vmatpush3.bf16.msra.mxu1 %v1877_v55 }
  0xfc   : > { %v1529_v3 = vpop.f32.mrb[3].mxu0  ;;  %v1549_v4 = vpop.f32.mrb[3].mxu1  ;;  %1802 = vmatprep.subr.bf16.mxu0 %v1896_v1  ;;  %1822 = vmatprep.subr.bf16.mxu1 %v1896_v1 }
  0xff   : > { %1803 = vmatpush3.bf16.msra.mxu0 %v1878_v56  ;;  %1823 = vmatpush3.bf16.msra.mxu1 %v1878_v56  ;;  %v1363_v56 = vld [vmem:[%s2280_s2] ss:$0 sm:$0xff] }
 0x100   : > { %1804 = vmatprep.subr.bf16.mxu0 %v1896_v1  ;;  %1824 = vmatprep.subr.bf16.mxu1 %v1896_v1 }
 0x103   : > { %1805 = vmatpush3.bf16.msra.mxu0 %v1879_v57  ;;  %1825 = vmatpush3.bf16.msra.mxu1 %v1879_v57 }
 0x106   : > { %1807 = vmatmul.mubr.bf16.vlgmr.msra.gmra.mrb[28].mxu0 %v2040_v32  ;;  %1827 = vmatmul.mubr.bf16.vlgmr.msra.gmra.mrb[28].mxu1 %v1116_v7 }
 0x119   : > { %v428_v8 = vpop.f32.mrb[4].mxu0  ;;  %v479_v9 = vpop.f32.mrb[4].mxu1 }
 0x11a   : > { %v1568_v10 = vpop.f32.mrb[5].mxu0  ;;  %v1588_v11 = vpop.f32.mrb[5].mxu1 }
 0x11b   : > { %v431_v12 = vpop.f32.mrb[6].mxu0  ;;  %v482_v13 = vpop.f32.mrb[6].mxu1 }
 0x11c   : > { %v1569_v14 = vpop.f32.mrb[7].mxu0  ;;  %v1589_v15 = vpop.f32.mrb[7].mxu1 }
 0x139   : > { %v567_v16 = vpop.f32.mrb[8].mxu0  ;;  %v607_v17 = vpop.f32.mrb[8].mxu1 }
 0x13a   : > { %v568_v18 = vadd.f32 %v567_v16, %v326_v59  ;;  %v608_v19 = vadd.f32 %v607_v17, %v377_v60  ;;  %v1608_v20 = vpop.f32.mrb[9].mxu0  ;;  %v1628_v1 = vpop.f32.mrb[9].mxu1 }
 0x13b   : > { %v570_v21 = vpop.f32.mrb[10].mxu0  ;;  %v610_v22 = vpop.f32.mrb[10].mxu1 }
 0x13c   : > { %v1609_v23 = vpop.f32.mrb[11].mxu0  ;;  %v1629_v24 = vpop.f32.mrb[11].mxu1 }
 0x159   : > { %v647_v25 = vpop.f32.mrb[12].mxu0  ;;  %v687_v26 = vpop.f32.mrb[12].mxu1 }
 0x15a   : > { %v648_v27 = vadd.f32 %v647_v25, %v428_v8  ;;  %v688_v28 = vadd.f32 %v687_v26, %v479_v9  ;;  %v1648_v29 = vpop.f32.mrb[13].mxu0  ;;  %v1668_v30 = vpop.f32.mrb[13].mxu1 }
 0x15b   : > { %v650_v31 = vpop.f32.mrb[14].mxu0  ;;  %v690_v32 = vpop.f32.mrb[14].mxu1 }
 0x15c   : > { %v1649_v33 = vpop.f32.mrb[15].mxu0  ;;  %v1669_v34 = vpop.f32.mrb[15].mxu1 }
 0x179   : > { %v792_v35 = vpop.f32.mrb[16].mxu0  ;;  %v832_v36 = vpop.f32.mrb[16].mxu1 }
 0x17a   : > { %v918_v37 = vadd.f32 %v792_v35, %v568_v18  ;;  %v919_v38 = vadd.f32 %v832_v36, %v608_v19  ;;  %v1688_v39 = vpop.f32.mrb[17].mxu0  ;;  %v1708_v40 = vpop.f32.mrb[17].mxu1 }
 0x17b   : > { %v795_v41 = vpop.f32.mrb[18].mxu0  ;;  %v835_v42 = vpop.f32.mrb[18].mxu1 }
 0x17c   : > { %v1689_v43 = vpop.f32.mrb[19].mxu0  ;;  %v1709_v44 = vpop.f32.mrb[19].mxu1 }
 0x199   : > { %v872_v45 = vpop.f32.mrb[20].mxu0  ;;  %v912_v46 = vpop.f32.mrb[20].mxu1 }
 0x19a   : > { %v920_v47 = vadd.f32 %v872_v45, %v648_v27  ;;  %v921_v48 = vadd.f32 %v912_v46, %v688_v28  ;;  %v1728_v49 = vpop.f32.mrb[21].mxu0  ;;  %v1748_v50 = vpop.f32.mrb[21].mxu1  ;;  %v1187_v27 = vld [vmem:[%s2281_s3 + $0x8] sm:$0xf]  ;;  %v1188_v28 = vld [vmem:[%s2281_s3 + $0xc] sm:$0xf] }
 0x19b   : > { %v875_v51 = vpop.f32.mrb[22].mxu0  ;;  %v915_v52 = vpop.f32.mrb[22].mxu1 }
 0x19c   : > { %v1729_v53 = vpop.f32.mrb[23].mxu0  ;;  %v1749_v54 = vpop.f32.mrb[23].mxu1 }
 0x1b9   : > { %v1021_v55 = vpop.f32.mrb[24].mxu0  ;;  %v1061_v57 = vpop.f32.mrb[24].mxu1 }
 0x1ba   : > { %v1158_v58 = vadd.f32 %v1021_v55, %v918_v37  ;;  %v1159_v59 = vadd.f32 %v1061_v57, %v919_v38  ;;  %v1768_v60 = vpop.f32.mrb[25].mxu0  ;;  %v1788_v61 = vpop.f32.mrb[25].mxu1 }
 0x1bb   : > { %v1024_v62 = vpop.f32.mrb[26].mxu0  ;;  %v1064_v63 = vpop.f32.mrb[26].mxu1 }
 0x1bc   : > { %v1169_v0 = vadd.f32 %v1363_v56, %v1158_v58  ;;  %v1170_v2 = vadd.f32 %v1363_v56, %v1159_v59  ;;  %v1769_v3 = vpop.f32.mrb[27].mxu0  ;;  %v1789_v4 = vpop.f32.mrb[27].mxu1 }
 0x1be   : > { %vm1173_vm1 = vcmp.ge.f32.partialorder %v1169_v0, 0.0  ;;  %v1177_v7 = vmul.f32 0.2, %v1169_v0  ;;  %vm1174_vm2 = vcmp.ge.f32.partialorder %v1170_v2, 0.0  ;;  %v1178_v8 = vmul.f32 0.2, %v1170_v2 }
 0x1c0   : > { %v1181_v9 = vsel %vm1173_vm1, %v1169_v0, %v1177_v7  ;;  %v1182_v10 = vsel %vm1174_vm2, %v1170_v2, %v1178_v8 }
 0x1c1   : > { %v1189_v11 = vmul.f32 %v1185_v5, %v1181_v9  ;;  %v1190_v12 = vmul.f32 %v1186_v6, %v1182_v10 }
 0x1c3   : > { %v1194_v13 = vsel %vm1193_vm3, %v1189_v11, 0.0  ;;  %v1195_v14 = vsel %vm1193_vm3, %v1190_v12, 0.0 }
 0x1c4   : > { %v1196_v15 = vadd.f32 %v1195_v14, %v1194_v13 }
 0x1d9   : > { %v1101_v16 = vpop.f32.mrb[28].mxu0  ;;  %v1152_v17 = vpop.f32.mrb[28].mxu1 }
 0x1da   : > { %v1160_v18 = vadd.f32 %v1101_v16, %v920_v47  ;;  %v1161_v19 = vadd.f32 %v1152_v17, %v921_v48  ;;  %v1808_v20 = vpop.f32.mrb[29].mxu0  ;;  %v1828_v1 = vpop.f32.mrb[29].mxu1 }
 0x1db   : > { %v1104_v21 = vpop.f32.mrb[30].mxu0  ;;  %v1155_v22 = vpop.f32.mrb[30].mxu1 }
 0x1dc   : > { %v1171_v23 = vadd.f32 %v1363_v56, %v1160_v18  ;;  %v1172_v24 = vadd.f32 %v1363_v56, %v1161_v19  ;;  %v1809_v25 = vpop.f32.mrb[31].mxu0  ;;  %v1829_v26 = vpop.f32.mrb[31].mxu1 }
 0x1de   : > { %vm1175_vm4 = vcmp.ge.f32.partialorder %v1171_v23, 0.0  ;;  %v1179_v29 = vmul.f32 0.2, %v1171_v23  ;;  %v1180_v30 = vmul.f32 0.2, %v1172_v24  ;;  %vm1176_vm5 = vcmp.ge.f32.partialorder %v1172_v24, 0.0 }
 0x1e0   : > { %v1183_v31 = vsel %vm1175_vm4, %v1171_v23, %v1179_v29  ;;  %v1184_v32 = vsel %vm1176_vm5, %v1172_v24, %v1180_v30 }
 0x1e1   : > { %v1191_v33 = vmul.f32 %v1187_v27, %v1183_v31  ;;  %v1192_v34 = vmul.f32 %v1188_v28, %v1184_v32 }
 0x1e3   : > { %v1197_v35 = vsel %vm1193_vm3, %v1191_v33, 0.0  ;;  %v1199_v37 = vsel %vm1193_vm3, %v1192_v34, 0.0 }
 0x1e4   : > { %v1198_v36 = vadd.f32 %v1197_v35, %v1196_v15 }
 0x1e6   : > { %v1200_v38 = vadd.f32 %v1199_v37, %v1198_v36 }
 0x1e8   : > { %1201 = vadd.xlane.f32.xlu0 %v1200_v38 }
 0x275   : > { %v1202_v39 = vpop.xlane.xlu0 %1201 }
 0x276   : > { %v1203_v40 = vrot.slane %v1202_v39, 4 }
 0x278   : > { %v1204_v41 = vadd.f32 %v1203_v40, %v1202_v39 }
 0x27a   : > { %v1205_v42 = vrot.slane %v1204_v41, 2 }
 0x27c   : > { %v1206_v43 = vadd.f32 %v1205_v42, %v1204_v41 }
 0x27e   : > { %v1207_v44 = vrot.slane %v1206_v43, 1 }
 0x280   : > { %v1208_v45 = vadd.f32 %v1207_v44, %v1206_v43 }
 0x282   : > { %1831 = vpush %v1208_v45 }
 0x2b3   : > { %s1832_s24 = spop %1831 }
 0x2b4   : > { %v1210_v46 = vstv %s1832_s24 }
 0x2b5   : > { %v1212_v47 = vsub.f32 0.0, %v1210_v46  ;;  %v1218_v48 = vmul.f32 1.442695, %v1210_v46  ;;  %vm1211_vm6 = vcmp.ge.f32.partialorder %v1210_v46, 0.0 }
 0x2b7   : > { %v1213_v49 = vmul.f32 1.442695, %v1212_v47  ;;  %1880 = vpow2.f32 %v1218_v48 }
 0x2b9   : > { %1882 = vpow2.f32 %v1213_v49 }
 0x2c1   : > { %v1881_v50 = vpop.eup %1880 }
 0x2c2   : > { %v1220_v51 = vadd.f32 1.0, %v1881_v50 }
 0x2c3   : > { %v1883_v52 = vpop.eup %1882 }
 0x2c4   : > { %v1215_v53 = vadd.f32 1.0, %v1883_v52  ;;  %1884 = vrcp.f32 %v1220_v51 }
 0x2c6   : > { %1886 = vrcp.f32 %v1215_v53 }
 0x2ce   : > { %v1885_v54 = vpop.eup %1884 }
 0x2cf   : > { %v1222_v55 = vmul.f32 %v1885_v54, %v1881_v50 }
 0x2d0   : > { %v1887_v56 = vpop.eup %1886 }
 0x2d1   : > { %v1223_v57 = vsel %vm1211_vm6, %v1887_v56, %v1222_v55 }
 0x2d2   : > { %1224 = vst [vmem:[%s193_s26] sm:$0x1] %v1223_v57 }
 0x2d3 PF: > { %s14_s15 = sadd.s32 1, %s1894_s15  }
 0x2d4   : > { %p11_p4 = scmp.ge.s32.totalorder %s14_s15, 4  }
 0x2d6   :  { %13 = sbr.rel (!%p11_p4) target bundleno = 1 (0x1), region = 69 }

</bundles_post_ra>
